<compile_context>
chip_gen: v7x
topology: tpu7x:2x2x1
jax: 0.10.0
libtpu: 0.0.40
codegen_flags: <defaults>
</compile_context>

<pallas_src>
import functools

import jax
import jax.numpy as jnp
from jax.experimental import pallas as pl
from jax.experimental.pallas import tpu as pltpu


# ----------------------------------------------------------------------------
# Pallas kernel
# ----------------------------------------------------------------------------
def _cell_kernel(
    xh_ref,    # (Nb, H, W, Cin)        input_tensor_for_h block
    h_ref,     # (Nb, H, W, Ch)         h_cur block
    x_ref,     # (Nb, H, W, 1)          input_tensor_for_x block
    t_ref,     # (Nb, H, W, 1)          time_tensor block
    c_ref,     # (Nb, HW, Ch)           c_cur block (spatially flattened)
    w_ref,     # (kH*kW*Ct, Cout_pad)   fused conv weight (all 7 convs)
    b_ref,     # (1, Cout_pad)          fused bias
    out_ref,   # (Nb, HW, 2*Ch)         fused [h_m | c_m] output
    xpad_ref,  # VMEM (H+2pH, W+2pW, Ct)   padded fused-input scratch
    col_ref,   # VMEM (Nb*HW, kH*kW*Ct)    im2col scratch
    *,
    H, W, kH, kW, Cin, Ch, Nb,
):
    pH, pW = kH // 2, kW // 2
    Ct = Cin + Ch + 2
    HW = H * W
    rows = Nb * HW

    # Border must be zero every grid step (scratch persists across steps and
    # under "parallel" semantics each core has its own copy).  49 KB: cheap.
    xpad_ref[...] = jnp.zeros(xpad_ref.shape, xpad_ref.dtype)

    for img in range(Nb):
        # Assemble zero-padded fused input plane [x_h | h_cur | x | t] in VMEM.
        xpad_ref[pH:pH + H, pW:pW + W, 0:Cin] = xh_ref[img]
        xpad_ref[pH:pH + H, pW:pW + W, Cin:Cin + Ch] = h_ref[img]
        xpad_ref[pH:pH + H, pW:pW + W, Cin + Ch:Cin + Ch + 1] = x_ref[img]
        xpad_ref[pH:pH + H, pW:pW + W, Cin + Ch + 1:Ct] = t_ref[img]

        # im2col: each tap's shifted window fills Ct columns of this image's rows.
        for kh in range(kH):
            for kw in range(kW):
                tap = kh * kW + kw
                patch = xpad_ref[kh:kh + H, kw:kw + W, :].reshape(HW, Ct)
                col_ref[img * HW:(img + 1) * HW,
                        tap * Ct:(tap + 1) * Ct] = patch

    # One fused MXU matmul for all 7 convolutions of all Nb images.
    z = jnp.dot(col_ref[...], w_ref[...], preferred_element_type=jnp.float32)
    z = z + b_ref[...]

    # Cout column blocks: [T1x | T2x | i | o | T1t | T2t | c | pad], each Ch.
    xb = z[:, 0:2 * Ch]                             # T1_x, T2_x pre-activations
    io = jax.nn.sigmoid(z[:, 2 * Ch:4 * Ch])        # 64-wide sigmoid: i | o
    i_m = io[:, 0:Ch]
    o_m = io[:, Ch:2 * Ch]
    th = jnp.tanh(z[:, 4 * Ch:])                    # lane-full tanh: T1t|T2t|c|pad
    t12 = jax.nn.sigmoid(th[:, 0:2 * Ch] + xb)      # 64-wide: T1 | T2
    t1_m = t12[:, 0:Ch]
    t2_m = t12[:, Ch:2 * Ch]
    c_tanh = th[:, 2 * Ch:3 * Ch]

    # LSTM state update (same algebra as the PyTorch module).
    c_cur = c_ref[...].reshape(rows, Ch)
    it1 = i_m * t1_m
    c_m_tilde = (1.0 - it1) * c_cur + it1 * c_tanh
    c_m = (1.0 - i_m) * c_cur + i_m * t2_m * c_tanh
    h_m = o_m * jnp.tanh(c_m_tilde)

    # Fused [h | c] store: one output stream, 2x lane fill vs separate 32-wide.
    # TODO(synk): for large problems emit a fully 128-lane-dense slab
    # ((rows/2, 128) relayout) and reshape in the wrapper.
    hc = jnp.concatenate([h_m, c_m], axis=-1)       # (rows, 2*Ch)
    out_ref[...] = hc.reshape(Nb, HW, 2 * Ch).astype(out_ref.dtype)


# ----------------------------------------------------------------------------
# Call-invariant weight fusion (hoist out of any per-step loop / scan)
# ----------------------------------------------------------------------------
def prepare_fused_params(params, input_dim, hidden_dim, kernel_size):
    """Fuse all 7 conv weights/biases into one (K, Cout_pad) matmul weight.

    Fused input channels (Ct = Cin + Ch + 2): [x_h | h_cur | x | t].
    Fused output blocks (Ch each): [T1x | T2x | i | o | T1t | T2t | c | pad].
    """
    kH, kW = kernel_size
    Cin, Ch = input_dim, hidden_dim
    Ct = Cin + Ch + 2
    x_row = Cin + Ch
    t_row = Cin + Ch + 1
    cout = 7 * Ch
    cout_pad = cout + (-cout) % 128     # pad to a 128-lane multiple

    w = jnp.zeros((kH, kW, Ct, cout_pad), jnp.float32)
    w = w.at[:, :, x_row, 0:Ch].set(params["w_t1x"][:, :, 0, :])
    w = w.at[:, :, x_row, Ch:2 * Ch].set(params["w_t2x"][:, :, 0, :])
    w = w.at[:, :, 0:Cin + Ch, 2 * Ch:3 * Ch].set(params["w_i"])
    w = w.at[:, :, 0:Cin + Ch, 3 * Ch:4 * Ch].set(params["w_o"][:, :, 0:Cin + Ch, :])
    w = w.at[:, :, t_row, 3 * Ch:4 * Ch].set(params["w_o"][:, :, Cin + Ch, :])
    w = w.at[:, :, t_row, 4 * Ch:5 * Ch].set(
        jnp.minimum(params["w_t1t"], 0.0)[:, :, 0, :])   # T1_conv_t clamp(max=0)
    w = w.at[:, :, t_row, 5 * Ch:6 * Ch].set(params["w_t2t"][:, :, 0, :])
    w = w.at[:, :, 0:Cin + Ch, 6 * Ch:7 * Ch].set(params["w_c"])
    w2d = w.reshape(kH * kW * Ct, cout_pad)

    b = jnp.concatenate([
        params["b_t1x"], params["b_t2x"], params["b_i"], params["b_o"],
        params["b_t1t"], params["b_t2t"], params["b_c"],
        jnp.zeros((cout_pad - cout,), jnp.float32),
    ])[None, :]
    return w2d, b


def _choose_images_per_block(N, HW, max_rows=1024):
    """Images per grid step: big enough to amortize ~0.35us step overhead,
    small enough to stay well inside scoped VMEM, and keep >=2 grid steps when
    N >= 2 so both v7x TensorCores are fed."""
    cap = max(1, max_rows // HW)
    divisors = [d for d in range(1, N + 1) if N % d == 0 and d <= cap]
    multi = [d for d in divisors if N // d >= 2]
    return max(multi) if multi else max(divisors)


# ----------------------------------------------------------------------------
# Wrapper
# ----------------------------------------------------------------------------
def convtime_lstm2_unet_cell(x_h, x, t, h_cur, c_cur, fused_w, fused_b,
                             kernel_size, images_per_block=None):
    """Forward pass of ConvTime_LSTM2_UnetCell (NHWC activations).

    x_h: (N,H,W,Cin), x: (N,H,W,1), t: (N,H,W,1), h_cur/c_cur: (N,H,W,Ch).
    fused_w/fused_b come from prepare_fused_params (hoist out of scans).
    Returns (h_m, c_m), each (N,H,W,Ch).
    """
    N, H, W, Cin = x_h.shape
    Ch = h_cur.shape[-1]
    kH, kW = kernel_size
    pH, pW = kH // 2, kW // 2
    HW = H * W
    Ct = Cin + Ch + 2
    K = kH * kW * Ct
    cout_pad = fused_w.shape[-1]
    assert fused_w.shape == (K, cout_pad)

    Nb = images_per_block or _choose_images_per_block(N, HW)
    assert N % Nb == 0
    nblk = N // Nb

    c_flat = c_cur.reshape(N, HW, Ch)     # metadata-only reshape

    def blk4(arr):
        shape = (Nb,) + arr.shape[1:]
        return pl.BlockSpec(shape, lambda n: (n, 0, 0, 0))

    in_specs = [
        blk4(x_h), blk4(h_cur), blk4(x), blk4(t),
        pl.BlockSpec((Nb, HW, Ch), lambda n: (n, 0, 0)),
        pl.BlockSpec((K, cout_pad), lambda n: (0, 0)),       # weights: constant
        pl.BlockSpec((1, cout_pad), lambda n: (0, 0)),       # block -> DMA'd once
    ]
    out_specs = pl.BlockSpec((Nb, HW, 2 * Ch), lambda n: (n, 0, 0))
    out_shape = jax.ShapeDtypeStruct((N, HW, 2 * Ch), jnp.float32)

    kernel = functools.partial(
        _cell_kernel, H=H, W=W, kH=kH, kW=kW, Cin=Cin, Ch=Ch, Nb=Nb)

    # TODO(synk): when N == 1 on v7x, add a second "parallel" grid axis over H
    # tiles with a pH-row halo (sized against 64 MiB physical VMEM) so both
    # TensorCores are fed; skip it on single-TC v5e/v6e.
    hc = pl.pallas_call(
        kernel,
        out_shape=out_shape,
        grid=(nblk,),
        in_specs=in_specs,
        out_specs=out_specs,
        scratch_shapes=[
            pltpu.VMEM((H + 2 * pH, W + 2 * pW, Ct), jnp.float32),
            pltpu.VMEM((Nb * HW, K), jnp.float32),
        ],
        compiler_params=pltpu.CompilerParams(
            dimension_semantics=("parallel",),
        ),
    )(x_h, h_cur, x, t, c_flat, fused_w, fused_b)

    h_m = hc[:, :, 0:Ch].reshape(N, H, W, Ch)
    c_m = hc[:, :, Ch:2 * Ch].reshape(N, H, W, Ch)
    return h_m, c_m


# ----------------------------------------------------------------------------
# Pure-JAX reference (for correctness checking)
# ----------------------------------------------------------------------------
def _conv_ref(a, w, b):
    y = jax.lax.conv_general_dilated(
        a, w, window_strides=(1, 1), padding="SAME",
        dimension_numbers=("NHWC", "HWIO", "NHWC"),
        precision=jax.lax.Precision.HIGHEST,
    )
    return y + b[None, None, None, :]


def reference_forward(x_h, x, t, h_cur, c_cur, params):
    xh = jnp.concatenate([x_h, h_cur], axis=-1)
    xht = jnp.concatenate([x_h, h_cur, t], axis=-1)
    i_m = jax.nn.sigmoid(_conv_ref(xh, params["w_i"], params["b_i"]))
    t1_x = _conv_ref(x, params["w_t1x"], params["b_t1x"])
    t1_t = jnp.tanh(
        _conv_ref(t, jnp.minimum(params["w_t1t"], 0.0), params["b_t1t"]))
    t1_m = jax.nn.sigmoid(t1_t + t1_x)
    t2_x = _conv_ref(x, params["w_t2x"], params["b_t2x"])
    t2_t = jnp.tanh(_conv_ref(t, params["w_t2t"], params["b_t2t"]))
    t2_m = jax.nn.sigmoid(t2_t + t2_x)
    c_tanh = jnp.tanh(_conv_ref(xh, params["w_c"], params["b_c"]))
    c_m_tilde = (1.0 - i_m * t1_m) * c_cur + i_m * t1_m * c_tanh
    c_m = (1.0 - i_m) * c_cur + i_m * t2_m * c_tanh
    o_m = jax.nn.sigmoid(_conv_ref(xht, params["w_o"], params["b_o"]))
    h_m = o_m * jnp.tanh(c_m_tilde)
    return h_m, c_m


# ----------------------------------------------------------------------------
# Main
# ----------------------------------------------------------------------------
if __name__ == "__main__":
    N = 2
    input_dim = 4
    hidden_dim = 32
    H = W = 16
    kH = kW = 3

    key = jax.random.PRNGKey(0)
    ks = jax.random.split(key, 20)

    def winit(k, shape, scale=0.1):
        return scale * jax.random.normal(k, shape, dtype=jnp.float32)

    params = {
        "w_i":   winit(ks[0], (kH, kW, input_dim + hidden_dim, hidden_dim)),
        "w_c":   winit(ks[1], (kH, kW, input_dim + hidden_dim, hidden_dim)),
        "w_o":   winit(ks[2], (kH, kW, input_dim + hidden_dim + 1, hidden_dim)),
        "w_t1x": winit(ks[3], (kH, kW, 1, hidden_dim)),
        "w_t1t": winit(ks[4], (kH, kW, 1, hidden_dim)),
        "w_t2x": winit(ks[5], (kH, kW, 1, hidden_dim)),
        "w_t2t": winit(ks[6], (kH, kW, 1, hidden_dim)),
        "b_i":   winit(ks[7], (hidden_dim,)),
        "b_c":   winit(ks[8], (hidden_dim,)),
        "b_o":   winit(ks[9], (hidden_dim,)),
        "b_t1x": winit(ks[10], (hidden_dim,)),
        "b_t1t": winit(ks[11], (hidden_dim,)),
        "b_t2x": winit(ks[12], (hidden_dim,)),
        "b_t2t": winit(ks[13], (hidden_dim,)),
    }

    x_h = jax.random.normal(ks[14], (N, H, W, input_dim), dtype=jnp.float32)
    x = jax.random.normal(ks[15], (N, H, W, 1), dtype=jnp.float32)
    t = jax.random.uniform(ks[16], (N, H, W, 1), dtype=jnp.float32)
    h_cur = jax.random.normal(ks[17], (N, H, W, hidden_dim), dtype=jnp.float32)
    c_cur = jax.random.normal(ks[18], (N, H, W, hidden_dim), dtype=jnp.float32)

    # Hoisted, call-invariant weight fusion (would run once outside a scan).
    fused_w, fused_b = prepare_fused_params(
        params, input_dim, hidden_dim, (kH, kW))
    fused_w = jax.block_until_ready(fused_w)

    h_m, c_m = convtime_lstm2_unet_cell(
        x_h, x, t, h_cur, c_cur, fused_w, fused_b, (kH, kW))
    h_m = jax.block_until_ready(h_m)
    c_m = jax.block_until_ready(c_m)

    h_ref, c_ref = reference_forward(x_h, x, t, h_cur, c_cur, params)

    assert h_m.shape == (N, H, W, hidden_dim)
    assert c_m.shape == (N, H, W, hidden_dim)
    assert jnp.allclose(h_m, h_ref, rtol=1e-3, atol=2e-3), "h mismatch"
    assert jnp.allclose(c_m, c_ref, rtol=1e-3, atol=2e-3), "c mismatch"

    print("KERNEL_OK")
</pallas_src>

<mosaic_0001>
module attributes {stable_mosaic.version = 11 : i64} {
  func.func @_cell_kernel(%arg0: i32, %arg1: memref<1x16x16x4xf32, #tpu.memory_space<vmem>>, %arg2: memref<1x16x16x32xf32, #tpu.memory_space<vmem>>, %arg3: memref<1x16x16x1xf32, #tpu.memory_space<vmem>>, %arg4: memref<1x16x16x1xf32, #tpu.memory_space<vmem>>, %arg5: memref<1x256x32xf32, #tpu.memory_space<vmem>>, %arg6: memref<342x256xf32, #tpu.memory_space<vmem>>, %arg7: memref<1x256xf32, #tpu.memory_space<vmem>>, %arg8: memref<1x256x64xf32, #tpu.memory_space<vmem>>, %arg9: memref<18x18x38xf32, #tpu.memory_space<vmem>>, %arg10: memref<256x342xf32, #tpu.memory_space<vmem>>) attributes {dimension_semantics = [#tpu.dimension_semantics<parallel>], iteration_bounds = array<i64: 2>, scalar_prefetch = 0 : i64, scratch_operands = 2 : i64, tpu.core_type = #tpu.core_type<tc>, window_params = [{transform_indices = @transform_0, window_bounds = array<i64: 1, 16, 16, 4>}, {transform_indices = @transform_1, window_bounds = array<i64: 1, 16, 16, 32>}, {transform_indices = @transform_2, window_bounds = array<i64: 1, 16, 16, 1>}, {transform_indices = @transform_3, window_bounds = array<i64: 1, 16, 16, 1>}, {transform_indices = @transform_4, window_bounds = array<i64: 1, 256, 32>}, {pipeline_mode = #tpu.pipeline_mode<synchronous>, transform_indices = @transform_5, window_bounds = array<i64: 342, 256>}, {pipeline_mode = #tpu.pipeline_mode<synchronous>, transform_indices = @transform_6, window_bounds = array<i64: 1, 256>}, {transform_indices = @transform_7, window_bounds = array<i64: 1, 256, 64>}]} {
    %cst = arith.constant 0.000000e+00 : f32
    %0 = vector.broadcast %cst : f32 to vector<18x18x38xf32>
    %c0 = arith.constant 0 : index
    %c0_0 = arith.constant 0 : index
    %c0_1 = arith.constant 0 : index
    %1 = vector.load %arg9[%c0, %c0_0, %c0_1] : memref<18x18x38xf32, #tpu.memory_space<vmem>>, vector<18x18x38xf32>
    tpu.vector_store %arg9[%c0, %c0_0, %c0_1], %0 {strides = array<i32>} : memref<18x18x38xf32, #tpu.memory_space<vmem>>, vector<18x18x38xf32>,
    %c0_2 = arith.constant 0 : index
    %c0_3 = arith.constant 0 : index
    %c0_4 = arith.constant 0 : index
    %c0_5 = arith.constant 0 : index
    %2 = vector.load %arg1[%c0_2, %c0_3, %c0_4, %c0_5] : memref<1x16x16x4xf32, #tpu.memory_space<vmem>>, vector<1x16x16x4xf32>
    %3 = vector.shape_cast %2 : vector<1x16x16x4xf32> to vector<16x16x4xf32>
    %c1 = arith.constant 1 : index
    %c1_6 = arith.constant 1 : index
    %c0_7 = arith.constant 0 : index
    %4 = vector.load %arg9[%c1, %c1_6, %c0_7] : memref<18x18x38xf32, #tpu.memory_space<vmem>>, vector<16x16x4xf32>
    tpu.vector_store %arg9[%c1, %c1_6, %c0_7], %3 {strides = array<i32>} : memref<18x18x38xf32, #tpu.memory_space<vmem>>, vector<16x16x4xf32>,
    %c0_8 = arith.constant 0 : index
    %c0_9 = arith.constant 0 : index
    %c0_10 = arith.constant 0 : index
    %c0_11 = arith.constant 0 : index
    %5 = vector.load %arg2[%c0_8, %c0_9, %c0_10, %c0_11] : memref<1x16x16x32xf32, #tpu.memory_space<vmem>>, vector<1x16x16x32xf32>
    %6 = vector.shape_cast %5 : vector<1x16x16x32xf32> to vector<16x16x32xf32>
    %c1_12 = arith.constant 1 : index
    %c1_13 = arith.constant 1 : index
    %c4 = arith.constant 4 : index
    %7 = vector.load %arg9[%c1_12, %c1_13, %c4] : memref<18x18x38xf32, #tpu.memory_space<vmem>>, vector<16x16x32xf32>
    tpu.vector_store %arg9[%c1_12, %c1_13, %c4], %6 {strides = array<i32>} : memref<18x18x38xf32, #tpu.memory_space<vmem>>, vector<16x16x32xf32>,
    %c0_14 = arith.constant 0 : index
    %c0_15 = arith.constant 0 : index
    %c0_16 = arith.constant 0 : index
    %c0_17 = arith.constant 0 : index
    %8 = vector.load %arg3[%c0_14, %c0_15, %c0_16, %c0_17] : memref<1x16x16x1xf32, #tpu.memory_space<vmem>>, vector<1x16x16x1xf32>
    %9 = vector.shape_cast %8 : vector<1x16x16x1xf32> to vector<16x16x1xf32>
    %c1_18 = arith.constant 1 : index
    %c1_19 = arith.constant 1 : index
    %c36 = arith.constant 36 : index
    %10 = vector.load %arg9[%c1_18, %c1_19, %c36] : memref<18x18x38xf32, #tpu.memory_space<vmem>>, vector<16x16x1xf32>
    tpu.vector_store %arg9[%c1_18, %c1_19, %c36], %9 {strides = array<i32>} : memref<18x18x38xf32, #tpu.memory_space<vmem>>, vector<16x16x1xf32>,
    %c0_20 = arith.constant 0 : index
    %c0_21 = arith.constant 0 : index
    %c0_22 = arith.constant 0 : index
    %c0_23 = arith.constant 0 : index
    %11 = vector.load %arg4[%c0_20, %c0_21, %c0_22, %c0_23] : memref<1x16x16x1xf32, #tpu.memory_space<vmem>>, vector<1x16x16x1xf32>
    %12 = vector.shape_cast %11 : vector<1x16x16x1xf32> to vector<16x16x1xf32>
    %c1_24 = arith.constant 1 : index
    %c1_25 = arith.constant 1 : index
    %c37 = arith.constant 37 : index
    %13 = vector.load %arg9[%c1_24, %c1_25, %c37] : memref<18x18x38xf32, #tpu.memory_space<vmem>>, vector<16x16x1xf32>
    tpu.vector_store %arg9[%c1_24, %c1_25, %c37], %12 {strides = array<i32>} : memref<18x18x38xf32, #tpu.memory_space<vmem>>, vector<16x16x1xf32>,
    %c0_26 = arith.constant 0 : index
    %c0_27 = arith.constant 0 : index
    %c0_28 = arith.constant 0 : index
    %14 = vector.load %arg9[%c0_26, %c0_27, %c0_28] : memref<18x18x38xf32, #tpu.memory_space<vmem>>, vector<16x16x38xf32>
    %15 = vector.shape_cast %14 : vector<16x16x38xf32> to vector<256x38xf32>
    %c0_29 = arith.constant 0 : index
    %c0_30 = arith.constant 0 : index
    %16 = vector.load %arg10[%c0_29, %c0_30] : memref<256x342xf32, #tpu.memory_space<vmem>>, vector<256x38xf32>
    tpu.vector_store %arg10[%c0_29, %c0_30], %15 {strides = array<i32>} : memref<256x342xf32, #tpu.memory_space<vmem>>, vector<256x38xf32>,
    %c0_31 = arith.constant 0 : index
    %c1_32 = arith.constant 1 : index
    %c0_33 = arith.constant 0 : index
    %17 = vector.load %arg9[%c0_31, %c1_32, %c0_33] : memref<18x18x38xf32, #tpu.memory_space<vmem>>, vector<16x16x38xf32>
    %18 = vector.shape_cast %17 : vector<16x16x38xf32> to vector<256x38xf32>
    %c0_34 = arith.constant 0 : index
    %c38 = arith.constant 38 : index
    %19 = vector.load %arg10[%c0_34, %c38] : memref<256x342xf32, #tpu.memory_space<vmem>>, vector<256x38xf32>
    tpu.vector_store %arg10[%c0_34, %c38], %18 {strides = array<i32>} : memref<256x342xf32, #tpu.memory_space<vmem>>, vector<256x38xf32>,
    %c0_35 = arith.constant 0 : index
    %c2 = arith.constant 2 : index
    %c0_36 = arith.constant 0 : index
    %20 = vector.load %arg9[%c0_35, %c2, %c0_36] : memref<18x18x38xf32, #tpu.memory_space<vmem>>, vector<16x16x38xf32>
    %21 = vector.shape_cast %20 : vector<16x16x38xf32> to vector<256x38xf32>
    %c0_37 = arith.constant 0 : index
    %c76 = arith.constant 76 : index
    %22 = vector.load %arg10[%c0_37, %c76] : memref<256x342xf32, #tpu.memory_space<vmem>>, vector<256x38xf32>
    tpu.vector_store %arg10[%c0_37, %c76], %21 {strides = array<i32>} : memref<256x342xf32, #tpu.memory_space<vmem>>, vector<256x38xf32>,
    %c1_38 = arith.constant 1 : index
    %c0_39 = arith.constant 0 : index
    %c0_40 = arith.constant 0 : index
    %23 = vector.load %arg9[%c1_38, %c0_39, %c0_40] : memref<18x18x38xf32, #tpu.memory_space<vmem>>, vector<16x16x38xf32>
    %24 = vector.shape_cast %23 : vector<16x16x38xf32> to vector<256x38xf32>
    %c0_41 = arith.constant 0 : index
    %c114 = arith.constant 114 : index
    %25 = vector.load %arg10[%c0_41, %c114] : memref<256x342xf32, #tpu.memory_space<vmem>>, vector<256x38xf32>
    tpu.vector_store %arg10[%c0_41, %c114], %24 {strides = array<i32>} : memref<256x342xf32, #tpu.memory_space<vmem>>, vector<256x38xf32>,
    %c1_42 = arith.constant 1 : index
    %c1_43 = arith.constant 1 : index
    %c0_44 = arith.constant 0 : index
    %26 = vector.load %arg9[%c1_42, %c1_43, %c0_44] : memref<18x18x38xf32, #tpu.memory_space<vmem>>, vector<16x16x38xf32>
    %27 = vector.shape_cast %26 : vector<16x16x38xf32> to vector<256x38xf32>
    %c0_45 = arith.constant 0 : index
    %c152 = arith.constant 152 : index
    %28 = vector.load %arg10[%c0_45, %c152] : memref<256x342xf32, #tpu.memory_space<vmem>>, vector<256x38xf32>
    tpu.vector_store %arg10[%c0_45, %c152], %27 {strides = array<i32>} : memref<256x342xf32, #tpu.memory_space<vmem>>, vector<256x38xf32>,
    %c1_46 = arith.constant 1 : index
    %c2_47 = arith.constant 2 : index
    %c0_48 = arith.constant 0 : index
    %29 = vector.load %arg9[%c1_46, %c2_47, %c0_48] : memref<18x18x38xf32, #tpu.memory_space<vmem>>, vector<16x16x38xf32>
    %30 = vector.shape_cast %29 : vector<16x16x38xf32> to vector<256x38xf32>
    %c0_49 = arith.constant 0 : index
    %c190 = arith.constant 190 : index
    %31 = vector.load %arg10[%c0_49, %c190] : memref<256x342xf32, #tpu.memory_space<vmem>>, vector<256x38xf32>
    tpu.vector_store %arg10[%c0_49, %c190], %30 {strides = array<i32>} : memref<256x342xf32, #tpu.memory_space<vmem>>, vector<256x38xf32>,
    %c2_50 = arith.constant 2 : index
    %c0_51 = arith.constant 0 : index
    %c0_52 = arith.constant 0 : index
    %32 = vector.load %arg9[%c2_50, %c0_51, %c0_52] : memref<18x18x38xf32, #tpu.memory_space<vmem>>, vector<16x16x38xf32>
    %33 = vector.shape_cast %32 : vector<16x16x38xf32> to vector<256x38xf32>
    %c0_53 = arith.constant 0 : index
    %c228 = arith.constant 228 : index
    %34 = vector.load %arg10[%c0_53, %c228] : memref<256x342xf32, #tpu.memory_space<vmem>>, vector<256x38xf32>
    tpu.vector_store %arg10[%c0_53, %c228], %33 {strides = array<i32>} : memref<256x342xf32, #tpu.memory_space<vmem>>, vector<256x38xf32>,
    %c2_54 = arith.constant 2 : index
    %c1_55 = arith.constant 1 : index
    %c0_56 = arith.constant 0 : index
    %35 = vector.load %arg9[%c2_54, %c1_55, %c0_56] : memref<18x18x38xf32, #tpu.memory_space<vmem>>, vector<16x16x38xf32>
    %36 = vector.shape_cast %35 : vector<16x16x38xf32> to vector<256x38xf32>
    %c0_57 = arith.constant 0 : index
    %c266 = arith.constant 266 : index
    %37 = vector.load %arg10[%c0_57, %c266] : memref<256x342xf32, #tpu.memory_space<vmem>>, vector<256x38xf32>
    tpu.vector_store %arg10[%c0_57, %c266], %36 {strides = array<i32>} : memref<256x342xf32, #tpu.memory_space<vmem>>, vector<256x38xf32>,
    %c2_58 = arith.constant 2 : index
    %c2_59 = arith.constant 2 : index
    %c0_60 = arith.constant 0 : index
    %38 = vector.load %arg9[%c2_58, %c2_59, %c0_60] : memref<18x18x38xf32, #tpu.memory_space<vmem>>, vector<16x16x38xf32>
    %39 = vector.shape_cast %38 : vector<16x16x38xf32> to vector<256x38xf32>
    %c0_61 = arith.constant 0 : index
    %c304 = arith.constant 304 : index
    %40 = vector.load %arg10[%c0_61, %c304] : memref<256x342xf32, #tpu.memory_space<vmem>>, vector<256x38xf32>
    tpu.vector_store %arg10[%c0_61, %c304], %39 {strides = array<i32>} : memref<256x342xf32, #tpu.memory_space<vmem>>, vector<256x38xf32>,
    %c0_62 = arith.constant 0 : index
    %c0_63 = arith.constant 0 : index
    %41 = vector.load %arg10[%c0_62, %c0_63] : memref<256x342xf32, #tpu.memory_space<vmem>>, vector<256x342xf32>
    %c0_64 = arith.constant 0 : index
    %c0_65 = arith.constant 0 : index
    %42 = vector.load %arg6[%c0_64, %c0_65] : memref<342x256xf32, #tpu.memory_space<vmem>>, vector<342x256xf32>
    %cst_66 = arith.constant dense<0.000000e+00> : vector<256x256xf32>
    %43 = tpu.matmul %41, %42, %cst_66 {dimension_numbers = #tpu.dot_dimension_numbers<[1], [0], [0], [1], [0, 0, 1, 1], [], []>} : vector<256x342xf32>, vector<342x256xf32>, vector<256x256xf32> -> vector<256x256xf32>
    %c0_67 = arith.constant 0 : index
    %c0_68 = arith.constant 0 : index
    %44 = vector.load %arg7[%c0_67, %c0_68] : memref<1x256xf32, #tpu.memory_space<vmem>>, vector<1x256xf32>
    %45 = vector.broadcast %44 : vector<1x256xf32> to vector<256x256xf32>
    %46 = arith.addf %43, %45 : vector<256x256xf32>
    %47 = vector.extract_strided_slice %46 {offsets = [0, 0], sizes = [256, 64], strides = [1, 1]} : vector<256x256xf32> to vector<256x64xf32>
    %48 = vector.extract_strided_slice %46 {offsets = [0, 64], sizes = [256, 64], strides = [1, 1]} : vector<256x256xf32> to vector<256x64xf32>
    %49 = arith.negf %48 : vector<256x64xf32>
    %50 = math.exp %49 : vector<256x64xf32>
    %cst_69 = arith.constant 1.000000e+00 : f32
    %51 = vector.broadcast %cst_69 : f32 to vector<256x64xf32>
    %52 = arith.addf %51, %50 : vector<256x64xf32>
    %53 = arith.divf %51, %52 : vector<256x64xf32>
    %54 = vector.extract_strided_slice %53 {offsets = [0, 0], sizes = [256, 32], strides = [1, 1]} : vector<256x64xf32> to vector<256x32xf32>
    %55 = vector.extract_strided_slice %53 {offsets = [0, 32], sizes = [256, 32], strides = [1, 1]} : vector<256x64xf32> to vector<256x32xf32>
    %56 = vector.extract_strided_slice %46 {offsets = [0, 128], sizes = [256, 128], strides = [1, 1]} : vector<256x256xf32> to vector<256x128xf32>
    %57 = math.tanh %56 : vector<256x128xf32>
    %58 = vector.extract_strided_slice %57 {offsets = [0, 0], sizes = [256, 64], strides = [1, 1]} : vector<256x128xf32> to vector<256x64xf32>
    %59 = arith.addf %58, %47 : vector<256x64xf32>
    %60 = arith.negf %59 : vector<256x64xf32>
    %61 = math.exp %60 : vector<256x64xf32>
    %cst_70 = arith.constant 1.000000e+00 : f32
    %62 = vector.broadcast %cst_70 : f32 to vector<256x64xf32>
    %63 = arith.addf %62, %61 : vector<256x64xf32>
    %64 = arith.divf %62, %63 : vector<256x64xf32>
    %65 = vector.extract_strided_slice %64 {offsets = [0, 0], sizes = [256, 32], strides = [1, 1]} : vector<256x64xf32> to vector<256x32xf32>
    %66 = vector.extract_strided_slice %64 {offsets = [0, 32], sizes = [256, 32], strides = [1, 1]} : vector<256x64xf32> to vector<256x32xf32>
    %67 = vector.extract_strided_slice %57 {offsets = [0, 64], sizes = [256, 32], strides = [1, 1]} : vector<256x128xf32> to vector<256x32xf32>
    %c0_71 = arith.constant 0 : index
    %c0_72 = arith.constant 0 : index
    %c0_73 = arith.constant 0 : index
    %68 = vector.load %arg5[%c0_71, %c0_72, %c0_73] : memref<1x256x32xf32, #tpu.memory_space<vmem>>, vector<1x256x32xf32>
    %69 = vector.shape_cast %68 : vector<1x256x32xf32> to vector<256x32xf32>
    %70 = arith.mulf %54, %65 : vector<256x32xf32>
    %cst_74 = arith.constant 1.000000e+00 : f32
    %71 = vector.broadcast %cst_74 : f32 to vector<256x32xf32>
    %72 = arith.subf %71, %70 : vector<256x32xf32>
    %73 = arith.mulf %72, %69 : vector<256x32xf32>
    %74 = arith.mulf %70, %67 : vector<256x32xf32>
    %75 = arith.addf %73, %74 : vector<256x32xf32>
    %cst_75 = arith.constant 1.000000e+00 : f32
    %76 = vector.broadcast %cst_75 : f32 to vector<256x32xf32>
    %77 = arith.subf %76, %54 : vector<256x32xf32>
    %78 = arith.mulf %77, %69 : vector<256x32xf32>
    %79 = arith.mulf %54, %66 : vector<256x32xf32>
    %80 = arith.mulf %79, %67 : vector<256x32xf32>
    %81 = arith.addf %78, %80 : vector<256x32xf32>
    %82 = math.tanh %75 : vector<256x32xf32>
    %83 = arith.mulf %55, %82 : vector<256x32xf32>
    %84 = tpu.concatenate %83, %81 in 1 : vector<256x32xf32>, vector<256x32xf32> -> vector<256x64xf32>
    %85 = vector.shape_cast %84 : vector<256x64xf32> to vector<1x256x64xf32>
    %c0_76 = arith.constant 0 : index
    %c0_77 = arith.constant 0 : index
    %c0_78 = arith.constant 0 : index
    %86 = vector.load %arg8[%c0_76, %c0_77, %c0_78] : memref<1x256x64xf32, #tpu.memory_space<vmem>>, vector<1x256x64xf32>
    tpu.vector_store %arg8[%c0_76, %c0_77, %c0_78], %85 {strides = array<i32>} : memref<1x256x64xf32, #tpu.memory_space<vmem>>, vector<1x256x64xf32>,
    return
  }
  func.func @transform_0(%arg0: i32) -> (i32, i32, i32, i32) {
    %c0_i32 = arith.constant 0 : i32
    %c0_i32_0 = arith.constant 0 : i32
    %c0_i32_1 = arith.constant 0 : i32
    %c0_i32_2 = arith.constant 0 : i32
    return %arg0, %c0_i32, %c0_i32_0, %c0_i32_1 : i32, i32, i32, i32
  }
  func.func @transform_1(%arg0: i32) -> (i32, i32, i32, i32) {
    %c0_i32 = arith.constant 0 : i32
    %c0_i32_0 = arith.constant 0 : i32
    %c0_i32_1 = arith.constant 0 : i32
    %c0_i32_2 = arith.constant 0 : i32
    return %arg0, %c0_i32, %c0_i32_0, %c0_i32_1 : i32, i32, i32, i32
  }
  func.func @transform_2(%arg0: i32) -> (i32, i32, i32, i32) {
    %c0_i32 = arith.constant 0 : i32
    %c0_i32_0 = arith.constant 0 : i32
    %c0_i32_1 = arith.constant 0 : i32
    %c0_i32_2 = arith.constant 0 : i32
    return %arg0, %c0_i32, %c0_i32_0, %c0_i32_1 : i32, i32, i32, i32
  }
  func.func @transform_3(%arg0: i32) -> (i32, i32, i32, i32) {
    %c0_i32 = arith.constant 0 : i32
    %c0_i32_0 = arith.constant 0 : i32
    %c0_i32_1 = arith.constant 0 : i32
    %c0_i32_2 = arith.constant 0 : i32
    return %arg0, %c0_i32, %c0_i32_0, %c0_i32_1 : i32, i32, i32, i32
  }
  func.func @transform_4(%arg0: i32) -> (i32, i32, i32) {
    %c0_i32 = arith.constant 0 : i32
    %c0_i32_0 = arith.constant 0 : i32
    %c0_i32_1 = arith.constant 0 : i32
    return %arg0, %c0_i32, %c0_i32_0 : i32, i32, i32
  }
  func.func @transform_5(%arg0: i32) -> (i32, i32) {
    %c0_i32 = arith.constant 0 : i32
    %c0_i32_0 = arith.constant 0 : i32
    %c0_i32_1 = arith.constant 0 : i32
    return %c0_i32, %c0_i32_0 : i32, i32
  }
  func.func @transform_6(%arg0: i32) -> (i32, i32) {
    %c0_i32 = arith.constant 0 : i32
    %c0_i32_0 = arith.constant 0 : i32
    %c0_i32_1 = arith.constant 0 : i32
    return %c0_i32, %c0_i32_0 : i32, i32
  }
  func.func @transform_7(%arg0: i32) -> (i32, i32, i32) {
    %c0_i32 = arith.constant 0 : i32
    %c0_i32_0 = arith.constant 0 : i32
    %c0_i32_1 = arith.constant 0 : i32
    return %arg0, %c0_i32, %c0_i32_0 : i32, i32, i32
  }
}

</mosaic_0001>

<bundles_post_ra>
// kernel: tpu_custom_call.1
= control target key start
LH: loop header
LB: loop body
LE: loop exit
PB: predicated region body
PF: predicated region fallthrough
CT: control target
= control target key end

     0   :  { %s6123_s24 = smov 0   ;;  %s9228_s0 = inlined_call_operand.vmem [shape: f32[2,16,16,4], index: 0, kind: input, shape index: {}]   ;;  %s9229_s1 = inlined_call_operand.vmem [shape: f32[2,16,16,32], index: 1, kind: input, shape index: {}]   ;;  %s9230_s2 = inlined_call_operand.vmem [shape: f32[2,16,16,1], index: 2, kind: input, shape index: {}]   ;;  %s9231_s3 = inlined_call_operand.vmem [shape: f32[2,16,16,1], index: 3, kind: input, shape index: {}]   ;;  %s9232_s4 = inlined_call_operand.vmem [shape: f32[2,256,32], index: 4, kind: input, shape index: {}]   ;;  %s9233_s5 = inlined_call_operand.vmem [shape: f32[342,256], index: 5, kind: input, shape index: {}]   ;;  %s9234_s6 = inlined_call_operand.vmem [shape: f32[1,256], index: 6, kind: input, shape index: {}]   ;;  %s9235_s7 = inlined_call_operand.vmem [shape: f32[2,256,64], index: 7, kind: output, shape index: {}]  }
   0x1 LB: > { %s5316_s25 = sadd.s32 4294967295, %s6066_s24   ;;  %p5320_p0 = scmp.ge.s32.totalorder %s6066_s24, 1  ;;  %s6066_s24 = sphi %s6123_s24, %s17_s24  }
   0x2   : > { %p277_p1 = scmp.lt.s32.totalorder %s6066_s24, 3 }
   0x4   : > { %p278_p2 = pnand %p5320_p0, %p277_p1 }
   0x6   : > { %281 = sbr.rel (%p278_p2) target bundleno = 1645 (0x66d), region = 48 }
   0xd   : > { %p6133_p3 = scmp.lt.s32.totalorder %s5316_s25, 1  ;;  %vm359_vm0 = vcmask 310272   ;;  %v9236_v0 = vmov 0.0   ;;  %vm362_vm1 = vcmask 304128   ;;  %s6069_s8 = smov 4   ;;  %vm448_vm2 = vcmask 31744  }
   0xe   : > { %367 = vst.msk [vmem:[#allocation2 + $0x30] sm:$0xff] %vm359_vm0, %v9236_v0  ;;  %368 = vst.msk [vmem:[#allocation2 + $0x38] sm:$0xff] %vm359_vm0, %v9236_v0  ;;  %3354 = vmatprep.mubr.f32.mxu0 %v9236_v0  ;;  %s6070_s15 = smov 36   ;;  %vm641_vm3 = vcmask 293920   ;;  %s6071_s19 = smov 37   ;;  %vm834_vm4 = vcmask 302368  }
   0xf   : > { %360 = vst.msk [vmem:[#allocation2] sm:$0xff] %vm359_vm0, %v9236_v0  ;;  %361 = vst.msk [vmem:[#allocation2 + $0x8] sm:$0xff] %vm359_vm0, %v9236_v0  ;;  %s9624_s25 = smov (!%p6133_p3, %s5316_s25), 1  ;;  %s6072_s20 = smov 38   ;;  %vm1027_vm5 = vcmask 310568   ;;  %vm1284_vm6 = vcmask 621872  }
  0x10   : > { %364 = vst.msk [vmem:[#allocation2 + $0x18] sm:$0xff] %vm359_vm0, %v9236_v0  ;;  %365 = vst.msk [vmem:[#allocation2 + $0x20] sm:$0xff] %vm359_vm0, %v9236_v0  ;;  %s6250_s27 = sshll.u32 %s9624_s25, 8  ;;  %s6073_s21 = smov 76   ;;  %vm1477_vm7 = vcmask 933472   ;;  %vm1670_vm8 = vcmask 1048464  }
  0x11   : > { %370 = vst.msk [vmem:[#allocation2 + $0x48] sm:$0xff] %vm359_vm0, %v9236_v0  ;;  %371 = vst.msk [vmem:[#allocation2 + $0x50] sm:$0xff] %vm359_vm0, %v9236_v0  ;;  %s6256_s30 = scalar_lea.vmem %s9229_s1, %s6250_s27  ;;  %s6284_s11 = scalar_lea.vmem %s9228_s0, %s6250_s27  ;;  %vm1672_vm9 = vcmask 195584   ;;  %vm3026_vm10 = vcmask 1045504   ;;  %vm1896_vm11 = vcmask 507072   ;;  %vm2285_vm12 = vcmask 80896  }
  0x12   : > { %373 = vst.msk [vmem:[#allocation2 + $0x60] sm:$0xff] %vm359_vm0, %v9236_v0  ;;  %374 = vst.msk [vmem:[#allocation2 + $0x68] sm:$0xff] %vm359_vm0, %v9236_v0  ;;  %v483_v1 = vld [vmem:[%s6256_s30 + $0x10] sm:$0xff]  ;;  %v481_v2 = vld [vmem:[%s6256_s30] sm:$0xff]  ;;  %s6394_s14 = scalar_lea.vmem %s9230_s2, %s6250_s27  ;;  %s6468_s18 = scalar_lea.vmem %s9231_s3, %s6250_s27  ;;  %vm2089_vm13 = vcmask 818672   ;;  %vm2283_vm14 = vcmask 1048352  }
  0x13   : > { %376 = vst.msk [vmem:[#allocation2 + $0x78] sm:$0xff] %vm359_vm0, %v9236_v0  ;;  %377 = vst.msk [vmem:[#allocation2 + $0x80] sm:$0xff] %vm359_vm0, %v9236_v0  ;;  %549 = vrot.lane.b32.xlu1 %v483_v1, %s6069_s8  ;;  %545 = vrot.lane.b32.xlu0 %v481_v2, %s6069_s8  ;;  %v484_v3 = vld [vmem:[%s6256_s30 + $0x18] sm:$0xff]  ;;  %v482_v4 = vld [vmem:[%s6256_s30 + $0x8] sm:$0xff]  ;;  %s6074_s22 = smov 114   ;;  %s6076_s10 = smov 100  }
  0x14   : > { %379 = vst.msk [vmem:[#allocation2 + $0x90] sm:$0xff] %vm359_vm0, %v9236_v0  ;;  %380 = vst.msk [vmem:[#allocation2 + $0x98] sm:$0xff] %vm359_vm0, %v9236_v0  ;;  %v486_v5 = vld [vmem:[%s6256_s30 + $0x28] sm:$0xff]  ;;  %v485_v6 = vld [vmem:[%s6256_s30 + $0x20] sm:$0xff]  ;;  %s6078_s16 = smov 10   ;;  %s6079_s17 = smov 48  }
  0x15   : > { %382 = vst.msk [vmem:[#allocation2 + $0xa8] sm:$0xff] %vm359_vm0, %v9236_v0  ;;  %383 = vst.msk [vmem:[#allocation2 + $0xb0] sm:$0xff] %vm359_vm0, %v9236_v0  ;;  %v488_v7 = vld [vmem:[%s6256_s30 + $0x38] sm:$0xff]  ;;  %v487_v8 = vld [vmem:[%s6256_s30 + $0x30] sm:$0xff]  ;;  %vm2509_vm15 = vcmask 392272   ;;  %s8224_s23 = scalar_lea.vmem %s9232_s4, %s6250_s27  ;;  %s6081_s25 = smov 32  }
  0x16   : > { %385 = vst.msk [vmem:[#allocation2 + $0xc0] sm:$0xff] %vm359_vm0, %v9236_v0  ;;  %386 = vst.msk [vmem:[#allocation2 + $0xc8] sm:$0xff] %vm359_vm0, %v9236_v0  ;;  %v490_v9 = vld [vmem:[%s6256_s30 + $0x48] sm:$0xff]  ;;  %v489_v10 = vld [vmem:[%s6256_s30 + $0x40] sm:$0xff]  ;;  %s6082_s26 = smov 96  }
  0x17   : > { %388 = vst.msk [vmem:[#allocation2 + $0xd8] sm:$0xff] %vm359_vm0, %v9236_v0  ;;  %389 = vst.msk [vmem:[#allocation2 + $0xe0] sm:$0xff] %vm359_vm0, %v9236_v0  ;;  %551 = vrot.lane.b32.xlu1 %v484_v3, %s6069_s8  ;;  %547 = vrot.lane.b32.xlu0 %v482_v4, %s6069_s8  ;;  %v492_v11 = vld [vmem:[%s6256_s30 + $0x58] sm:$0xff]  ;;  %v491_v12 = vld [vmem:[%s6256_s30 + $0x50] sm:$0xff] }
  0x18   : > { %391 = vst.msk [vmem:[#allocation2 + $0xf0] sm:$0xff] %vm359_vm0, %v9236_v0  ;;  %392 = vst.msk [vmem:[#allocation2 + $0xf8] sm:$0xff] %vm359_vm0, %v9236_v0  ;;  %v417_v13 = vld [vmem:[%s6284_s11 + $0x10] sm:$0xff]  ;;  %v415_v14 = vld [vmem:[%s6284_s11] sm:$0xff] }
  0x19   : > { %394 = vst.msk [vmem:[#allocation2 + $0x108] sm:$0xff] %vm359_vm0, %v9236_v0  ;;  %395 = vst.msk [vmem:[#allocation2 + $0x110] sm:$0xff] %vm359_vm0, %v9236_v0  ;;  %v494_v15 = vld [vmem:[%s6256_s30 + $0x68] sm:$0xff]  ;;  %v493_v16 = vld [vmem:[%s6256_s30 + $0x60] sm:$0xff] }
  0x1a   : > { %397 = vst.msk [vmem:[#allocation2 + $0x120] sm:$0xff] %vm359_vm0, %v9236_v0  ;;  %398 = vst.msk [vmem:[#allocation2 + $0x128] sm:$0xff] %vm359_vm0, %v9236_v0  ;;  %v418_v17 = vld [vmem:[%s6284_s11 + $0x18] sm:$0xff]  ;;  %v416_v18 = vld [vmem:[%s6284_s11 + $0x8] sm:$0xff] }
  0x1b   : > { %400 = vst.msk [vmem:[#allocation2 + $0x138] sm:$0xff] %vm359_vm0, %v9236_v0  ;;  %401 = vst.msk [vmem:[#allocation2 + $0x140] sm:$0xff] %vm359_vm0, %v9236_v0  ;;  %555 = vrot.lane.b32.xlu1 %v486_v5, %s6069_s8  ;;  %553 = vrot.lane.b32.xlu0 %v485_v6, %s6069_s8  ;;  %v420_v19 = vld [vmem:[%s6284_s11 + $0x28] sm:$0xff]  ;;  %v419_v20 = vld [vmem:[%s6284_s11 + $0x20] sm:$0xff] }
  0x1c   : > { %403 = vst.msk [vmem:[#allocation2 + $0x150] sm:$0xff] %vm359_vm0, %v9236_v0  ;;  %404 = vst.msk [vmem:[#allocation2 + $0x158] sm:$0xff] %vm359_vm0, %v9236_v0  ;;  %v422_v21 = vld [vmem:[%s6284_s11 + $0x38] sm:$0xff]  ;;  %v495_v23 = vld [vmem:[%s6256_s30 + $0x70] sm:$0xff] }
  0x1d   : > { %406 = vst.msk [vmem:[#allocation2 + $0x168] sm:$0xff] %vm359_vm0, %v9236_v0  ;;  %407 = vst.msk [vmem:[#allocation2 + $0x170] sm:$0xff] %vm359_vm0, %v9236_v0  ;;  %v496_v22 = vld [vmem:[%s6256_s30 + $0x78] sm:$0xff]  ;;  %v421_v24 = vld [vmem:[%s6284_s11 + $0x30] sm:$0xff] }
  0x1e   : > { %409 = vst.msk [vmem:[#allocation2 + $0x180] sm:$0xff] %vm359_vm0, %v9236_v0  ;;  %410 = vst.msk [vmem:[#allocation2 + $0x188] sm:$0xff] %vm359_vm0, %v9236_v0  ;;  %v424_v25 = vld [vmem:[%s6284_s11 + $0x48] sm:$0xff]  ;;  %v423_v26 = vld [vmem:[%s6284_s11 + $0x40] sm:$0xff] }
  0x1f   : > { %412 = vst.msk [vmem:[#allocation2 + $0x198] sm:$0xff] %vm359_vm0, %v9236_v0  ;;  %413 = vst.msk [vmem:[#allocation2 + $0x1a0] sm:$0xff] %vm359_vm0, %v9236_v0  ;;  %559 = vrot.lane.b32.xlu1 %v488_v7, %s6069_s8  ;;  %557 = vrot.lane.b32.xlu0 %v487_v8, %s6069_s8  ;;  %v426_v27 = vld [vmem:[%s6284_s11 + $0x58] sm:$0xff]  ;;  %v425_v28 = vld [vmem:[%s6284_s11 + $0x50] sm:$0xff] }
  0x20   : > { %369 = vst.msk [vmem:[#allocation2 + $0x40] sm:$0x3] %vm362_vm1, %v9236_v0  ;;  %363 = vst.msk [vmem:[#allocation2 + $0x10] sm:$0x3] %vm362_vm1, %v9236_v0  ;;  %v498_v29 = vld [vmem:[%s6256_s30 + $0x88] sm:$0xff]  ;;  %v497_v30 = vld [vmem:[%s6256_s30 + $0x80] sm:$0xff] }
  0x21   : > { %366 = vst.msk [vmem:[#allocation2 + $0x28] sm:$0x3] %vm362_vm1, %v9236_v0  ;;  %372 = vst.msk [vmem:[#allocation2 + $0x58] sm:$0x3] %vm362_vm1, %v9236_v0  ;;  %v428_v31 = vld [vmem:[%s6284_s11 + $0x68] sm:$0xff]  ;;  %v427_v32 = vld [vmem:[%s6284_s11 + $0x60] sm:$0xff] }
  0x22   : > { %375 = vst.msk [vmem:[#allocation2 + $0x70] sm:$0x3] %vm362_vm1, %v9236_v0  ;;  %378 = vst.msk [vmem:[#allocation2 + $0x88] sm:$0x3] %vm362_vm1, %v9236_v0  ;;  %v430_v33 = vld [vmem:[%s6284_s11 + $0x78] sm:$0xff]  ;;  %v429_v34 = vld [vmem:[%s6284_s11 + $0x70] sm:$0xff] }
  0x23   : > { %381 = vst.msk [vmem:[#allocation2 + $0xa0] sm:$0x3] %vm362_vm1, %v9236_v0  ;;  %384 = vst.msk [vmem:[#allocation2 + $0xb8] sm:$0x3] %vm362_vm1, %v9236_v0  ;;  %563 = vrot.lane.b32.xlu1 %v490_v9, %s6069_s8  ;;  %561 = vrot.lane.b32.xlu0 %v489_v10, %s6069_s8  ;;  %v432_v35 = vld [vmem:[%s6284_s11 + $0x88] sm:$0xff]  ;;  %v500_v36 = vld [vmem:[%s6256_s30 + $0x98] sm:$0xff] }
  0x24   : > { %387 = vst.msk [vmem:[#allocation2 + $0xd0] sm:$0x3] %vm362_vm1, %v9236_v0  ;;  %390 = vst.msk [vmem:[#allocation2 + $0xe8] sm:$0x3] %vm362_vm1, %v9236_v0  ;;  %v431_v37 = vld [vmem:[%s6284_s11 + $0x80] sm:$0xff]  ;;  %v499_v38 = vld [vmem:[%s6256_s30 + $0x90] sm:$0xff] }
  0x25   : > { %393 = vst.msk [vmem:[#allocation2 + $0x100] sm:$0x3] %vm362_vm1, %v9236_v0  ;;  %396 = vst.msk [vmem:[#allocation2 + $0x118] sm:$0x3] %vm362_vm1, %v9236_v0  ;;  %v434_v39 = vld [vmem:[%s6284_s11 + $0x98] sm:$0xff]  ;;  %v433_v40 = vld [vmem:[%s6284_s11 + $0x90] sm:$0xff] }
  0x26   : > { %399 = vst.msk [vmem:[#allocation2 + $0x130] sm:$0x3] %vm362_vm1, %v9236_v0  ;;  %402 = vst.msk [vmem:[#allocation2 + $0x148] sm:$0x3] %vm362_vm1, %v9236_v0  ;;  %v436_v41 = vld [vmem:[%s6284_s11 + $0xa8] sm:$0xff]  ;;  %v435_v42 = vld [vmem:[%s6284_s11 + $0xa0] sm:$0xff] }
  0x27   : > { %405 = vst.msk [vmem:[#allocation2 + $0x160] sm:$0x3] %vm362_vm1, %v9236_v0  ;;  %408 = vst.msk [vmem:[#allocation2 + $0x178] sm:$0x3] %vm362_vm1, %v9236_v0  ;;  %567 = vrot.lane.b32.xlu1 %v492_v11, %s6069_s8  ;;  %565 = vrot.lane.b32.xlu0 %v491_v12, %s6069_s8  ;;  %v438_v43 = vld [vmem:[%s6284_s11 + $0xb8] sm:$0xff]  ;;  %v437_v44 = vld [vmem:[%s6284_s11 + $0xb0] sm:$0xff] }
  0x28   : > { %411 = vst.msk [vmem:[#allocation2 + $0x190] sm:$0x3] %vm362_vm1, %v9236_v0  ;;  %414 = vst.msk [vmem:[#allocation2 + $0x1a8] sm:$0x3] %vm362_vm1, %v9236_v0  ;;  %v502_v45 = vld [vmem:[%s6256_s30 + $0xa8] sm:$0xff]  ;;  %v501_v46 = vld [vmem:[%s6256_s30 + $0xa0] sm:$0xff] }
  0x29   : > { %451 = vst.msk [vmem:[#allocation2 + $0x31] sm:$0xff] %vm448_vm2, %v417_v13  ;;  %449 = vst.msk [vmem:[#allocation2 + $0x19] sm:$0xff] %vm448_vm2, %v415_v14  ;;  %v440_v47 = vld [vmem:[%s6284_s11 + $0xc8] sm:$0xff]  ;;  %v439_v48 = vld [vmem:[%s6284_s11 + $0xc0] sm:$0xff]  ;;  %vm2929_vm1 = vcmask 703488  }
  0x2a   : > { %452 = vst.msk [vmem:[#allocation2 + $0x39] sm:$0xff] %vm448_vm2, %v418_v17  ;;  %450 = vst.msk [vmem:[#allocation2 + $0x21] sm:$0xff] %vm448_vm2, %v416_v18  ;;  %v442_v49 = vld [vmem:[%s6284_s11 + $0xd8] sm:$0xff]  ;;  %v441_v50 = vld [vmem:[%s6284_s11 + $0xd0] sm:$0xff] }
  0x2b   : > { %571 = vrot.lane.b32.xlu1 %v494_v15, %s6069_s8  ;;  %569 = vrot.lane.b32.xlu0 %v493_v16, %s6069_s8  ;;  %454 = vst.msk [vmem:[#allocation2 + $0x51] sm:$0xff] %vm448_vm2, %v420_v19  ;;  %453 = vst.msk [vmem:[#allocation2 + $0x49] sm:$0xff] %vm448_vm2, %v419_v20  ;;  %v504_v51 = vld [vmem:[%s6256_s30 + $0xb8] sm:$0xff]  ;;  %v503_v52 = vld [vmem:[%s6256_s30 + $0xb0] sm:$0xff] }
  0x2c   : > { %456 = vst.msk [vmem:[#allocation2 + $0x69] sm:$0xff] %vm448_vm2, %v422_v21  ;;  %455 = vst.msk [vmem:[#allocation2 + $0x61] sm:$0xff] %vm448_vm2, %v421_v24  ;;  %v443_v53 = vld [vmem:[%s6284_s11 + $0xe0] sm:$0xff]  ;;  %v444_v54 = vld [vmem:[%s6284_s11 + $0xe8] sm:$0xff] }
  0x2d   : > { %458 = vst.msk [vmem:[#allocation2 + $0x81] sm:$0xff] %vm448_vm2, %v424_v25  ;;  %457 = vst.msk [vmem:[#allocation2 + $0x79] sm:$0xff] %vm448_vm2, %v423_v26  ;;  %v506_v55 = vld [vmem:[%s6256_s30 + $0xc8] sm:$0xff]  ;;  %v505_v56 = vld [vmem:[%s6256_s30 + $0xc0] sm:$0xff] }
  0x2e   : > { %460 = vst.msk [vmem:[#allocation2 + $0x99] sm:$0xff] %vm448_vm2, %v426_v27  ;;  %459 = vst.msk [vmem:[#allocation2 + $0x91] sm:$0xff] %vm448_vm2, %v425_v28  ;;  %v445_v57 = vld [vmem:[%s6284_s11 + $0xf0] sm:$0xff]  ;;  %v446_v58 = vld [vmem:[%s6284_s11 + $0xf8] sm:$0xff]  ;;  %s6077_s11 = smov 62  }
  0x2f   : > { %575 = vrot.lane.b32.xlu1 %v496_v22, %s6069_s8  ;;  %573 = vrot.lane.b32.xlu0 %v495_v23, %s6069_s8  ;;  %462 = vst.msk [vmem:[#allocation2 + $0xb1] sm:$0xff] %vm448_vm2, %v428_v31  ;;  %461 = vst.msk [vmem:[#allocation2 + $0xa9] sm:$0xff] %vm448_vm2, %v427_v32  ;;  %v508_v59 = vld [vmem:[%s6256_s30 + $0xd8] sm:$0xff]  ;;  %v507_v60 = vld [vmem:[%s6256_s30 + $0xd0] sm:$0xff] }
  0x30   : > { %464 = vst.msk [vmem:[#allocation2 + $0xc9] sm:$0xff] %vm448_vm2, %v430_v33  ;;  %463 = vst.msk [vmem:[#allocation2 + $0xc1] sm:$0xff] %vm448_vm2, %v429_v34  ;;  %v510_v61 = vld [vmem:[%s6256_s30 + $0xe8] sm:$0xff]  ;;  %v509_v62 = vld [vmem:[%s6256_s30 + $0xe0] sm:$0xff] }
  0x31   : > { %466 = vst.msk [vmem:[#allocation2 + $0xe1] sm:$0xff] %vm448_vm2, %v432_v35  ;;  %465 = vst.msk [vmem:[#allocation2 + $0xd9] sm:$0xff] %vm448_vm2, %v431_v37  ;;  %v512_v63 = vld [vmem:[%s6256_s30 + $0xf8] sm:$0xff]  ;;  %v511_v1 = vld [vmem:[%s6256_s30 + $0xf0] sm:$0xff]  ;;  %s9108_s30 = scalar_lea.vmem %s9235_s7, %s6250_s27 }
  0x32   : > { %468 = vst.msk [vmem:[#allocation2 + $0xf9] sm:$0xff] %vm448_vm2, %v434_v39  ;;  %467 = vst.msk [vmem:[#allocation2 + $0xf1] sm:$0xff] %vm448_vm2, %v433_v40  ;;  %v675_v2 = vld [vmem:[%s6394_s14 + $0x8] sm:$0xff]  ;;  %v674_v3 = vld [vmem:[%s6394_s14] sm:$0xff] }
  0x33   : > { %579 = vrot.lane.b32.xlu1 %v498_v29, %s6069_s8  ;;  %577 = vrot.lane.b32.xlu0 %v497_v30, %s6069_s8  ;;  %470 = vst.msk [vmem:[#allocation2 + $0x111] sm:$0xff] %vm448_vm2, %v436_v41  ;;  %469 = vst.msk [vmem:[#allocation2 + $0x109] sm:$0xff] %vm448_vm2, %v435_v42  ;;  %v677_v4 = vld [vmem:[%s6394_s14 + $0x18] sm:$0xff]  ;;  %v676_v5 = vld [vmem:[%s6394_s14 + $0x10] sm:$0xff] }
  0x34   : > { %472 = vst.msk [vmem:[#allocation2 + $0x129] sm:$0xff] %vm448_vm2, %v438_v43  ;;  %471 = vst.msk [vmem:[#allocation2 + $0x121] sm:$0xff] %vm448_vm2, %v437_v44  ;;  %v679_v6 = vld [vmem:[%s6394_s14 + $0x28] sm:$0xff]  ;;  %v678_v7 = vld [vmem:[%s6394_s14 + $0x20] sm:$0xff] }
  0x35   : > { %474 = vst.msk [vmem:[#allocation2 + $0x141] sm:$0xff] %vm448_vm2, %v440_v47  ;;  %473 = vst.msk [vmem:[#allocation2 + $0x139] sm:$0xff] %vm448_vm2, %v439_v48  ;;  %v681_v8 = vld [vmem:[%s6394_s14 + $0x38] sm:$0xff]  ;;  %v680_v9 = vld [vmem:[%s6394_s14 + $0x30] sm:$0xff] }
  0x36   : > { %476 = vst.msk [vmem:[#allocation2 + $0x159] sm:$0xff] %vm448_vm2, %v442_v49  ;;  %475 = vst.msk [vmem:[#allocation2 + $0x151] sm:$0xff] %vm448_vm2, %v441_v50  ;;  %v683_v10 = vld [vmem:[%s6394_s14 + $0x48] sm:$0xff]  ;;  %v682_v11 = vld [vmem:[%s6394_s14 + $0x40] sm:$0xff] }
  0x37   : > { %583 = vrot.lane.b32.xlu1 %v500_v36, %s6069_s8  ;;  %581 = vrot.lane.b32.xlu0 %v499_v38, %s6069_s8  ;;  %477 = vst.msk [vmem:[#allocation2 + $0x169] sm:$0xff] %vm448_vm2, %v443_v53  ;;  %478 = vst.msk [vmem:[#allocation2 + $0x171] sm:$0xff] %vm448_vm2, %v444_v54  ;;  %v685_v12 = vld [vmem:[%s6394_s14 + $0x58] sm:$0xff]  ;;  %v684_v13 = vld [vmem:[%s6394_s14 + $0x50] sm:$0xff] }
  0x38   : > { %479 = vst.msk [vmem:[#allocation2 + $0x181] sm:$0xff] %vm448_vm2, %v445_v57  ;;  %480 = vst.msk [vmem:[#allocation2 + $0x189] sm:$0xff] %vm448_vm2, %v446_v58  ;;  %v687_v14 = vld [vmem:[%s6394_s14 + $0x68] sm:$0xff]  ;;  %v686_v15 = vld [vmem:[%s6394_s14 + $0x60] sm:$0xff]  ;;  %vm5147_vm2 = vcmask 261120  }
  0x39   : > { %v689_v16 = vld [vmem:[%s6394_s14 + $0x78] sm:$0xff]  ;;  %v688_v17 = vld [vmem:[%s6394_s14 + $0x70] sm:$0xff]  ;;  %v691_v18 = vld [vmem:[%s6394_s14 + $0x88] sm:$0xff] }
  0x3a   : > { %v690_v19 = vld [vmem:[%s6394_s14 + $0x80] sm:$0xff]  ;;  %v693_v20 = vld [vmem:[%s6394_s14 + $0x98] sm:$0xff]  ;;  %v692_v21 = vld [vmem:[%s6394_s14 + $0x90] sm:$0xff] }
  0x3b   : > { %587 = vrot.lane.b32.xlu1 %v502_v45, %s6069_s8  ;;  %585 = vrot.lane.b32.xlu0 %v501_v46, %s6069_s8  ;;  %v695_v22 = vld [vmem:[%s6394_s14 + $0xa8] sm:$0xff]  ;;  %v694_v23 = vld [vmem:[%s6394_s14 + $0xa0] sm:$0xff] }
  0x3c   : > { %v697_v24 = vld [vmem:[%s6394_s14 + $0xb8] sm:$0xff]  ;;  %v696_v25 = vld [vmem:[%s6394_s14 + $0xb0] sm:$0xff]  ;;  %v699_v26 = vld [vmem:[%s6394_s14 + $0xc8] sm:$0xff] }
  0x3d   : > { %v698_v27 = vld [vmem:[%s6394_s14 + $0xc0] sm:$0xff]  ;;  %v701_v28 = vld [vmem:[%s6394_s14 + $0xd8] sm:$0xff]  ;;  %v700_v29 = vld [vmem:[%s6394_s14 + $0xd0] sm:$0xff] }
  0x3e   : > { %v703_v32 = vld [vmem:[%s6394_s14 + $0xe8] sm:$0xff]  ;;  %v702_v33 = vld [vmem:[%s6394_s14 + $0xe0] sm:$0xff]  ;;  %v705_v36 = vld [vmem:[%s6394_s14 + $0xf8] sm:$0xff] }
  0x3f   : > { %591 = vrot.lane.b32.xlu1 %v504_v51, %s6069_s8  ;;  %589 = vrot.lane.b32.xlu0 %v503_v52, %s6069_s8  ;;  %v704_v37 = vld [vmem:[%s6394_s14 + $0xf0] sm:$0xff]  ;;  %v868_v40 = vld [vmem:[%s6468_s18 + $0x8] sm:$0xff] }
  0x40   : > { %v867_v41 = vld [vmem:[%s6468_s18] sm:$0xff]  ;;  %v870_v44 = vld [vmem:[%s6468_s18 + $0x18] sm:$0xff]  ;;  %v869_v45 = vld [vmem:[%s6468_s18 + $0x10] sm:$0xff] }
  0x41   : > { %v872_v48 = vld [vmem:[%s6468_s18 + $0x28] sm:$0xff]  ;;  %v871_v49 = vld [vmem:[%s6468_s18 + $0x20] sm:$0xff]  ;;  %v874_v52 = vld [vmem:[%s6468_s18 + $0x38] sm:$0xff] }
  0x42   : > { %v873_v53 = vld [vmem:[%s6468_s18 + $0x30] sm:$0xff]  ;;  %v875_v57 = vld [vmem:[%s6468_s18 + $0x40] sm:$0xff] }
  0x43   : > { %595 = vrot.lane.b32.xlu1 %v506_v55, %s6069_s8  ;;  %593 = vrot.lane.b32.xlu0 %v505_v56, %s6069_s8  ;;  %v876_v56 = vld [vmem:[%s6468_s18 + $0x48] sm:$0xff] }
  0x44   : > { %v1317_v0 = vld [vmem:[#allocation2 + $0x2] sm:$0xff] }
  0x47   : > { %599 = vrot.lane.b32.xlu1 %v508_v59, %s6069_s8  ;;  %597 = vrot.lane.b32.xlu0 %v507_v60, %s6069_s8  ;;  %v878_v60 = vld [vmem:[%s6468_s18 + $0x58] sm:$0xff] }
  0x4b   : > { %603 = vrot.lane.b32.xlu1 %v510_v61, %s6069_s8  ;;  %601 = vrot.lane.b32.xlu0 %v509_v62, %s6069_s8  ;;  %v877_v61 = vld [vmem:[%s6468_s18 + $0x50] sm:$0xff] }
  0x4f   : > { %607 = vrot.lane.b32.xlu1 %v512_v63, %s6069_s8  ;;  %605 = vrot.lane.b32.xlu0 %v511_v1, %s6069_s8  ;;  %v880_v1 = vld [vmem:[%s6468_s18 + $0x68] sm:$0xff] }
  0x53   : > { %740 = vrot.lane.b32.xlu1 %v675_v2, %s6070_s15  ;;  %738 = vrot.lane.b32.xlu0 %v674_v3, %s6070_s15  ;;  %v879_v2 = vld [vmem:[%s6468_s18 + $0x60] sm:$0xff] }
  0x57   : > { %744 = vrot.lane.b32.xlu1 %v677_v4, %s6070_s15  ;;  %742 = vrot.lane.b32.xlu0 %v676_v5, %s6070_s15  ;;  %v882_v5 = vld [vmem:[%s6468_s18 + $0x78] sm:$0xff] }
  0x5b   : > { %748 = vrot.lane.b32.xlu1 %v679_v6, %s6070_s15  ;;  %746 = vrot.lane.b32.xlu0 %v678_v7, %s6070_s15  ;;  %v881_v6 = vld [vmem:[%s6468_s18 + $0x70] sm:$0xff] }
  0x5f   : > { %752 = vrot.lane.b32.xlu1 %v681_v8, %s6070_s15  ;;  %750 = vrot.lane.b32.xlu0 %v680_v9, %s6070_s15  ;;  %v884_v9 = vld [vmem:[%s6468_s18 + $0x88] sm:$0xff] }
  0x63   : > { %756 = vrot.lane.b32.xlu1 %v683_v10, %s6070_s15  ;;  %754 = vrot.lane.b32.xlu0 %v682_v11, %s6070_s15  ;;  %v883_v10 = vld [vmem:[%s6468_s18 + $0x80] sm:$0xff] }
  0x67   : > { %760 = vrot.lane.b32.xlu1 %v685_v12, %s6070_s15  ;;  %758 = vrot.lane.b32.xlu0 %v684_v13, %s6070_s15  ;;  %v886_v13 = vld [vmem:[%s6468_s18 + $0x98] sm:$0xff] }
  0x6b   : > { %764 = vrot.lane.b32.xlu1 %v687_v14, %s6070_s15  ;;  %762 = vrot.lane.b32.xlu0 %v686_v15, %s6070_s15  ;;  %v885_v14 = vld [vmem:[%s6468_s18 + $0x90] sm:$0xff] }
  0x6f   : > { %768 = vrot.lane.b32.xlu1 %v689_v16, %s6070_s15  ;;  %766 = vrot.lane.b32.xlu0 %v688_v17, %s6070_s15  ;;  %v888_v17 = vld [vmem:[%s6468_s18 + $0xa8] sm:$0xff] }
  0x73   : > { %772 = vrot.lane.b32.xlu1 %v691_v18, %s6070_s15  ;;  %770 = vrot.lane.b32.xlu0 %v690_v19, %s6070_s15  ;;  %v887_v18 = vld [vmem:[%s6468_s18 + $0xa0] sm:$0xff] }
  0x77   : > { %776 = vrot.lane.b32.xlu1 %v693_v20, %s6070_s15  ;;  %774 = vrot.lane.b32.xlu0 %v692_v21, %s6070_s15  ;;  %v890_v21 = vld [vmem:[%s6468_s18 + $0xb8] sm:$0xff] }
  0x7b   : > { %780 = vrot.lane.b32.xlu1 %v695_v22, %s6070_s15  ;;  %778 = vrot.lane.b32.xlu0 %v694_v23, %s6070_s15  ;;  %v889_v22 = vld [vmem:[%s6468_s18 + $0xb0] sm:$0xff] }
  0x7f   : > { %784 = vrot.lane.b32.xlu1 %v697_v24, %s6070_s15  ;;  %782 = vrot.lane.b32.xlu0 %v696_v25, %s6070_s15  ;;  %v892_v25 = vld [vmem:[%s6468_s18 + $0xc8] sm:$0xff] }
  0x83   : > { %788 = vrot.lane.b32.xlu1 %v699_v26, %s6070_s15  ;;  %786 = vrot.lane.b32.xlu0 %v698_v27, %s6070_s15  ;;  %v891_v26 = vld [vmem:[%s6468_s18 + $0xc0] sm:$0xff] }
  0x85   : > { %v550_v30 = vpop.permute.xlu1 %549  ;;  %v546_v31 = vpop.permute.xlu0 %545 }
  0x86   : > { %644 = vst.msk [vmem:[#allocation2 + $0x31] sm:$0xff] %vm641_vm3, %v550_v30  ;;  %642 = vst.msk [vmem:[#allocation2 + $0x19] sm:$0xff] %vm641_vm3, %v546_v31  ;;  %v893_v30 = vld [vmem:[%s6468_s18 + $0xd0] sm:$0xff] }
  0x87   : > { %792 = vrot.lane.b32.xlu1 %v701_v28, %s6070_s15  ;;  %790 = vrot.lane.b32.xlu0 %v700_v29, %s6070_s15  ;;  %v894_v29 = vld [vmem:[%s6468_s18 + $0xd8] sm:$0xff] }
  0x89   : > { %v552_v34 = vpop.permute.xlu1 %551  ;;  %v548_v35 = vpop.permute.xlu0 %547 }
  0x8a   : > { %645 = vst.msk [vmem:[#allocation2 + $0x39] sm:$0xff] %vm641_vm3, %v552_v34  ;;  %643 = vst.msk [vmem:[#allocation2 + $0x21] sm:$0xff] %vm641_vm3, %v548_v35  ;;  %v895_v34 = vld [vmem:[%s6468_s18 + $0xe0] sm:$0xff] }
  0x8b   : > { %796 = vrot.lane.b32.xlu1 %v703_v32, %s6070_s15  ;;  %794 = vrot.lane.b32.xlu0 %v702_v33, %s6070_s15  ;;  %v896_v33 = vld [vmem:[%s6468_s18 + $0xe8] sm:$0xff] }
  0x8d   : > { %v556_v38 = vpop.permute.xlu1 %555  ;;  %v554_v39 = vpop.permute.xlu0 %553 }
  0x8e   : > { %647 = vst.msk [vmem:[#allocation2 + $0x51] sm:$0xff] %vm641_vm3, %v556_v38  ;;  %646 = vst.msk [vmem:[#allocation2 + $0x49] sm:$0xff] %vm641_vm3, %v554_v39  ;;  %v897_v38 = vld [vmem:[%s6468_s18 + $0xf0] sm:$0xff] }
  0x8f   : > { %800 = vrot.lane.b32.xlu1 %v705_v36, %s6070_s15  ;;  %798 = vrot.lane.b32.xlu0 %v704_v37, %s6070_s15  ;;  %v898_v37 = vld [vmem:[%s6468_s18 + $0xf8] sm:$0xff]  ;;  %s6075_s18 = smov 24  }
  0x91   : > { %v560_v42 = vpop.permute.xlu1 %559  ;;  %v558_v43 = vpop.permute.xlu0 %557 }
  0x92   : > { %649 = vst.msk [vmem:[#allocation2 + $0x69] sm:$0xff] %vm641_vm3, %v560_v42  ;;  %648 = vst.msk [vmem:[#allocation2 + $0x61] sm:$0xff] %vm641_vm3, %v558_v43  ;;  %v1124_v42 = vld [vmem:[#allocation2 + $0x1] sm:$0xff] }
  0x93   : > { %933 = vrot.lane.b32.xlu1 %v868_v40, %s6071_s19  ;;  %931 = vrot.lane.b32.xlu0 %v867_v41, %s6071_s19  ;;  %v1125_v41 = vld [vmem:[#allocation2 + $0x9] sm:$0xff] }
  0x95   : > { %v564_v46 = vpop.permute.xlu1 %563  ;;  %v562_v47 = vpop.permute.xlu0 %561 }
  0x96   : > { %651 = vst.msk [vmem:[#allocation2 + $0x81] sm:$0xff] %vm641_vm3, %v564_v46  ;;  %650 = vst.msk [vmem:[#allocation2 + $0x79] sm:$0xff] %vm641_vm3, %v562_v47 }
  0x97   : > { %937 = vrot.lane.b32.xlu1 %v870_v44, %s6071_s19  ;;  %935 = vrot.lane.b32.xlu0 %v869_v45, %s6071_s19 }
  0x99   : > { %v568_v50 = vpop.permute.xlu1 %567  ;;  %v566_v51 = vpop.permute.xlu0 %565 }
  0x9a   : > { %653 = vst.msk [vmem:[#allocation2 + $0x99] sm:$0xff] %vm641_vm3, %v568_v50  ;;  %652 = vst.msk [vmem:[#allocation2 + $0x91] sm:$0xff] %vm641_vm3, %v566_v51 }
  0x9b   : > { %941 = vrot.lane.b32.xlu1 %v872_v48, %s6071_s19  ;;  %939 = vrot.lane.b32.xlu0 %v871_v49, %s6071_s19 }
  0x9d   : > { %v572_v54 = vpop.permute.xlu1 %571  ;;  %v570_v55 = vpop.permute.xlu0 %569 }
  0x9e   : > { %655 = vst.msk [vmem:[#allocation2 + $0xb1] sm:$0xff] %vm641_vm3, %v572_v54  ;;  %654 = vst.msk [vmem:[#allocation2 + $0xa9] sm:$0xff] %vm641_vm3, %v570_v55 }
  0x9f   : > { %945 = vrot.lane.b32.xlu1 %v874_v52, %s6071_s19  ;;  %943 = vrot.lane.b32.xlu0 %v873_v53, %s6071_s19 }
  0xa1   : > { %v576_v58 = vpop.permute.xlu1 %575  ;;  %v574_v59 = vpop.permute.xlu0 %573 }
  0xa2   : > { %657 = vst.msk [vmem:[#allocation2 + $0xc9] sm:$0xff] %vm641_vm3, %v576_v58  ;;  %656 = vst.msk [vmem:[#allocation2 + $0xc1] sm:$0xff] %vm641_vm3, %v574_v59 }
  0xa3   : > { %949 = vrot.lane.b32.xlu1 %v876_v56, %s6071_s19  ;;  %947 = vrot.lane.b32.xlu0 %v875_v57, %s6071_s19 }
  0xa5   : > { %v580_v62 = vpop.permute.xlu1 %579  ;;  %v578_v63 = vpop.permute.xlu0 %577 }
  0xa6   : > { %659 = vst.msk [vmem:[#allocation2 + $0xe1] sm:$0xff] %vm641_vm3, %v580_v62  ;;  %658 = vst.msk [vmem:[#allocation2 + $0xd9] sm:$0xff] %vm641_vm3, %v578_v63 }
  0xa7   : > { %953 = vrot.lane.b32.xlu1 %v878_v60, %s6071_s19  ;;  %951 = vrot.lane.b32.xlu0 %v877_v61, %s6071_s19 }
  0xa9   : > { %v584_v3 = vpop.permute.xlu1 %583  ;;  %v582_v4 = vpop.permute.xlu0 %581 }
  0xaa   : > { %661 = vst.msk [vmem:[#allocation2 + $0xf9] sm:$0xff] %vm641_vm3, %v584_v3  ;;  %660 = vst.msk [vmem:[#allocation2 + $0xf1] sm:$0xff] %vm641_vm3, %v582_v4  ;;  %v1060_v3 = vld [vmem:[#allocation2] sm:$0xff] }
  0xab   : > { %957 = vrot.lane.b32.xlu1 %v880_v1, %s6071_s19  ;;  %955 = vrot.lane.b32.xlu0 %v879_v2, %s6071_s19  ;;  %v1061_v2 = vld [vmem:[#allocation2 + $0x8] sm:$0xff]  ;;  %1092 = vst.msk [vmem:[#allocation3] sm:$0xff] %vm359_vm0, %v1060_v3 }
  0xac   : > { %1093 = vst.msk [vmem:[#allocation3 + $0x18] sm:$0xff] %vm359_vm0, %v1061_v2 }
  0xad   : > { %v588_v7 = vpop.permute.xlu1 %587  ;;  %v586_v8 = vpop.permute.xlu0 %585 }
  0xae   : > { %663 = vst.msk [vmem:[#allocation2 + $0x111] sm:$0xff] %vm641_vm3, %v588_v7  ;;  %662 = vst.msk [vmem:[#allocation2 + $0x109] sm:$0xff] %vm641_vm3, %v586_v8 }
  0xaf   : > { %961 = vrot.lane.b32.xlu1 %v882_v5, %s6071_s19  ;;  %959 = vrot.lane.b32.xlu0 %v881_v6, %s6071_s19 }
  0xb1   : > { %v592_v11 = vpop.permute.xlu1 %591  ;;  %v590_v12 = vpop.permute.xlu0 %589 }
  0xb2   : > { %665 = vst.msk [vmem:[#allocation2 + $0x129] sm:$0xff] %vm641_vm3, %v592_v11  ;;  %664 = vst.msk [vmem:[#allocation2 + $0x121] sm:$0xff] %vm641_vm3, %v590_v12 }
  0xb3   : > { %965 = vrot.lane.b32.xlu1 %v884_v9, %s6071_s19  ;;  %963 = vrot.lane.b32.xlu0 %v883_v10, %s6071_s19 }
  0xb5   : > { %v596_v15 = vpop.permute.xlu1 %595  ;;  %v594_v16 = vpop.permute.xlu0 %593 }
  0xb6   : > { %667 = vst.msk [vmem:[#allocation2 + $0x141] sm:$0xff] %vm641_vm3, %v596_v15  ;;  %666 = vst.msk [vmem:[#allocation2 + $0x139] sm:$0xff] %vm641_vm3, %v594_v16 }
  0xb7   : > { %969 = vrot.lane.b32.xlu1 %v886_v13, %s6071_s19  ;;  %967 = vrot.lane.b32.xlu0 %v885_v14, %s6071_s19 }
  0xb9   : > { %v600_v19 = vpop.permute.xlu1 %599  ;;  %v598_v20 = vpop.permute.xlu0 %597 }
  0xba   : > { %669 = vst.msk [vmem:[#allocation2 + $0x159] sm:$0xff] %vm641_vm3, %v600_v19  ;;  %668 = vst.msk [vmem:[#allocation2 + $0x151] sm:$0xff] %vm641_vm3, %v598_v20 }
  0xbb   : > { %973 = vrot.lane.b32.xlu1 %v888_v17, %s6071_s19  ;;  %971 = vrot.lane.b32.xlu0 %v887_v18, %s6071_s19 }
  0xbd   : > { %v604_v23 = vpop.permute.xlu1 %603  ;;  %v602_v24 = vpop.permute.xlu0 %601 }
  0xbe   : > { %671 = vst.msk [vmem:[#allocation2 + $0x171] sm:$0xff] %vm641_vm3, %v604_v23  ;;  %670 = vst.msk [vmem:[#allocation2 + $0x169] sm:$0xff] %vm641_vm3, %v602_v24 }
  0xbf   : > { %977 = vrot.lane.b32.xlu1 %v890_v21, %s6071_s19  ;;  %975 = vrot.lane.b32.xlu0 %v889_v22, %s6071_s19 }
  0xc1   : > { %v608_v27 = vpop.permute.xlu1 %607  ;;  %v606_v28 = vpop.permute.xlu0 %605 }
  0xc2   : > { %673 = vst.msk [vmem:[#allocation2 + $0x189] sm:$0xff] %vm641_vm3, %v608_v27  ;;  %672 = vst.msk [vmem:[#allocation2 + $0x181] sm:$0xff] %vm641_vm3, %v606_v28  ;;  %vm5180_vm3 = vcmask 523264  }
  0xc3   : > { %981 = vrot.lane.b32.xlu1 %v892_v25, %s6071_s19  ;;  %979 = vrot.lane.b32.xlu0 %v891_v26, %s6071_s19 }
  0xc5   : > { %v741_v31 = vpop.permute.xlu1 %740  ;;  %v739_v32 = vpop.permute.xlu0 %738 }
  0xc6   : > { %836 = vst.msk [vmem:[#allocation2 + $0x21] sm:$0xff] %vm834_vm4, %v741_v31  ;;  %835 = vst.msk [vmem:[#allocation2 + $0x19] sm:$0xff] %vm834_vm4, %v739_v32 }
  0xc7   : > { %985 = vrot.lane.b32.xlu1 %v894_v29, %s6071_s19  ;;  %983 = vrot.lane.b32.xlu0 %v893_v30, %s6071_s19 }
  0xc9   : > { %v745_v35 = vpop.permute.xlu1 %744  ;;  %v743_v36 = vpop.permute.xlu0 %742 }
  0xca   : > { %838 = vst.msk [vmem:[#allocation2 + $0x39] sm:$0xff] %vm834_vm4, %v745_v35  ;;  %837 = vst.msk [vmem:[#allocation2 + $0x31] sm:$0xff] %vm834_vm4, %v743_v36 }
  0xcb   : > { %989 = vrot.lane.b32.xlu1 %v896_v33, %s6071_s19  ;;  %987 = vrot.lane.b32.xlu0 %v895_v34, %s6071_s19 }
  0xcd   : > { %v749_v39 = vpop.permute.xlu1 %748  ;;  %v747_v40 = vpop.permute.xlu0 %746 }
  0xce   : > { %840 = vst.msk [vmem:[#allocation2 + $0x51] sm:$0xff] %vm834_vm4, %v749_v39  ;;  %839 = vst.msk [vmem:[#allocation2 + $0x49] sm:$0xff] %vm834_vm4, %v747_v40 }
  0xcf   : > { %993 = vrot.lane.b32.xlu1 %v898_v37, %s6071_s19  ;;  %991 = vrot.lane.b32.xlu0 %v897_v38, %s6071_s19 }
  0xd1   : > { %v753_v43 = vpop.permute.xlu1 %752  ;;  %v751_v44 = vpop.permute.xlu0 %750 }
  0xd2   : > { %842 = vst.msk [vmem:[#allocation2 + $0x69] sm:$0xff] %vm834_vm4, %v753_v43  ;;  %841 = vst.msk [vmem:[#allocation2 + $0x61] sm:$0xff] %vm834_vm4, %v751_v44 }
  0xd3   : > { %1190 = vrot.lane.b32.xlu1 %v1125_v41, %s6072_s20  ;;  %1188 = vrot.lane.b32.xlu0 %v1124_v42, %s6072_s20 }
  0xd5   : > { %v757_v45 = vpop.permute.xlu1 %756  ;;  %v755_v46 = vpop.permute.xlu0 %754 }
  0xd6   : > { %844 = vst.msk [vmem:[#allocation2 + $0x81] sm:$0xff] %vm834_vm4, %v757_v45  ;;  %843 = vst.msk [vmem:[#allocation2 + $0x79] sm:$0xff] %vm834_vm4, %v755_v46 }
  0xd9   : > { %v761_v47 = vpop.permute.xlu1 %760  ;;  %v759_v48 = vpop.permute.xlu0 %758 }
  0xda   : > { %846 = vst.msk [vmem:[#allocation2 + $0x99] sm:$0xff] %vm834_vm4, %v761_v47  ;;  %845 = vst.msk [vmem:[#allocation2 + $0x91] sm:$0xff] %vm834_vm4, %v759_v48 }
  0xdd   : > { %v765_v49 = vpop.permute.xlu1 %764  ;;  %v763_v50 = vpop.permute.xlu0 %762 }
  0xde   : > { %848 = vst.msk [vmem:[#allocation2 + $0xb1] sm:$0xff] %vm834_vm4, %v765_v49  ;;  %847 = vst.msk [vmem:[#allocation2 + $0xa9] sm:$0xff] %vm834_vm4, %v763_v50 }
  0xe1   : > { %v769_v51 = vpop.permute.xlu1 %768  ;;  %v767_v52 = vpop.permute.xlu0 %766 }
  0xe2   : > { %850 = vst.msk [vmem:[#allocation2 + $0xc9] sm:$0xff] %vm834_vm4, %v769_v51  ;;  %849 = vst.msk [vmem:[#allocation2 + $0xc1] sm:$0xff] %vm834_vm4, %v767_v52 }
  0xe5   : > { %v773_v53 = vpop.permute.xlu1 %772  ;;  %v771_v54 = vpop.permute.xlu0 %770 }
  0xe6   : > { %852 = vst.msk [vmem:[#allocation2 + $0xe1] sm:$0xff] %vm834_vm4, %v773_v53  ;;  %851 = vst.msk [vmem:[#allocation2 + $0xd9] sm:$0xff] %vm834_vm4, %v771_v54 }
  0xe9   : > { %v777_v55 = vpop.permute.xlu1 %776  ;;  %v775_v56 = vpop.permute.xlu0 %774 }
  0xea   : > { %854 = vst.msk [vmem:[#allocation2 + $0xf9] sm:$0xff] %vm834_vm4, %v777_v55  ;;  %853 = vst.msk [vmem:[#allocation2 + $0xf1] sm:$0xff] %vm834_vm4, %v775_v56 }
  0xed   : > { %v781_v57 = vpop.permute.xlu1 %780  ;;  %v779_v58 = vpop.permute.xlu0 %778 }
  0xee   : > { %856 = vst.msk [vmem:[#allocation2 + $0x111] sm:$0xff] %vm834_vm4, %v781_v57  ;;  %855 = vst.msk [vmem:[#allocation2 + $0x109] sm:$0xff] %vm834_vm4, %v779_v58 }
  0xf1   : > { %v785_v59 = vpop.permute.xlu1 %784  ;;  %v783_v60 = vpop.permute.xlu0 %782 }
  0xf2   : > { %858 = vst.msk [vmem:[#allocation2 + $0x129] sm:$0xff] %vm834_vm4, %v785_v59  ;;  %857 = vst.msk [vmem:[#allocation2 + $0x121] sm:$0xff] %vm834_vm4, %v783_v60 }
  0xf5   : > { %v789_v61 = vpop.permute.xlu1 %788  ;;  %v787_v62 = vpop.permute.xlu0 %786 }
  0xf6   : > { %860 = vst.msk [vmem:[#allocation2 + $0x141] sm:$0xff] %vm834_vm4, %v789_v61  ;;  %859 = vst.msk [vmem:[#allocation2 + $0x139] sm:$0xff] %vm834_vm4, %v787_v62 }
  0xf9   : > { %v793_v63 = vpop.permute.xlu1 %792  ;;  %v791_v1 = vpop.permute.xlu0 %790 }
  0xfa   : > { %862 = vst.msk [vmem:[#allocation2 + $0x159] sm:$0xff] %vm834_vm4, %v793_v63  ;;  %861 = vst.msk [vmem:[#allocation2 + $0x151] sm:$0xff] %vm834_vm4, %v791_v1 }
  0xfd   : > { %v797_v4 = vpop.permute.xlu1 %796  ;;  %v795_v5 = vpop.permute.xlu0 %794 }
  0xfe   : > { %864 = vst.msk [vmem:[#allocation2 + $0x171] sm:$0xff] %vm834_vm4, %v797_v4  ;;  %863 = vst.msk [vmem:[#allocation2 + $0x169] sm:$0xff] %vm834_vm4, %v795_v5 }
 0x101   : > { %v801_v6 = vpop.permute.xlu1 %800  ;;  %v799_v7 = vpop.permute.xlu0 %798 }
 0x102   : > { %866 = vst.msk [vmem:[#allocation2 + $0x189] sm:$0xff] %vm834_vm4, %v801_v6  ;;  %865 = vst.msk [vmem:[#allocation2 + $0x181] sm:$0xff] %vm834_vm4, %v799_v7 }
 0x105   : > { %v934_v8 = vpop.permute.xlu1 %933  ;;  %v932_v9 = vpop.permute.xlu0 %931 }
 0x106   : > { %1029 = vst.msk [vmem:[#allocation2 + $0x21] sm:$0xff] %vm1027_vm5, %v934_v8  ;;  %1028 = vst.msk [vmem:[#allocation2 + $0x19] sm:$0xff] %vm1027_vm5, %v932_v9 }
 0x109   : > { %v938_v10 = vpop.permute.xlu1 %937  ;;  %v936_v11 = vpop.permute.xlu0 %935 }
 0x10a   : > { %1031 = vst.msk [vmem:[#allocation2 + $0x39] sm:$0xff] %vm1027_vm5, %v938_v10  ;;  %1030 = vst.msk [vmem:[#allocation2 + $0x31] sm:$0xff] %vm1027_vm5, %v936_v11 }
 0x10d   : > { %v942_v12 = vpop.permute.xlu1 %941  ;;  %v940_v13 = vpop.permute.xlu0 %939  ;;  %v6604_v14 = vld [vmem:[#allocation2 + $0x21] sm:$0xff]  ;;  %v6606_v15 = vld [vmem:[#allocation2 + $0x19] sm:$0xff] }
 0x10e   : > { %1033 = vst.msk [vmem:[#allocation2 + $0x51] sm:$0xff] %vm1027_vm5, %v942_v12  ;;  %1032 = vst.msk [vmem:[#allocation2 + $0x49] sm:$0xff] %vm1027_vm5, %v940_v13  ;;  %1194 = vrot.lane.b32.xlu1 %v6604_v14, %s6072_s20  ;;  %1192 = vrot.lane.b32.xlu0 %v6606_v15, %s6072_s20  ;;  %v6614_v16 = vld [vmem:[#allocation2 + $0x20] sm:$0xff]  ;;  %v6616_v17 = vld [vmem:[#allocation2 + $0x18] sm:$0xff] }
 0x10f   : > { %1095 = vst.msk [vmem:[#allocation3 + $0x48] sm:$0xff] %vm359_vm0, %v6614_v16  ;;  %1094 = vst.msk [vmem:[#allocation3 + $0x30] sm:$0xff] %vm359_vm0, %v6616_v17 }
 0x111   : > { %v946_v18 = vpop.permute.xlu1 %945  ;;  %v944_v19 = vpop.permute.xlu0 %943  ;;  %v6622_v20 = vld [vmem:[#allocation2 + $0x39] sm:$0xff]  ;;  %v6624_v21 = vld [vmem:[#allocation2 + $0x31] sm:$0xff] }
 0x112   : > { %1035 = vst.msk [vmem:[#allocation2 + $0x69] sm:$0xff] %vm1027_vm5, %v946_v18  ;;  %1034 = vst.msk [vmem:[#allocation2 + $0x61] sm:$0xff] %vm1027_vm5, %v944_v19  ;;  %1198 = vrot.lane.b32.xlu1 %v6622_v20, %s6072_s20  ;;  %1196 = vrot.lane.b32.xlu0 %v6624_v21, %s6072_s20  ;;  %v6632_v22 = vld [vmem:[#allocation2 + $0x38] sm:$0xff]  ;;  %v6634_v23 = vld [vmem:[#allocation2 + $0x30] sm:$0xff] }
 0x113   : > { %1097 = vst.msk [vmem:[#allocation3 + $0x78] sm:$0xff] %vm359_vm0, %v6632_v22  ;;  %1096 = vst.msk [vmem:[#allocation3 + $0x60] sm:$0xff] %vm359_vm0, %v6634_v23 }
 0x115   : > { %v950_v24 = vpop.permute.xlu1 %949  ;;  %v948_v25 = vpop.permute.xlu0 %947  ;;  %v6640_v26 = vld [vmem:[#allocation2 + $0x51] sm:$0xff]  ;;  %v6642_v27 = vld [vmem:[#allocation2 + $0x49] sm:$0xff] }
 0x116   : > { %1037 = vst.msk [vmem:[#allocation2 + $0x81] sm:$0xff] %vm1027_vm5, %v950_v24  ;;  %1036 = vst.msk [vmem:[#allocation2 + $0x79] sm:$0xff] %vm1027_vm5, %v948_v25  ;;  %1202 = vrot.lane.b32.xlu1 %v6640_v26, %s6072_s20  ;;  %1200 = vrot.lane.b32.xlu0 %v6642_v27, %s6072_s20  ;;  %v6650_v28 = vld [vmem:[#allocation2 + $0x50] sm:$0xff]  ;;  %v6652_v29 = vld [vmem:[#allocation2 + $0x48] sm:$0xff] }
 0x117   : > { %1099 = vst.msk [vmem:[#allocation3 + $0xa8] sm:$0xff] %vm359_vm0, %v6650_v28  ;;  %1098 = vst.msk [vmem:[#allocation3 + $0x90] sm:$0xff] %vm359_vm0, %v6652_v29 }
 0x119   : > { %v954_v30 = vpop.permute.xlu1 %953  ;;  %v952_v31 = vpop.permute.xlu0 %951  ;;  %v6658_v32 = vld [vmem:[#allocation2 + $0x69] sm:$0xff]  ;;  %v6660_v33 = vld [vmem:[#allocation2 + $0x61] sm:$0xff] }
 0x11a   : > { %1039 = vst.msk [vmem:[#allocation2 + $0x99] sm:$0xff] %vm1027_vm5, %v954_v30  ;;  %1038 = vst.msk [vmem:[#allocation2 + $0x91] sm:$0xff] %vm1027_vm5, %v952_v31  ;;  %1206 = vrot.lane.b32.xlu1 %v6658_v32, %s6072_s20  ;;  %1204 = vrot.lane.b32.xlu0 %v6660_v33, %s6072_s20  ;;  %v6668_v34 = vld [vmem:[#allocation2 + $0x68] sm:$0xff]  ;;  %v6670_v35 = vld [vmem:[#allocation2 + $0x60] sm:$0xff] }
 0x11b   : > { %1101 = vst.msk [vmem:[#allocation3 + $0xd8] sm:$0xff] %vm359_vm0, %v6668_v34  ;;  %1100 = vst.msk [vmem:[#allocation3 + $0xc0] sm:$0xff] %vm359_vm0, %v6670_v35 }
 0x11d   : > { %v958_v36 = vpop.permute.xlu1 %957  ;;  %v956_v37 = vpop.permute.xlu0 %955  ;;  %v6676_v38 = vld [vmem:[#allocation2 + $0x81] sm:$0xff]  ;;  %v6678_v39 = vld [vmem:[#allocation2 + $0x79] sm:$0xff] }
 0x11e   : > { %1041 = vst.msk [vmem:[#allocation2 + $0xb1] sm:$0xff] %vm1027_vm5, %v958_v36  ;;  %1040 = vst.msk [vmem:[#allocation2 + $0xa9] sm:$0xff] %vm1027_vm5, %v956_v37  ;;  %1210 = vrot.lane.b32.xlu1 %v6676_v38, %s6072_s20  ;;  %1208 = vrot.lane.b32.xlu0 %v6678_v39, %s6072_s20  ;;  %v6686_v40 = vld [vmem:[#allocation2 + $0x80] sm:$0xff]  ;;  %v6688_v41 = vld [vmem:[#allocation2 + $0x78] sm:$0xff] }
 0x11f   : > { %1103 = vst.msk [vmem:[#allocation3 + $0x108] sm:$0xff] %vm359_vm0, %v6686_v40  ;;  %1102 = vst.msk [vmem:[#allocation3 + $0xf0] sm:$0xff] %vm359_vm0, %v6688_v41 }
 0x121   : > { %v962_v42 = vpop.permute.xlu1 %961  ;;  %v960_v43 = vpop.permute.xlu0 %959  ;;  %v6694_v44 = vld [vmem:[#allocation2 + $0x99] sm:$0xff]  ;;  %v6696_v45 = vld [vmem:[#allocation2 + $0x91] sm:$0xff] }
 0x122   : > { %1043 = vst.msk [vmem:[#allocation2 + $0xc9] sm:$0xff] %vm1027_vm5, %v962_v42  ;;  %1042 = vst.msk [vmem:[#allocation2 + $0xc1] sm:$0xff] %vm1027_vm5, %v960_v43  ;;  %1214 = vrot.lane.b32.xlu1 %v6694_v44, %s6072_s20  ;;  %1212 = vrot.lane.b32.xlu0 %v6696_v45, %s6072_s20  ;;  %v6704_v46 = vld [vmem:[#allocation2 + $0x98] sm:$0xff]  ;;  %v6706_v47 = vld [vmem:[#allocation2 + $0x90] sm:$0xff] }
 0x123   : > { %1105 = vst.msk [vmem:[#allocation3 + $0x138] sm:$0xff] %vm359_vm0, %v6704_v46  ;;  %1104 = vst.msk [vmem:[#allocation3 + $0x120] sm:$0xff] %vm359_vm0, %v6706_v47 }
 0x125   : > { %v966_v48 = vpop.permute.xlu1 %965  ;;  %v964_v49 = vpop.permute.xlu0 %963  ;;  %v6712_v50 = vld [vmem:[#allocation2 + $0xb1] sm:$0xff]  ;;  %v6714_v51 = vld [vmem:[#allocation2 + $0xa9] sm:$0xff] }
 0x126   : > { %1045 = vst.msk [vmem:[#allocation2 + $0xe1] sm:$0xff] %vm1027_vm5, %v966_v48  ;;  %1044 = vst.msk [vmem:[#allocation2 + $0xd9] sm:$0xff] %vm1027_vm5, %v964_v49  ;;  %1218 = vrot.lane.b32.xlu1 %v6712_v50, %s6072_s20  ;;  %1216 = vrot.lane.b32.xlu0 %v6714_v51, %s6072_s20  ;;  %v6722_v52 = vld [vmem:[#allocation2 + $0xb0] sm:$0xff]  ;;  %v6724_v53 = vld [vmem:[#allocation2 + $0xa8] sm:$0xff] }
 0x127   : > { %1107 = vst.msk [vmem:[#allocation3 + $0x168] sm:$0xff] %vm359_vm0, %v6722_v52  ;;  %1106 = vst.msk [vmem:[#allocation3 + $0x150] sm:$0xff] %vm359_vm0, %v6724_v53 }
 0x129   : > { %v970_v54 = vpop.permute.xlu1 %969  ;;  %v968_v55 = vpop.permute.xlu0 %967  ;;  %v6730_v56 = vld [vmem:[#allocation2 + $0xc9] sm:$0xff]  ;;  %v6732_v57 = vld [vmem:[#allocation2 + $0xc1] sm:$0xff] }
 0x12a   : > { %1047 = vst.msk [vmem:[#allocation2 + $0xf9] sm:$0xff] %vm1027_vm5, %v970_v54  ;;  %1046 = vst.msk [vmem:[#allocation2 + $0xf1] sm:$0xff] %vm1027_vm5, %v968_v55  ;;  %1222 = vrot.lane.b32.xlu1 %v6730_v56, %s6072_s20  ;;  %1220 = vrot.lane.b32.xlu0 %v6732_v57, %s6072_s20  ;;  %v6740_v58 = vld [vmem:[#allocation2 + $0xc8] sm:$0xff]  ;;  %v6742_v59 = vld [vmem:[#allocation2 + $0xc0] sm:$0xff] }
 0x12b   : > { %1109 = vst.msk [vmem:[#allocation3 + $0x198] sm:$0xff] %vm359_vm0, %v6740_v58  ;;  %1108 = vst.msk [vmem:[#allocation3 + $0x180] sm:$0xff] %vm359_vm0, %v6742_v59 }
 0x12d   : > { %v974_v60 = vpop.permute.xlu1 %973  ;;  %v972_v61 = vpop.permute.xlu0 %971  ;;  %v6748_v62 = vld [vmem:[#allocation2 + $0xe1] sm:$0xff]  ;;  %v6750_v63 = vld [vmem:[#allocation2 + $0xd9] sm:$0xff] }
 0x12e   : > { %1049 = vst.msk [vmem:[#allocation2 + $0x111] sm:$0xff] %vm1027_vm5, %v974_v60  ;;  %1048 = vst.msk [vmem:[#allocation2 + $0x109] sm:$0xff] %vm1027_vm5, %v972_v61  ;;  %1226 = vrot.lane.b32.xlu1 %v6748_v62, %s6072_s20  ;;  %1224 = vrot.lane.b32.xlu0 %v6750_v63, %s6072_s20  ;;  %v6758_v1 = vld [vmem:[#allocation2 + $0xe0] sm:$0xff]  ;;  %v6760_v2 = vld [vmem:[#allocation2 + $0xd8] sm:$0xff] }
 0x12f   : > { %1111 = vst.msk [vmem:[#allocation3 + $0x1c8] sm:$0xff] %vm359_vm0, %v6758_v1  ;;  %1110 = vst.msk [vmem:[#allocation3 + $0x1b0] sm:$0xff] %vm359_vm0, %v6760_v2 }
 0x131   : > { %v978_v3 = vpop.permute.xlu1 %977  ;;  %v976_v4 = vpop.permute.xlu0 %975  ;;  %v6766_v5 = vld [vmem:[#allocation2 + $0xf9] sm:$0xff]  ;;  %v6768_v6 = vld [vmem:[#allocation2 + $0xf1] sm:$0xff] }
 0x132   : > { %1051 = vst.msk [vmem:[#allocation2 + $0x129] sm:$0xff] %vm1027_vm5, %v978_v3  ;;  %1050 = vst.msk [vmem:[#allocation2 + $0x121] sm:$0xff] %vm1027_vm5, %v976_v4  ;;  %1230 = vrot.lane.b32.xlu1 %v6766_v5, %s6072_s20  ;;  %1228 = vrot.lane.b32.xlu0 %v6768_v6, %s6072_s20  ;;  %v6776_v7 = vld [vmem:[#allocation2 + $0xf8] sm:$0xff]  ;;  %v6778_v8 = vld [vmem:[#allocation2 + $0xf0] sm:$0xff] }
 0x133   : > { %1113 = vst.msk [vmem:[#allocation3 + $0x1f8] sm:$0xff] %vm359_vm0, %v6776_v7  ;;  %1112 = vst.msk [vmem:[#allocation3 + $0x1e0] sm:$0xff] %vm359_vm0, %v6778_v8 }
 0x135   : > { %v982_v9 = vpop.permute.xlu1 %981  ;;  %v980_v10 = vpop.permute.xlu0 %979  ;;  %v6784_v11 = vld [vmem:[#allocation2 + $0x111] sm:$0xff]  ;;  %v6786_v12 = vld [vmem:[#allocation2 + $0x109] sm:$0xff] }
 0x136   : > { %1053 = vst.msk [vmem:[#allocation2 + $0x141] sm:$0xff] %vm1027_vm5, %v982_v9  ;;  %1052 = vst.msk [vmem:[#allocation2 + $0x139] sm:$0xff] %vm1027_vm5, %v980_v10  ;;  %1234 = vrot.lane.b32.xlu1 %v6784_v11, %s6072_s20  ;;  %1232 = vrot.lane.b32.xlu0 %v6786_v12, %s6072_s20  ;;  %v6794_v13 = vld [vmem:[#allocation2 + $0x110] sm:$0xff]  ;;  %v6796_v18 = vld [vmem:[#allocation2 + $0x108] sm:$0xff] }
 0x137   : > { %1115 = vst.msk [vmem:[#allocation3 + $0x228] sm:$0xff] %vm359_vm0, %v6794_v13  ;;  %1114 = vst.msk [vmem:[#allocation3 + $0x210] sm:$0xff] %vm359_vm0, %v6796_v18 }
 0x139   : > { %v986_v19 = vpop.permute.xlu1 %985  ;;  %v984_v24 = vpop.permute.xlu0 %983  ;;  %v6802_v25 = vld [vmem:[#allocation2 + $0x129] sm:$0xff]  ;;  %v6804_v30 = vld [vmem:[#allocation2 + $0x121] sm:$0xff] }
 0x13a   : > { %1055 = vst.msk [vmem:[#allocation2 + $0x159] sm:$0xff] %vm1027_vm5, %v986_v19  ;;  %1054 = vst.msk [vmem:[#allocation2 + $0x151] sm:$0xff] %vm1027_vm5, %v984_v24  ;;  %1238 = vrot.lane.b32.xlu1 %v6802_v25, %s6072_s20  ;;  %1236 = vrot.lane.b32.xlu0 %v6804_v30, %s6072_s20  ;;  %v6812_v31 = vld [vmem:[#allocation2 + $0x128] sm:$0xff]  ;;  %v6814_v36 = vld [vmem:[#allocation2 + $0x120] sm:$0xff] }
 0x13b   : > { %1117 = vst.msk [vmem:[#allocation3 + $0x258] sm:$0xff] %vm359_vm0, %v6812_v31  ;;  %1116 = vst.msk [vmem:[#allocation3 + $0x240] sm:$0xff] %vm359_vm0, %v6814_v36 }
 0x13d   : > { %v990_v37 = vpop.permute.xlu1 %989  ;;  %v988_v42 = vpop.permute.xlu0 %987  ;;  %v6820_v43 = vld [vmem:[#allocation2 + $0x141] sm:$0xff]  ;;  %v6822_v48 = vld [vmem:[#allocation2 + $0x139] sm:$0xff] }
 0x13e   : > { %1057 = vst.msk [vmem:[#allocation2 + $0x171] sm:$0xff] %vm1027_vm5, %v990_v37  ;;  %1056 = vst.msk [vmem:[#allocation2 + $0x169] sm:$0xff] %vm1027_vm5, %v988_v42  ;;  %1242 = vrot.lane.b32.xlu1 %v6820_v43, %s6072_s20  ;;  %1240 = vrot.lane.b32.xlu0 %v6822_v48, %s6072_s20  ;;  %v6830_v49 = vld [vmem:[#allocation2 + $0x140] sm:$0xff]  ;;  %v6832_v54 = vld [vmem:[#allocation2 + $0x138] sm:$0xff] }
 0x13f   : > { %1119 = vst.msk [vmem:[#allocation3 + $0x288] sm:$0xff] %vm359_vm0, %v6830_v49  ;;  %1118 = vst.msk [vmem:[#allocation3 + $0x270] sm:$0xff] %vm359_vm0, %v6832_v54 }
 0x141   : > { %v6838_v55 = vld [vmem:[#allocation2 + $0x159] sm:$0xff]  ;;  %v6840_v60 = vld [vmem:[#allocation2 + $0x151] sm:$0xff]  ;;  %v994_v61 = vpop.permute.xlu1 %993  ;;  %v992_v3 = vpop.permute.xlu0 %991 }
 0x142   : > { %9375 = vst [vmem:[#allocation4_spill] sm:$0xff] %v6838_v55  ;;  %9376 = vst [vmem:[#allocation5_spill] sm:$0xff] %v6840_v60  ;;  %1246 = vrot.lane.b32.xlu1 %v6838_v55, %s6072_s20  ;;  %1244 = vrot.lane.b32.xlu0 %v6840_v60, %s6072_s20  ;;  %v6848_v4 = vld [vmem:[#allocation2 + $0x158] sm:$0xff]  ;;  %v6850_v9 = vld [vmem:[#allocation2 + $0x150] sm:$0xff] }
 0x143   : > { %1059 = vst.msk [vmem:[#allocation2 + $0x189] sm:$0xff] %vm1027_vm5, %v994_v61  ;;  %1058 = vst.msk [vmem:[#allocation2 + $0x181] sm:$0xff] %vm1027_vm5, %v992_v3  ;;  %v1318_v3 = vld [vmem:[#allocation2 + $0xa] sm:$0xff]  ;;  %v1327_v60 = vld [vmem:[#allocation2 + $0x7a] sm:$0xff] }
 0x144   : > { %1121 = vst.msk [vmem:[#allocation3 + $0x2b8] sm:$0xff] %vm359_vm0, %v6848_v4  ;;  %1120 = vst.msk [vmem:[#allocation3 + $0x2a0] sm:$0xff] %vm359_vm0, %v6850_v9  ;;  %v1329_v55 = vld [vmem:[#allocation2 + $0x92] sm:$0xff] }
 0x145   : > { %v6856_v10 = vld [vmem:[#allocation2 + $0x171] sm:$0xff]  ;;  %v6858_v19 = vld [vmem:[#allocation2 + $0x169] sm:$0xff]  ;;  %v1191_v24 = vpop.permute.xlu1 %1190  ;;  %v1189_v37 = vpop.permute.xlu0 %1188 }
 0x146   : > { %9377 = vst [vmem:[#allocation6_spill] sm:$0xff] %v6856_v10  ;;  %9378 = vst [vmem:[#allocation7_spill] sm:$0xff] %v6858_v19  ;;  %1250 = vrot.lane.b32.xlu1 %v6856_v10, %s6072_s20  ;;  %1248 = vrot.lane.b32.xlu0 %v6858_v19, %s6072_s20  ;;  %v6866_v42 = vld [vmem:[#allocation2 + $0x170] sm:$0xff]  ;;  %v6868_v61 = vld [vmem:[#allocation2 + $0x168] sm:$0xff]  ;;  %s6080_s20 = smov 64  }
 0x147   : > { %1286 = vst.msk [vmem:[#allocation3 + $0x18] sm:$0xff] %vm1284_vm6, %v1191_v24  ;;  %1285 = vst.msk [vmem:[#allocation3] sm:$0xff] %vm1284_vm6, %v1189_v37  ;;  %v6876_v24 = vld [vmem:[#allocation2 + $0x22] sm:$0xff]  ;;  %v6878_v37 = vld [vmem:[#allocation2 + $0x1a] sm:$0xff] }
 0x148   : > { %1123 = vst.msk [vmem:[#allocation3 + $0x2e8] sm:$0xff] %vm359_vm0, %v6866_v42  ;;  %1122 = vst.msk [vmem:[#allocation3 + $0x2d0] sm:$0xff] %vm359_vm0, %v6868_v61  ;;  %v6884_v19 = vld [vmem:[#allocation2 + $0x3a] sm:$0xff]  ;;  %v6886_v10 = vld [vmem:[#allocation2 + $0x32] sm:$0xff]  ;;  %vm2702_vm0 = vcmask 703872  }
 0x149   : > { %9379 = vst [vmem:[#allocation8_spill] sm:$0xff] %v6876_v24  ;;  %9380 = vst [vmem:[#allocation9_spill] sm:$0xff] %v6878_v37 }
 0x14a   : > { %1383 = vrot.lane.b32.xlu1 %v1318_v3, %s6073_s21  ;;  %1381 = vrot.lane.b32.xlu0 %v1317_v0, %s6073_s21  ;;  %9381 = vst [vmem:[#allocation10_spill] sm:$0xff] %v6884_v19  ;;  %9382 = vst [vmem:[#allocation11_spill] sm:$0xff] %v6886_v10  ;;  %v6892_v0 = vld [vmem:[#allocation2 + $0x52] sm:$0xff]  ;;  %v6894_v3 = vld [vmem:[#allocation2 + $0x4a] sm:$0xff] }
 0x14b   : > { %9383 = vst [vmem:[#allocation12_spill] sm:$0xff] %v6892_v0  ;;  %9384 = vst [vmem:[#allocation13_spill] sm:$0xff] %v6894_v3 }
 0x14e   : > { %1387 = vrot.lane.b32.xlu1 %v6876_v24, %s6073_s21  ;;  %1385 = vrot.lane.b32.xlu0 %v6878_v37, %s6073_s21  ;;  %v1326_v24 = vld [vmem:[#allocation2 + $0x6a] sm:$0xff]  ;;  %v1325_v37 = vld [vmem:[#allocation2 + $0x62] sm:$0xff] }
 0x152   : > { %1391 = vrot.lane.b32.xlu1 %v6884_v19, %s6073_s21  ;;  %1389 = vrot.lane.b32.xlu0 %v6886_v10, %s6073_s21  ;;  %v1328_v19 = vld [vmem:[#allocation2 + $0x82] sm:$0xff]  ;;  %v1330_v10 = vld [vmem:[#allocation2 + $0x9a] sm:$0xff] }
 0x156   : > { %1395 = vrot.lane.b32.xlu1 %v6892_v0, %s6073_s21  ;;  %1393 = vrot.lane.b32.xlu0 %v6894_v3, %s6073_s21  ;;  %v1332_v0 = vld [vmem:[#allocation2 + $0xb2] sm:$0xff]  ;;  %v1331_v3 = vld [vmem:[#allocation2 + $0xaa] sm:$0xff] }
 0x15a   : > { %1399 = vrot.lane.b32.xlu1 %v1326_v24, %s6073_s21  ;;  %1397 = vrot.lane.b32.xlu0 %v1325_v37, %s6073_s21  ;;  %v1334_v24 = vld [vmem:[#allocation2 + $0xca] sm:$0xff]  ;;  %v1333_v37 = vld [vmem:[#allocation2 + $0xc2] sm:$0xff] }
 0x15e   : > { %1403 = vrot.lane.b32.xlu1 %v1328_v19, %s6073_s21  ;;  %1401 = vrot.lane.b32.xlu0 %v1327_v60, %s6073_s21  ;;  %v1336_v19 = vld [vmem:[#allocation2 + $0xe2] sm:$0xff]  ;;  %v1335_v60 = vld [vmem:[#allocation2 + $0xda] sm:$0xff] }
 0x162   : > { %1407 = vrot.lane.b32.xlu1 %v1330_v10, %s6073_s21  ;;  %1405 = vrot.lane.b32.xlu0 %v1329_v55, %s6073_s21  ;;  %v1338_v10 = vld [vmem:[#allocation2 + $0xfa] sm:$0xff]  ;;  %v1337_v55 = vld [vmem:[#allocation2 + $0xf2] sm:$0xff] }
 0x166   : > { %1411 = vrot.lane.b32.xlu1 %v1332_v0, %s6073_s21  ;;  %1409 = vrot.lane.b32.xlu0 %v1331_v3, %s6073_s21  ;;  %v1340_v0 = vld [vmem:[#allocation2 + $0x112] sm:$0xff]  ;;  %v1339_v3 = vld [vmem:[#allocation2 + $0x10a] sm:$0xff] }
 0x16a   : > { %1415 = vrot.lane.b32.xlu1 %v1334_v24, %s6073_s21  ;;  %1413 = vrot.lane.b32.xlu0 %v1333_v37, %s6073_s21  ;;  %v1342_v24 = vld [vmem:[#allocation2 + $0x12a] sm:$0xff]  ;;  %v1341_v37 = vld [vmem:[#allocation2 + $0x122] sm:$0xff] }
 0x16e   : > { %1419 = vrot.lane.b32.xlu1 %v1336_v19, %s6073_s21  ;;  %1417 = vrot.lane.b32.xlu0 %v1335_v60, %s6073_s21  ;;  %v1344_v19 = vld [vmem:[#allocation2 + $0x142] sm:$0xff]  ;;  %v1343_v60 = vld [vmem:[#allocation2 + $0x13a] sm:$0xff] }
 0x172   : > { %1423 = vrot.lane.b32.xlu1 %v1338_v10, %s6073_s21  ;;  %1421 = vrot.lane.b32.xlu0 %v1337_v55, %s6073_s21 }
 0x176   : > { %1427 = vrot.lane.b32.xlu1 %v1340_v0, %s6073_s21  ;;  %1425 = vrot.lane.b32.xlu0 %v1339_v3, %s6073_s21  ;;  %v1346_v0 = vld [vmem:[#allocation2 + $0x15a] sm:$0xff]  ;;  %v1345_v3 = vld [vmem:[#allocation2 + $0x152] sm:$0xff] }
 0x17a   : > { %1431 = vrot.lane.b32.xlu1 %v1342_v24, %s6073_s21  ;;  %1429 = vrot.lane.b32.xlu0 %v1341_v37, %s6073_s21 }
 0x17e   : > { %1435 = vrot.lane.b32.xlu1 %v1344_v19, %s6073_s21  ;;  %1433 = vrot.lane.b32.xlu0 %v1343_v60, %s6073_s21  ;;  %v1348_v19 = vld [vmem:[#allocation2 + $0x172] sm:$0xff]  ;;  %v1347_v60 = vld [vmem:[#allocation2 + $0x16a] sm:$0xff] }
 0x180   : > { %v1195_v10 = vpop.permute.xlu1 %1194  ;;  %v1193_v55 = vpop.permute.xlu0 %1192 }
 0x181   : > { %1288 = vst.msk [vmem:[#allocation3 + $0x48] sm:$0xff] %vm1284_vm6, %v1195_v10  ;;  %1287 = vst.msk [vmem:[#allocation3 + $0x30] sm:$0xff] %vm1284_vm6, %v1193_v55 }
 0x182   : > { %1439 = vrot.lane.b32.xlu1 %v1346_v0, %s6073_s21  ;;  %1437 = vrot.lane.b32.xlu0 %v1345_v3, %s6073_s21 }
 0x184   : > { %v1199_v24 = vpop.permute.xlu1 %1198  ;;  %v1197_v37 = vpop.permute.xlu0 %1196 }
 0x185   : > { %1290 = vst.msk [vmem:[#allocation3 + $0x78] sm:$0xff] %vm1284_vm6, %v1199_v24  ;;  %1289 = vst.msk [vmem:[#allocation3 + $0x60] sm:$0xff] %vm1284_vm6, %v1197_v37 }
 0x186   : > { %1443 = vrot.lane.b32.xlu1 %v1348_v19, %s6073_s21  ;;  %1441 = vrot.lane.b32.xlu0 %v1347_v60, %s6073_s21 }
 0x188   : > { %v1203_v10 = vpop.permute.xlu1 %1202  ;;  %v1201_v55 = vpop.permute.xlu0 %1200 }
 0x189   : > { %1292 = vst.msk [vmem:[#allocation3 + $0xa8] sm:$0xff] %vm1284_vm6, %v1203_v10  ;;  %1291 = vst.msk [vmem:[#allocation3 + $0x90] sm:$0xff] %vm1284_vm6, %v1201_v55 }
 0x18a   : > { %1576 = vrot.lane.b32.xlu1 %v6614_v16, %s6074_s22  ;;  %1574 = vrot.lane.b32.xlu0 %v6616_v17, %s6074_s22 }
 0x18c   : > { %v1207_v0 = vpop.permute.xlu1 %1206  ;;  %v1205_v3 = vpop.permute.xlu0 %1204 }
 0x18d   : > { %1294 = vst.msk [vmem:[#allocation3 + $0xd8] sm:$0xff] %vm1284_vm6, %v1207_v0  ;;  %1293 = vst.msk [vmem:[#allocation3 + $0xc0] sm:$0xff] %vm1284_vm6, %v1205_v3 }
 0x18e   : > { %1580 = vrot.lane.b32.xlu1 %v6632_v22, %s6074_s22  ;;  %1578 = vrot.lane.b32.xlu0 %v6634_v23, %s6074_s22 }
 0x190   : > { %v1211_v24 = vpop.permute.xlu1 %1210  ;;  %v1209_v37 = vpop.permute.xlu0 %1208 }
 0x191   : > { %1296 = vst.msk [vmem:[#allocation3 + $0x108] sm:$0xff] %vm1284_vm6, %v1211_v24  ;;  %1295 = vst.msk [vmem:[#allocation3 + $0xf0] sm:$0xff] %vm1284_vm6, %v1209_v37 }
 0x192   : > { %1584 = vrot.lane.b32.xlu1 %v6650_v28, %s6074_s22  ;;  %1582 = vrot.lane.b32.xlu0 %v6652_v29, %s6074_s22 }
 0x194   : > { %v1215_v16 = vpop.permute.xlu1 %1214  ;;  %v1213_v17 = vpop.permute.xlu0 %1212 }
 0x195   : > { %1298 = vst.msk [vmem:[#allocation3 + $0x138] sm:$0xff] %vm1284_vm6, %v1215_v16  ;;  %1297 = vst.msk [vmem:[#allocation3 + $0x120] sm:$0xff] %vm1284_vm6, %v1213_v17 }
 0x196   : > { %1588 = vrot.lane.b32.xlu1 %v6668_v34, %s6074_s22  ;;  %1586 = vrot.lane.b32.xlu0 %v6670_v35, %s6074_s22 }
 0x198   : > { %v1219_v19 = vpop.permute.xlu1 %1218  ;;  %v1217_v60 = vpop.permute.xlu0 %1216 }
 0x199   : > { %1300 = vst.msk [vmem:[#allocation3 + $0x168] sm:$0xff] %vm1284_vm6, %v1219_v19  ;;  %1299 = vst.msk [vmem:[#allocation3 + $0x150] sm:$0xff] %vm1284_vm6, %v1217_v60 }
 0x19a   : > { %1592 = vrot.lane.b32.xlu1 %v6686_v40, %s6074_s22  ;;  %1590 = vrot.lane.b32.xlu0 %v6688_v41, %s6074_s22 }
 0x19c   : > { %v1223_v10 = vpop.permute.xlu1 %1222  ;;  %v1221_v55 = vpop.permute.xlu0 %1220 }
 0x19d   : > { %1302 = vst.msk [vmem:[#allocation3 + $0x198] sm:$0xff] %vm1284_vm6, %v1223_v10  ;;  %1301 = vst.msk [vmem:[#allocation3 + $0x180] sm:$0xff] %vm1284_vm6, %v1221_v55  ;;  %v1541_v55 = vld [vmem:[#allocation2 + $0x188] sm:$0xff] }
 0x19e   : > { %1596 = vrot.lane.b32.xlu1 %v6704_v46, %s6074_s22  ;;  %1594 = vrot.lane.b32.xlu0 %v6706_v47, %s6074_s22 }
 0x1a0   : > { %v1227_v0 = vpop.permute.xlu1 %1226  ;;  %v1225_v3 = vpop.permute.xlu0 %1224 }
 0x1a1   : > { %1304 = vst.msk [vmem:[#allocation3 + $0x1c8] sm:$0xff] %vm1284_vm6, %v1227_v0  ;;  %1303 = vst.msk [vmem:[#allocation3 + $0x1b0] sm:$0xff] %vm1284_vm6, %v1225_v3  ;;  %v1540_v0 = vld [vmem:[#allocation2 + $0x180] sm:$0xff]  ;;  %v2836_v3 = vld [vmem:[%s9233_s5 + $0x28] sm:$0xff] }
 0x1a2   : > { %1600 = vrot.lane.b32.xlu1 %v6722_v52, %s6074_s22  ;;  %1598 = vrot.lane.b32.xlu0 %v6724_v53, %s6074_s22 }
 0x1a4   : > { %v1231_v24 = vpop.permute.xlu1 %1230  ;;  %v1229_v37 = vpop.permute.xlu0 %1228 }
 0x1a5   : > { %1306 = vst.msk [vmem:[#allocation3 + $0x1f8] sm:$0xff] %vm1284_vm6, %v1231_v24  ;;  %1305 = vst.msk [vmem:[#allocation3 + $0x1e0] sm:$0xff] %vm1284_vm6, %v1229_v37  ;;  %v2838_v24 = vld [vmem:[%s9233_s5 + $0x38] sm:$0xff] }
 0x1a6   : > { %1604 = vrot.lane.b32.xlu1 %v6740_v58, %s6074_s22  ;;  %1602 = vrot.lane.b32.xlu0 %v6742_v59, %s6074_s22  ;;  %v5443_v37 = vpack.c.bf16 %v2838_v24, %v2836_v3  ;;  %v2854_v3 = vld [vmem:[%s9233_s5 + $0xb8] sm:$0xff] }
 0x1a8   : > { %v1235_v16 = vpop.permute.xlu1 %1234  ;;  %v1233_v17 = vpop.permute.xlu0 %1232 }
 0x1a9   : > { %1308 = vst.msk [vmem:[#allocation3 + $0x228] sm:$0xff] %vm1284_vm6, %v1235_v16  ;;  %1307 = vst.msk [vmem:[#allocation3 + $0x210] sm:$0xff] %vm1284_vm6, %v1233_v17  ;;  %v2835_v16 = vld [vmem:[%s9233_s5 + $0x20] sm:$0xff]  ;;  %v2837_v17 = vld [vmem:[%s9233_s5 + $0x30] sm:$0xff] }
 0x1aa   : > { %1608 = vrot.lane.b32.xlu1 %v6758_v1, %s6074_s22  ;;  %1606 = vrot.lane.b32.xlu0 %v6760_v2, %s6074_s22 }
 0x1ac   : > { %v1239_v52 = vpop.permute.xlu1 %1238  ;;  %v1237_v19 = vpop.permute.xlu0 %1236 }
 0x1ad   : > { %1310 = vst.msk [vmem:[#allocation3 + $0x258] sm:$0xff] %vm1284_vm6, %v1239_v52  ;;  %1309 = vst.msk [vmem:[#allocation3 + $0x240] sm:$0xff] %vm1284_vm6, %v1237_v19 }
 0x1ae   : > { %1612 = vrot.lane.b32.xlu1 %v6776_v7, %s6074_s22  ;;  %1610 = vrot.lane.b32.xlu0 %v6778_v8, %s6074_s22 }
 0x1b0   : > { %v1243_v58 = vpop.permute.xlu1 %1242  ;;  %v1241_v59 = vpop.permute.xlu0 %1240 }
 0x1b1   : > { %1312 = vst.msk [vmem:[#allocation3 + $0x288] sm:$0xff] %vm1284_vm6, %v1243_v58  ;;  %1311 = vst.msk [vmem:[#allocation3 + $0x270] sm:$0xff] %vm1284_vm6, %v1241_v59  ;;  %v5445_v58 = vpack.c.bf16 %v2837_v17, %v2835_v16  ;;  %v2840_v59 = vld [vmem:[%s9233_s5 + $0x48] sm:$0xff] }
 0x1b2   : > { %1616 = vrot.lane.b32.xlu1 %v6794_v13, %s6074_s22  ;;  %1614 = vrot.lane.b32.xlu0 %v6796_v18, %s6074_s22 }
 0x1b4   : > { %v1247_v1 = vpop.permute.xlu1 %1246  ;;  %v1245_v2 = vpop.permute.xlu0 %1244 }
 0x1b5   : > { %1314 = vst.msk [vmem:[#allocation3 + $0x2b8] sm:$0xff] %vm1284_vm6, %v1247_v1  ;;  %1313 = vst.msk [vmem:[#allocation3 + $0x2a0] sm:$0xff] %vm1284_vm6, %v1245_v2  ;;  %v2842_v1 = vld [vmem:[%s9233_s5 + $0x58] sm:$0xff] }
 0x1b6   : > { %1620 = vrot.lane.b32.xlu1 %v6812_v31, %s6074_s22  ;;  %1618 = vrot.lane.b32.xlu0 %v6814_v36, %s6074_s22  ;;  %v5447_v2 = vpack.c.bf16 %v2842_v1, %v2840_v59  ;;  %v2855_v59 = vld [vmem:[%s9233_s5 + $0xc0] sm:$0xff] }
 0x1b8   : > { %v1251_v7 = vpop.permute.xlu1 %1250  ;;  %v1249_v8 = vpop.permute.xlu0 %1248 }
 0x1b9   : > { %1316 = vst.msk [vmem:[#allocation3 + $0x2e8] sm:$0xff] %vm1284_vm6, %v1251_v7  ;;  %1315 = vst.msk [vmem:[#allocation3 + $0x2d0] sm:$0xff] %vm1284_vm6, %v1249_v8  ;;  %v2839_v7 = vld [vmem:[%s9233_s5 + $0x40] sm:$0xff] }
 0x1ba   : > { %1624 = vrot.lane.b32.xlu1 %v6830_v49, %s6074_s22  ;;  %1622 = vrot.lane.b32.xlu0 %v6832_v54, %s6074_s22  ;;  %v2832_v49 = vld [vmem:[%s9233_s5 + $0x8] sm:$0xff]  ;;  %v2834_v54 = vld [vmem:[%s9233_s5 + $0x18] sm:$0xff] }
 0x1bc   : > { %v1384_v13 = vpop.permute.xlu1 %1383  ;;  %v1382_v18 = vpop.permute.xlu0 %1381 }
 0x1bd   : > { %1479 = vst.msk [vmem:[#allocation3 + $0x18] sm:$0xff] %vm1477_vm7, %v1384_v13  ;;  %1478 = vst.msk [vmem:[#allocation3] sm:$0xff] %vm1477_vm7, %v1382_v18  ;;  %v2844_v18 = vld [vmem:[%s9233_s5 + $0x68] sm:$0xff] }
 0x1be   : > { %1628 = vrot.lane.b32.xlu1 %v6848_v4, %s6074_s22  ;;  %1626 = vrot.lane.b32.xlu0 %v6850_v9, %s6074_s22  ;;  %v5439_v4 = vpack.c.bf16 %v2834_v54, %v2832_v49  ;;  %v2831_v9 = vld [vmem:[%s9233_s5] sm:$0xff] }
 0x1bf   : > { %v2843_v49 = vld [vmem:[%s9233_s5 + $0x60] sm:$0xff] }
 0x1c0   : > { %v1388_v31 = vpop.permute.xlu1 %1387  ;;  %v1386_v36 = vpop.permute.xlu0 %1385  ;;  %5440 = vmatprep.subr.bf16.mxu1 %v5439_v4 }
 0x1c1   : > { %1481 = vst.msk [vmem:[#allocation3 + $0x48] sm:$0xff] %vm1477_vm7, %v1388_v31  ;;  %1480 = vst.msk [vmem:[#allocation3 + $0x30] sm:$0xff] %vm1477_vm7, %v1386_v36  ;;  %v2846_v31 = vld [vmem:[%s9233_s5 + $0x78] sm:$0xff] }
 0x1c2   : > { %1632 = vrot.lane.b32.xlu1 %v6866_v42, %s6074_s22  ;;  %1630 = vrot.lane.b32.xlu0 %v6868_v61, %s6074_s22  ;;  %v2833_v42 = vld [vmem:[%s9233_s5 + $0x10] sm:$0xff]  ;;  %v5451_v36 = vpack.c.bf16 %v2846_v31, %v2844_v18  ;;  %v2864_v31 = vld [vmem:[%s9233_s5 + $0x108] sm:$0xff] }
 0x1c3   : > { %v5441_v61 = vpack.c.bf16 %v2833_v42, %v2831_v9  ;;  %v2848_v9 = vld [vmem:[%s9233_s5 + $0x88] sm:$0xff]  ;;  %v2850_v42 = vld [vmem:[%s9233_s5 + $0x98] sm:$0xff] }
 0x1c4   : > { %v1392_v60 = vpop.permute.xlu1 %1391  ;;  %v1390_v10 = vpop.permute.xlu0 %1389 }
 0x1c5   : > { %1483 = vst.msk [vmem:[#allocation3 + $0x78] sm:$0xff] %vm1477_vm7, %v1392_v60  ;;  %1482 = vst.msk [vmem:[#allocation3 + $0x60] sm:$0xff] %vm1477_vm7, %v1390_v10  ;;  %5442 = vmatpush1.bf16.msra.mxu1 %v5441_v61  ;;  %v5455_v60 = vpack.c.bf16 %v2850_v42, %v2848_v9  ;;  %v2847_v10 = vld [vmem:[%s9233_s5 + $0x80] sm:$0xff]  ;;  %v2870_v9 = vld [vmem:[%s9233_s5 + $0x138] sm:$0xff] }
 0x1c6   : > { %1636 = vrot.lane.b32.xlu1 %v1541_v55, %s6074_s22  ;;  %1634 = vrot.lane.b32.xlu0 %v1540_v0, %s6074_s22  ;;  %v2852_v0 = vld [vmem:[%s9233_s5 + $0xa8] sm:$0xff] }
 0x1c7   : > { %5444 = vmatprep.subr.bf16.mxu1 %v5443_v37  ;;  %v5459_v24 = vpack.c.bf16 %v2854_v3, %v2852_v0  ;;  %v2851_v37 = vld [vmem:[%s9233_s5 + $0xa0] sm:$0xff] }
 0x1c8   : > { %v1396_v52 = vpop.permute.xlu1 %1395  ;;  %v1394_v19 = vpop.permute.xlu0 %1393  ;;  %v2871_v0 = vld [vmem:[%s9233_s5 + $0x140] sm:$0xff] }
 0x1c9   : > { %1485 = vst.msk [vmem:[#allocation3 + $0xa8] sm:$0xff] %vm1477_vm7, %v1396_v52  ;;  %1484 = vst.msk [vmem:[#allocation3 + $0x90] sm:$0xff] %vm1477_vm7, %v1394_v19  ;;  %5446 = vmatpush1.bf16.msra.mxu1 %v5445_v58  ;;  %v2856_v52 = vld [vmem:[%s9233_s5 + $0xc8] sm:$0xff]  ;;  %v2858_v19 = vld [vmem:[%s9233_s5 + $0xd8] sm:$0xff] }
 0x1ca   : > { %1802 = vrot.lane.b32.xlu1 %v6604_v14, %s6075_s18  ;;  %1800 = vrot.lane.b32.xlu0 %v6606_v15, %s6075_s18  ;;  %v2841_v14 = vld [vmem:[%s9233_s5 + $0x50] sm:$0xff]  ;;  %v5463_v58 = vpack.c.bf16 %v2858_v19, %v2856_v52  ;;  %v2880_v19 = vld [vmem:[%s9233_s5 + $0x188] sm:$0xff] }
 0x1cb   : > { %v5449_v13 = vpack.c.bf16 %v2841_v14, %v2839_v7  ;;  %5448 = vmatprep.subr.bf16.mxu1 %v5447_v2  ;;  %v2860_v7 = vld [vmem:[%s9233_s5 + $0xe8] sm:$0xff]  ;;  %v2862_v14 = vld [vmem:[%s9233_s5 + $0xf8] sm:$0xff] }
 0x1cc   : > { %v1400_v8 = vpop.permute.xlu1 %1399  ;;  %v1398_v15 = vpop.permute.xlu0 %1397 }
 0x1cd   : > { %1487 = vst.msk [vmem:[#allocation3 + $0xd8] sm:$0xff] %vm1477_vm7, %v1400_v8  ;;  %1486 = vst.msk [vmem:[#allocation3 + $0xc0] sm:$0xff] %vm1477_vm7, %v1398_v15  ;;  %5450 = vmatpush1.bf16.msra.mxu1 %v5449_v13  ;;  %v5467_v8 = vpack.c.bf16 %v2862_v14, %v2860_v7  ;;  %v2859_v15 = vld [vmem:[%s9233_s5 + $0xe0] sm:$0xff]  ;;  %v2881_v7 = vld [vmem:[%s9233_s5 + $0x190] sm:$0xff] }
 0x1ce   : > { %1806 = vrot.lane.b32.xlu1 %v6622_v20, %s6075_s18  ;;  %1804 = vrot.lane.b32.xlu0 %v6624_v21, %s6075_s18  ;;  %v2845_v20 = vld [vmem:[%s9233_s5 + $0x70] sm:$0xff]  ;;  %v2895_v14 = vld [vmem:[%s9233_s5 + $0x200] sm:$0xff] }
 0x1cf   : > { %v5453_v4 = vpack.c.bf16 %v2845_v20, %v2843_v49  ;;  %5452 = vmatprep.subr.bf16.mxu1 %v5451_v36  ;;  %v2866_v36 = vld [vmem:[%s9233_s5 + $0x118] sm:$0xff]  ;;  %v2863_v20 = vld [vmem:[%s9233_s5 + $0x100] sm:$0xff] }
 0x1d0   : > { %v1404_v54 = vpop.permute.xlu1 %1403  ;;  %v1402_v21 = vpop.permute.xlu0 %1401  ;;  %v5471_v49 = vpack.c.bf16 %v2866_v36, %v2864_v31  ;;  %v2900_v31 = vld [vmem:[%s9233_s5 + $0x228] sm:$0xff] }
 0x1d1   : > { %1489 = vst.msk [vmem:[#allocation3 + $0x108] sm:$0xff] %vm1477_vm7, %v1404_v54  ;;  %1488 = vst.msk [vmem:[#allocation3 + $0xf0] sm:$0xff] %vm1477_vm7, %v1402_v21  ;;  %5454 = vmatpush1.bf16.msra.mxu1 %v5453_v4  ;;  %v2868_v4 = vld [vmem:[%s9233_s5 + $0x128] sm:$0xff] }
 0x1d2   : > { %1810 = vrot.lane.b32.xlu1 %v6640_v26, %s6075_s18  ;;  %1808 = vrot.lane.b32.xlu0 %v6642_v27, %s6075_s18  ;;  %v2849_v26 = vld [vmem:[%s9233_s5 + $0x90] sm:$0xff]  ;;  %v5475_v42 = vpack.c.bf16 %v2870_v9, %v2868_v4  ;;  %v2888_v9 = vld [vmem:[%s9233_s5 + $0x1c8] sm:$0xff] }
 0x1d3   : > { %v5457_v55 = vpack.c.bf16 %v2849_v26, %v2847_v10  ;;  %5456 = vmatprep.subr.bf16.mxu1 %v5455_v60  ;;  %v2867_v60 = vld [vmem:[%s9233_s5 + $0x120] sm:$0xff] }
 0x1d4   : > { %v1408_v61 = vpop.permute.xlu1 %1407  ;;  %v1406_v27 = vpop.permute.xlu0 %1405 }
 0x1d5   : > { %1491 = vst.msk [vmem:[#allocation3 + $0x138] sm:$0xff] %vm1477_vm7, %v1408_v61  ;;  %1490 = vst.msk [vmem:[#allocation3 + $0x120] sm:$0xff] %vm1477_vm7, %v1406_v27  ;;  %5458 = vmatpush1.bf16.msra.mxu1 %v5457_v55  ;;  %v2872_v61 = vld [vmem:[%s9233_s5 + $0x148] sm:$0xff]  ;;  %v2874_v27 = vld [vmem:[%s9233_s5 + $0x158] sm:$0xff] }
 0x1d6   : > { %1814 = vrot.lane.b32.xlu1 %v6658_v32, %s6075_s18  ;;  %1812 = vrot.lane.b32.xlu0 %v6660_v33, %s6075_s18  ;;  %v2853_v32 = vld [vmem:[%s9233_s5 + $0xb0] sm:$0xff]  ;;  %v5479_v55 = vpack.c.bf16 %v2874_v27, %v2872_v61  ;;  %v2903_v27 = vld [vmem:[%s9233_s5 + $0x240] sm:$0xff] }
 0x1d7   : > { %v5461_v17 = vpack.c.bf16 %v2853_v32, %v2851_v37  ;;  %5460 = vmatprep.subr.bf16.mxu1 %v5459_v24  ;;  %v2876_v37 = vld [vmem:[%s9233_s5 + $0x168] sm:$0xff]  ;;  %v2878_v32 = vld [vmem:[%s9233_s5 + $0x178] sm:$0xff]  ;;  %v2889_v61 = vld [vmem:[%s9233_s5 + $0x1d0] sm:$0xff] }
 0x1d8   : > { %v1412_v16 = vpop.permute.xlu1 %1411  ;;  %v1410_v33 = vpop.permute.xlu0 %1409 }
 0x1d9   : > { %1493 = vst.msk [vmem:[#allocation3 + $0x168] sm:$0xff] %vm1477_vm7, %v1412_v16  ;;  %1492 = vst.msk [vmem:[#allocation3 + $0x150] sm:$0xff] %vm1477_vm7, %v1410_v33  ;;  %5462 = vmatpush1.bf16.msra.mxu1 %v5461_v17  ;;  %v5483_v16 = vpack.c.bf16 %v2878_v32, %v2876_v37  ;;  %v2875_v33 = vld [vmem:[%s9233_s5 + $0x160] sm:$0xff]  ;;  %v2894_v37 = vld [vmem:[%s9233_s5 + $0x1f8] sm:$0xff] }
 0x1da   : > { %1818 = vrot.lane.b32.xlu1 %v6676_v38, %s6075_s18  ;;  %1816 = vrot.lane.b32.xlu0 %v6678_v39, %s6075_s18  ;;  %v2857_v38 = vld [vmem:[%s9233_s5 + $0xd0] sm:$0xff] }
 0x1db   : > { %v5465_v2 = vpack.c.bf16 %v2857_v38, %v2855_v59  ;;  %5464 = vmatprep.subr.bf16.mxu1 %v5463_v58  ;;  %v2882_v58 = vld [vmem:[%s9233_s5 + $0x198] sm:$0xff]  ;;  %v2896_v38 = vld [vmem:[%s9233_s5 + $0x208] sm:$0xff] }
 0x1dc   : > { %v1416_v1 = vpop.permute.xlu1 %1415  ;;  %v1414_v39 = vpop.permute.xlu0 %1413  ;;  %v5487_v59 = vpack.c.bf16 %v2882_v58, %v2880_v19  ;;  %v2893_v19 = vld [vmem:[%s9233_s5 + $0x1f0] sm:$0xff]  ;;  %v2907_v58 = vld [vmem:[%s9233_s5 + $0x260] sm:$0xff] }
 0x1dd   : > { %1495 = vst.msk [vmem:[#allocation3 + $0x198] sm:$0xff] %vm1477_vm7, %v1416_v1  ;;  %1494 = vst.msk [vmem:[#allocation3 + $0x180] sm:$0xff] %vm1477_vm7, %v1414_v39  ;;  %5466 = vmatpush1.bf16.msra.mxu1 %v5465_v2 }
 0x1de   : > { %1822 = vrot.lane.b32.xlu1 %v6694_v44, %s6075_s18  ;;  %1820 = vrot.lane.b32.xlu0 %v6696_v45, %s6075_s18  ;;  %v2861_v44 = vld [vmem:[%s9233_s5 + $0xf0] sm:$0xff] }
 0x1df   : > { %v5469_v18 = vpack.c.bf16 %v2861_v44, %v2859_v15  ;;  %5468 = vmatprep.subr.bf16.mxu1 %v5467_v8  ;;  %v2897_v8 = vld [vmem:[%s9233_s5 + $0x210] sm:$0xff] }
 0x1e0   : > { %v1420_v13 = vpop.permute.xlu1 %1419  ;;  %v1418_v45 = vpop.permute.xlu0 %1417  ;;  %v5505_v44 = vpack.c.bf16 %v2897_v8, %v2895_v14 }
 0x1e1   : > { %1497 = vst.msk [vmem:[#allocation3 + $0x1c8] sm:$0xff] %vm1477_vm7, %v1420_v13  ;;  %1496 = vst.msk [vmem:[#allocation3 + $0x1b0] sm:$0xff] %vm1477_vm7, %v1418_v45  ;;  %5470 = vmatpush1.bf16.msra.mxu1 %v5469_v18  ;;  %v2884_v13 = vld [vmem:[%s9233_s5 + $0x1a8] sm:$0xff]  ;;  %v2886_v45 = vld [vmem:[%s9233_s5 + $0x1b8] sm:$0xff] }
 0x1e2   : > { %1826 = vrot.lane.b32.xlu1 %v6712_v50, %s6075_s18  ;;  %1824 = vrot.lane.b32.xlu0 %v6714_v51, %s6075_s18  ;;  %v2865_v50 = vld [vmem:[%s9233_s5 + $0x110] sm:$0xff]  ;;  %v5491_v18 = vpack.c.bf16 %v2886_v45, %v2884_v13  ;;  %v9389_v45 = vld [vmem:[#allocation9_spill] sm:$0xff] }
 0x1e3   : > { %v5473_v21 = vpack.c.bf16 %v2865_v50, %v2863_v20  ;;  %5472 = vmatprep.subr.bf16.mxu1 %v5471_v49  ;;  %v2885_v50 = vld [vmem:[%s9233_s5 + $0x1b0] sm:$0xff] }
 0x1e4   : > { %v1424_v54 = vpop.permute.xlu1 %1423  ;;  %v1422_v51 = vpop.permute.xlu0 %1421 }
 0x1e5   : > { %1499 = vst.msk [vmem:[#allocation3 + $0x1f8] sm:$0xff] %vm1477_vm7, %v1424_v54  ;;  %1498 = vst.msk [vmem:[#allocation3 + $0x1e0] sm:$0xff] %vm1477_vm7, %v1422_v51  ;;  %5474 = vmatpush1.bf16.msra.mxu1 %v5473_v21  ;;  %v2899_v54 = vld [vmem:[%s9233_s5 + $0x220] sm:$0xff]  ;;  %v2901_v51 = vld [vmem:[%s9233_s5 + $0x230] sm:$0xff] }
 0x1e6   : > { %1830 = vrot.lane.b32.xlu1 %v6730_v56, %s6075_s18  ;;  %1828 = vrot.lane.b32.xlu0 %v6732_v57, %s6075_s18  ;;  %v2869_v56 = vld [vmem:[%s9233_s5 + $0x130] sm:$0xff]  ;;  %v5509_v4 = vpack.c.bf16 %v2901_v51, %v2899_v54 }
 0x1e7   : > { %v5477_v26 = vpack.c.bf16 %v2869_v56, %v2867_v60  ;;  %5476 = vmatprep.subr.bf16.mxu1 %v5475_v42  ;;  %v2890_v42 = vld [vmem:[%s9233_s5 + $0x1d8] sm:$0xff]  ;;  %v2887_v56 = vld [vmem:[%s9233_s5 + $0x1c0] sm:$0xff] }
 0x1e8   : > { %v1428_v10 = vpop.permute.xlu1 %1427  ;;  %v1426_v57 = vpop.permute.xlu0 %1425  ;;  %v5495_v60 = vpack.c.bf16 %v2890_v42, %v2888_v9  ;;  %v9392_v9 = vld [vmem:[#allocation10_spill] sm:$0xff] }
 0x1e9   : > { %1501 = vst.msk [vmem:[#allocation3 + $0x228] sm:$0xff] %vm1477_vm7, %v1428_v10  ;;  %1500 = vst.msk [vmem:[#allocation3 + $0x210] sm:$0xff] %vm1477_vm7, %v1426_v57  ;;  %5478 = vmatpush1.bf16.msra.mxu1 %v5477_v26 }
 0x1ea   : > { %1834 = vrot.lane.b32.xlu1 %v6748_v62, %s6075_s18  ;;  %1832 = vrot.lane.b32.xlu0 %v6750_v63, %s6075_s18  ;;  %v2873_v62 = vld [vmem:[%s9233_s5 + $0x150] sm:$0xff] }
 0x1eb   : > { %v5481_v24 = vpack.c.bf16 %v2873_v62, %v2871_v0  ;;  %5480 = vmatprep.subr.bf16.mxu1 %v5479_v55  ;;  %v2905_v55 = vld [vmem:[%s9233_s5 + $0x250] sm:$0xff]  ;;  %v5497_v0 = vpack.c.bf16 %v2889_v61, %v2887_v56  ;;  %v9393_v56 = vld [vmem:[#allocation13_spill] sm:$0xff] }
 0x1ec   : > { %v1432_v3 = vpop.permute.xlu1 %1431  ;;  %v1430_v63 = vpop.permute.xlu0 %1429  ;;  %v5513_v62 = vpack.c.bf16 %v2905_v55, %v2903_v27  ;;  %v9394_v27 = vld [vmem:[#allocation12_spill] sm:$0xff] }
 0x1ed   : > { %1503 = vst.msk [vmem:[#allocation3 + $0x258] sm:$0xff] %vm1477_vm7, %v1432_v3  ;;  %1502 = vst.msk [vmem:[#allocation3 + $0x240] sm:$0xff] %vm1477_vm7, %v1430_v63  ;;  %5482 = vmatpush1.bf16.msra.mxu1 %v5481_v24  ;;  %v9385_v3 = vld [vmem:[#allocation4_spill] sm:$0xff]  ;;  %v9386_v63 = vld [vmem:[#allocation5_spill] sm:$0xff] }
 0x1ee   : > { %1838 = vrot.lane.b32.xlu1 %v6766_v5, %s6075_s18  ;;  %1836 = vrot.lane.b32.xlu0 %v6768_v6, %s6075_s18  ;;  %v2877_v5 = vld [vmem:[%s9233_s5 + $0x170] sm:$0xff]  ;;  %v2892_v24 = vld [vmem:[%s9233_s5 + $0x1e8] sm:$0xff] }
 0x1ef   : > { %v5485_v52 = vpack.c.bf16 %v2877_v5, %v2875_v33  ;;  %5484 = vmatprep.subr.bf16.mxu1 %v5483_v16  ;;  %v5499_v32 = vpack.c.bf16 %v2894_v37, %v2892_v24  ;;  %v2908_v16 = vld [vmem:[%s9233_s5 + $0x268] sm:$0xff]  ;;  %v2910_v33 = vld [vmem:[%s9233_s5 + $0x278] sm:$0xff]  ;;  %v2891_v5 = vld [vmem:[%s9233_s5 + $0x1e0] sm:$0xff] }
 0x1f0   : > { %v1436_v17 = vpop.permute.xlu1 %1435  ;;  %v1434_v6 = vpop.permute.xlu0 %1433  ;;  %v6059_v24 = vld [vmem:[#allocation2 + $0x62] sm:$0xff] }
 0x1f1   : > { %1505 = vst.msk [vmem:[#allocation3 + $0x288] sm:$0xff] %vm1477_vm7, %v1436_v17  ;;  %1504 = vst.msk [vmem:[#allocation3 + $0x270] sm:$0xff] %vm1477_vm7, %v1434_v6  ;;  %5486 = vmatpush1.bf16.msra.mxu1 %v5485_v52  ;;  %v5515_v52 = vpack.c.bf16 %v2910_v33, %v2908_v16  ;;  %v2354_v16 = vld [vmem:[#allocation2 + $0x69] sm:$0xff] }
 0x1f2   : > { %1842 = vrot.lane.b32.xlu1 %v6784_v11, %s6075_s18  ;;  %1840 = vrot.lane.b32.xlu0 %v6786_v12, %s6075_s18  ;;  %v2898_v11 = vld [vmem:[%s9233_s5 + $0x218] sm:$0xff]  ;;  %v2879_v12 = vld [vmem:[%s9233_s5 + $0x180] sm:$0xff] }
 0x1f3   : > { %v5503_v2 = vpack.c.bf16 %v2898_v11, %v2896_v38  ;;  %5488 = vmatprep.subr.bf16.mxu1 %v5487_v59  ;;  %v5489_v15 = vpack.c.bf16 %v2881_v7, %v2879_v12  ;;  %v2909_v59 = vld [vmem:[%s9233_s5 + $0x270] sm:$0xff]  ;;  %v5501_v38 = vpack.c.bf16 %v2893_v19, %v2891_v5  ;;  %v9387_v12 = vld [vmem:[#allocation6_spill] sm:$0xff] }
 0x1f4   : > { %v1440_v1 = vpop.permute.xlu1 %1439  ;;  %v1438_v39 = vpop.permute.xlu0 %1437  ;;  %v5517_v11 = vpack.c.bf16 %v2909_v59, %v2907_v58  ;;  %v2547_v5 = vld [vmem:[#allocation2 + $0x6a] sm:$0xff]  ;;  %v2548_v58 = vld [vmem:[#allocation2 + $0x7a] sm:$0xff] }
 0x1f5   : > { %1507 = vst.msk [vmem:[#allocation3 + $0x2b8] sm:$0xff] %vm1477_vm7, %v1440_v1  ;;  %1506 = vst.msk [vmem:[#allocation3 + $0x2a0] sm:$0xff] %vm1477_vm7, %v1438_v39  ;;  %5504 = vmatprep.subr.bf16.mxu0 %v5503_v2  ;;  %5490 = vmatpush1.bf16.msra.mxu1 %v5489_v15  ;;  %v9388_v1 = vld [vmem:[#allocation7_spill] sm:$0xff]  ;;  %v2914_v2 = vld [vmem:[%s9233_s5 + $0x298] sm:$0xff] }
 0x1f6   : > { %1846 = vrot.lane.b32.xlu1 %v6802_v25, %s6075_s18  ;;  %1844 = vrot.lane.b32.xlu0 %v6804_v30, %s6075_s18  ;;  %v2902_v25 = vld [vmem:[%s9233_s5 + $0x238] sm:$0xff]  ;;  %v2883_v30 = vld [vmem:[%s9233_s5 + $0x1a0] sm:$0xff] }
 0x1f7   : > { %5506 = vmatpush1.bf16.msra.mxu0 %v5505_v44  ;;  %v5507_v20 = vpack.c.bf16 %v2902_v25, %v2900_v31  ;;  %5492 = vmatprep.subr.bf16.mxu1 %v5491_v18  ;;  %v5493_v21 = vpack.c.bf16 %v2885_v50, %v2883_v30  ;;  %v2912_v39 = vld [vmem:[%s9233_s5 + $0x288] sm:$0xff]  ;;  %v2911_v15 = vld [vmem:[%s9233_s5 + $0x280] sm:$0xff]  ;;  %v2913_v44 = vld [vmem:[%s9233_s5 + $0x290] sm:$0xff] }
 0x1f8   : > { %v1444_v36 = vpop.permute.xlu1 %1443  ;;  %v1442_v49 = vpop.permute.xlu0 %1441  ;;  %v5519_v8 = vpack.c.bf16 %v2914_v2, %v2912_v39  ;;  %v5521_v13 = vpack.c.bf16 %v2913_v44, %v2911_v15  ;;  %v2916_v18 = vld [vmem:[%s9233_s5 + $0x2a8] sm:$0x3f]  ;;  %v2915_v30 = vld [vmem:[%s9233_s5 + $0x2a0] sm:$0x3f] }
 0x1f9   : > { %1509 = vst.msk [vmem:[#allocation3 + $0x2e8] sm:$0xff] %vm1477_vm7, %v1444_v36  ;;  %1508 = vst.msk [vmem:[#allocation3 + $0x2d0] sm:$0xff] %vm1477_vm7, %v1442_v49  ;;  %5508 = vmatprep.subr.bf16.mxu0 %v5507_v20  ;;  %5494 = vmatpush1.bf16.msra.mxu1 %v5493_v21  ;;  %v9390_v36 = vld [vmem:[#allocation8_spill] sm:$0xff]  ;;  %v9391_v50 = vld [vmem:[#allocation11_spill] sm:$0xff] }
 0x1fa   : > { %1850 = vrot.lane.b32.xlu1 %v6820_v43, %s6075_s18  ;;  %1848 = vrot.lane.b32.xlu0 %v6822_v48, %s6075_s18  ;;  %v2904_v43 = vld [vmem:[%s9233_s5 + $0x248] sm:$0xff]  ;;  %v2906_v48 = vld [vmem:[%s9233_s5 + $0x258] sm:$0xff] }
 0x1fb   : > { %5510 = vmatpush1.bf16.msra.mxu0 %v5509_v4  ;;  %v5511_v26 = vpack.c.bf16 %v2906_v48, %v2904_v43  ;;  %5496 = vmatprep.subr.bf16.mxu1 %v5495_v60  ;;  %v2350_v21 = vld [vmem:[#allocation2 + $0x39] sm:$0xff]  ;;  %v2351_v43 = vld [vmem:[#allocation2 + $0x49] sm:$0xff] }
 0x1fc   : > { %v1577_v10 = vpop.permute.xlu1 %1576  ;;  %v1575_v57 = vpop.permute.xlu0 %1574 }
 0x1fd   : > { %1674 = vst.msk [vmem:[#allocation3 + $0x18] sm:$0xff] %vm1670_vm8, %v1577_v10  ;;  %1671 = vst.msk [vmem:[#allocation3] sm:$0xff] %vm1670_vm8, %v1575_v57  ;;  %5512 = vmatprep.subr.bf16.mxu0 %v5511_v26  ;;  %5498 = vmatpush1.bf16.msra.mxu1 %v5497_v0  ;;  %v2352_v26 = vld [vmem:[#allocation2 + $0x51] sm:$0xff] }
 0x1fe   : > { %1675 = vst.msk [vmem:[#allocation3 + $0x20] sm:$0xff] %vm1672_vm9, %v1577_v10  ;;  %1673 = vst.msk [vmem:[#allocation3 + $0x8] sm:$0xff] %vm1672_vm9, %v1575_v57  ;;  %1854 = vrot.lane.b32.xlu1 %v9385_v3, %s6075_s18  ;;  %1852 = vrot.lane.b32.xlu0 %v9386_v63, %s6075_s18  ;;  %v6058_v3 = vld [vmem:[#allocation2 + $0x52] sm:$0xff] }
 0x1ff   : > { %5514 = vmatpush1.bf16.msra.mxu0 %v5513_v62  ;;  %5500 = vmatprep.subr.bf16.mxu1 %v5499_v32  ;;  %v2353_v62 = vld [vmem:[#allocation2 + $0x61] sm:$0xff] }
 0x200   : > { %v1581_v17 = vpop.permute.xlu1 %1580  ;;  %v1579_v6 = vpop.permute.xlu0 %1578  ;;  %5516 = vmatprep.subr.bf16.mxu0 %v5515_v52  ;;  %v2355_v52 = vld [vmem:[#allocation2 + $0x79] sm:$0xff] }
 0x201   : > { %1678 = vst.msk [vmem:[#allocation3 + $0x48] sm:$0xff] %vm1670_vm8, %v1581_v17  ;;  %1676 = vst.msk [vmem:[#allocation3 + $0x30] sm:$0xff] %vm1670_vm8, %v1579_v6  ;;  %5502 = vmatpush1.bf16.msra.mxu1 %v5501_v38 }
 0x202   : > { %1679 = vst.msk [vmem:[#allocation3 + $0x50] sm:$0xff] %vm1672_vm9, %v1581_v17  ;;  %1677 = vst.msk [vmem:[#allocation3 + $0x38] sm:$0xff] %vm1672_vm9, %v1579_v6  ;;  %1858 = vrot.lane.b32.xlu1 %v9387_v12, %s6075_s18  ;;  %1856 = vrot.lane.b32.xlu0 %v9388_v1, %s6075_s18 }
 0x203   : > { %5518 = vmatpush1.bf16.msra.mxu0 %v5517_v11  ;;  %v2356_v11 = vld [vmem:[#allocation2 + $0x81] sm:$0xff] }
 0x204   : > { %v1585_v7 = vpop.permute.xlu1 %1584  ;;  %v1583_v14 = vpop.permute.xlu0 %1582  ;;  %5520 = vmatprep.subr.bf16.mxu0 %v5519_v8 }
 0x205   : > { %1682 = vst.msk [vmem:[#allocation3 + $0x78] sm:$0xff] %vm1670_vm8, %v1585_v7  ;;  %1680 = vst.msk [vmem:[#allocation3 + $0x60] sm:$0xff] %vm1670_vm8, %v1583_v14 }
 0x206   : > { %1683 = vst.msk [vmem:[#allocation3 + $0x80] sm:$0xff] %vm1672_vm9, %v1585_v7  ;;  %1681 = vst.msk [vmem:[#allocation3 + $0x68] sm:$0xff] %vm1672_vm9, %v1583_v14  ;;  %2187 = vrot.lane.b32.xlu1 %v6634_v23, %s6076_s10  ;;  %1993 = vrot.lane.b32.xlu0 %v9389_v45, %s6077_s11  ;;  %v2349_v23 = vld [vmem:[#allocation2 + $0x31] sm:$0xff] }
 0x207   : > { %5522 = vmatpush1.bf16.msra.mxu0 %v5521_v13  ;;  %v2357_v7 = vld [vmem:[#allocation2 + $0x91] sm:$0xff]  ;;  %v2358_v13 = vld [vmem:[#allocation2 + $0x99] sm:$0xff] }
 0x208   : > { %v1589_v31 = vpop.permute.xlu1 %1588  ;;  %v1587_v25 = vpop.permute.xlu0 %1586  ;;  %5333 = vmatprep.subr.msk.mxu0 %vm3026_vm10, %v2916_v18 }
 0x209   : > { %1686 = vst.msk [vmem:[#allocation3 + $0xa8] sm:$0xff] %vm1670_vm8, %v1589_v31  ;;  %1684 = vst.msk [vmem:[#allocation3 + $0x90] sm:$0xff] %vm1670_vm8, %v1587_v25 }
 0x20a   : > { %1687 = vst.msk [vmem:[#allocation3 + $0xb0] sm:$0xff] %vm1672_vm9, %v1589_v31  ;;  %1685 = vst.msk [vmem:[#allocation3 + $0x98] sm:$0xff] %vm1672_vm9, %v1587_v25  ;;  %1995 = vrot.lane.b32.xlu1 %v9390_v36, %s6077_s11  ;;  %2413 = vrot.lane.b32.xlu0 %v2349_v23, %s6078_s16  ;;  %v2359_v23 = vld [vmem:[#allocation2 + $0xa9] sm:$0xff] }
 0x20b   : > { %5334 = vmatpush1.msk.msra.mxu0 %vm3026_vm10, %v2915_v30 }
 0x20c   : > { %v1593_v49 = vpop.permute.xlu1 %1592  ;;  %v1591_v20 = vpop.permute.xlu0 %1590 }
 0x20d   : > { %1690 = vst.msk [vmem:[#allocation3 + $0xd8] sm:$0xff] %vm1670_vm8, %v1593_v49  ;;  %1688 = vst.msk [vmem:[#allocation3 + $0xc0] sm:$0xff] %vm1670_vm8, %v1591_v20 }
 0x20e   : > { %1691 = vst.msk [vmem:[#allocation3 + $0xe0] sm:$0xff] %vm1672_vm9, %v1593_v49  ;;  %1689 = vst.msk [vmem:[#allocation3 + $0xc8] sm:$0xff] %vm1672_vm9, %v1591_v20  ;;  %2189 = vrot.lane.b32.xlu1 %v6632_v22, %s6076_s10  ;;  %2606 = vrot.lane.b32.xlu0 %v9391_v50, %s6079_s17  ;;  %v2552_v49 = vld [vmem:[#allocation2 + $0xaa] sm:$0xff] }
 0x210   : > { %v1597_v54 = vpop.permute.xlu1 %1596  ;;  %v1595_v51 = vpop.permute.xlu0 %1594 }
 0x211   : > { %1694 = vst.msk [vmem:[#allocation3 + $0x108] sm:$0xff] %vm1670_vm8, %v1597_v54  ;;  %1692 = vst.msk [vmem:[#allocation3 + $0xf0] sm:$0xff] %vm1670_vm8, %v1595_v51 }
 0x212   : > { %1695 = vst.msk [vmem:[#allocation3 + $0x110] sm:$0xff] %vm1672_vm9, %v1597_v54  ;;  %1693 = vst.msk [vmem:[#allocation3 + $0xf8] sm:$0xff] %vm1672_vm9, %v1595_v51  ;;  %1997 = vrot.lane.b32.xlu1 %v9391_v50, %s6077_s11  ;;  %2415 = vrot.lane.b32.xlu0 %v2350_v21, %s6078_s16  ;;  %v2360_v54 = vld [vmem:[#allocation2 + $0xb1] sm:$0xff] }
 0x214   : > { %v1601_v22 = vpop.permute.xlu1 %1600  ;;  %v1599_v4 = vpop.permute.xlu0 %1598 }
 0x215   : > { %1698 = vst.msk [vmem:[#allocation3 + $0x138] sm:$0xff] %vm1670_vm8, %v1601_v22  ;;  %1696 = vst.msk [vmem:[#allocation3 + $0x120] sm:$0xff] %vm1670_vm8, %v1599_v4 }
 0x216   : > { %1699 = vst.msk [vmem:[#allocation3 + $0x140] sm:$0xff] %vm1672_vm9, %v1601_v22  ;;  %1697 = vst.msk [vmem:[#allocation3 + $0x128] sm:$0xff] %vm1672_vm9, %v1599_v4  ;;  %2191 = vrot.lane.b32.xlu1 %v6652_v29, %s6076_s10  ;;  %2608 = vrot.lane.b32.xlu0 %v9392_v9, %s6079_s17  ;;  %v2135_v22 = vld [vmem:[#allocation2 + $0xc0] sm:$0xff]  ;;  %v2553_v4 = vld [vmem:[#allocation2 + $0xb2] sm:$0xff] }
 0x218   : > { %v1605_v42 = vpop.permute.xlu1 %1604  ;;  %v1603_v60 = vpop.permute.xlu0 %1602 }
 0x219   : > { %1702 = vst.msk [vmem:[#allocation3 + $0x168] sm:$0xff] %vm1670_vm8, %v1605_v42  ;;  %1700 = vst.msk [vmem:[#allocation3 + $0x150] sm:$0xff] %vm1670_vm8, %v1603_v60 }
 0x21a   : > { %1703 = vst.msk [vmem:[#allocation3 + $0x170] sm:$0xff] %vm1672_vm9, %v1605_v42  ;;  %1701 = vst.msk [vmem:[#allocation3 + $0x158] sm:$0xff] %vm1672_vm9, %v1603_v60  ;;  %1999 = vrot.lane.b32.xlu1 %v9392_v9, %s6077_s11  ;;  %2417 = vrot.lane.b32.xlu0 %v2351_v43, %s6078_s16  ;;  %v2361_v60 = vld [vmem:[#allocation2 + $0xc1] sm:$0xff] }
 0x21c   : > { %v1609_v29 = vpop.permute.xlu1 %1608  ;;  %v1607_v48 = vpop.permute.xlu0 %1606 }
 0x21d   : > { %1706 = vst.msk [vmem:[#allocation3 + $0x198] sm:$0xff] %vm1670_vm8, %v1609_v29  ;;  %1704 = vst.msk [vmem:[#allocation3 + $0x180] sm:$0xff] %vm1670_vm8, %v1607_v48 }
 0x21e   : > { %1707 = vst.msk [vmem:[#allocation3 + $0x1a0] sm:$0xff] %vm1672_vm9, %v1609_v29  ;;  %1705 = vst.msk [vmem:[#allocation3 + $0x188] sm:$0xff] %vm1672_vm9, %v1607_v48  ;;  %2193 = vrot.lane.b32.xlu1 %v6650_v28, %s6076_s10  ;;  %2610 = vrot.lane.b32.xlu0 %v9393_v56, %s6079_s17  ;;  %v2136_v48 = vld [vmem:[#allocation2 + $0xc8] sm:$0xff] }
 0x220   : > { %v1613_v10 = vpop.permute.xlu1 %1612  ;;  %v1611_v57 = vpop.permute.xlu0 %1610 }
 0x221   : > { %1710 = vst.msk [vmem:[#allocation3 + $0x1c8] sm:$0xff] %vm1670_vm8, %v1613_v10  ;;  %1708 = vst.msk [vmem:[#allocation3 + $0x1b0] sm:$0xff] %vm1670_vm8, %v1611_v57 }
 0x222   : > { %1711 = vst.msk [vmem:[#allocation3 + $0x1d0] sm:$0xff] %vm1672_vm9, %v1613_v10  ;;  %1709 = vst.msk [vmem:[#allocation3 + $0x1b8] sm:$0xff] %vm1672_vm9, %v1611_v57  ;;  %2001 = vrot.lane.b32.xlu1 %v9393_v56, %s6077_s11  ;;  %2419 = vrot.lane.b32.xlu0 %v2352_v26, %s6078_s16  ;;  %v2554_v56 = vld [vmem:[#allocation2 + $0xc2] sm:$0xff] }
 0x223   : > { %v2362_v26 = vld [vmem:[#allocation2 + $0xc9] sm:$0xff] }
 0x224   : > { %v1617_v28 = vpop.permute.xlu1 %1616  ;;  %v1615_v61 = vpop.permute.xlu0 %1614 }
 0x225   : > { %1714 = vst.msk [vmem:[#allocation3 + $0x1f8] sm:$0xff] %vm1670_vm8, %v1617_v28  ;;  %1712 = vst.msk [vmem:[#allocation3 + $0x1e0] sm:$0xff] %vm1670_vm8, %v1615_v61 }
 0x226   : > { %1715 = vst.msk [vmem:[#allocation3 + $0x200] sm:$0xff] %vm1672_vm9, %v1617_v28  ;;  %1713 = vst.msk [vmem:[#allocation3 + $0x1e8] sm:$0xff] %vm1672_vm9, %v1615_v61  ;;  %2195 = vrot.lane.b32.xlu1 %v6670_v35, %s6076_s10  ;;  %2612 = vrot.lane.b32.xlu0 %v9394_v27, %s6079_s17  ;;  %v2137_v27 = vld [vmem:[#allocation2 + $0xd8] sm:$0xff] }
 0x228   : > { %v1621_v55 = vpop.permute.xlu1 %1620  ;;  %v1619_v0 = vpop.permute.xlu0 %1618 }
 0x229   : > { %1718 = vst.msk [vmem:[#allocation3 + $0x228] sm:$0xff] %vm1670_vm8, %v1621_v55  ;;  %1716 = vst.msk [vmem:[#allocation3 + $0x210] sm:$0xff] %vm1670_vm8, %v1619_v0 }
 0x22a   : > { %1719 = vst.msk [vmem:[#allocation3 + $0x230] sm:$0xff] %vm1672_vm9, %v1621_v55  ;;  %1717 = vst.msk [vmem:[#allocation3 + $0x218] sm:$0xff] %vm1672_vm9, %v1619_v0  ;;  %2003 = vrot.lane.b32.xlu1 %v6058_v3, %s6077_s11  ;;  %2421 = vrot.lane.b32.xlu0 %v2353_v62, %s6078_s16  ;;  %v2555_v55 = vld [vmem:[#allocation2 + $0xca] sm:$0xff]  ;;  %v2363_v3 = vld [vmem:[#allocation2 + $0xd9] sm:$0xff] }
 0x22c   : > { %v1625_v35 = vpop.permute.xlu1 %1624  ;;  %v1623_v63 = vpop.permute.xlu0 %1622 }
 0x22d   : > { %1722 = vst.msk [vmem:[#allocation3 + $0x258] sm:$0xff] %vm1670_vm8, %v1625_v35  ;;  %1720 = vst.msk [vmem:[#allocation3 + $0x240] sm:$0xff] %vm1670_vm8, %v1623_v63 }
 0x22e   : > { %1723 = vst.msk [vmem:[#allocation3 + $0x260] sm:$0xff] %vm1672_vm9, %v1625_v35  ;;  %1721 = vst.msk [vmem:[#allocation3 + $0x248] sm:$0xff] %vm1672_vm9, %v1623_v63  ;;  %2197 = vrot.lane.b32.xlu1 %v6668_v34, %s6076_s10  ;;  %2614 = vrot.lane.b32.xlu0 %v6059_v24, %s6079_s17 }
 0x230   : > { %v1629_v37 = vpop.permute.xlu1 %1628  ;;  %v1627_v32 = vpop.permute.xlu0 %1626 }
 0x231   : > { %1726 = vst.msk [vmem:[#allocation3 + $0x288] sm:$0xff] %vm1670_vm8, %v1629_v37  ;;  %1724 = vst.msk [vmem:[#allocation3 + $0x270] sm:$0xff] %vm1670_vm8, %v1627_v32 }
 0x232   : > { %1727 = vst.msk [vmem:[#allocation3 + $0x290] sm:$0xff] %vm1672_vm9, %v1629_v37  ;;  %1725 = vst.msk [vmem:[#allocation3 + $0x278] sm:$0xff] %vm1672_vm9, %v1627_v32  ;;  %2005 = vrot.lane.b32.xlu1 %v6059_v24, %s6077_s11  ;;  %2423 = vrot.lane.b32.xlu0 %v2354_v16, %s6078_s16  ;;  %v2138_v24 = vld [vmem:[#allocation2 + $0xe0] sm:$0xff] }
 0x233   : > { %v2556_v37 = vld [vmem:[#allocation2 + $0xda] sm:$0xff] }
 0x234   : > { %v1633_v33 = vpop.permute.xlu1 %1632  ;;  %v1631_v34 = vpop.permute.xlu0 %1630 }
 0x235   : > { %1730 = vst.msk [vmem:[#allocation3 + $0x2b8] sm:$0xff] %vm1670_vm8, %v1633_v33  ;;  %1728 = vst.msk [vmem:[#allocation3 + $0x2a0] sm:$0xff] %vm1670_vm8, %v1631_v34 }
 0x236   : > { %1731 = vst.msk [vmem:[#allocation3 + $0x2c0] sm:$0xff] %vm1672_vm9, %v1633_v33  ;;  %1729 = vst.msk [vmem:[#allocation3 + $0x2a8] sm:$0xff] %vm1672_vm9, %v1631_v34  ;;  %2199 = vrot.lane.b32.xlu1 %v6688_v41, %s6076_s10  ;;  %2616 = vrot.lane.b32.xlu0 %v2547_v5, %s6079_s17  ;;  %v2364_v33 = vld [vmem:[#allocation2 + $0xe1] sm:$0xff] }
 0x238   : > { %v1637_v17 = vpop.permute.xlu1 %1636  ;;  %v1635_v6 = vpop.permute.xlu0 %1634 }
 0x239   : > { %1734 = vst.msk [vmem:[#allocation3 + $0x2e8] sm:$0xff] %vm1670_vm8, %v1637_v17  ;;  %1732 = vst.msk [vmem:[#allocation3 + $0x2d0] sm:$0xff] %vm1670_vm8, %v1635_v6 }
 0x23a   : > { %1735 = vst.msk [vmem:[#allocation3 + $0x2f0] sm:$0xff] %vm1672_vm9, %v1637_v17  ;;  %1733 = vst.msk [vmem:[#allocation3 + $0x2d8] sm:$0xff] %vm1672_vm9, %v1635_v6  ;;  %2007 = vrot.lane.b32.xlu1 %v2547_v5, %s6077_s11  ;;  %2425 = vrot.lane.b32.xlu0 %v2355_v52, %s6078_s16  ;;  %v2735_v5 = vld [vmem:[#allocation3] sm:$0xff] }
 0x23b   : > { %v2139_v52 = vld [vmem:[#allocation2 + $0xf0] sm:$0xff] }
 0x23c   : > { %v1803_v19 = vpop.permute.xlu1 %1802  ;;  %v1801_v41 = vpop.permute.xlu0 %1800 }
 0x23d   : > { %1898 = vst.msk [vmem:[#allocation3 + $0x20] sm:$0xff] %vm1896_vm11, %v1803_v19  ;;  %1897 = vst.msk [vmem:[#allocation3 + $0x8] sm:$0xff] %vm1896_vm11, %v1801_v41  ;;  %v2557_v19 = vld [vmem:[#allocation2 + $0xe2] sm:$0xff] }
 0x23e   : > { %2201 = vrot.lane.b32.xlu1 %v6686_v40, %s6076_s10  ;;  %2618 = vrot.lane.b32.xlu0 %v2548_v58, %s6079_s17  ;;  %v2549_v40 = vld [vmem:[#allocation2 + $0x82] sm:$0xff] }
 0x240   : > { %v1807_v59 = vpop.permute.xlu1 %1806  ;;  %v1805_v38 = vpop.permute.xlu0 %1804 }
 0x241   : > { %1900 = vst.msk [vmem:[#allocation3 + $0x50] sm:$0xff] %vm1896_vm11, %v1807_v59  ;;  %1899 = vst.msk [vmem:[#allocation3 + $0x38] sm:$0xff] %vm1896_vm11, %v1805_v38 }
 0x242   : > { %2009 = vrot.lane.b32.xlu1 %v2548_v58, %s6077_s11  ;;  %2427 = vrot.lane.b32.xlu0 %v2356_v11, %s6078_s16  ;;  %v2365_v11 = vld [vmem:[#allocation2 + $0xf1] sm:$0xff] }
 0x244   : > { %v1811_v12 = vpop.permute.xlu1 %1810  ;;  %v1809_v1 = vpop.permute.xlu0 %1808 }
 0x245   : > { %1902 = vst.msk [vmem:[#allocation3 + $0x80] sm:$0xff] %vm1896_vm11, %v1811_v12  ;;  %1901 = vst.msk [vmem:[#allocation3 + $0x68] sm:$0xff] %vm1896_vm11, %v1809_v1  ;;  %v2738_v12 = vld [vmem:[#allocation3 + $0x18] sm:$0xff]  ;;  %v9395_v1 = vmov 0.0  }
 0x246   : > { %2203 = vrot.lane.b32.xlu1 %v6706_v47, %s6076_s10  ;;  %2620 = vrot.lane.b32.xlu0 %v2549_v40, %s6079_s17  ;;  %v2550_v47 = vld [vmem:[#allocation2 + $0x92] sm:$0xff] }
 0x248   : > { %v1815_v39 = vpop.permute.xlu1 %1814  ;;  %v1813_v2 = vpop.permute.xlu0 %1812 }
 0x249   : > { %1904 = vst.msk [vmem:[#allocation3 + $0xb0] sm:$0xff] %vm1896_vm11, %v1815_v39  ;;  %1903 = vst.msk [vmem:[#allocation3 + $0x98] sm:$0xff] %vm1896_vm11, %v1813_v2  ;;  %v2140_v2 = vld [vmem:[#allocation2 + $0xf8] sm:$0xff] }
 0x24a   : > { %2011 = vrot.lane.b32.xlu1 %v2549_v40, %s6077_s11  ;;  %2429 = vrot.lane.b32.xlu0 %v2357_v7, %s6078_s16  ;;  %v2558_v7 = vld [vmem:[#allocation2 + $0xf2] sm:$0xff] }
 0x24c   : > { %v1819_v14 = vpop.permute.xlu1 %1818  ;;  %v1817_v8 = vpop.permute.xlu0 %1816 }
 0x24d   : > { %1906 = vst.msk [vmem:[#allocation3 + $0xe0] sm:$0xff] %vm1896_vm11, %v1819_v14  ;;  %1905 = vst.msk [vmem:[#allocation3 + $0xc8] sm:$0xff] %vm1896_vm11, %v1817_v8 }
 0x24e   : > { %2205 = vrot.lane.b32.xlu1 %v6704_v46, %s6076_s10  ;;  %2622 = vrot.lane.b32.xlu0 %v2550_v47, %s6079_s17  ;;  %v2551_v46 = vld [vmem:[#allocation2 + $0x9a] sm:$0xff] }
 0x250   : > { %v1823_v15 = vpop.permute.xlu1 %1822  ;;  %v1821_v44 = vpop.permute.xlu0 %1820 }
 0x251   : > { %1908 = vst.msk [vmem:[#allocation3 + $0x110] sm:$0xff] %vm1896_vm11, %v1823_v15  ;;  %1907 = vst.msk [vmem:[#allocation3 + $0xf8] sm:$0xff] %vm1896_vm11, %v1821_v44  ;;  %v2366_v44 = vld [vmem:[#allocation2 + $0xf9] sm:$0xff] }
 0x252   : > { %2013 = vrot.lane.b32.xlu1 %v2550_v47, %s6077_s11  ;;  %2431 = vrot.lane.b32.xlu0 %v2358_v13, %s6078_s16  ;;  %v2741_v13 = vld [vmem:[#allocation3 + $0x30] sm:$0xff] }
 0x254   : > { %v1827_v45 = vpop.permute.xlu1 %1826  ;;  %v1825_v18 = vpop.permute.xlu0 %1824 }
 0x255   : > { %1910 = vst.msk [vmem:[#allocation3 + $0x140] sm:$0xff] %vm1896_vm11, %v1827_v45  ;;  %1909 = vst.msk [vmem:[#allocation3 + $0x128] sm:$0xff] %vm1896_vm11, %v1825_v18 }
 0x256   : > { %2207 = vrot.lane.b32.xlu1 %v6724_v53, %s6076_s10  ;;  %2624 = vrot.lane.b32.xlu0 %v2551_v46, %s6079_s17  ;;  %v2134_v53 = vld [vmem:[#allocation2 + $0xb0] sm:$0xff] }
 0x258   : > { %v1831_v31 = vpop.permute.xlu1 %1830  ;;  %v1829_v25 = vpop.permute.xlu0 %1828 }
 0x259   : > { %1912 = vst.msk [vmem:[#allocation3 + $0x170] sm:$0xff] %vm1896_vm11, %v1831_v31  ;;  %1911 = vst.msk [vmem:[#allocation3 + $0x158] sm:$0xff] %vm1896_vm11, %v1829_v25  ;;  %v2559_v31 = vld [vmem:[#allocation2 + $0xfa] sm:$0xff] }
 0x25a   : > { %2015 = vrot.lane.b32.xlu1 %v2551_v46, %s6077_s11  ;;  %2433 = vrot.lane.b32.xlu0 %v2359_v23, %s6078_s16  ;;  %v2141_v46 = vld [vmem:[#allocation2 + $0x108] sm:$0xff] }
 0x25c   : > { %v1835_v30 = vpop.permute.xlu1 %1834  ;;  %v1833_v36 = vpop.permute.xlu0 %1832 }
 0x25d   : > { %1914 = vst.msk [vmem:[#allocation3 + $0x1a0] sm:$0xff] %vm1896_vm11, %v1835_v30  ;;  %1913 = vst.msk [vmem:[#allocation3 + $0x188] sm:$0xff] %vm1896_vm11, %v1833_v36 }
 0x25e   : > { %2209 = vrot.lane.b32.xlu1 %v2134_v53, %s6076_s10  ;;  %2626 = vrot.lane.b32.xlu0 %v2552_v49, %s6079_s17  ;;  %v2367_v53 = vld [vmem:[#allocation2 + $0x109] sm:$0xff] }
 0x260   : > { %v1839_v20 = vpop.permute.xlu1 %1838  ;;  %v1837_v50 = vpop.permute.xlu0 %1836 }
 0x261   : > { %1916 = vst.msk [vmem:[#allocation3 + $0x1d0] sm:$0xff] %vm1896_vm11, %v1839_v20  ;;  %1915 = vst.msk [vmem:[#allocation3 + $0x1b8] sm:$0xff] %vm1896_vm11, %v1837_v50 }
 0x262   : > { %2017 = vrot.lane.b32.xlu1 %v2552_v49, %s6077_s11  ;;  %2435 = vrot.lane.b32.xlu0 %v2360_v54, %s6078_s16  ;;  %v2744_v49 = vld [vmem:[#allocation3 + $0x48] sm:$0xff]  ;;  %v2142_v54 = vld [vmem:[#allocation2 + $0x110] sm:$0xff] }
 0x264   : > { %v1843_v51 = vpop.permute.xlu1 %1842  ;;  %v1841_v21 = vpop.permute.xlu0 %1840 }
 0x265   : > { %1918 = vst.msk [vmem:[#allocation3 + $0x200] sm:$0xff] %vm1896_vm11, %v1843_v51  ;;  %1917 = vst.msk [vmem:[#allocation3 + $0x1e8] sm:$0xff] %vm1896_vm11, %v1841_v21  ;;  %v2560_v51 = vld [vmem:[#allocation2 + $0x10a] sm:$0xff] }
 0x266   : > { %2211 = vrot.lane.b32.xlu1 %v2135_v22, %s6076_s10  ;;  %2628 = vrot.lane.b32.xlu0 %v2553_v4, %s6079_s17 }
 0x268   : > { %v1847_v9 = vpop.permute.xlu1 %1846  ;;  %v1845_v42 = vpop.permute.xlu0 %1844 }
 0x269   : > { %1920 = vst.msk [vmem:[#allocation3 + $0x230] sm:$0xff] %vm1896_vm11, %v1847_v9  ;;  %1919 = vst.msk [vmem:[#allocation3 + $0x218] sm:$0xff] %vm1896_vm11, %v1845_v42  ;;  %v2368_v42 = vld [vmem:[#allocation2 + $0x111] sm:$0xff] }
 0x26a   : > { %2019 = vrot.lane.b32.xlu1 %v2553_v4, %s6077_s11  ;;  %2437 = vrot.lane.b32.xlu0 %v2361_v60, %s6078_s16  ;;  %v2747_v60 = vld [vmem:[#allocation3 + $0x60] sm:$0xff] }
 0x26c   : > { %v1851_v43 = vpop.permute.xlu1 %1850  ;;  %v1849_v29 = vpop.permute.xlu0 %1848 }
 0x26d   : > { %1922 = vst.msk [vmem:[#allocation3 + $0x260] sm:$0xff] %vm1896_vm11, %v1851_v43  ;;  %1921 = vst.msk [vmem:[#allocation3 + $0x248] sm:$0xff] %vm1896_vm11, %v1849_v29 }
 0x26e   : > { %2213 = vrot.lane.b32.xlu1 %v2136_v48, %s6076_s10  ;;  %2630 = vrot.lane.b32.xlu0 %v2554_v56, %s6079_s17  ;;  %v2143_v48 = vld [vmem:[#allocation2 + $0x120] sm:$0xff] }
 0x270   : > { %v1855_v10 = vpop.permute.xlu1 %1854  ;;  %v1853_v57 = vpop.permute.xlu0 %1852 }
 0x271   : > { %1924 = vst.msk [vmem:[#allocation3 + $0x290] sm:$0xff] %vm1896_vm11, %v1855_v10  ;;  %1923 = vst.msk [vmem:[#allocation3 + $0x278] sm:$0xff] %vm1896_vm11, %v1853_v57 }
 0x272   : > { %2021 = vrot.lane.b32.xlu1 %v2554_v56, %s6077_s11  ;;  %2439 = vrot.lane.b32.xlu0 %v2362_v26, %s6078_s16  ;;  %v2561_v56 = vld [vmem:[#allocation2 + $0x112] sm:$0xff] }
 0x274   : > { %v1859_v28 = vpop.permute.xlu1 %1858  ;;  %v1857_v61 = vpop.permute.xlu0 %1856 }
 0x275   : > { %1926 = vst.msk [vmem:[#allocation3 + $0x2c0] sm:$0xff] %vm1896_vm11, %v1859_v28  ;;  %1925 = vst.msk [vmem:[#allocation3 + $0x2a8] sm:$0xff] %vm1896_vm11, %v1857_v61  ;;  %v2369_v61 = vld [vmem:[#allocation2 + $0x121] sm:$0xff] }
 0x276   : > { %2215 = vrot.lane.b32.xlu1 %v2137_v27, %s6076_s10  ;;  %2632 = vrot.lane.b32.xlu0 %v2555_v55, %s6079_s17  ;;  %v2750_v27 = vld [vmem:[#allocation3 + $0x78] sm:$0xff] }
 0x278   : > { %v2188_v0 = vpop.permute.xlu1 %2187  ;;  %v1994_v62 = vpop.permute.xlu0 %1993 }
 0x279   : > { %2286 = vst.msk [vmem:[#allocation3 + $0x10] sm:$0xff] %vm2285_vm12, %v2188_v0 }
 0x27a   : > { %2090 = vst.msk [vmem:[#allocation3 + $0x8] sm:$0xff] %vm2089_vm13, %v1994_v62  ;;  %2023 = vrot.lane.b32.xlu1 %v2555_v55, %s6077_s11  ;;  %2441 = vrot.lane.b32.xlu0 %v2363_v3, %s6078_s16  ;;  %v2144_v62 = vld [vmem:[#allocation2 + $0x128] sm:$0xff] }
 0x27b   : > { %2284 = vst.msk [vmem:[#allocation3 + $0x8] sm:$0xff] %vm2283_vm14, %v2188_v0  ;;  %v2562_v3 = vld [vmem:[#allocation2 + $0x122] sm:$0xff] }
 0x27c   : > { %v1996_v35 = vpop.permute.xlu1 %1995  ;;  %v2414_v63 = vpop.permute.xlu0 %2413 }
 0x27d   : > { %2091 = vst.msk [vmem:[#allocation3 + $0x20] sm:$0xff] %vm2089_vm13, %v1996_v35 }
 0x27e   : > { %2510 = vst.msk [vmem:[#allocation3 + $0x10] sm:$0xff] %vm2509_vm15, %v2414_v63  ;;  %2217 = vrot.lane.b32.xlu1 %v2138_v24, %s6076_s10  ;;  %2634 = vrot.lane.b32.xlu0 %v2556_v37, %s6079_s17 }
 0x280   : > { %v2190_v32 = vpop.permute.xlu1 %2189  ;;  %v2607_v16 = vpop.permute.xlu0 %2606 }
 0x281   : > { %2287 = vst.msk [vmem:[#allocation3 + $0x20] sm:$0xff] %vm2283_vm14, %v2190_v32 }
 0x282   : > { %2288 = vst.msk [vmem:[#allocation3 + $0x28] sm:$0xff] %vm2285_vm12, %v2190_v32  ;;  %v2736_v34 = vld [vmem:[#allocation3 + $0x8] sm:$0xff]  ;;  %2025 = vrot.lane.b32.xlu1 %v2556_v37, %s6077_s11  ;;  %2443 = vrot.lane.b32.xlu0 %v2364_v33, %s6078_s16  ;;  %v2370_v32 = vld [vmem:[#allocation2 + $0x129] sm:$0xff] }
 0x283   : > { %2703 = vst.msk [vmem:[#allocation3 + $0x10] sm:$0xff] %vm2702_vm0, %v2607_v16  ;;  %3097 = vmatprep.mubr.f32.mxu1 %v2736_v34  ;;  %v2753_v16 = vld [vmem:[#allocation3 + $0x90] sm:$0xff] }
 0x284   : > { %3098 = vmatmul.mubr.f32.vlgmr.msra.gmra.mrb[0].mxu1 %v2735_v5  ;;  %v1998_v17 = vpop.permute.xlu1 %1997  ;;  %v2416_v6 = vpop.permute.xlu0 %2415  ;;  %v2145_v5 = vld [vmem:[#allocation2 + $0x138] sm:$0xff] }
 0x285   : > { %2092 = vst.msk [vmem:[#allocation3 + $0x38] sm:$0xff] %vm2089_vm13, %v1998_v17  ;;  %v2563_v17 = vld [vmem:[#allocation2 + $0x12a] sm:$0xff] }
 0x286   : > { %2511 = vst.msk [vmem:[#allocation3 + $0x28] sm:$0xff] %vm2509_vm15, %v2416_v6  ;;  %2219 = vrot.lane.b32.xlu1 %v2139_v52, %s6076_s10  ;;  %2636 = vrot.lane.b32.xlu0 %v2557_v19, %s6079_s17 }
 0x288   : > { %v2192_v41 = vpop.permute.xlu1 %2191  ;;  %v2609_v58 = vpop.permute.xlu0 %2608  ;;  %v2739_v59 = vld [vmem:[#allocation3 + $0x20] sm:$0xff] }
 0x289   : > { %2289 = vst.msk [vmem:[#allocation3 + $0x38] sm:$0xff] %vm2283_vm14, %v2192_v41  ;;  %3103 = vmatprep.mubr.f32.mxu1 %v2739_v59  ;;  %v2756_v59 = vld [vmem:[#allocation3 + $0xa8] sm:$0xff] }
 0x28a   : > { %v2737_v38 = vld [vmem:[#allocation3 + $0x10] sm:$0xff]  ;;  %2290 = vst.msk [vmem:[#allocation3 + $0x40] sm:$0xff] %vm2285_vm12, %v2192_v41  ;;  %2027 = vrot.lane.b32.xlu1 %v2557_v19, %s6077_s11  ;;  %2445 = vrot.lane.b32.xlu0 %v2365_v11, %s6078_s16 }
 0x28b   : > { %2704 = vst.msk [vmem:[#allocation3 + $0x28] sm:$0xff] %vm2702_vm0, %v2609_v58  ;;  %5335 = vmatmul.mubr.msk.f32.vlgmr.msra.gmra.mrb[0].mxu0 %vm2929_vm1, %v2737_v38  ;;  %3104 = vmatmul.mubr.f32.gmra.mrb[2].mxu1 %v2738_v12  ;;  %v2371_v58 = vld [vmem:[#allocation2 + $0x139] sm:$0xff] }
 0x28c   : > { %3360 = vmatprep.mubr.f32.mxu0 %v9395_v1  ;;  %v2000_v40 = vpop.permute.xlu1 %1999  ;;  %v2418_v39 = vpop.permute.xlu0 %2417  ;;  %v2146_v12 = vld [vmem:[#allocation2 + $0x140] sm:$0xff] }
 0x28d   : > { %2093 = vst.msk [vmem:[#allocation3 + $0x50] sm:$0xff] %vm2089_vm13, %v2000_v40  ;;  %v2564_v40 = vld [vmem:[#allocation2 + $0x13a] sm:$0xff] }
 0x28e   : > { %2512 = vst.msk [vmem:[#allocation3 + $0x40] sm:$0xff] %vm2509_vm15, %v2418_v39  ;;  %2221 = vrot.lane.b32.xlu1 %v2140_v2, %s6076_s10  ;;  %2638 = vrot.lane.b32.xlu0 %v2558_v7, %s6079_s17 }
 0x290   : > { %v2194_v14 = vpop.permute.xlu1 %2193  ;;  %v2611_v8 = vpop.permute.xlu0 %2610  ;;  %v2742_v47 = vld [vmem:[#allocation3 + $0x38] sm:$0xff] }
 0x291   : > { %2291 = vst.msk [vmem:[#allocation3 + $0x50] sm:$0xff] %vm2283_vm14, %v2194_v14  ;;  %3109 = vmatprep.mubr.f32.mxu1 %v2742_v47  ;;  %v2759_v47 = vld [vmem:[#allocation3 + $0xc0] sm:$0xff] }
 0x292   : > { %v2740_v15 = vld [vmem:[#allocation3 + $0x28] sm:$0xff]  ;;  %2292 = vst.msk [vmem:[#allocation3 + $0x58] sm:$0xff] %vm2285_vm12, %v2194_v14  ;;  %2029 = vrot.lane.b32.xlu1 %v2558_v7, %s6077_s11  ;;  %2447 = vrot.lane.b32.xlu0 %v2366_v44, %s6078_s16 }
 0x293   : > { %2705 = vst.msk [vmem:[#allocation3 + $0x40] sm:$0xff] %vm2702_vm0, %v2611_v8  ;;  %5336 = vmatmul.mubr.msk.f32.gmra.mrb[2].mxu0 %vm2929_vm1, %v2740_v15  ;;  %3110 = vmatmul.mubr.f32.gmra.mrb[4].mxu1 %v2741_v13  ;;  %v2372_v8 = vld [vmem:[#allocation2 + $0x141] sm:$0xff]  ;;  %v2147_v13 = vld [vmem:[#allocation2 + $0x150] sm:$0xff] }
 0x294   : > { %3366 = vmatprep.mubr.f32.mxu0 %v9395_v1  ;;  %v2002_v45 = vpop.permute.xlu1 %2001  ;;  %v2420_v18 = vpop.permute.xlu0 %2419 }
 0x295   : > { %2094 = vst.msk [vmem:[#allocation3 + $0x68] sm:$0xff] %vm2089_vm13, %v2002_v45  ;;  %v2565_v45 = vld [vmem:[#allocation2 + $0x142] sm:$0xff] }
 0x296   : > { %2513 = vst.msk [vmem:[#allocation3 + $0x58] sm:$0xff] %vm2509_vm15, %v2420_v18  ;;  %2223 = vrot.lane.b32.xlu1 %v2141_v46, %s6076_s10  ;;  %2640 = vrot.lane.b32.xlu0 %v2559_v31, %s6079_s17 }
 0x298   : > { %v2196_v25 = vpop.permute.xlu1 %2195  ;;  %v2613_v23 = vpop.permute.xlu0 %2612  ;;  %v2745_v30 = vld [vmem:[#allocation3 + $0x50] sm:$0xff] }
 0x299   : > { %2293 = vst.msk [vmem:[#allocation3 + $0x68] sm:$0xff] %vm2283_vm14, %v2196_v25  ;;  %3115 = vmatprep.mubr.f32.mxu1 %v2745_v30  ;;  %v2762_v30 = vld [vmem:[#allocation3 + $0xd8] sm:$0xff] }
 0x29a   : > { %v2743_v36 = vld [vmem:[#allocation3 + $0x40] sm:$0xff]  ;;  %2294 = vst.msk [vmem:[#allocation3 + $0x70] sm:$0xff] %vm2285_vm12, %v2196_v25  ;;  %2031 = vrot.lane.b32.xlu1 %v2559_v31, %s6077_s11  ;;  %2449 = vrot.lane.b32.xlu0 %v2367_v53, %s6078_s16 }
 0x29b   : > { %2706 = vst.msk [vmem:[#allocation3 + $0x58] sm:$0xff] %vm2702_vm0, %v2613_v23  ;;  %5337 = vmatmul.mubr.msk.f32.gmra.mrb[4].mxu0 %vm2929_vm1, %v2743_v36  ;;  %3116 = vmatmul.mubr.f32.gmra.mrb[6].mxu1 %v2744_v49  ;;  %v2373_v23 = vld [vmem:[#allocation2 + $0x151] sm:$0xff] }
 0x29c   : > { %3372 = vmatprep.mubr.f32.mxu0 %v9395_v1  ;;  %v2004_v20 = vpop.permute.xlu1 %2003  ;;  %v2422_v50 = vpop.permute.xlu0 %2421  ;;  %v2148_v49 = vld [vmem:[#allocation2 + $0x158] sm:$0xff] }
 0x29d   : > { %2095 = vst.msk [vmem:[#allocation3 + $0x80] sm:$0xff] %vm2089_vm13, %v2004_v20  ;;  %v2566_v20 = vld [vmem:[#allocation2 + $0x152] sm:$0xff] }
 0x29e   : > { %2514 = vst.msk [vmem:[#allocation3 + $0x70] sm:$0xff] %vm2509_vm15, %v2422_v50  ;;  %2225 = vrot.lane.b32.xlu1 %v2142_v54, %s6076_s10  ;;  %2642 = vrot.lane.b32.xlu0 %v2560_v51, %s6079_s17 }
 0x2a0   : > { %v2198_v21 = vpop.permute.xlu1 %2197  ;;  %v2615_v22 = vpop.permute.xlu0 %2614  ;;  %v2748_v4 = vld [vmem:[#allocation3 + $0x68] sm:$0xff] }
 0x2a1   : > { %2295 = vst.msk [vmem:[#allocation3 + $0x80] sm:$0xff] %vm2283_vm14, %v2198_v21  ;;  %3121 = vmatprep.mubr.f32.mxu1 %v2748_v4  ;;  %v2765_v4 = vld [vmem:[#allocation3 + $0xf0] sm:$0xff] }
 0x2a2   : > { %v2746_v9 = vld [vmem:[#allocation3 + $0x58] sm:$0xff]  ;;  %2296 = vst.msk [vmem:[#allocation3 + $0x88] sm:$0xff] %vm2285_vm12, %v2198_v21  ;;  %2033 = vrot.lane.b32.xlu1 %v2560_v51, %s6077_s11  ;;  %2451 = vrot.lane.b32.xlu0 %v2368_v42, %s6078_s16 }
 0x2a3   : > { %2707 = vst.msk [vmem:[#allocation3 + $0x70] sm:$0xff] %vm2702_vm0, %v2615_v22  ;;  %5338 = vmatmul.mubr.msk.f32.gmra.mrb[6].mxu0 %vm2929_vm1, %v2746_v9  ;;  %3122 = vmatmul.mubr.f32.gmra.mrb[8].mxu1 %v2747_v60  ;;  %v2374_v22 = vld [vmem:[#allocation2 + $0x159] sm:$0xff]  ;;  %v2149_v60 = vld [vmem:[#allocation2 + $0x168] sm:$0xff] }
 0x2a4   : > { %3378 = vmatprep.mubr.f32.mxu0 %v9395_v1  ;;  %v2006_v43 = vpop.permute.xlu1 %2005  ;;  %v2424_v29 = vpop.permute.xlu0 %2423 }
 0x2a5   : > { %2096 = vst.msk [vmem:[#allocation3 + $0x98] sm:$0xff] %vm2089_vm13, %v2006_v43  ;;  %v2567_v43 = vld [vmem:[#allocation2 + $0x15a] sm:$0xff] }
 0x2a6   : > { %2515 = vst.msk [vmem:[#allocation3 + $0x88] sm:$0xff] %vm2509_vm15, %v2424_v29  ;;  %2227 = vrot.lane.b32.xlu1 %v2143_v48, %s6076_s10  ;;  %2644 = vrot.lane.b32.xlu0 %v2561_v56, %s6079_s17 }
 0x2a8   : > { %v2200_v10 = vpop.permute.xlu1 %2199  ;;  %v2617_v57 = vpop.permute.xlu0 %2616  ;;  %v2751_v26 = vld [vmem:[#allocation3 + $0x80] sm:$0xff] }
 0x2a9   : > { %2297 = vst.msk [vmem:[#allocation3 + $0x98] sm:$0xff] %vm2283_vm14, %v2200_v10  ;;  %3127 = vmatprep.mubr.f32.mxu1 %v2751_v26  ;;  %v2768_v26 = vld [vmem:[#allocation3 + $0x108] sm:$0xff] }
 0x2aa   : > { %v2749_v28 = vld [vmem:[#allocation3 + $0x70] sm:$0xff]  ;;  %2298 = vst.msk [vmem:[#allocation3 + $0xa0] sm:$0xff] %vm2285_vm12, %v2200_v10  ;;  %2035 = vrot.lane.b32.xlu1 %v2561_v56, %s6077_s11  ;;  %2453 = vrot.lane.b32.xlu0 %v2369_v61, %s6078_s16 }
 0x2ab   : > { %2708 = vst.msk [vmem:[#allocation3 + $0x88] sm:$0xff] %vm2702_vm0, %v2617_v57  ;;  %5339 = vmatmul.mubr.msk.f32.gmra.mrb[8].mxu0 %vm2929_vm1, %v2749_v28  ;;  %3128 = vmatmul.mubr.f32.gmra.mrb[10].mxu1 %v2750_v27  ;;  %v2375_v57 = vld [vmem:[#allocation2 + $0x169] sm:$0xff] }
 0x2ac   : > { %3384 = vmatprep.mubr.f32.mxu0 %v9395_v1  ;;  %v2008_v55 = vpop.permute.xlu1 %2007  ;;  %v2426_v0 = vpop.permute.xlu0 %2425  ;;  %v2150_v27 = vld [vmem:[#allocation2 + $0x170] sm:$0xff] }
 0x2ad   : > { %2097 = vst.msk [vmem:[#allocation3 + $0xb0] sm:$0xff] %vm2089_vm13, %v2008_v55  ;;  %v2568_v55 = vld [vmem:[#allocation2 + $0x16a] sm:$0xff] }
 0x2ae   : > { %2516 = vst.msk [vmem:[#allocation3 + $0xa0] sm:$0xff] %vm2509_vm15, %v2426_v0  ;;  %2229 = vrot.lane.b32.xlu1 %v2144_v62, %s6076_s10  ;;  %2646 = vrot.lane.b32.xlu0 %v2562_v3, %s6079_s17 }
 0x2b0   : > { %v2202_v35 = vpop.permute.xlu1 %2201  ;;  %v2619_v63 = vpop.permute.xlu0 %2618  ;;  %v2754_v24 = vld [vmem:[#allocation3 + $0x98] sm:$0xff] }
 0x2b1   : > { %2299 = vst.msk [vmem:[#allocation3 + $0xb0] sm:$0xff] %vm2283_vm14, %v2202_v35  ;;  %3133 = vmatprep.mubr.f32.mxu1 %v2754_v24  ;;  %v2771_v24 = vld [vmem:[#allocation3 + $0x120] sm:$0xff] }
 0x2b2   : > { %v2752_v37 = vld [vmem:[#allocation3 + $0x88] sm:$0xff]  ;;  %2300 = vst.msk [vmem:[#allocation3 + $0xb8] sm:$0xff] %vm2285_vm12, %v2202_v35  ;;  %2037 = vrot.lane.b32.xlu1 %v2562_v3, %s6077_s11  ;;  %2455 = vrot.lane.b32.xlu0 %v2370_v32, %s6078_s16 }
 0x2b3   : > { %2709 = vst.msk [vmem:[#allocation3 + $0xa0] sm:$0xff] %vm2702_vm0, %v2619_v63  ;;  %5340 = vmatmul.mubr.msk.f32.gmra.mrb[10].mxu0 %vm2929_vm1, %v2752_v37  ;;  %3134 = vmatmul.mubr.f32.gmra.mrb[12].mxu1 %v2753_v16  ;;  %v2376_v63 = vld [vmem:[#allocation2 + $0x171] sm:$0xff]  ;;  %v2151_v16 = vld [vmem:[#allocation2 + $0x180] sm:$0xff] }
 0x2b4   : > { %3390 = vmatprep.mubr.f32.mxu0 %v9395_v1  ;;  %v2010_v33 = vpop.permute.xlu1 %2009  ;;  %v2428_v34 = vpop.permute.xlu0 %2427 }
 0x2b5   : > { %2098 = vst.msk [vmem:[#allocation3 + $0xc8] sm:$0xff] %vm2089_vm13, %v2010_v33  ;;  %v2569_v33 = vld [vmem:[#allocation2 + $0x172] sm:$0xff] }
 0x2b6   : > { %2517 = vst.msk [vmem:[#allocation3 + $0xb8] sm:$0xff] %vm2509_vm15, %v2428_v34  ;;  %2231 = vrot.lane.b32.xlu1 %v2145_v5, %s6076_s10  ;;  %2648 = vrot.lane.b32.xlu0 %v2563_v17, %s6079_s17 }
 0x2b8   : > { %v2204_v6 = vpop.permute.xlu1 %2203  ;;  %v2621_v52 = vpop.permute.xlu0 %2620  ;;  %v2757_v19 = vld [vmem:[#allocation3 + $0xb0] sm:$0xff] }
 0x2b9   : > { %2301 = vst.msk [vmem:[#allocation3 + $0xc8] sm:$0xff] %vm2283_vm14, %v2204_v6  ;;  %3139 = vmatprep.mubr.f32.mxu1 %v2757_v19  ;;  %v2774_v19 = vld [vmem:[#allocation3 + $0x138] sm:$0xff] }
 0x2ba   : > { %v2755_v41 = vld [vmem:[#allocation3 + $0xa0] sm:$0xff]  ;;  %2302 = vst.msk [vmem:[#allocation3 + $0xd0] sm:$0xff] %vm2285_vm12, %v2204_v6  ;;  %2039 = vrot.lane.b32.xlu1 %v2563_v17, %s6077_s11  ;;  %2457 = vrot.lane.b32.xlu0 %v2371_v58, %s6078_s16 }
 0x2bb   : > { %2710 = vst.msk [vmem:[#allocation3 + $0xb8] sm:$0xff] %vm2702_vm0, %v2621_v52  ;;  %5341 = vmatmul.mubr.msk.f32.gmra.mrb[12].mxu0 %vm2929_vm1, %v2755_v41  ;;  %3140 = vmatmul.mubr.f32.gmra.mrb[14].mxu1 %v2756_v59  ;;  %v2377_v52 = vld [vmem:[#allocation2 + $0x181] sm:$0xff] }
 0x2bc   : > { %3396 = vmatprep.mubr.f32.mxu0 %v9395_v1  ;;  %v2012_v38 = vpop.permute.xlu1 %2011  ;;  %v2430_v11 = vpop.permute.xlu0 %2429  ;;  %v2152_v59 = vld [vmem:[#allocation2 + $0x188] sm:$0xff] }
 0x2bd   : > { %2099 = vst.msk [vmem:[#allocation3 + $0xe0] sm:$0xff] %vm2089_vm13, %v2012_v38  ;;  %v2570_v38 = vld [vmem:[#allocation2 + $0x182] sm:$0xff] }
 0x2be   : > { %2518 = vst.msk [vmem:[#allocation3 + $0xd0] sm:$0xff] %vm2509_vm15, %v2430_v11  ;;  %2233 = vrot.lane.b32.xlu1 %v2146_v12, %s6076_s10  ;;  %2650 = vrot.lane.b32.xlu0 %v2564_v40, %s6079_s17 }
 0x2c0   : > { %v2206_v39 = vpop.permute.xlu1 %2205  ;;  %v2623_v2 = vpop.permute.xlu0 %2622  ;;  %v2760_v7 = vld [vmem:[#allocation3 + $0xc8] sm:$0xff] }
 0x2c1   : > { %2303 = vst.msk [vmem:[#allocation3 + $0xe0] sm:$0xff] %vm2283_vm14, %v2206_v39  ;;  %3145 = vmatprep.mubr.f32.mxu1 %v2760_v7  ;;  %v2777_v7 = vld [vmem:[#allocation3 + $0x150] sm:$0xff] }
 0x2c2   : > { %v2758_v14 = vld [vmem:[#allocation3 + $0xb8] sm:$0xff]  ;;  %2304 = vst.msk [vmem:[#allocation3 + $0xe8] sm:$0xff] %vm2285_vm12, %v2206_v39  ;;  %2041 = vrot.lane.b32.xlu1 %v2564_v40, %s6077_s11  ;;  %2459 = vrot.lane.b32.xlu0 %v2372_v8, %s6078_s16 }
 0x2c3   : > { %2711 = vst.msk [vmem:[#allocation3 + $0xd0] sm:$0xff] %vm2702_vm0, %v2623_v2  ;;  %5342 = vmatmul.mubr.msk.f32.gmra.mrb[14].mxu0 %vm2929_vm1, %v2758_v14  ;;  %3146 = vmatmul.mubr.f32.gmra.mrb[16].mxu1 %v2759_v47  ;;  %v2378_v2 = vld [vmem:[#allocation2 + $0x189] sm:$0xff] }
 0x2c4   : > { %3402 = vmatprep.mubr.f32.mxu0 %v9395_v1  ;;  %v2014_v15 = vpop.permute.xlu1 %2013  ;;  %v2432_v44 = vpop.permute.xlu0 %2431  ;;  %v2571_v47 = vld [vmem:[#allocation2 + $0x18a] sm:$0xff] }
 0x2c5   : > { %2100 = vst.msk [vmem:[#allocation3 + $0xf8] sm:$0xff] %vm2089_vm13, %v2014_v15  ;;  %v2153_v15 = vld [vmem:[#allocation2 + $0x198] sm:$0xff] }
 0x2c6   : > { %2519 = vst.msk [vmem:[#allocation3 + $0xe8] sm:$0xff] %vm2509_vm15, %v2432_v44  ;;  %2235 = vrot.lane.b32.xlu1 %v2147_v13, %s6076_s10  ;;  %2652 = vrot.lane.b32.xlu0 %v2565_v45, %s6079_s17 }
 0x2c8   : > { %v2208_v18 = vpop.permute.xlu1 %2207  ;;  %v2625_v46 = vpop.permute.xlu0 %2624  ;;  %v2763_v31 = vld [vmem:[#allocation3 + $0xe0] sm:$0xff] }
 0x2c9   : > { %2305 = vst.msk [vmem:[#allocation3 + $0xf8] sm:$0xff] %vm2283_vm14, %v2208_v18  ;;  %3151 = vmatprep.mubr.f32.mxu1 %v2763_v31  ;;  %v2379_v31 = vld [vmem:[#allocation2 + $0x199] sm:$0xff] }
 0x2ca   : > { %v2761_v25 = vld [vmem:[#allocation3 + $0xd0] sm:$0xff]  ;;  %2306 = vst.msk [vmem:[#allocation3 + $0x100] sm:$0xff] %vm2285_vm12, %v2208_v18  ;;  %2043 = vrot.lane.b32.xlu1 %v2565_v45, %s6077_s11  ;;  %2461 = vrot.lane.b32.xlu0 %v2373_v23, %s6078_s16 }
 0x2cb   : > { %2712 = vst.msk [vmem:[#allocation3 + $0xe8] sm:$0xff] %vm2702_vm0, %v2625_v46  ;;  %5343 = vmatmul.mubr.msk.f32.gmra.mrb[16].mxu0 %vm2929_vm1, %v2761_v25  ;;  %3152 = vmatmul.mubr.f32.gmra.mrb[18].mxu1 %v2762_v30  ;;  %v2780_v46 = vld [vmem:[#allocation3 + $0x168] sm:$0xff]  ;;  %v2154_v30 = vld [vmem:[#allocation2 + $0x1a0] sm:$0xff] }
 0x2cc   : > { %3408 = vmatprep.mubr.f32.mxu0 %v9395_v1  ;;  %v2016_v36 = vpop.permute.xlu1 %2015  ;;  %v2434_v53 = vpop.permute.xlu0 %2433 }
 0x2cd   : > { %2101 = vst.msk [vmem:[#allocation3 + $0x110] sm:$0xff] %vm2089_vm13, %v2016_v36  ;;  %v2572_v36 = vld [vmem:[#allocation2 + $0x19a] sm:$0xff] }
 0x2ce   : > { %2520 = vst.msk [vmem:[#allocation3 + $0x100] sm:$0xff] %vm2509_vm15, %v2434_v53  ;;  %2237 = vrot.lane.b32.xlu1 %v2148_v49, %s6076_s10  ;;  %2654 = vrot.lane.b32.xlu0 %v2566_v20, %s6079_s17 }
 0x2d0   : > { %v2210_v50 = vpop.permute.xlu1 %2209  ;;  %v2627_v54 = vpop.permute.xlu0 %2626  ;;  %v2766_v51 = vld [vmem:[#allocation3 + $0xf8] sm:$0xff] }
 0x2d1   : > { %2307 = vst.msk [vmem:[#allocation3 + $0x110] sm:$0xff] %vm2283_vm14, %v2210_v50  ;;  %3157 = vmatprep.mubr.f32.mxu1 %v2766_v51  ;;  %v2380_v51 = vld [vmem:[#allocation2 + $0x1a1] sm:$0xff] }
 0x2d2   : > { %v2764_v21 = vld [vmem:[#allocation3 + $0xe8] sm:$0xff]  ;;  %2308 = vst.msk [vmem:[#allocation3 + $0x118] sm:$0xff] %vm2285_vm12, %v2210_v50  ;;  %2045 = vrot.lane.b32.xlu1 %v2566_v20, %s6077_s11  ;;  %2463 = vrot.lane.b32.xlu0 %v2374_v22, %s6078_s16 }
 0x2d3   : > { %2713 = vst.msk [vmem:[#allocation3 + $0x100] sm:$0xff] %vm2702_vm0, %v2627_v54  ;;  %5344 = vmatmul.mubr.msk.f32.gmra.mrb[18].mxu0 %vm2929_vm1, %v2764_v21  ;;  %3158 = vmatmul.mubr.f32.gmra.mrb[20].mxu1 %v2765_v4  ;;  %v2783_v54 = vld [vmem:[#allocation3 + $0x180] sm:$0xff]  ;;  %v2573_v21 = vld [vmem:[#allocation2 + $0x1a2] sm:$0xff] }
 0x2d4   : > { %3414 = vmatprep.mubr.f32.mxu0 %v9395_v1  ;;  %v2018_v9 = vpop.permute.xlu1 %2017  ;;  %v2436_v42 = vpop.permute.xlu0 %2435 }
 0x2d5   : > { %2102 = vst.msk [vmem:[#allocation3 + $0x128] sm:$0xff] %vm2089_vm13, %v2018_v9 }
 0x2d6   : > { %2521 = vst.msk [vmem:[#allocation3 + $0x118] sm:$0xff] %vm2509_vm15, %v2436_v42  ;;  %2239 = vrot.lane.b32.xlu1 %v2149_v60, %s6076_s10  ;;  %2656 = vrot.lane.b32.xlu0 %v2567_v43, %s6079_s17 }
 0x2d8   : > { %v2212_v29 = vpop.permute.xlu1 %2211  ;;  %v2629_v48 = vpop.permute.xlu0 %2628  ;;  %v2769_v56 = vld [vmem:[#allocation3 + $0x110] sm:$0xff] }
 0x2d9   : > { %2309 = vst.msk [vmem:[#allocation3 + $0x128] sm:$0xff] %vm2283_vm14, %v2212_v29  ;;  %3163 = vmatprep.mubr.f32.mxu1 %v2769_v56 }
 0x2da   : > { %v2767_v10 = vld [vmem:[#allocation3 + $0x100] sm:$0xff]  ;;  %2310 = vst.msk [vmem:[#allocation3 + $0x130] sm:$0xff] %vm2285_vm12, %v2212_v29  ;;  %2047 = vrot.lane.b32.xlu1 %v2567_v43, %s6077_s11  ;;  %2465 = vrot.lane.b32.xlu0 %v2375_v57, %s6078_s16  ;;  %v2786_v29 = vld [vmem:[#allocation3 + $0x198] sm:$0xff] }
 0x2db   : > { %2714 = vst.msk [vmem:[#allocation3 + $0x118] sm:$0xff] %vm2702_vm0, %v2629_v48  ;;  %5345 = vmatmul.mubr.msk.f32.gmra.mrb[20].mxu0 %vm2929_vm1, %v2767_v10  ;;  %3164 = vmatmul.mubr.f32.gmra.mrb[22].mxu1 %v2768_v26 }
 0x2dc   : > { %3420 = vmatprep.mubr.f32.mxu0 %v9395_v1  ;;  %v2020_v28 = vpop.permute.xlu1 %2019  ;;  %v2438_v61 = vpop.permute.xlu0 %2437 }
 0x2dd   : > { %2103 = vst.msk [vmem:[#allocation3 + $0x140] sm:$0xff] %vm2089_vm13, %v2020_v28 }
 0x2de   : > { %2522 = vst.msk [vmem:[#allocation3 + $0x130] sm:$0xff] %vm2509_vm15, %v2438_v61  ;;  %2241 = vrot.lane.b32.xlu1 %v2150_v27, %s6076_s10  ;;  %2658 = vrot.lane.b32.xlu0 %v2568_v55, %s6079_s17  ;;  %v2789_v61 = vld [vmem:[#allocation3 + $0x1b0] sm:$0xff] }
 0x2e0   : > { %v2214_v0 = vpop.permute.xlu1 %2213  ;;  %v2631_v62 = vpop.permute.xlu0 %2630  ;;  %v2772_v3 = vld [vmem:[#allocation3 + $0x128] sm:$0xff] }
 0x2e1   : > { %2311 = vst.msk [vmem:[#allocation3 + $0x140] sm:$0xff] %vm2283_vm14, %v2214_v0  ;;  %3169 = vmatprep.mubr.f32.mxu1 %v2772_v3 }
 0x2e2   : > { %v2770_v35 = vld [vmem:[#allocation3 + $0x118] sm:$0xff]  ;;  %2312 = vst.msk [vmem:[#allocation3 + $0x148] sm:$0xff] %vm2285_vm12, %v2214_v0  ;;  %2049 = vrot.lane.b32.xlu1 %v2568_v55, %s6077_s11  ;;  %2467 = vrot.lane.b32.xlu0 %v2376_v63, %s6078_s16  ;;  %v2792_v63 = vld [vmem:[#allocation3 + $0x1c8] sm:$0xff] }
 0x2e3   : > { %2715 = vst.msk [vmem:[#allocation3 + $0x130] sm:$0xff] %vm2702_vm0, %v2631_v62  ;;  %5346 = vmatmul.mubr.msk.f32.gmra.mrb[22].mxu0 %vm2929_vm1, %v2770_v35  ;;  %3170 = vmatmul.mubr.f32.gmra.mrb[24].mxu1 %v2771_v24 }
 0x2e4   : > { %3426 = vmatprep.mubr.f32.mxu0 %v9395_v1  ;;  %v2022_v37 = vpop.permute.xlu1 %2021  ;;  %v2440_v32 = vpop.permute.xlu0 %2439 }
 0x2e5   : > { %2104 = vst.msk [vmem:[#allocation3 + $0x158] sm:$0xff] %vm2089_vm13, %v2022_v37 }
 0x2e6   : > { %2523 = vst.msk [vmem:[#allocation3 + $0x148] sm:$0xff] %vm2509_vm15, %v2440_v32  ;;  %2243 = vrot.lane.b32.xlu1 %v2151_v16, %s6076_s10  ;;  %2660 = vrot.lane.b32.xlu0 %v2569_v33, %s6079_s17 }
 0x2e8   : > { %v2216_v34 = vpop.permute.xlu1 %2215  ;;  %v2633_v5 = vpop.permute.xlu0 %2632  ;;  %v2775_v17 = vld [vmem:[#allocation3 + $0x140] sm:$0xff] }
 0x2e9   : > { %2313 = vst.msk [vmem:[#allocation3 + $0x158] sm:$0xff] %vm2283_vm14, %v2216_v34  ;;  %3175 = vmatprep.mubr.f32.mxu1 %v2775_v17 }
 0x2ea   : > { %v2773_v6 = vld [vmem:[#allocation3 + $0x130] sm:$0xff]  ;;  %2314 = vst.msk [vmem:[#allocation3 + $0x160] sm:$0xff] %vm2285_vm12, %v2216_v34  ;;  %2051 = vrot.lane.b32.xlu1 %v2569_v33, %s6077_s11  ;;  %2469 = vrot.lane.b32.xlu0 %v2377_v52, %s6078_s16 }
 0x2eb   : > { %2716 = vst.msk [vmem:[#allocation3 + $0x148] sm:$0xff] %vm2702_vm0, %v2633_v5  ;;  %5347 = vmatmul.mubr.msk.f32.gmra.mrb[24].mxu0 %vm2929_vm1, %v2773_v6  ;;  %3176 = vmatmul.mubr.f32.gmra.mrb[26].mxu1 %v2774_v19  ;;  %v2795_v5 = vld [vmem:[#allocation3 + $0x1e0] sm:$0xff] }
 0x2ec   : > { %3432 = vmatprep.mubr.f32.mxu0 %v9395_v1  ;;  %v2024_v41 = vpop.permute.xlu1 %2023  ;;  %v2442_v58 = vpop.permute.xlu0 %2441 }
 0x2ed   : > { %2105 = vst.msk [vmem:[#allocation3 + $0x170] sm:$0xff] %vm2089_vm13, %v2024_v41 }
 0x2ee   : > { %2524 = vst.msk [vmem:[#allocation3 + $0x160] sm:$0xff] %vm2509_vm15, %v2442_v58  ;;  %2245 = vrot.lane.b32.xlu1 %v2152_v59, %s6076_s10  ;;  %2662 = vrot.lane.b32.xlu0 %v2570_v38, %s6079_s17  ;;  %v2798_v59 = vld [vmem:[#allocation3 + $0x1f8] sm:$0xff] }
 0x2f0   : > { %v2218_v11 = vpop.permute.xlu1 %2217  ;;  %v2635_v12 = vpop.permute.xlu0 %2634  ;;  %v2778_v40 = vld [vmem:[#allocation3 + $0x158] sm:$0xff] }
 0x2f1   : > { %2315 = vst.msk [vmem:[#allocation3 + $0x170] sm:$0xff] %vm2283_vm14, %v2218_v11  ;;  %3181 = vmatprep.mubr.f32.mxu1 %v2778_v40 }
 0x2f2   : > { %v2776_v39 = vld [vmem:[#allocation3 + $0x148] sm:$0xff]  ;;  %2316 = vst.msk [vmem:[#allocation3 + $0x178] sm:$0xff] %vm2285_vm12, %v2218_v11  ;;  %2471 = vrot.lane.b32.xlu1 %v2378_v2, %s6078_s16  ;;  %1860 = vrot.lane.b32.xlu0 %v2377_v52, %s6075_s18 }
 0x2f3   : > { %2717 = vst.msk [vmem:[#allocation3 + $0x160] sm:$0xff] %vm2702_vm0, %v2635_v12  ;;  %5348 = vmatmul.mubr.msk.f32.gmra.mrb[26].mxu0 %vm2929_vm1, %v2776_v39  ;;  %3182 = vmatmul.mubr.f32.gmra.mrb[28].mxu1 %v2777_v7  ;;  %v2801_v7 = vld [vmem:[#allocation3 + $0x210] sm:$0xff] }
 0x2f4   : > { %3438 = vmatprep.mubr.f32.mxu0 %v9395_v1  ;;  %v2026_v14 = vpop.permute.xlu1 %2025  ;;  %v2444_v8 = vpop.permute.xlu0 %2443 }
 0x2f5   : > { %2106 = vst.msk [vmem:[#allocation3 + $0x188] sm:$0xff] %vm2089_vm13, %v2026_v14 }
 0x2f6   : > { %2525 = vst.msk [vmem:[#allocation3 + $0x178] sm:$0xff] %vm2509_vm15, %v2444_v8  ;;  %2664 = vrot.lane.b32.xlu1 %v2571_v47, %s6079_s17  ;;  %2053 = vrot.lane.b32.xlu0 %v2570_v38, %s6077_s11 }
 0x2f8   : > { %v2220_v44 = vpop.permute.xlu1 %2219  ;;  %v2637_v13 = vpop.permute.xlu0 %2636  ;;  %v2781_v45 = vld [vmem:[#allocation3 + $0x170] sm:$0xff] }
 0x2f9   : > { %2317 = vst.msk [vmem:[#allocation3 + $0x188] sm:$0xff] %vm2283_vm14, %v2220_v44  ;;  %3187 = vmatprep.mubr.f32.mxu1 %v2781_v45  ;;  %v2804_v45 = vld [vmem:[#allocation3 + $0x228] sm:$0xff] }
 0x2fa   : > { %v2779_v18 = vld [vmem:[#allocation3 + $0x160] sm:$0xff]  ;;  %2318 = vst.msk [vmem:[#allocation3 + $0x190] sm:$0xff] %vm2285_vm12, %v2220_v44  ;;  %1862 = vrot.lane.b32.xlu1 %v2378_v2, %s6075_s18  ;;  %2247 = vrot.lane.b32.xlu0 %v2153_v15, %s6076_s10 }
 0x2fb   : > { %2718 = vst.msk [vmem:[#allocation3 + $0x178] sm:$0xff] %vm2702_vm0, %v2637_v13  ;;  %5349 = vmatmul.mubr.msk.f32.gmra.mrb[28].mxu0 %vm2929_vm1, %v2779_v18  ;;  %3188 = vmatmul.mubr.f32.gmra.mrb[30].mxu1 %v2780_v46 }
 0x2fc   : > { %3444 = vmatprep.mubr.f32.mxu0 %v9395_v1  ;;  %v2028_v25 = vpop.permute.xlu1 %2027  ;;  %v2446_v23 = vpop.permute.xlu0 %2445 }
 0x2fd   : > { %2107 = vst.msk [vmem:[#allocation3 + $0x1a0] sm:$0xff] %vm2089_vm13, %v2028_v25 }
 0x2fe   : > { %2526 = vst.msk [vmem:[#allocation3 + $0x190] sm:$0xff] %vm2509_vm15, %v2446_v23  ;;  %2055 = vrot.lane.b32.xlu1 %v2571_v47, %s6077_s11  ;;  %2473 = vrot.lane.b32.xlu0 %v2379_v31, %s6078_s16 }
 0x300   : > { %v2222_v53 = vpop.permute.xlu1 %2221  ;;  %v2639_v49 = vpop.permute.xlu0 %2638  ;;  %v2784_v20 = vld [vmem:[#allocation3 + $0x188] sm:$0xff] }
 0x301   : > { %2319 = vst.msk [vmem:[#allocation3 + $0x1a0] sm:$0xff] %vm2283_vm14, %v2222_v53  ;;  %3193 = vmatprep.mubr.f32.mxu1 %v2784_v20 }
 0x302   : > { %v2782_v50 = vld [vmem:[#allocation3 + $0x178] sm:$0xff]  ;;  %2320 = vst.msk [vmem:[#allocation3 + $0x1a8] sm:$0xff] %vm2285_vm12, %v2222_v53  ;;  %2249 = vrot.lane.b32.xlu1 %v2154_v30, %s6076_s10  ;;  %2666 = vrot.lane.b32.xlu0 %v2572_v36, %s6079_s17  ;;  %v2807_v36 = vld [vmem:[#allocation3 + $0x240] sm:$0xff] }
 0x303   : > { %2719 = vst.msk [vmem:[#allocation3 + $0x190] sm:$0xff] %vm2702_vm0, %v2639_v49  ;;  %5350 = vmatmul.mubr.msk.f32.gmra.mrb[30].mxu0 %vm2929_vm1, %v2782_v50  ;;  %3194 = vmatmul.mubr.f32.gmra.mrb[32].mxu1 %v2783_v54 }
 0x304   : > { %3450 = vmatprep.mubr.f32.mxu0 %v9395_v1  ;;  %v2030_v22 = vpop.permute.xlu1 %2029  ;;  %v2448_v4 = vpop.permute.xlu0 %2447 }
 0x305   : > { %2108 = vst.msk [vmem:[#allocation3 + $0x1b8] sm:$0xff] %vm2089_vm13, %v2030_v22  ;;  %v2919_v22 = vlaneseq }
 0x306   : > { %2527 = vst.msk [vmem:[#allocation3 + $0x1a8] sm:$0xff] %vm2509_vm15, %v2448_v4  ;;  %2475 = vrot.lane.b32.xlu0 %v2380_v51, %s6078_s16  ;;  %2668 = vrot.lane.b32.xlu1 %v2573_v21, %s6079_s17  ;;  %v2810_v21 = vld [vmem:[#allocation3 + $0x258] sm:$0xff] }
 0x308   : > { %v2224_v9 = vpop.permute.xlu1 %2223  ;;  %v2641_v42 = vpop.permute.xlu0 %2640  ;;  %v2787_v60 = vld [vmem:[#allocation3 + $0x1a0] sm:$0xff] }
 0x309   : > { %2321 = vst.msk [vmem:[#allocation3 + $0x1b8] sm:$0xff] %vm2283_vm14, %v2224_v9  ;;  %3199 = vmatprep.mubr.f32.mxu1 %v2787_v60 }
 0x30a   : > { %v2785_v43 = vld [vmem:[#allocation3 + $0x190] sm:$0xff]  ;;  %2322 = vst.msk [vmem:[#allocation3 + $0x1c0] sm:$0xff] %vm2285_vm12, %v2224_v9  ;;  %3200 = vmatmul.mubr.f32.gmra.mrb[34].mxu1 %v2786_v29 }
 0x30b   : > { %2720 = vst.msk [vmem:[#allocation3 + $0x1a8] sm:$0xff] %vm2702_vm0, %v2641_v42  ;;  %5351 = vmatmul.mubr.msk.f32.gmra.mrb[32].mxu0 %vm2929_vm1, %v2785_v43  ;;  %v2920_v42 = vshrl.u32 %v2919_v22, 7 }
 0x30c   : > { %3456 = vmatprep.mubr.f32.mxu0 %v9395_v1  ;;  %v2032_v48 = vpop.permute.xlu1 %2031  ;;  %v2450_v56 = vpop.permute.xlu0 %2449 }
 0x30d   : > { %2109 = vst.msk [vmem:[#allocation3 + $0x1d0] sm:$0xff] %vm2089_vm13, %v2032_v48 }
 0x30e   : > { %2528 = vst.msk [vmem:[#allocation3 + $0x1c0] sm:$0xff] %vm2509_vm15, %v2450_v56  ;;  %v2813_v56 = vld [vmem:[#allocation3 + $0x270] sm:$0xff] }
 0x310   : > { %v2226_v10 = vpop.permute.xlu1 %2225  ;;  %v2643_v57 = vpop.permute.xlu0 %2642  ;;  %v2790_v26 = vld [vmem:[#allocation3 + $0x1b8] sm:$0xff] }
 0x311   : > { %2323 = vst.msk [vmem:[#allocation3 + $0x1d0] sm:$0xff] %vm2283_vm14, %v2226_v10  ;;  %3205 = vmatprep.mubr.f32.mxu1 %v2790_v26 }
 0x312   : > { %v2788_v28 = vld [vmem:[#allocation3 + $0x1a8] sm:$0xff]  ;;  %2324 = vst.msk [vmem:[#allocation3 + $0x1d8] sm:$0xff] %vm2285_vm12, %v2226_v10  ;;  %3206 = vmatmul.mubr.f32.gmra.mrb[36].mxu1 %v2789_v61  ;;  %v2921_v10 = vsub.s32 0, %v2920_v42  ;;  %v2925_v61 = vsub.s32 1, %v2920_v42 }
 0x313   : > { %2721 = vst.msk [vmem:[#allocation3 + $0x1c0] sm:$0xff] %vm2702_vm0, %v2643_v57  ;;  %5352 = vmatmul.mubr.msk.f32.gmra.mrb[34].mxu0 %vm2929_vm1, %v2788_v28  ;;  %v2917_v28 = vld [vmem:[%s9234_s6] sm:$0x3] }
 0x314   : > { %3462 = vmatprep.mubr.f32.mxu0 %v9395_v1  ;;  %v2034_v27 = vpop.permute.xlu1 %2033  ;;  %v2452_v55 = vpop.permute.xlu0 %2451 }
 0x315   : > { %2110 = vst.msk [vmem:[#allocation3 + $0x1e8] sm:$0xff] %vm2089_vm13, %v2034_v27  ;;  %v7807_v27 = vrot.slane %v2917_v28, %v2921_v10 }
 0x316   : > { %2529 = vst.msk [vmem:[#allocation3 + $0x1d8] sm:$0xff] %vm2509_vm15, %v2452_v55 }
 0x318   : > { %v2228_v0 = vpop.permute.xlu1 %2227  ;;  %v2645_v62 = vpop.permute.xlu0 %2644  ;;  %v2793_v3 = vld [vmem:[#allocation3 + $0x1d0] sm:$0xff] }
 0x319   : > { %2325 = vst.msk [vmem:[#allocation3 + $0x1e8] sm:$0xff] %vm2283_vm14, %v2228_v0  ;;  %3211 = vmatprep.mubr.f32.mxu1 %v2793_v3 }
 0x31a   : > { %v2791_v35 = vld [vmem:[#allocation3 + $0x1c0] sm:$0xff]  ;;  %2326 = vst.msk [vmem:[#allocation3 + $0x1f0] sm:$0xff] %vm2285_vm12, %v2228_v0  ;;  %3212 = vmatmul.mubr.f32.gmra.mrb[38].mxu1 %v2792_v63  ;;  %v7809_v0 = vrot.slane %v2917_v28, %v2925_v61 }
 0x31b   : > { %2722 = vst.msk [vmem:[#allocation3 + $0x1d8] sm:$0xff] %vm2702_vm0, %v2645_v62  ;;  %5353 = vmatmul.mubr.msk.f32.gmra.mrb[36].mxu0 %vm2929_vm1, %v2791_v35 }
 0x31c   : > { %3468 = vmatprep.mubr.f32.mxu0 %v9395_v1  ;;  %v2036_v24 = vpop.permute.xlu1 %2035  ;;  %v2454_v37 = vpop.permute.xlu0 %2453 }
 0x31d   : > { %2111 = vst.msk [vmem:[#allocation3 + $0x200] sm:$0xff] %vm2089_vm13, %v2036_v24 }
 0x31e   : > { %2530 = vst.msk [vmem:[#allocation3 + $0x1f0] sm:$0xff] %vm2509_vm15, %v2454_v37  ;;  %v2816_v37 = vld [vmem:[#allocation3 + $0x288] sm:$0xff] }
 0x320   : > { %v2230_v32 = vpop.permute.xlu1 %2229  ;;  %v2647_v16 = vpop.permute.xlu0 %2646  ;;  %v2796_v33 = vld [vmem:[#allocation3 + $0x1e8] sm:$0xff] }
 0x321   : > { %2327 = vst.msk [vmem:[#allocation3 + $0x200] sm:$0xff] %vm2283_vm14, %v2230_v32  ;;  %3217 = vmatprep.mubr.f32.mxu1 %v2796_v33 }
 0x322   : > { %v2794_v34 = vld [vmem:[#allocation3 + $0x1d8] sm:$0xff]  ;;  %2328 = vst.msk [vmem:[#allocation3 + $0x208] sm:$0xff] %vm2285_vm12, %v2230_v32  ;;  %3218 = vmatmul.mubr.f32.gmra.mrb[40].mxu1 %v2795_v5 }
 0x323   : > { %2723 = vst.msk [vmem:[#allocation3 + $0x1f0] sm:$0xff] %vm2702_vm0, %v2647_v16  ;;  %5354 = vmatmul.mubr.msk.f32.gmra.mrb[38].mxu0 %vm2929_vm1, %v2794_v34 }
 0x324   : > { %3474 = vmatprep.mubr.f32.mxu0 %v9395_v1  ;;  %v2038_v17 = vpop.permute.xlu1 %2037  ;;  %v2456_v6 = vpop.permute.xlu0 %2455 }
 0x325   : > { %2112 = vst.msk [vmem:[#allocation3 + $0x218] sm:$0xff] %vm2089_vm13, %v2038_v17 }
 0x326   : > { %2531 = vst.msk [vmem:[#allocation3 + $0x208] sm:$0xff] %vm2509_vm15, %v2456_v6 }
 0x328   : > { %v2232_v52 = vpop.permute.xlu1 %2231  ;;  %v2649_v19 = vpop.permute.xlu0 %2648  ;;  %v2799_v41 = vld [vmem:[#allocation3 + $0x200] sm:$0xff] }
 0x329   : > { %2329 = vst.msk [vmem:[#allocation3 + $0x218] sm:$0xff] %vm2283_vm14, %v2232_v52  ;;  %3223 = vmatprep.mubr.f32.mxu1 %v2799_v41 }
 0x32a   : > { %v2797_v58 = vld [vmem:[#allocation3 + $0x1f0] sm:$0xff]  ;;  %2330 = vst.msk [vmem:[#allocation3 + $0x220] sm:$0xff] %vm2285_vm12, %v2232_v52  ;;  %3224 = vmatmul.mubr.f32.gmra.mrb[42].mxu1 %v2798_v59 }
 0x32b   : > { %2724 = vst.msk [vmem:[#allocation3 + $0x208] sm:$0xff] %vm2702_vm0, %v2649_v19  ;;  %5355 = vmatmul.mubr.msk.f32.gmra.mrb[40].mxu0 %vm2929_vm1, %v2797_v58 }
 0x32c   : > { %3480 = vmatprep.mubr.f32.mxu0 %v9395_v1  ;;  %v2040_v38 = vpop.permute.xlu1 %2039  ;;  %v2458_v11 = vpop.permute.xlu0 %2457 }
 0x32d   : > { %2113 = vst.msk [vmem:[#allocation3 + $0x230] sm:$0xff] %vm2089_vm13, %v2040_v38 }
 0x32e   : > { %2532 = vst.msk [vmem:[#allocation3 + $0x220] sm:$0xff] %vm2509_vm15, %v2458_v11 }
 0x330   : > { %v2234_v12 = vpop.permute.xlu1 %2233  ;;  %v2651_v40 = vpop.permute.xlu0 %2650  ;;  %v2802_v39 = vld [vmem:[#allocation3 + $0x218] sm:$0xff] }
 0x331   : > { %2331 = vst.msk [vmem:[#allocation3 + $0x230] sm:$0xff] %vm2283_vm14, %v2234_v12  ;;  %3229 = vmatprep.mubr.f32.mxu1 %v2802_v39 }
 0x332   : > { %v2800_v2 = vld [vmem:[#allocation3 + $0x208] sm:$0xff]  ;;  %2332 = vst.msk [vmem:[#allocation3 + $0x238] sm:$0xff] %vm2285_vm12, %v2234_v12  ;;  %3230 = vmatmul.mubr.f32.gmra.mrb[44].mxu1 %v2801_v7  ;;  %v2819_v12 = vld [vmem:[#allocation3 + $0x2a0] sm:$0xff] }
 0x333   : > { %2725 = vst.msk [vmem:[#allocation3 + $0x220] sm:$0xff] %vm2702_vm0, %v2651_v40  ;;  %5356 = vmatmul.mubr.msk.f32.gmra.mrb[42].mxu0 %vm2929_vm1, %v2800_v2 }
 0x334   : > { %3486 = vmatprep.mubr.f32.mxu0 %v9395_v1  ;;  %v2042_v14 = vpop.permute.xlu1 %2041  ;;  %v2460_v8 = vpop.permute.xlu0 %2459 }
 0x335   : > { %2114 = vst.msk [vmem:[#allocation3 + $0x248] sm:$0xff] %vm2089_vm13, %v2042_v14 }
 0x336   : > { %2533 = vst.msk [vmem:[#allocation3 + $0x238] sm:$0xff] %vm2509_vm15, %v2460_v8 }
 0x338   : > { %v2236_v47 = vpop.permute.xlu1 %2235  ;;  %v2653_v15 = vpop.permute.xlu0 %2652  ;;  %v2805_v44 = vld [vmem:[#allocation3 + $0x230] sm:$0xff] }
 0x339   : > { %2333 = vst.msk [vmem:[#allocation3 + $0x248] sm:$0xff] %vm2283_vm14, %v2236_v47  ;;  %3235 = vmatprep.mubr.f32.mxu1 %v2805_v44 }
 0x33a   : > { %v2803_v13 = vld [vmem:[#allocation3 + $0x220] sm:$0xff]  ;;  %2334 = vst.msk [vmem:[#allocation3 + $0x250] sm:$0xff] %vm2285_vm12, %v2236_v47  ;;  %3236 = vmatmul.mubr.f32.gmra.mrb[46].mxu1 %v2804_v45 }
 0x33b   : > { %2726 = vst.msk [vmem:[#allocation3 + $0x238] sm:$0xff] %vm2702_vm0, %v2653_v15  ;;  %5357 = vmatmul.mubr.msk.f32.gmra.mrb[44].mxu0 %vm2929_vm1, %v2803_v13 }
 0x33c   : > { %3492 = vmatprep.mubr.f32.mxu0 %v9395_v1  ;;  %v2044_v18 = vpop.permute.xlu1 %2043  ;;  %v2462_v46 = vpop.permute.xlu0 %2461 }
 0x33d   : > { %2115 = vst.msk [vmem:[#allocation3 + $0x260] sm:$0xff] %vm2089_vm13, %v2044_v18 }
 0x33e   : > { %2534 = vst.msk [vmem:[#allocation3 + $0x250] sm:$0xff] %vm2509_vm15, %v2462_v46 }
 0x340   : > { %v2238_v31 = vpop.permute.xlu1 %2237  ;;  %v2655_v25 = vpop.permute.xlu0 %2654  ;;  %v2808_v23 = vld [vmem:[#allocation3 + $0x248] sm:$0xff] }
 0x341   : > { %2335 = vst.msk [vmem:[#allocation3 + $0x260] sm:$0xff] %vm2283_vm14, %v2238_v31  ;;  %3241 = vmatprep.mubr.f32.mxu1 %v2808_v23 }
 0x342   : > { %v2806_v30 = vld [vmem:[#allocation3 + $0x238] sm:$0xff]  ;;  %2336 = vst.msk [vmem:[#allocation3 + $0x268] sm:$0xff] %vm2285_vm12, %v2238_v31  ;;  %3242 = vmatmul.mubr.f32.gmra.mrb[48].mxu1 %v2807_v36 }
 0x343   : > { %2727 = vst.msk [vmem:[#allocation3 + $0x250] sm:$0xff] %vm2702_vm0, %v2655_v25  ;;  %5358 = vmatmul.mubr.msk.f32.gmra.mrb[46].mxu0 %vm2929_vm1, %v2806_v30  ;;  %v2822_v25 = vld [vmem:[#allocation3 + $0x2b8] sm:$0xff] }
 0x344   : > { %3498 = vmatprep.mubr.f32.mxu0 %v9395_v1  ;;  %v2046_v53 = vpop.permute.xlu1 %2045  ;;  %v2464_v49 = vpop.permute.xlu0 %2463 }
 0x345   : > { %2116 = vst.msk [vmem:[#allocation3 + $0x278] sm:$0xff] %vm2089_vm13, %v2046_v53 }
 0x346   : > { %2535 = vst.msk [vmem:[#allocation3 + $0x268] sm:$0xff] %vm2509_vm15, %v2464_v49 }
 0x348   : > { %v2240_v20 = vpop.permute.xlu1 %2239  ;;  %v2657_v50 = vpop.permute.xlu0 %2656  ;;  %v2811_v54 = vld [vmem:[#allocation3 + $0x260] sm:$0xff] }
 0x349   : > { %2337 = vst.msk [vmem:[#allocation3 + $0x278] sm:$0xff] %vm2283_vm14, %v2240_v20  ;;  %3247 = vmatprep.mubr.f32.mxu1 %v2811_v54 }
 0x34a   : > { %v2809_v51 = vld [vmem:[#allocation3 + $0x250] sm:$0xff]  ;;  %2338 = vst.msk [vmem:[#allocation3 + $0x280] sm:$0xff] %vm2285_vm12, %v2240_v20  ;;  %3248 = vmatmul.mubr.f32.gmra.mrb[50].mxu1 %v2810_v21 }
 0x34b   : > { %2728 = vst.msk [vmem:[#allocation3 + $0x268] sm:$0xff] %vm2702_vm0, %v2657_v50  ;;  %5359 = vmatmul.mubr.msk.f32.gmra.mrb[48].mxu0 %vm2929_vm1, %v2809_v51 }
 0x34c   : > { %3504 = vmatprep.mubr.f32.mxu0 %v9395_v1  ;;  %v2048_v4 = vpop.permute.xlu1 %2047  ;;  %v2466_v9 = vpop.permute.xlu0 %2465 }
 0x34d   : > { %2117 = vst.msk [vmem:[#allocation3 + $0x290] sm:$0xff] %vm2089_vm13, %v2048_v4 }
 0x34e   : > { %2536 = vst.msk [vmem:[#allocation3 + $0x280] sm:$0xff] %vm2509_vm15, %v2466_v9 }
 0x350   : > { %v2242_v60 = vpop.permute.xlu1 %2241  ;;  %v2659_v43 = vpop.permute.xlu0 %2658  ;;  %v2814_v29 = vld [vmem:[#allocation3 + $0x278] sm:$0xff] }
 0x351   : > { %2339 = vst.msk [vmem:[#allocation3 + $0x290] sm:$0xff] %vm2283_vm14, %v2242_v60  ;;  %3253 = vmatprep.mubr.f32.mxu1 %v2814_v29 }
 0x352   : > { %v2812_v48 = vld [vmem:[#allocation3 + $0x268] sm:$0xff]  ;;  %2340 = vst.msk [vmem:[#allocation3 + $0x298] sm:$0xff] %vm2285_vm12, %v2242_v60  ;;  %3254 = vmatmul.mubr.f32.gmra.mrb[52].mxu1 %v2813_v56 }
 0x353   : > { %2729 = vst.msk [vmem:[#allocation3 + $0x280] sm:$0xff] %vm2702_vm0, %v2659_v43  ;;  %5360 = vmatmul.mubr.msk.f32.gmra.mrb[50].mxu0 %vm2929_vm1, %v2812_v48 }
 0x354   : > { %3510 = vmatprep.mubr.f32.mxu0 %v9395_v1  ;;  %v2050_v57 = vpop.permute.xlu1 %2049  ;;  %v2468_v26 = vpop.permute.xlu0 %2467 }
 0x355   : > { %2118 = vst.msk [vmem:[#allocation3 + $0x2a8] sm:$0xff] %vm2089_vm13, %v2050_v57 }
 0x356   : > { %2537 = vst.msk [vmem:[#allocation3 + $0x298] sm:$0xff] %vm2509_vm15, %v2468_v26 }
 0x357   : > { %v3099_v55 = vpop.f32.mrb[0].mxu1 }
 0x358   : > { %v3101_v62 = vpop.f32.mrb[1].mxu1  ;;  %v2244_v3 = vpop.permute.xlu1 %2243  ;;  %v2817_v35 = vld [vmem:[#allocation3 + $0x290] sm:$0xff]  ;;  %v3100_v32 = vadd.f32 %v3099_v55, %v7807_v27 }
 0x359   : > { %2341 = vst.msk [vmem:[#allocation3 + $0x2a8] sm:$0xff] %vm2283_vm14, %v2244_v3  ;;  %v2661_v24 = vpop.permute.xlu0 %2660  ;;  %3259 = vmatprep.mubr.f32.mxu1 %v2817_v35  ;;  %v3102_v16 = vadd.f32 %v3101_v62, %v7809_v0 }
 0x35a   : > { %v2815_v63 = vld [vmem:[#allocation3 + $0x280] sm:$0xff]  ;;  %2342 = vst.msk [vmem:[#allocation3 + $0x2b0] sm:$0xff] %vm2285_vm12, %v2244_v3  ;;  %3260 = vmatmul.mubr.f32.gmra.mrb[54].mxu1 %v2816_v37 }
 0x35b   : > { %5361 = vmatmul.mubr.msk.f32.gmra.mrb[52].mxu0 %vm2929_vm1, %v2815_v63  ;;  %2730 = vst.msk [vmem:[#allocation3 + $0x298] sm:$0xff] %vm2702_vm0, %v2661_v24  ;;  %v2825_v24 = vld [vmem:[#allocation3 + $0x2d0] sm:$0xff] }
 0x35c   : > { %3516 = vmatprep.mubr.f32.mxu0 %v9395_v1  ;;  %v2052_v33 = vpop.permute.xlu1 %2051 }
 0x35d   : > { %2119 = vst.msk [vmem:[#allocation3 + $0x2c0] sm:$0xff] %vm2089_vm13, %v2052_v33  ;;  %v2470_v17 = vpop.permute.xlu0 %2469 }
 0x35e   : > { %v3356_v34 = vpop.f32.mrb[0].mxu0  ;;  %2538 = vst.msk [vmem:[#allocation3 + $0x2b0] sm:$0xff] %vm2509_vm15, %v2470_v17  ;;  %v3105_v52 = vpop.f32.mrb[2].mxu1 }
 0x35f   : > { %v7819_v5 = vadd.f32 %v3356_v34, %v3100_v32  ;;  %v3358_v6 = vpop.f32.mrb[1].mxu0  ;;  %v3107_v41 = vpop.f32.mrb[3].mxu1  ;;  %v3106_v40 = vadd.f32 %v3105_v52, %v7807_v27 }
 0x360   : > { %v3359_v19 = vadd.f32 %v3358_v6, %v3102_v16  ;;  %v2246_v58 = vpop.permute.xlu1 %2245  ;;  %v2820_v59 = vld [vmem:[#allocation3 + $0x2a8] sm:$0xff]  ;;  %v3108_v39 = vadd.f32 %v3107_v41, %v7809_v0 }
 0x361   : > { %2343 = vst.msk [vmem:[#allocation3 + $0x2c0] sm:$0xff] %vm2283_vm14, %v2246_v58  ;;  %v2663_v38 = vpop.permute.xlu0 %2662  ;;  %3265 = vmatprep.mubr.f32.mxu1 %v2820_v59 }
 0x362   : > { %5674 = vtanh.f32 %v3359_v19  ;;  %2344 = vst.msk [vmem:[#allocation3 + $0x2c8] sm:$0xff] %vm2285_vm12, %v2246_v58  ;;  %v2818_v11 = vld [vmem:[#allocation3 + $0x298] sm:$0xff]  ;;  %3266 = vmatmul.mubr.f32.gmra.mrb[56].mxu1 %v2819_v12 }
 0x363   : > { %2731 = vst.msk [vmem:[#allocation3 + $0x2b0] sm:$0xff] %vm2702_vm0, %v2663_v38  ;;  %5362 = vmatmul.mubr.msk.f32.gmra.mrb[54].mxu0 %vm2929_vm1, %v2818_v11 }
 0x364   : > { %3522 = vmatprep.mubr.f32.mxu0 %v9395_v1  ;;  %v2472_v2 = vpop.permute.xlu1 %2471 }
 0x365   : > { %2539 = vst.msk [vmem:[#allocation3 + $0x2c8] sm:$0xff] %vm2509_vm15, %v2472_v2  ;;  %v1861_v8 = vpop.permute.xlu0 %1860 }
 0x366   : > { %v3362_v7 = vpop.f32.mrb[2].mxu0  ;;  %1927 = vst.msk [vmem:[#allocation3 + $0x2d8] sm:$0xff] %vm1896_vm11, %v1861_v8  ;;  %v3111_v15 = vpop.f32.mrb[4].mxu1 }
 0x367   : > { %v7830_v14 = vadd.f32 %v3362_v7, %v3106_v40  ;;  %v3364_v47 = vpop.f32.mrb[3].mxu0  ;;  %v3113_v13 = vpop.f32.mrb[5].mxu1  ;;  %v3112_v36 = vadd.f32 %v3111_v15, %v7807_v27  ;;  %v2828_v40 = vld [vmem:[#allocation3 + $0x2e8] sm:$0xff] }
 0x368   : > { %v3365_v44 = vadd.f32 %v3364_v47, %v3108_v39  ;;  %v2665_v45 = vpop.permute.xlu1 %2664  ;;  %v2823_v18 = vld [vmem:[#allocation3 + $0x2c0] sm:$0xff]  ;;  %v3114_v53 = vadd.f32 %v3113_v13, %v7809_v0 }
 0x369   : > { %2732 = vst.msk [vmem:[#allocation3 + $0x2c8] sm:$0xff] %vm2702_vm0, %v2665_v45  ;;  %v2054_v46 = vpop.permute.xlu0 %2053  ;;  %3271 = vmatprep.mubr.f32.mxu1 %v2823_v18 }
 0x36a   : > { %5676 = vtanh.f32 %v3365_v44  ;;  %v2821_v31 = vld [vmem:[#allocation3 + $0x2b0] sm:$0xff]  ;;  %2120 = vst.msk [vmem:[#allocation3 + $0x2d8] sm:$0xff] %vm2089_vm13, %v2054_v46  ;;  %3272 = vmatmul.mubr.f32.gmra.mrb[58].mxu1 %v2822_v25 }
 0x36b   : > { %5363 = vmatmul.mubr.msk.f32.gmra.mrb[56].mxu0 %vm2929_vm1, %v2821_v31 }
 0x36c   : > { %v7834_v23 = vpop.eup %5674  ;;  %3528 = vmatprep.mubr.f32.mxu0 %v9395_v1  ;;  %v1863_v49 = vpop.permute.xlu1 %1862 }
 0x36d   : > { %9396 = vst [vmem:[#allocation4_spill] sm:$0xff] %v7834_v23  ;;  %v3771_v30 = vadd.f32 %v7834_v23, %v7819_v5  ;;  %1928 = vst.msk [vmem:[#allocation3 + $0x2f0] sm:$0xff] %vm1896_vm11, %v1863_v49  ;;  %v2248_v51 = vpop.permute.xlu0 %2247 }
 0x36e   : > { %v3368_v20 = vpop.f32.mrb[4].mxu0  ;;  %2345 = vst.msk [vmem:[#allocation3 + $0x2d8] sm:$0xff] %vm2283_vm14, %v2248_v51  ;;  %v3117_v22 = vpop.f32.mrb[6].mxu1 }
 0x36f   : > { %v5399_v50 = vmul.f32 -1.442695, %v3771_v30  ;;  %v7844_v54 = vadd.f32 %v3368_v20, %v3112_v36  ;;  %v3370_v21 = vpop.f32.mrb[5].mxu0  ;;  %2346 = vst.msk [vmem:[#allocation3 + $0x2e0] sm:$0xff] %vm2285_vm12, %v2248_v51  ;;  %v3119_v9 = vpop.f32.mrb[7].mxu1  ;;  %v3118_v56 = vadd.f32 %v3117_v22, %v7807_v27 }
 0x370   : > { %v3371_v4 = vadd.f32 %v3370_v21, %v3114_v53  ;;  %v2056_v42 = vpop.permute.xlu1 %2055  ;;  %v2824_v60 = vld [vmem:[#allocation3 + $0x2c8] sm:$0xff]  ;;  %v3120_v10 = vadd.f32 %v3119_v9, %v7809_v0 }
 0x371   : > { %5678 = vpow2.f32 %v5399_v50  ;;  %2121 = vst.msk [vmem:[#allocation3 + $0x2f0] sm:$0xff] %vm2089_vm13, %v2056_v42  ;;  %v2474_v43 = vpop.permute.xlu0 %2473  ;;  %5364 = vmatmul.mubr.msk.f32.gmra.mrb[58].mxu0 %vm2929_vm1, %v2824_v60 }
 0x372   : > { %5680 = vtanh.f32 %v3371_v4  ;;  %2540 = vst.msk [vmem:[#allocation3 + $0x2e0] sm:$0xff] %vm2509_vm15, %v2474_v43  ;;  %3534 = vmatprep.mubr.f32.mxu0 %v9395_v1 }
 0x374   : > { %v7850_v29 = vpop.eup %5676  ;;  %v2250_v57 = vpop.permute.xlu1 %2249 }
 0x375   : > { %9397 = vst [vmem:[#allocation5_spill] sm:$0xff] %v7850_v29  ;;  %v3772_v48 = vadd.f32 %v7850_v29, %v7830_v14  ;;  %2347 = vst.msk [vmem:[#allocation3 + $0x2f0] sm:$0xff] %vm2283_vm14, %v2250_v57  ;;  %v2667_v55 = vpop.permute.xlu0 %2666  ;;  %v2826_v62 = vld [vmem:[#allocation3 + $0x2d8] sm:$0xff] }
 0x376   : > { %v3374_v26 = vpop.f32.mrb[6].mxu0  ;;  %2348 = vst.msk [vmem:[#allocation3 + $0x2f8] sm:$0xff] %vm2285_vm12, %v2250_v57  ;;  %v3123_v35 = vpop.f32.mrb[8].mxu1  ;;  %3277 = vmatprep.mubr.f32.mxu1 %v2826_v62 }
 0x377   : > { %v5400_v28 = vmul.f32 -1.442695, %v3772_v48  ;;  %v7860_v61 = vadd.f32 %v3374_v26, %v3118_v56  ;;  %v3376_v3 = vpop.f32.mrb[7].mxu0  ;;  %2733 = vst.msk [vmem:[#allocation3 + $0x2e0] sm:$0xff] %vm2702_vm0, %v2667_v55  ;;  %v3125_v37 = vpop.f32.mrb[9].mxu1  ;;  %3278 = vmatmul.mubr.f32.gmra.mrb[60].mxu1 %v2825_v24  ;;  %v3124_v52 = vadd.f32 %v3123_v35, %v7807_v27 }
 0x378   : > { %v3377_v63 = vadd.f32 %v3376_v3, %v3120_v10  ;;  %v2669_v32 = vpop.permute.xlu1 %2668  ;;  %v3126_v19 = vadd.f32 %v3125_v37, %v7809_v0 }
 0x379   : > { %5682 = vpow2.f32 %v5400_v28  ;;  %v2476_v33 = vpop.permute.xlu0 %2475 }
 0x37a   : > { %5684 = vtanh.f32 %v3377_v63  ;;  %2541 = vst.msk [vmem:[#allocation3 + $0x2f8] sm:$0xff] %vm2509_vm15, %v2476_v33 }
 0x37b   : > { %v5679_v16 = vpop.eup %5678  ;;  %2734 = vst.msk [vmem:[#allocation3 + $0x2f8] sm:$0xff] %vm2702_vm0, %v2669_v32 }
 0x37c   : > { %v7863_v34 = vpop.eup %5680  ;;  %v3899_v17 = vadd.f32 1.0, %v5679_v16  ;;  %v2829_v58 = vld [vmem:[#allocation3 + $0x2f0] sm:$0xff] }
 0x37d   : > { %9398 = vst [vmem:[#allocation6_spill] sm:$0xff] %v7863_v34  ;;  %v3773_v6 = vadd.f32 %v7863_v34, %v7844_v54  ;;  %3283 = vmatprep.mubr.f32.mxu1 %v2829_v58 }
 0x37e   : > { %5686 = vrcp.f32 %v3899_v17  ;;  %v3380_v41 = vpop.f32.mrb[8].mxu0  ;;  %v2827_v12 = vld [vmem:[#allocation3 + $0x2e0] sm:$0xff]  ;;  %v3129_v39 = vpop.f32.mrb[10].mxu1  ;;  %3284 = vmatmul.mubr.f32.gmra.mrb[62].mxu1 %v2828_v40 }
 0x37f   : > { %v5401_v59 = vmul.f32 -1.442695, %v3773_v6  ;;  %v7871_v38 = vadd.f32 %v3380_v41, %v3124_v52  ;;  %v3382_v11 = vpop.f32.mrb[9].mxu0  ;;  %5365 = vmatmul.mubr.msk.f32.gmra.mrb[60].mxu0 %vm2929_vm1, %v2827_v12  ;;  %v3131_v7 = vpop.f32.mrb[11].mxu1  ;;  %v3130_v45 = vadd.f32 %v3129_v39, %v7807_v27 }
 0x380   : > { %v3383_v2 = vadd.f32 %v3382_v11, %v3126_v19  ;;  %3540 = vmatprep.mubr.f32.mxu0 %v9395_v1  ;;  %v3132_v18 = vadd.f32 %v3131_v7, %v7809_v0 }
 0x381   : > { %5688 = vpow2.f32 %v5401_v59 }
 0x382   : > { %5690 = vtanh.f32 %v3383_v2  ;;  %v2830_v44 = vld [vmem:[#allocation3 + $0x2f8] sm:$0xff] }
 0x383   : > { %v5683_v8 = vpop.eup %5682  ;;  %5366 = vmatmul.mubr.msk.f32.gmra.mrb[62].mxu0 %vm2929_vm1, %v2830_v44 }
 0x384   : > { %v7875_v47 = vpop.eup %5684  ;;  %v3900_v15 = vadd.f32 1.0, %v5683_v8 }
 0x385   : > { %9399 = vst [vmem:[#allocation7_spill] sm:$0xff] %v7875_v47  ;;  %v3774_v13 = vadd.f32 %v7875_v47, %v7860_v61 }
 0x386   : > { %5692 = vrcp.f32 %v3900_v15  ;;  %v3386_v46 = vpop.f32.mrb[10].mxu0  ;;  %v3135_v36 = vpop.f32.mrb[12].mxu1 }
 0x387   : > { %v5402_v31 = vmul.f32 -1.442695, %v3774_v13  ;;  %v7882_v25 = vadd.f32 %v3386_v46, %v3130_v45  ;;  %v3388_v1 = vpop.f32.mrb[11].mxu0  ;;  %v3137_v49 = vpop.f32.mrb[13].mxu1  ;;  %v3136_v22 = vadd.f32 %v3135_v36, %v7807_v27 }
 0x388   : > { %v7884_v30 = vpop.eup %5686  ;;  %v3389_v53 = vadd.f32 %v3388_v1, %v3132_v18  ;;  %v3138_v4 = vadd.f32 %v3137_v49, %v7809_v0 }
 0x389   : > { %5694 = vpow2.f32 %v5402_v31  ;;  %4059 = vrot.lane.b32.xlu0 %v7884_v30, %s6080_s20 }
 0x38a   : > { %5696 = vtanh.f32 %v3389_v53 }
 0x38b   : > { %v5689_v20 = vpop.eup %5688 }
 0x38c   : > { %v7888_v50 = vpop.eup %5690  ;;  %v3901_v51 = vadd.f32 1.0, %v5689_v20 }
 0x38d   : > { %9400 = vst [vmem:[#allocation9_spill] sm:$0xff] %v7888_v50  ;;  %v3775_v21 = vadd.f32 %v7888_v50, %v7871_v38 }
 0x38e   : > { %5698 = vrcp.f32 %v3901_v51  ;;  %v3392_v9 = vpop.f32.mrb[12].mxu0  ;;  %v3141_v56 = vpop.f32.mrb[14].mxu1 }
 0x38f   : > { %v5403_v42 = vmul.f32 -1.442695, %v3775_v21  ;;  %v7894_v60 = vadd.f32 %v3392_v9, %v3136_v22  ;;  %v3394_v43 = vpop.f32.mrb[13].mxu0  ;;  %v3143_v57 = vpop.f32.mrb[15].mxu1  ;;  %v3142_v3 = vadd.f32 %v3141_v56, %v7807_v27 }
 0x390   : > { %v7896_v48 = vpop.eup %5692  ;;  %v3395_v10 = vadd.f32 %v3394_v43, %v3138_v4  ;;  %v3144_v35 = vadd.f32 %v3143_v57, %v7809_v0 }
 0x391   : > { %5700 = vpow2.f32 %v5403_v42  ;;  %4061 = vrot.lane.b32.xlu1 %v7896_v48, %s6080_s20 }
 0x392   : > { %5702 = vtanh.f32 %v3395_v10 }
 0x393   : > { %v5695_v26 = vpop.eup %5694 }
 0x394   : > { %v7900_v28 = vpop.eup %5696  ;;  %v3902_v55 = vadd.f32 1.0, %v5695_v26 }
 0x395   : > { %9401 = vst [vmem:[#allocation8_spill] sm:$0xff] %v7900_v28  ;;  %v3776_v62 = vadd.f32 %v7900_v28, %v7882_v25 }
 0x396   : > { %5704 = vrcp.f32 %v3902_v55  ;;  %v3398_v63 = vpop.f32.mrb[14].mxu0  ;;  %v3147_v33 = vpop.f32.mrb[16].mxu1 }
 0x397   : > { %v5404_v24 = vmul.f32 -1.442695, %v3776_v62  ;;  %v7906_v37 = vadd.f32 %v3398_v63, %v3142_v3  ;;  %v3400_v32 = vpop.f32.mrb[15].mxu0  ;;  %v3149_v6 = vpop.f32.mrb[17].mxu1  ;;  %v3148_v59 = vadd.f32 %v3147_v33, %v7807_v27 }
 0x398   : > { %v7908_v16 = vpop.eup %5698  ;;  %v3401_v17 = vadd.f32 %v3400_v32, %v3144_v35  ;;  %v3150_v11 = vadd.f32 %v3149_v6, %v7809_v0 }
 0x399   : > { %5706 = vpow2.f32 %v5404_v24  ;;  %4063 = vrot.lane.b32.xlu0 %v7908_v16, %s6080_s20 }
 0x39a   : > { %5708 = vtanh.f32 %v3401_v17 }
 0x39b   : > { %v5701_v52 = vpop.eup %5700 }
 0x39c   : > { %v7912_v19 = vpop.eup %5702  ;;  %v3903_v41 = vadd.f32 1.0, %v5701_v52 }
 0x39d   : > { %9402 = vst [vmem:[#allocation11_spill] sm:$0xff] %v7912_v19  ;;  %v3777_v58 = vadd.f32 %v7912_v19, %v7894_v60 }
 0x39e   : > { %5710 = vrcp.f32 %v3903_v41  ;;  %v3404_v12 = vpop.f32.mrb[16].mxu0  ;;  %v3153_v8 = vpop.f32.mrb[18].mxu1 }
 0x39f   : > { %v5405_v40 = vmul.f32 -1.442695, %v3777_v58  ;;  %v7918_v39 = vadd.f32 %v3404_v12, %v3148_v59  ;;  %v3406_v2 = vpop.f32.mrb[17].mxu0  ;;  %v3155_v44 = vpop.f32.mrb[19].mxu1  ;;  %v3154_v31 = vadd.f32 %v3153_v8, %v7807_v27 }
 0x3a0   : > { %v7920_v7 = vpop.eup %5704  ;;  %v3407_v15 = vadd.f32 %v3406_v2, %v3150_v11  ;;  %v3156_v1 = vadd.f32 %v3155_v44, %v7809_v0 }
 0x3a1   : > { %5712 = vpow2.f32 %v5405_v40  ;;  %4065 = vrot.lane.b32.xlu1 %v7920_v7, %s6080_s20 }
 0x3a2   : > { %5714 = vtanh.f32 %v3407_v15 }
 0x3a3   : > { %v5707_v13 = vpop.eup %5706 }
 0x3a4   : > { %v7924_v45 = vpop.eup %5708  ;;  %v3904_v18 = vadd.f32 1.0, %v5707_v13 }
 0x3a5   : > { %9403 = vst [vmem:[#allocation10_spill] sm:$0xff] %v7924_v45  ;;  %v3778_v46 = vadd.f32 %v7924_v45, %v7906_v37 }
 0x3a6   : > { %5716 = vrcp.f32 %v3904_v18  ;;  %v3410_v36 = vpop.f32.mrb[18].mxu0  ;;  %v3159_v21 = vpop.f32.mrb[20].mxu1 }
 0x3a7   : > { %v5406_v53 = vmul.f32 -1.442695, %v3778_v46  ;;  %v7930_v49 = vadd.f32 %v3410_v36, %v3154_v31  ;;  %v3412_v20 = vpop.f32.mrb[19].mxu0  ;;  %v3161_v4 = vpop.f32.mrb[21].mxu1  ;;  %v3160_v10 = vadd.f32 %v3159_v21, %v7807_v27 }
 0x3a8   : > { %v7932_v51 = vpop.eup %5710  ;;  %v3413_v22 = vadd.f32 %v3412_v20, %v3156_v1  ;;  %v3162_v57 = vadd.f32 %v3161_v4, %v7809_v0 }
 0x3a9   : > { %5718 = vpow2.f32 %v5406_v53  ;;  %4067 = vrot.lane.b32.xlu0 %v7932_v51, %s6080_s20 }
 0x3aa   : > { %5720 = vtanh.f32 %v3413_v22 }
 0x3ab   : > { %v5713_v9 = vpop.eup %5712 }
 0x3ac   : > { %v7936_v42 = vpop.eup %5714  ;;  %v3905_v43 = vadd.f32 1.0, %v5713_v9 }
 0x3ad   : > { %9404 = vst [vmem:[#allocation13_spill] sm:$0xff] %v7936_v42  ;;  %v3779_v56 = vadd.f32 %v7936_v42, %v7918_v39 }
 0x3ae   : > { %5722 = vrcp.f32 %v3905_v43  ;;  %v3416_v26 = vpop.f32.mrb[20].mxu0  ;;  %v3165_v63 = vpop.f32.mrb[22].mxu1 }
 0x3af   : > { %v5407_v55 = vmul.f32 -1.442695, %v3779_v56  ;;  %v7942_v62 = vadd.f32 %v3416_v26, %v3160_v10  ;;  %v3418_v3 = vpop.f32.mrb[21].mxu0  ;;  %v3167_v32 = vpop.f32.mrb[23].mxu1  ;;  %v3166_v41 = vadd.f32 %v3165_v63, %v7807_v27 }
 0x3b0   : > { %v7944_v35 = vpop.eup %5716  ;;  %v3419_v24 = vadd.f32 %v3418_v3, %v3162_v57  ;;  %v3168_v58 = vadd.f32 %v3167_v32, %v7809_v0 }
 0x3b1   : > { %5724 = vpow2.f32 %v5407_v55  ;;  %4069 = vrot.lane.b32.xlu1 %v7944_v35, %s6080_s20 }
 0x3b2   : > { %5726 = vtanh.f32 %v3419_v24 }
 0x3b3   : > { %v5719_v33 = vpop.eup %5718 }
 0x3b4   : > { %v7948_v17 = vpop.eup %5720  ;;  %v3906_v6 = vadd.f32 1.0, %v5719_v33 }
 0x3b5   : > { %9405 = vst [vmem:[#allocation12_spill] sm:$0xff] %v7948_v17  ;;  %v3780_v52 = vadd.f32 %v7948_v17, %v7930_v49 }
 0x3b6   : > { %5728 = vrcp.f32 %v3906_v6  ;;  %v3422_v59 = vpop.f32.mrb[22].mxu0  ;;  %v3171_v8 = vpop.f32.mrb[24].mxu1 }
 0x3b7   : > { %v5408_v11 = vmul.f32 -1.442695, %v3780_v52  ;;  %v7954_v12 = vadd.f32 %v3422_v59, %v3166_v41  ;;  %v3424_v40 = vpop.f32.mrb[23].mxu0  ;;  %v3173_v44 = vpop.f32.mrb[25].mxu1  ;;  %v3172_v1 = vadd.f32 %v3171_v8, %v7807_v27 }
 0x3b8   : > { %v7956_v2 = vpop.eup %5722  ;;  %v3425_v15 = vadd.f32 %v3424_v40, %v3168_v58  ;;  %v3174_v36 = vadd.f32 %v3173_v44, %v7809_v0 }
 0x3b9   : > { %5730 = vpow2.f32 %v5408_v11  ;;  %4071 = vrot.lane.b32.xlu0 %v7956_v2, %s6080_s20 }
 0x3ba   : > { %5732 = vtanh.f32 %v3425_v15 }
 0x3bb   : > { %v5725_v13 = vpop.eup %5724 }
 0x3bc   : > { %v7960_v18 = vpop.eup %5726  ;;  %v3907_v46 = vadd.f32 1.0, %v5725_v13 }
 0x3bd   : > { %9406 = vst [vmem:[#allocation14_spill] sm:$0xff] %v7960_v18  ;;  %v3781_v31 = vadd.f32 %v7960_v18, %v7942_v62 }
 0x3be   : > { %5734 = vrcp.f32 %v3907_v46  ;;  %v3428_v53 = vpop.f32.mrb[24].mxu0  ;;  %v3177_v9 = vpop.f32.mrb[26].mxu1 }
 0x3bf   : > { %v5409_v20 = vmul.f32 -1.442695, %v3781_v31  ;;  %v7966_v21 = vadd.f32 %v3428_v53, %v3172_v1  ;;  %v3430_v22 = vpop.f32.mrb[25].mxu0  ;;  %v3179_v56 = vpop.f32.mrb[27].mxu1  ;;  %v3178_v3 = vadd.f32 %v3177_v9, %v7807_v27 }
 0x3c0   : > { %v7968_v4 = vpop.eup %5728  ;;  %v3431_v43 = vadd.f32 %v3430_v22, %v3174_v36  ;;  %v3180_v63 = vadd.f32 %v3179_v56, %v7809_v0 }
 0x3c1   : > { %5736 = vpow2.f32 %v5409_v20  ;;  %4073 = vrot.lane.b32.xlu1 %v7968_v4, %s6080_s20 }
 0x3c2   : > { %5738 = vtanh.f32 %v3431_v43 }
 0x3c3   : > { %v5731_v10 = vpop.eup %5730 }
 0x3c4   : > { %v7972_v57 = vpop.eup %5732  ;;  %v3908_v26 = vadd.f32 1.0, %v5731_v10 }
 0x3c5   : > { %9407 = vst [vmem:[#allocation15_spill] sm:$0xff] %v7972_v57  ;;  %v3782_v55 = vadd.f32 %v7972_v57, %v7954_v12 }
 0x3c6   : > { %5740 = vrcp.f32 %v3908_v26  ;;  %v3434_v24 = vpop.f32.mrb[26].mxu0  ;;  %v3183_v41 = vpop.f32.mrb[28].mxu1 }
 0x3c7   : > { %v5410_v32 = vmul.f32 -1.442695, %v3782_v55  ;;  %v7978_v33 = vadd.f32 %v3434_v24, %v3178_v3  ;;  %v3436_v6 = vpop.f32.mrb[27].mxu0  ;;  %v3185_v59 = vpop.f32.mrb[29].mxu1  ;;  %v3184_v44 = vadd.f32 %v3183_v41, %v7807_v27 }
 0x3c8   : > { %v7980_v52 = vpop.eup %5734  ;;  %v3437_v58 = vadd.f32 %v3436_v6, %v3180_v63  ;;  %v3186_v13 = vadd.f32 %v3185_v59, %v7809_v0 }
 0x3c9   : > { %5742 = vpow2.f32 %v5410_v32  ;;  %4075 = vrot.lane.b32.xlu0 %v7980_v52, %s6080_s20 }
 0x3ca   : > { %5744 = vtanh.f32 %v3437_v58 }
 0x3cb   : > { %v5737_v11 = vpop.eup %5736 }
 0x3cc   : > { %v7984_v40 = vpop.eup %5738  ;;  %v3909_v8 = vadd.f32 1.0, %v5737_v11 }
 0x3cd   : > { %9408 = vst [vmem:[#allocation16_spill] sm:$0xff] %v7984_v40  ;;  %v3783_v15 = vadd.f32 %v7984_v40, %v7966_v21 }
 0x3ce   : > { %5746 = vrcp.f32 %v3909_v8  ;;  %v3440_v46 = vpop.f32.mrb[28].mxu0  ;;  %v3189_v20 = vpop.f32.mrb[30].mxu1 }
 0x3cf   : > { %v5411_v31 = vmul.f32 -1.442695, %v3783_v15  ;;  %v7990_v1 = vadd.f32 %v3440_v46, %v3184_v44  ;;  %v3442_v36 = vpop.f32.mrb[29].mxu0  ;;  %v3191_v9 = vpop.f32.mrb[31].mxu1  ;;  %v3190_v55 = vadd.f32 %v3189_v20, %v7807_v27 }
 0x3d0   : > { %v7992_v53 = vpop.eup %5740  ;;  %v3443_v22 = vadd.f32 %v3442_v36, %v3186_v13  ;;  %v3192_v3 = vadd.f32 %v3191_v9, %v7809_v0 }
 0x3d1   : > { %5748 = vpow2.f32 %v5411_v31  ;;  %4077 = vrot.lane.b32.xlu1 %v7992_v53, %s6080_s20 }
 0x3d2   : > { %5750 = vtanh.f32 %v3443_v22 }
 0x3d3   : > { %v5743_v43 = vpop.eup %5742 }
 0x3d4   : > { %v7996_v56 = vpop.eup %5744  ;;  %v3910_v10 = vadd.f32 1.0, %v5743_v43 }
 0x3d5   : > { %9409 = vst [vmem:[#allocation17_spill] sm:$0xff] %v7996_v56  ;;  %v3784_v26 = vadd.f32 %v7996_v56, %v7978_v33 }
 0x3d6   : > { %5752 = vrcp.f32 %v3910_v10  ;;  %v3446_v63 = vpop.f32.mrb[30].mxu0  ;;  %v3195_v58 = vpop.f32.mrb[32].mxu1 }
 0x3d7   : > { %v5412_v24 = vmul.f32 -1.442695, %v3784_v26  ;;  %v8002_v32 = vadd.f32 %v3446_v63, %v3190_v55  ;;  %v3448_v6 = vpop.f32.mrb[31].mxu0  ;;  %v3197_v11 = vpop.f32.mrb[33].mxu1  ;;  %v3196_v46 = vadd.f32 %v3195_v58, %v7807_v27 }
 0x3d8   : > { %v8004_v41 = vpop.eup %5746  ;;  %v3449_v59 = vadd.f32 %v3448_v6, %v3192_v3  ;;  %v3198_v31 = vadd.f32 %v3197_v11, %v7809_v0 }
 0x3d9   : > { %5754 = vpow2.f32 %v5412_v24  ;;  %4079 = vrot.lane.b32.xlu0 %v8004_v41, %s6080_s20 }
 0x3da   : > { %5756 = vtanh.f32 %v3449_v59 }
 0x3db   : > { %v5749_v8 = vpop.eup %5748 }
 0x3dc   : > { %v8008_v15 = vpop.eup %5750  ;;  %v3911_v44 = vadd.f32 1.0, %v5749_v8 }
 0x3dd   : > { %9410 = vst [vmem:[#allocation18_spill] sm:$0xff] %v8008_v15  ;;  %v3785_v13 = vadd.f32 %v8008_v15, %v7990_v1  ;;  %v3201_v9 = vpop.f32.mrb[34].mxu1 }
 0x3de   : > { %5758 = vrcp.f32 %v3911_v44  ;;  %v3452_v36 = vpop.f32.mrb[32].mxu0  ;;  %v3203_v55 = vpop.f32.mrb[35].mxu1  ;;  %v3202_v58 = vadd.f32 %v3201_v9, %v7807_v27 }
 0x3df   : > { %v5413_v20 = vmul.f32 -1.442695, %v3785_v13  ;;  %v8014_v22 = vadd.f32 %v3452_v36, %v3196_v46  ;;  %v3454_v43 = vpop.f32.mrb[33].mxu0  ;;  %v3204_v59 = vadd.f32 %v3203_v55, %v7809_v0 }
 0x3e0   : > { %v8016_v10 = vpop.eup %5752  ;;  %v3455_v26 = vadd.f32 %v3454_v43, %v3198_v31 }
 0x3e1   : > { %5760 = vpow2.f32 %v5413_v20  ;;  %4081 = vrot.lane.b32.xlu1 %v8016_v10, %s6080_s20 }
 0x3e2   : > { %5762 = vtanh.f32 %v3455_v26 }
 0x3e3   : > { %v5755_v3 = vpop.eup %5754 }
 0x3e4   : > { %v8020_v63 = vpop.eup %5756  ;;  %v3912_v24 = vadd.f32 1.0, %v5755_v3 }
 0x3e5   : > { %9411 = vst [vmem:[#allocation19_spill] sm:$0xff] %v8020_v63  ;;  %v3786_v6 = vadd.f32 %v8020_v63, %v8002_v32  ;;  %v3207_v13 = vpop.f32.mrb[36].mxu1 }
 0x3e6   : > { %5764 = vrcp.f32 %v3912_v24  ;;  %v3458_v11 = vpop.f32.mrb[34].mxu0  ;;  %v3209_v20 = vpop.f32.mrb[37].mxu1  ;;  %v3208_v3 = vadd.f32 %v3207_v13, %v7807_v27 }
 0x3e7   : > { %v5414_v8 = vmul.f32 -1.442695, %v3786_v6  ;;  %v8026_v44 = vadd.f32 %v3458_v11, %v3202_v58  ;;  %v3460_v46 = vpop.f32.mrb[35].mxu0  ;;  %v3210_v24 = vadd.f32 %v3209_v20, %v7809_v0 }
 0x3e8   : > { %v8028_v31 = vpop.eup %5758  ;;  %v3461_v36 = vadd.f32 %v3460_v46, %v3204_v59 }
 0x3e9   : > { %5766 = vpow2.f32 %v5414_v8  ;;  %4083 = vrot.lane.b32.xlu0 %v8028_v31, %s6080_s20 }
 0x3ea   : > { %5768 = vtanh.f32 %v3461_v36 }
 0x3eb   : > { %v5761_v43 = vpop.eup %5760 }
 0x3ec   : > { %v8032_v9 = vpop.eup %5762  ;;  %v3913_v26 = vadd.f32 1.0, %v5761_v43 }
 0x3ed   : > { %9412 = vst [vmem:[#allocation20_spill] sm:$0xff] %v8032_v9  ;;  %v3787_v55 = vadd.f32 %v8032_v9, %v8014_v22  ;;  %v3213_v11 = vpop.f32.mrb[38].mxu1 }
 0x3ee   : > { %5770 = vrcp.f32 %v3913_v26  ;;  %v3464_v6 = vpop.f32.mrb[36].mxu0  ;;  %v3215_v63 = vpop.f32.mrb[39].mxu1 }
 0x3ef   : > { %v5415_v58 = vmul.f32 -1.442695, %v3787_v55  ;;  %v8038_v59 = vadd.f32 %v3464_v6, %v3208_v3  ;;  %v3466_v8 = vpop.f32.mrb[37].mxu0  ;;  %v3214_v55 = vadd.f32 %v3213_v11, %v7807_v27  ;;  %v3216_v3 = vadd.f32 %v3215_v63, %v7809_v0 }
 0x3f0   : > { %v8040_v46 = vpop.eup %5764  ;;  %v3467_v36 = vadd.f32 %v3466_v8, %v3210_v24 }
 0x3f1   : > { %5772 = vpow2.f32 %v5415_v58  ;;  %4085 = vrot.lane.b32.xlu1 %v8040_v46, %s6080_s20 }
 0x3f2   : > { %5774 = vtanh.f32 %v3467_v36 }
 0x3f3   : > { %v5767_v43 = vpop.eup %5766 }
 0x3f4   : > { %v8044_v13 = vpop.eup %5768  ;;  %v3914_v26 = vadd.f32 1.0, %v5767_v43 }
 0x3f5   : > { %9413 = vst [vmem:[#allocation21_spill] sm:$0xff] %v8044_v13  ;;  %v3788_v20 = vadd.f32 %v8044_v13, %v8026_v44  ;;  %v3219_v58 = vpop.f32.mrb[40].mxu1 }
 0x3f6   : > { %5776 = vrcp.f32 %v3914_v26  ;;  %v3470_v6 = vpop.f32.mrb[38].mxu0  ;;  %v3221_v56 = vpop.f32.mrb[41].mxu1 }
 0x3f7   : > { %v5416_v24 = vmul.f32 -1.442695, %v3788_v20  ;;  %v8050_v8 = vadd.f32 %v3470_v6, %v3214_v55  ;;  %v3472_v9 = vpop.f32.mrb[39].mxu0  ;;  %v3220_v20 = vadd.f32 %v3219_v58, %v7807_v27  ;;  %v3222_v55 = vadd.f32 %v3221_v56, %v7809_v0 }
 0x3f8   : > { %v8052_v15 = vpop.eup %5770  ;;  %v3473_v36 = vadd.f32 %v3472_v9, %v3216_v3 }
 0x3f9   : > { %5778 = vpow2.f32 %v5416_v24  ;;  %4087 = vrot.lane.b32.xlu0 %v8052_v15, %s6080_s20 }
 0x3fa   : > { %5780 = vtanh.f32 %v3473_v36 }
 0x3fb   : > { %v5773_v43 = vpop.eup %5772 }
 0x3fc   : > { %v8056_v11 = vpop.eup %5774  ;;  %v3915_v26 = vadd.f32 1.0, %v5773_v43 }
 0x3fd   : > { %9414 = vst [vmem:[#allocation22_spill] sm:$0xff] %v8056_v11  ;;  %v3789_v63 = vadd.f32 %v8056_v11, %v8038_v59  ;;  %v3225_v24 = vpop.f32.mrb[42].mxu1 }
 0x3fe   : > { %5782 = vrcp.f32 %v3915_v26  ;;  %v3476_v6 = vpop.f32.mrb[40].mxu0  ;;  %v3227_v57 = vpop.f32.mrb[43].mxu1 }
 0x3ff   : > { %v5417_v9 = vmul.f32 -1.442695, %v3789_v63  ;;  %v8062_v3 = vadd.f32 %v3476_v6, %v3220_v20  ;;  %v3478_v13 = vpop.f32.mrb[41].mxu0  ;;  %v3226_v63 = vadd.f32 %v3225_v24, %v7807_v27  ;;  %v3228_v20 = vadd.f32 %v3227_v57, %v7809_v0 }
 0x400   : > { %v8064_v40 = vpop.eup %5776  ;;  %v3479_v36 = vadd.f32 %v3478_v13, %v3222_v55 }
 0x401   : > { %5784 = vpow2.f32 %v5417_v9  ;;  %4089 = vrot.lane.b32.xlu1 %v8064_v40, %s6080_s20 }
 0x402   : > { %5786 = vtanh.f32 %v3479_v36 }
 0x403   : > { %v5779_v43 = vpop.eup %5778 }
 0x404   : > { %v8068_v58 = vpop.eup %5780  ;;  %v3916_v26 = vadd.f32 1.0, %v5779_v43 }
 0x405   : > { %9415 = vst [vmem:[#allocation23_spill] sm:$0xff] %v8068_v58  ;;  %v3790_v56 = vadd.f32 %v8068_v58, %v8050_v8  ;;  %v3231_v9 = vpop.f32.mrb[44].mxu1 }
 0x406   : > { %5788 = vrcp.f32 %v3916_v26  ;;  %v3482_v6 = vpop.f32.mrb[42].mxu0  ;;  %v3233_v17 = vpop.f32.mrb[45].mxu1 }
 0x407   : > { %v5418_v13 = vmul.f32 -1.442695, %v3790_v56  ;;  %v8074_v55 = vadd.f32 %v3482_v6, %v3226_v63  ;;  %v3484_v11 = vpop.f32.mrb[43].mxu0  ;;  %v3232_v56 = vadd.f32 %v3231_v9, %v7807_v27  ;;  %v3234_v63 = vadd.f32 %v3233_v17, %v7809_v0 }
 0x408   : > { %v8076_v18 = vpop.eup %5782  ;;  %v3485_v36 = vadd.f32 %v3484_v11, %v3228_v20 }
 0x409   : > { %5790 = vpow2.f32 %v5418_v13  ;;  %4091 = vrot.lane.b32.xlu0 %v8076_v18, %s6080_s20 }
 0x40a   : > { %5792 = vtanh.f32 %v3485_v36 }
 0x40b   : > { %v5785_v43 = vpop.eup %5784 }
 0x40c   : > { %v8080_v24 = vpop.eup %5786  ;;  %v3917_v26 = vadd.f32 1.0, %v5785_v43 }
 0x40d   : > { %9416 = vst [vmem:[#allocation24_spill] sm:$0xff] %v8080_v24  ;;  %v3791_v57 = vadd.f32 %v8080_v24, %v8062_v3  ;;  %v3237_v13 = vpop.f32.mrb[46].mxu1 }
 0x40e   : > { %5794 = vrcp.f32 %v3917_v26  ;;  %v3488_v6 = vpop.f32.mrb[44].mxu0  ;;  %v3239_v45 = vpop.f32.mrb[47].mxu1 }
 0x40f   : > { %v5419_v11 = vmul.f32 -1.442695, %v3791_v57  ;;  %v8086_v20 = vadd.f32 %v3488_v6, %v3232_v56  ;;  %v3490_v58 = vpop.f32.mrb[45].mxu0  ;;  %v3238_v57 = vadd.f32 %v3237_v13, %v7807_v27  ;;  %v3240_v56 = vadd.f32 %v3239_v45, %v7809_v0 }
 0x410   : > { %v8088_v42 = vpop.eup %5788  ;;  %v3491_v36 = vadd.f32 %v3490_v58, %v3234_v63 }
 0x411   : > { %5796 = vpow2.f32 %v5419_v11  ;;  %4093 = vrot.lane.b32.xlu1 %v8088_v42, %s6080_s20 }
 0x412   : > { %5798 = vtanh.f32 %v3491_v36 }
 0x413   : > { %v5791_v43 = vpop.eup %5790 }
 0x414   : > { %v8092_v9 = vpop.eup %5792  ;;  %v3918_v26 = vadd.f32 1.0, %v5791_v43 }
 0x415   : > { %9417 = vst [vmem:[#allocation25_spill] sm:$0xff] %v8092_v9  ;;  %v3792_v17 = vadd.f32 %v8092_v9, %v8074_v55  ;;  %v3243_v11 = vpop.f32.mrb[48].mxu1 }
 0x416   : > { %5800 = vrcp.f32 %v3918_v26  ;;  %v3494_v6 = vpop.f32.mrb[46].mxu0  ;;  %v3245_v28 = vpop.f32.mrb[49].mxu1 }
 0x417   : > { %v5420_v58 = vmul.f32 -1.442695, %v3792_v17  ;;  %v8098_v63 = vadd.f32 %v3494_v6, %v3238_v57  ;;  %v3496_v24 = vpop.f32.mrb[47].mxu0  ;;  %v3244_v17 = vadd.f32 %v3243_v11, %v7807_v27  ;;  %v3246_v57 = vadd.f32 %v3245_v28, %v7809_v0 }
 0x418   : > { %v8100_v19 = vpop.eup %5794  ;;  %v3497_v36 = vadd.f32 %v3496_v24, %v3240_v56 }
 0x419   : > { %9418 = vst [vmem:[#allocation26_spill] sm:$0xff] %v8098_v63  ;;  %5802 = vpow2.f32 %v5420_v58  ;;  %4095 = vrot.lane.b32.xlu0 %v8100_v19, %s6080_s20 }
 0x41a   : > { %5804 = vtanh.f32 %v3497_v36 }
 0x41b   : > { %v5797_v43 = vpop.eup %5796 }
 0x41c   : > { %v8104_v13 = vpop.eup %5798  ;;  %v3919_v26 = vadd.f32 1.0, %v5797_v43 }
 0x41d   : > { %9419 = vst [vmem:[#allocation27_spill] sm:$0xff] %v8104_v13  ;;  %v3793_v45 = vadd.f32 %v8104_v13, %v8086_v20  ;;  %v3249_v58 = vpop.f32.mrb[50].mxu1 }
 0x41e   : > { %5806 = vrcp.f32 %v3919_v26  ;;  %v3500_v6 = vpop.f32.mrb[48].mxu0  ;;  %v3251_v47 = vpop.f32.mrb[51].mxu1 }
 0x41f   : > { %v5421_v24 = vmul.f32 -1.442695, %v3793_v45  ;;  %v8110_v56 = vadd.f32 %v3500_v6, %v3244_v17  ;;  %v3502_v9 = vpop.f32.mrb[49].mxu0  ;;  %v3250_v45 = vadd.f32 %v3249_v58, %v7807_v27  ;;  %v3252_v17 = vadd.f32 %v3251_v47, %v7809_v0 }
 0x420   : > { %v8112_v50 = vpop.eup %5800  ;;  %v3503_v36 = vadd.f32 %v3502_v9, %v3246_v57 }
 0x421   : > { %9420 = vst [vmem:[#allocation28_spill] sm:$0xff] %v8110_v56  ;;  %5808 = vpow2.f32 %v5421_v24  ;;  %4097 = vrot.lane.b32.xlu1 %v8112_v50, %s6080_s20 }
 0x422   : > { %5810 = vtanh.f32 %v3503_v36 }
 0x423   : > { %v5803_v43 = vpop.eup %5802 }
 0x424   : > { %v8116_v11 = vpop.eup %5804  ;;  %v3920_v26 = vadd.f32 1.0, %v5803_v43 }
 0x425   : > { %9421 = vst [vmem:[#allocation29_spill] sm:$0xff] %v8116_v11  ;;  %v3794_v28 = vadd.f32 %v8116_v11, %v8098_v63  ;;  %v3255_v24 = vpop.f32.mrb[52].mxu1 }
 0x426   : > { %5812 = vrcp.f32 %v3920_v26  ;;  %v3506_v6 = vpop.f32.mrb[50].mxu0  ;;  %v3257_v29 = vpop.f32.mrb[53].mxu1 }
 0x427   : > { %v5422_v9 = vmul.f32 -1.442695, %v3794_v28  ;;  %v8122_v57 = vadd.f32 %v3506_v6, %v3250_v45  ;;  %v3508_v13 = vpop.f32.mrb[51].mxu0  ;;  %v3256_v28 = vadd.f32 %v3255_v24, %v7807_v27  ;;  %v3258_v45 = vadd.f32 %v3257_v29, %v7809_v0 }
 0x428   : > { %v8124_v34 = vpop.eup %5806  ;;  %v3509_v36 = vadd.f32 %v3508_v13, %v3252_v17 }
 0x429   : > { %9422 = vst [vmem:[#allocation30_spill] sm:$0xff] %v8122_v57  ;;  %5814 = vpow2.f32 %v5422_v9  ;;  %4099 = vrot.lane.b32.xlu0 %v8124_v34, %s6080_s20 }
 0x42a   : > { %5816 = vtanh.f32 %v3509_v36 }
 0x42b   : > { %v5809_v43 = vpop.eup %5808 }
 0x42c   : > { %v8128_v58 = vpop.eup %5810  ;;  %v3921_v26 = vadd.f32 1.0, %v5809_v43 }
 0x42d   : > { %9423 = vst [vmem:[#allocation31_spill] sm:$0xff] %v8128_v58  ;;  %v3795_v47 = vadd.f32 %v8128_v58, %v8110_v56  ;;  %v3261_v9 = vpop.f32.mrb[54].mxu1 }
 0x42e   : > { %5818 = vrcp.f32 %v3921_v26  ;;  %v3512_v6 = vpop.f32.mrb[52].mxu0  ;;  %v3263_v23 = vpop.f32.mrb[55].mxu1 }
 0x42f   : > { %v5423_v13 = vmul.f32 -1.442695, %v3795_v47  ;;  %v8134_v17 = vadd.f32 %v3512_v6, %v3256_v28  ;;  %v3514_v11 = vpop.f32.mrb[53].mxu0  ;;  %v3262_v47 = vadd.f32 %v3261_v9, %v7807_v27  ;;  %v3264_v6 = vadd.f32 %v3263_v23, %v7809_v0 }
 0x430   : > { %v8136_v63 = vpop.eup %5812  ;;  %v3515_v36 = vadd.f32 %v3514_v11, %v3258_v45 }
 0x431   : > { %9424 = vst [vmem:[#allocation32_spill] sm:$0xff] %v8134_v17  ;;  %9425 = vst [vmem:[#allocation33_spill] sm:$0xff] %v8136_v63  ;;  %5820 = vpow2.f32 %v5423_v13  ;;  %4101 = vrot.lane.b32.xlu1 %v8136_v63, %s6080_s20 }
 0x432   : > { %5822 = vtanh.f32 %v3515_v36 }
 0x433   : > { %v5815_v43 = vpop.eup %5814 }
 0x434   : > { %v8140_v24 = vpop.eup %5816  ;;  %v3922_v26 = vadd.f32 1.0, %v5815_v43 }
 0x435   : > { %9426 = vst [vmem:[#allocation34_spill] sm:$0xff] %v8140_v24  ;;  %v3796_v29 = vadd.f32 %v8140_v24, %v8122_v57  ;;  %v3267_v45 = vpop.f32.mrb[56].mxu1 }
 0x436   : > { %5824 = vrcp.f32 %v3922_v26  ;;  %v3518_v11 = vpop.f32.mrb[54].mxu0  ;;  %v3269_v56 = vpop.f32.mrb[57].mxu1 }
 0x437   : > { %v5424_v28 = vmul.f32 -1.442695, %v3796_v29  ;;  %v8148_v58 = vadd.f32 %v3518_v11, %v3262_v47  ;;  %v3520_v36 = vpop.f32.mrb[55].mxu0  ;;  %v3268_v29 = vadd.f32 %v3267_v45, %v7807_v27  ;;  %v3270_v11 = vadd.f32 %v3269_v56, %v7809_v0 }
 0x438   : > { %v8146_v13 = vpop.eup %5818  ;;  %v3521_v63 = vadd.f32 %v3520_v36, %v3264_v6 }
 0x439   : > { %9427 = vst [vmem:[#allocation35_spill] sm:$0xff] %v8146_v13  ;;  %9428 = vst [vmem:[#allocation36_spill] sm:$0xff] %v8148_v58  ;;  %5826 = vpow2.f32 %v5424_v28  ;;  %4103 = vrot.lane.b32.xlu0 %v8146_v13, %s6080_s20 }
 0x43a   : > { %5828 = vtanh.f32 %v3521_v63 }
 0x43b   : > { %v5821_v43 = vpop.eup %5820 }
 0x43c   : > { %v8152_v26 = vpop.eup %5822  ;;  %v3923_v9 = vadd.f32 1.0, %v5821_v43 }
 0x43d   : > { %9429 = vst [vmem:[#allocation37_spill] sm:$0xff] %v8152_v26  ;;  %v3797_v23 = vadd.f32 %v8152_v26, %v8134_v17  ;;  %v3273_v28 = vpop.f32.mrb[58].mxu1 }
 0x43e   : > { %5830 = vrcp.f32 %v3923_v9  ;;  %v3524_v24 = vpop.f32.mrb[56].mxu0  ;;  %v3275_v63 = vpop.f32.mrb[59].mxu1  ;;  %v3274_v56 = vadd.f32 %v3273_v28, %v7807_v27 }
 0x43f   : > { %v5425_v47 = vmul.f32 -1.442695, %v3797_v23  ;;  %v8160_v36 = vadd.f32 %v3524_v24, %v3268_v29  ;;  %v3526_v57 = vpop.f32.mrb[57].mxu0  ;;  %v3276_v24 = vadd.f32 %v3275_v63, %v7809_v0 }
 0x440   : > { %v8158_v6 = vpop.eup %5824  ;;  %v3527_v13 = vadd.f32 %v3526_v57, %v3270_v11 }
 0x441   : > { %9430 = vst [vmem:[#allocation38_spill] sm:$0xff] %v8158_v6  ;;  %9431 = vst [vmem:[#allocation39_spill] sm:$0xff] %v8160_v36  ;;  %5832 = vpow2.f32 %v5425_v47  ;;  %4105 = vrot.lane.b32.xlu1 %v8158_v6, %s6080_s20 }
 0x442   : > { %5834 = vtanh.f32 %v3527_v13 }
 0x443   : > { %v5827_v43 = vpop.eup %5826 }
 0x444   : > { %v3924_v9 = vadd.f32 1.0, %v5827_v43  ;;  %v8164_v45 = vpop.eup %5828  ;;  %v3530_v29 = vpop.f32.mrb[58].mxu0 }
 0x445   : > { %9432 = vst [vmem:[#allocation40_spill] sm:$0xff] %v8164_v45  ;;  %v3798_v23 = vadd.f32 %v8164_v45, %v8148_v58  ;;  %v8170_v26 = vadd.f32 %v3530_v29, %v3274_v56  ;;  %v3532_v57 = vpop.f32.mrb[59].mxu0 }
 0x446   : > { %5836 = vrcp.f32 %v3924_v9  ;;  %v3533_v17 = vadd.f32 %v3532_v57, %v3276_v24 }
 0x447   : > { %9433 = vst [vmem:[#allocation41_spill] sm:$0xff] %v8170_v26  ;;  %v5426_v11 = vmul.f32 -1.442695, %v3798_v23 }
 0x448   : > { %v8172_v47 = vpop.eup %5830 }
 0x449   : > { %9434 = vst [vmem:[#allocation42_spill] sm:$0xff] %v8172_v47  ;;  %4107 = vrot.lane.b32.xlu0 %v8172_v47, %s6080_s20  ;;  %5838 = vpow2.f32 %v5426_v11 }
 0x44a   : > { %5840 = vtanh.f32 %v3533_v17  ;;  %v3279_v43 = vpop.f32.mrb[60].mxu1 }
 0x44b   : > { %v5833_v13 = vpop.eup %5832  ;;  %v3281_v45 = vpop.f32.mrb[61].mxu1  ;;  %v3280_v23 = vadd.f32 %v3279_v43, %v7807_v27 }
 0x44c   : > { %v3925_v28 = vadd.f32 1.0, %v5833_v13  ;;  %v8176_v9 = vpop.eup %5834  ;;  %v3282_v24 = vadd.f32 %v3281_v45, %v7809_v0 }
 0x44d   : > { %9435 = vst [vmem:[#allocation43_spill] sm:$0xff] %v8176_v9  ;;  %v3799_v63 = vadd.f32 %v8176_v9, %v8160_v36 }
 0x44e   : > { %5842 = vrcp.f32 %v3925_v28 }
 0x44f   : > { %v5427_v29 = vmul.f32 -1.442695, %v3799_v63 }
 0x450   : > { %v8180_v56 = vpop.eup %5836 }
 0x451   : > { %9436 = vst [vmem:[#allocation44_spill] sm:$0xff] %v8180_v56  ;;  %4109 = vrot.lane.b32.xlu1 %v8180_v56, %s6080_s20  ;;  %5844 = vpow2.f32 %v5427_v29  ;;  %v3285_v57 = vpop.f32.mrb[62].mxu1 }
 0x452   : > { %v3536_v17 = vpop.f32.mrb[60].mxu0  ;;  %v3287_v9 = vpop.f32.mrb[63].mxu1  ;;  %v3286_v29 = vadd.f32 %v3285_v57, %v7807_v27 }
 0x453   : > { %v5839_v11 = vpop.eup %5838  ;;  %v8186_v13 = vadd.f32 %v3536_v17, %v3280_v23  ;;  %v3538_v28 = vpop.f32.mrb[61].mxu0  ;;  %v3288_v45 = vadd.f32 %v3287_v9, %v7809_v0 }
 0x454   : > { %v3926_v58 = vadd.f32 1.0, %v5839_v11  ;;  %v3539_v47 = vadd.f32 %v3538_v28, %v3282_v24  ;;  %v8188_v36 = vpop.eup %5840 }
 0x455   : > { %9437 = vst [vmem:[#allocation45_spill] sm:$0xff] %v8186_v13  ;;  %9438 = vst [vmem:[#allocation46_spill] sm:$0xff] %v8188_v36  ;;  %v3800_v63 = vadd.f32 %v8188_v36, %v8170_v26 }
 0x456   : > { %5846 = vrcp.f32 %v3926_v58  ;;  %v3542_v56 = vpop.f32.mrb[62].mxu0 }
 0x457   : > { %v5428_v6 = vmul.f32 -1.442695, %v3800_v63  ;;  %v8196_v23 = vadd.f32 %v3542_v56, %v3286_v29  ;;  %v3544_v17 = vpop.f32.mrb[63].mxu0  ;;  %5848 = vtanh.f32 %v3539_v47 }
 0x458   : > { %v8193_v43 = vpop.eup %5842  ;;  %v3545_v24 = vadd.f32 %v3544_v17, %v3288_v45 }
 0x459   : > { %9439 = vst [vmem:[#allocation47_spill] sm:$0xff] %v8196_v23  ;;  %4111 = vrot.lane.b32.xlu0 %v8193_v43, %s6080_s20  ;;  %5850 = vpow2.f32 %v5428_v6 }
 0x45a   : > { %5852 = vtanh.f32 %v3545_v24 }
 0x45b   : > { %v5845_v58 = vpop.eup %5844 }
 0x45c   : > { %v3927_v11 = vadd.f32 1.0, %v5845_v58 }
 0x45e   : > { %5854 = vrcp.f32 %v3927_v11 }
 0x460   : > { %v8200_v27 = vpop.eup %5846 }
 0x461   : > { %4113 = vrot.lane.b32.xlu1 %v8200_v27, %s6080_s20  ;;  %v8204_v0 = vpop.eup %5848 }
 0x462   : > { %9440 = vst [vmem:[#allocation48_spill] sm:$0xff] %v8204_v0  ;;  %v3801_v56 = vadd.f32 %v8204_v0, %v8186_v13 }
 0x463   : > { %v5851_v9 = vpop.eup %5850 }
 0x464   : > { %v8208_v57 = vpop.eup %5852  ;;  %v3928_v47 = vadd.f32 1.0, %v5851_v9  ;;  %v5429_v28 = vmul.f32 -1.442695, %v3801_v56 }
 0x465   : > { %9441 = vst [vmem:[#allocation49_spill] sm:$0xff] %v8208_v57  ;;  %v3802_v6 = vadd.f32 %v8208_v57, %v8196_v23  ;;  %v8290_v57 = vpop.permute.xlu1 %4061  ;;  %v4026_v23 = vld [vmem:[%s8224_s23 + $0xf8] sm:$0xff] }
 0x466   : > { %5856 = vrcp.f32 %v3928_v47  ;;  %v3995_v47 = vld [vmem:[%s8224_s23] sm:$0xff] }
 0x467   : > { %5858 = vpow2.f32 %v5429_v28  ;;  %v5430_v29 = vmul.f32 -1.442695, %v3802_v6  ;;  %v3996_v28 = vld [vmem:[%s8224_s23 + $0x8] sm:$0xff]  ;;  %v3997_v6 = vld [vmem:[%s8224_s23 + $0x10] sm:$0xff] }
 0x468   : > { %v8212_v63 = vpop.eup %5854 }
 0x469   : > { %4115 = vrot.lane.b32.xlu0 %v8212_v63, %s6080_s20  ;;  %5860 = vpow2.f32 %v5430_v29  ;;  %v3998_v29 = vld [vmem:[%s8224_s23 + $0x18] sm:$0xff]  ;;  %v8298_v0 = vpop.permute.xlu1 %4065 }
 0x46d   : > { %v8307_v13 = vpop.permute.xlu1 %4069 }
 0x470   : > { %v8216_v45 = vpop.eup %5856 }
 0x471   : > { %v5859_v17 = vpop.eup %5858  ;;  %4117 = vrot.lane.b32.xlu1 %v8216_v45, %s6080_s20 }
 0x472   : > { %v3929_v24 = vadd.f32 1.0, %v5859_v17  ;;  %v3999_v17 = vld [vmem:[%s8224_s23 + $0x20] sm:$0xff] }
 0x473   : > { %v5861_v58 = vpop.eup %5860 }
 0x474   : > { %5862 = vrcp.f32 %v3929_v24  ;;  %v3930_v11 = vadd.f32 1.0, %v5861_v58  ;;  %v4000_v24 = vld [vmem:[%s8224_s23 + $0x28] sm:$0xff]  ;;  %v4001_v58 = vld [vmem:[%s8224_s23 + $0x30] sm:$0xff] }
 0x476   : > { %5864 = vrcp.f32 %v3930_v11  ;;  %v4002_v11 = vld [vmem:[%s8224_s23 + $0x38] sm:$0xff] }
 0x47e   : > { %v8226_v9 = vpop.eup %5862 }
 0x47f   : > { %4119 = vrot.lane.b32.xlu0 %v8226_v9, %s6080_s20 }
 0x480   : > { %v8230_v56 = vpop.eup %5864 }
 0x481   : > { %9442 = vst [vmem:[#allocation50_spill] sm:$0xff] %v8230_v56  ;;  %4121 = vrot.lane.b32.xlu1 %v8230_v56, %s6080_s20  ;;  %v8316_v56 = vpop.permute.xlu1 %4073 }
 0x483   : > { %4251 = vrot.lane.b32.xlu0 %v3995_v47, %s6080_s20  ;;  %v4003_v47 = vld [vmem:[%s8224_s23 + $0x40] sm:$0xff] }
 0x485   : > { %4253 = vrot.lane.b32.xlu1 %v3996_v28, %s6080_s20  ;;  %v4004_v28 = vld [vmem:[%s8224_s23 + $0x48] sm:$0xff] }
 0x487   : > { %4255 = vrot.lane.b32.xlu0 %v3997_v6, %s6080_s20  ;;  %v4005_v6 = vld [vmem:[%s8224_s23 + $0x50] sm:$0xff] }
 0x489   : > { %4257 = vrot.lane.b32.xlu1 %v3998_v29, %s6080_s20  ;;  %v4006_v29 = vld [vmem:[%s8224_s23 + $0x58] sm:$0xff] }
 0x48b   : > { %4259 = vrot.lane.b32.xlu0 %v3999_v17, %s6080_s20  ;;  %v4007_v17 = vld [vmem:[%s8224_s23 + $0x60] sm:$0xff] }
 0x48d   : > { %4261 = vrot.lane.b32.xlu1 %v4000_v24, %s6080_s20  ;;  %v4008_v24 = vld [vmem:[%s8224_s23 + $0x68] sm:$0xff] }
 0x48f   : > { %4263 = vrot.lane.b32.xlu0 %v4001_v58, %s6080_s20  ;;  %v4009_v58 = vld [vmem:[%s8224_s23 + $0x70] sm:$0xff] }
 0x491   : > { %4265 = vrot.lane.b32.xlu1 %v4002_v11, %s6080_s20  ;;  %v4010_v11 = vld [vmem:[%s8224_s23 + $0x78] sm:$0xff] }
 0x493   : > { %4267 = vrot.lane.b32.xlu0 %v4003_v47, %s6080_s20  ;;  %v4011_v47 = vld [vmem:[%s8224_s23 + $0x80] sm:$0xff] }
 0x495   : > { %4269 = vrot.lane.b32.xlu1 %v4004_v28, %s6080_s20  ;;  %v4012_v28 = vld [vmem:[%s8224_s23 + $0x88] sm:$0xff] }
 0x497   : > { %4271 = vrot.lane.b32.xlu0 %v4005_v6, %s6080_s20  ;;  %v4013_v6 = vld [vmem:[%s8224_s23 + $0x90] sm:$0xff] }
 0x499   : > { %4273 = vrot.lane.b32.xlu1 %v4006_v29, %s6080_s20  ;;  %v4014_v29 = vld [vmem:[%s8224_s23 + $0x98] sm:$0xff] }
 0x49b   : > { %4275 = vrot.lane.b32.xlu0 %v4007_v17, %s6080_s20  ;;  %v4015_v17 = vld [vmem:[%s8224_s23 + $0xa0] sm:$0xff] }
 0x49d   : > { %4277 = vrot.lane.b32.xlu1 %v4008_v24, %s6080_s20  ;;  %v4016_v24 = vld [vmem:[%s8224_s23 + $0xa8] sm:$0xff] }
 0x49f   : > { %4279 = vrot.lane.b32.xlu0 %v4009_v58, %s6080_s20  ;;  %v4017_v58 = vld [vmem:[%s8224_s23 + $0xb0] sm:$0xff] }
 0x4a1   : > { %4281 = vrot.lane.b32.xlu1 %v4010_v11, %s6080_s20  ;;  %v4018_v11 = vld [vmem:[%s8224_s23 + $0xb8] sm:$0xff] }
 0x4a3   : > { %4283 = vrot.lane.b32.xlu0 %v4011_v47, %s6080_s20  ;;  %v4019_v47 = vld [vmem:[%s8224_s23 + $0xc0] sm:$0xff] }
 0x4a5   : > { %4285 = vrot.lane.b32.xlu1 %v4012_v28, %s6080_s20  ;;  %v4020_v28 = vld [vmem:[%s8224_s23 + $0xc8] sm:$0xff] }
 0x4a7   : > { %4287 = vrot.lane.b32.xlu0 %v4013_v6, %s6080_s20  ;;  %v4021_v6 = vld [vmem:[%s8224_s23 + $0xd0] sm:$0xff] }
 0x4a9   : > { %4289 = vrot.lane.b32.xlu1 %v4014_v29, %s6080_s20  ;;  %v8286_v29 = vpop.permute.xlu0 %4059 }
 0x4ab   : > { %4291 = vrot.lane.b32.xlu0 %v4015_v17, %s6080_s20  ;;  %v4022_v17 = vld [vmem:[%s8224_s23 + $0xd8] sm:$0xff] }
 0x4ad   : > { %4293 = vrot.lane.b32.xlu1 %v4016_v24, %s6080_s20  ;;  %v4023_v24 = vld [vmem:[%s8224_s23 + $0xe0] sm:$0xff] }
 0x4af   : > { %4295 = vrot.lane.b32.xlu0 %v4017_v58, %s6080_s20  ;;  %v8294_v58 = vpop.permute.xlu0 %4063 }
 0x4b1   : > { %4297 = vrot.lane.b32.xlu1 %v4018_v11, %s6080_s20  ;;  %v4024_v11 = vld [vmem:[%s8224_s23 + $0xe8] sm:$0xff] }
 0x4b3   : > { %4299 = vrot.lane.b32.xlu0 %v4019_v47, %s6080_s20  ;;  %v4025_v47 = vld [vmem:[%s8224_s23 + $0xf0] sm:$0xff]  ;;  %v8302_v36 = vpop.permute.xlu0 %4067 }
 0x4b5   : > { %4301 = vrot.lane.b32.xlu1 %v4020_v28, %s6080_s20  ;;  %v5367_v28 = vmul.f32 -1.442695, %v7819_v5 }
 0x4b7   : > { %4303 = vrot.lane.b32.xlu0 %v4021_v6, %s6080_s20  ;;  %v5368_v6 = vmul.f32 -1.442695, %v7830_v14  ;;  %v8312_v26 = vpop.permute.xlu0 %4071  ;;  %5866 = vpow2.f32 %v5367_v28  ;;  %v5371_v14 = vmul.f32 -1.442695, %v7871_v38  ;;  %v5373_v28 = vmul.f32 -1.442695, %v7894_v60 }
 0x4b8   : > { %v5375_v60 = vmul.f32 -1.442695, %v7918_v39 }
 0x4b9   : > { %4305 = vrot.lane.b32.xlu1 %v4022_v17, %s6080_s20  ;;  %v5369_v17 = vmul.f32 -1.442695, %v7844_v54  ;;  %5868 = vpow2.f32 %v5368_v6  ;;  %v8325_v54 = vpop.permute.xlu1 %4077 }
 0x4bb   : > { %4307 = vrot.lane.b32.xlu0 %v4023_v24, %s6080_s20  ;;  %v5370_v24 = vmul.f32 -1.442695, %v7860_v61  ;;  %5870 = vpow2.f32 %v5369_v17  ;;  %v8320_v5 = vpop.permute.xlu0 %4075  ;;  %v5372_v61 = vmul.f32 -1.442695, %v7882_v25 }
 0x4bd   : > { %4309 = vrot.lane.b32.xlu1 %v4024_v11, %s6080_s20  ;;  %5872 = vpow2.f32 %v5370_v24 }
 0x4be   : > { %5874 = vpow2.f32 %v5371_v14 }
 0x4bf   : > { %4311 = vrot.lane.b32.xlu0 %v4025_v47, %s6080_s20  ;;  %5876 = vpow2.f32 %v5372_v61 }
 0x4c1   : > { %4313 = vrot.lane.b32.xlu1 %v4026_v23, %s6080_s20  ;;  %v8330_v23 = vpop.permute.xlu0 %4079 }
 0x4c3   : > { %4507 = vrot.lane.b32.xlu0 %v7884_v30, %s6081_s25  ;;  %v8334_v30 = vpop.permute.xlu1 %4081 }
 0x4c5   : > { %4509 = vrot.lane.b32.xlu1 %v7896_v48, %s6081_s25  ;;  %v5867_v48 = vpop.eup %5866  ;;  %v8338_v38 = vpop.permute.xlu0 %4083 }
 0x4c6   : > { %v3643_v11 = vadd.f32 1.0, %v5867_v48  ;;  %v5376_v48 = vmul.f32 -1.442695, %v7930_v49  ;;  %v5378_v49 = vmul.f32 -1.442695, %v7954_v12 }
 0x4c7   : > { %4511 = vrot.lane.b32.xlu0 %v7908_v16, %s6081_s25  ;;  %v5869_v16 = vpop.eup %5868  ;;  %v8342_v47 = vpop.permute.xlu1 %4085 }
 0x4c8   : > { %v5871_v25 = vpop.eup %5870  ;;  %v3644_v6 = vadd.f32 1.0, %v5869_v16  ;;  %5878 = vrcp.f32 %v3643_v11 }
 0x4c9   : > { %4513 = vrot.lane.b32.xlu1 %v7920_v7, %s6081_s25  ;;  %v5873_v7 = vpop.eup %5872  ;;  %v3645_v17 = vadd.f32 1.0, %v5871_v25  ;;  %5880 = vpow2.f32 %v5373_v28 }
 0x4ca   : > { %v5875_v14 = vpop.eup %5874  ;;  %5882 = vrcp.f32 %v3644_v6  ;;  %v5384_v6 = vmul.f32 -1.442695, %v8026_v44 }
 0x4cb   : > { %4515 = vrot.lane.b32.xlu0 %v7932_v51, %s6081_s25  ;;  %v8347_v51 = vpop.permute.xlu0 %4087  ;;  %v8351_v24 = vpop.permute.xlu1 %4089  ;;  %5884 = vrcp.f32 %v3645_v17  ;;  %v3647_v16 = vadd.f32 1.0, %v5875_v14 }
 0x4cd   : > { %4517 = vrot.lane.b32.xlu1 %v7944_v35, %s6081_s25  ;;  %v3646_v35 = vadd.f32 1.0, %v5873_v7  ;;  %v5381_v7 = vmul.f32 -1.442695, %v7990_v1 }
 0x4cf   : > { %4519 = vrot.lane.b32.xlu0 %v7956_v2, %s6081_s25  ;;  %v5374_v2 = vmul.f32 -1.442695, %v7906_v37  ;;  %v8357_v61 = vpop.permute.xlu0 %4091  ;;  %5886 = vrcp.f32 %v3646_v35  ;;  %v8362_v25 = vpop.permute.xlu1 %4093  ;;  %v5377_v37 = vmul.f32 -1.442695, %v7942_v62  ;;  %v5380_v62 = vmul.f32 -1.442695, %v7978_v33 }
 0x4d0   : > { %v5385_v35 = vmul.f32 -1.442695, %v8038_v59 }
 0x4d1   : > { %4521 = vrot.lane.b32.xlu1 %v7968_v4, %s6081_s25  ;;  %v5877_v4 = vpop.eup %5876  ;;  %5888 = vpow2.f32 %v5374_v2 }
 0x4d2   : > { %v3648_v39 = vadd.f32 1.0, %v5877_v4  ;;  %5890 = vpow2.f32 %v5375_v60  ;;  %v5387_v60 = vmul.f32 -1.442695, %v8062_v3 }
 0x4d3   : > { %4523 = vrot.lane.b32.xlu0 %v7980_v52, %s6081_s25  ;;  %v8367_v52 = vpop.permute.xlu0 %4095  ;;  %5892 = vpow2.f32 %v5376_v48  ;;  %v8373_v11 = vpop.permute.xlu1 %4097 }
 0x4d4   : > { %5894 = vrcp.f32 %v3647_v16 }
 0x4d5   : > { %4525 = vrot.lane.b32.xlu1 %v7992_v53, %s6081_s25  ;;  %v5379_v53 = vmul.f32 -1.442695, %v7966_v21  ;;  %5896 = vpow2.f32 %v5377_v37  ;;  %v5382_v21 = vmul.f32 -1.442695, %v8002_v32 }
 0x4d6   : > { %5898 = vrcp.f32 %v3648_v39  ;;  %v5388_v39 = vmul.f32 -1.442695, %v8074_v55 }
 0x4d7   : > { %4527 = vrot.lane.b32.xlu0 %v8004_v41, %s6081_s25  ;;  %v8378_v41 = vpop.eup %5878  ;;  %5900 = vpow2.f32 %v5378_v49  ;;  %v8389_v33 = vpop.permute.xlu1 %4101 }
 0x4d8   : > { %v5881_v12 = vpop.eup %5880  ;;  %5902 = vpow2.f32 %v5379_v53 }
 0x4d9   : > { %4529 = vrot.lane.b32.xlu1 %v8016_v10, %s6081_s25  ;;  %v8381_v10 = vpop.permute.xlu0 %4099  ;;  %v8386_v28 = vpop.eup %5882  ;;  %5904 = vpow2.f32 %v5380_v62  ;;  %v3649_v17 = vadd.f32 1.0, %v5881_v12 }
 0x4da   : > { %v8393_v1 = vpop.eup %5884  ;;  %5906 = vpow2.f32 %v5381_v7  ;;  %v5389_v7 = vmul.f32 -1.442695, %v8086_v20 }
 0x4db   : > { %4531 = vrot.lane.b32.xlu0 %v8028_v31, %s6081_s25  ;;  %v5383_v31 = vmul.f32 -1.442695, %v8014_v22  ;;  %9443 = vst [vmem:[#allocation51_spill] sm:$0xff] %v8393_v1  ;;  %5908 = vpow2.f32 %v5382_v21  ;;  %v8404_v2 = vpop.permute.xlu1 %4105 }
 0x4dd   : > { %4533 = vrot.lane.b32.xlu1 %v8040_v46, %s6081_s25  ;;  %v8396_v46 = vpop.eup %5886  ;;  %v8398_v32 = vpop.permute.xlu0 %4103  ;;  %5910 = vpow2.f32 %v5383_v31 }
 0x4de   : > { %v5889_v22 = vpop.eup %5888  ;;  %5912 = vpow2.f32 %v5384_v6 }
 0x4df   : > { %4535 = vrot.lane.b32.xlu0 %v8052_v15, %s6081_s25  ;;  %v5891_v14 = vpop.eup %5890  ;;  %v5386_v15 = vmul.f32 -1.442695, %v8050_v8  ;;  %5914 = vrcp.f32 %v3649_v17 }
 0x4e0   : > { %v5893_v44 = vpop.eup %5892  ;;  %v3651_v8 = vadd.f32 1.0, %v5891_v14  ;;  %5916 = vpow2.f32 %v5385_v35 }
 0x4e1   : > { %4537 = vrot.lane.b32.xlu1 %v8064_v40, %s6081_s25  ;;  %v8409_v4 = vpop.eup %5894  ;;  %v3650_v40 = vadd.f32 1.0, %v5889_v22  ;;  %v8411_v48 = vpop.permute.xlu0 %4107  ;;  %v3652_v37 = vadd.f32 1.0, %v5893_v44  ;;  %5918 = vpow2.f32 %v5386_v15 }
 0x4e2   : > { %v5897_v59 = vpop.eup %5896  ;;  %5920 = vpow2.f32 %v5387_v60 }
 0x4e3   : > { %4539 = vrot.lane.b32.xlu0 %v8076_v18, %s6081_s25  ;;  %v8415_v16 = vpop.eup %5898  ;;  %v8417_v18 = vpop.permute.xlu1 %4109  ;;  %5922 = vrcp.f32 %v3650_v40  ;;  %v3653_v53 = vadd.f32 1.0, %v5897_v59  ;;  %v4155_v59 = vmul.f32 %v8378_v41, %v8286_v29 }
 0x4e4   : > { %v5901_v3 = vpop.eup %5900  ;;  %5924 = vrcp.f32 %v3651_v8 }
 0x4e5   : > { %4541 = vrot.lane.b32.xlu1 %v8088_v42, %s6081_s25  ;;  %v5903_v49 = vpop.eup %5902  ;;  %v8422_v42 = vpop.permute.xlu0 %4111  ;;  %5926 = vrcp.f32 %v3652_v37  ;;  %v3654_v21 = vadd.f32 1.0, %v5901_v3 }
 0x4e6   : > { %v5905_v62 = vpop.eup %5904  ;;  %v3655_v31 = vadd.f32 1.0, %v5903_v49  ;;  %5928 = vpow2.f32 %v5388_v39  ;;  %v9446_v39 = vld [vmem:[#allocation38_spill] sm:$0xff] }
 0x4e7   : > { %4543 = vrot.lane.b32.xlu0 %v8100_v19, %s6081_s25  ;;  %v5907_v12 = vpop.eup %5906  ;;  %v8427_v19 = vpop.permute.xlu1 %4113  ;;  %5930 = vrcp.f32 %v3653_v53  ;;  %v3656_v17 = vadd.f32 1.0, %v5905_v62  ;;  %v4156_v53 = vmul.f32 %v8386_v28, %v8290_v57 }
 0x4e8   : > { %v5909_v55 = vpop.eup %5908  ;;  %v3657_v35 = vadd.f32 1.0, %v5907_v12  ;;  %5932 = vpow2.f32 %v5389_v7  ;;  %v9447_v12 = vld [vmem:[#allocation42_spill] sm:$0xff] }
 0x4e9   : > { %4545 = vrot.lane.b32.xlu1 %v8112_v50, %s6081_s25  ;;  %v5911_v6 = vpop.eup %5910  ;;  %v8431_v22 = vpop.permute.xlu0 %4115  ;;  %v9444_v50 = vld [vmem:[#allocation33_spill] sm:$0xff]  ;;  %5934 = vrcp.f32 %v3654_v21  ;;  %v3658_v15 = vadd.f32 1.0, %v5909_v55 }
 0x4ea   : > { %v5913_v20 = vpop.eup %5912  ;;  %5936 = vrcp.f32 %v3655_v31  ;;  %v3659_v40 = vadd.f32 1.0, %v5911_v6  ;;  %v4187_v31 = vsub.f32 1.0, %v4155_v59  ;;  %v4157_v6 = vmul.f32 %v8393_v1, %v8294_v58  ;;  %v9453_v58 = vld [vmem:[#allocation5_spill] sm:$0xff] }
 0x4eb   : > { %4547 = vrot.lane.b32.xlu0 %v8124_v34, %s6081_s25  ;;  %v8435_v14 = vpop.eup %5914  ;;  %v8437_v44 = vpop.permute.xlu1 %4117  ;;  %v9445_v34 = vld [vmem:[#allocation35_spill] sm:$0xff]  ;;  %5938 = vrcp.f32 %v3656_v17  ;;  %v3660_v37 = vadd.f32 1.0, %v5913_v20  ;;  %v9451_v20 = vld [vmem:[#allocation44_spill] sm:$0xff]  ;;  %v4159_v1 = vmul.f32 %v8409_v4, %v8302_v36  ;;  %v4160_v36 = vmul.f32 %v8415_v16, %v8307_v13 }
 0x4ec   : > { %v5917_v60 = vpop.eup %5916  ;;  %5940 = vrcp.f32 %v3657_v35 }
 0x4ed   : > { %4549 = vrot.lane.b32.xlu1 %v9444_v50, %s6081_s25  ;;  %v5919_v8 = vpop.eup %5918  ;;  %5942 = vrcp.f32 %v3658_v15  ;;  %v3661_v7 = vadd.f32 1.0, %v5917_v60  ;;  %v9452_v15 = vld [vmem:[#allocation4_spill] sm:$0xff]  ;;  %v4188_v60 = vsub.f32 1.0, %v4156_v53 }
 0x4ee   : > { %v5921_v49 = vpop.eup %5920  ;;  %5944 = vrcp.f32 %v3659_v40  ;;  %v3662_v55 = vadd.f32 1.0, %v5919_v8  ;;  %v4158_v40 = vmul.f32 %v8396_v46, %v8298_v0  ;;  %v4189_v0 = vsub.f32 1.0, %v4157_v6 }
 0x4ef   : > { %4551 = vrot.lane.b32.xlu0 %v9445_v34, %s6081_s25  ;;  %v8449_v62 = vpop.eup %5922  ;;  %5946 = vrcp.f32 %v3660_v37  ;;  %v3663_v57 = vadd.f32 1.0, %v5921_v49  ;;  %v4379_v34 = vmul.f32 %v9452_v15, %v4155_v59  ;;  %v4380_v37 = vmul.f32 %v9453_v58, %v4156_v53  ;;  %v9454_v49 = vld [vmem:[#allocation26_spill] sm:$0xff] }
 0x4f0   : > { %v8455_v21 = vpop.eup %5924  ;;  %5948 = vrcp.f32 %v3661_v7  ;;  %v9456_v7 = vld [vmem:[#allocation6_spill] sm:$0xff] }
 0x4f1   : > { %v8443_v3 = vpop.permute.xlu0 %4119  ;;  %4553 = vrot.lane.b32.xlu1 %v9446_v39, %s6081_s25  ;;  %9448 = vst [vmem:[#allocation33_spill] sm:$0xff] %v8455_v21  ;;  %v8459_v17 = vpop.eup %5926  ;;  %5950 = vrcp.f32 %v3662_v55  ;;  %v4190_v55 = vsub.f32 1.0, %v4158_v40 }
 0x4f2   : > { %9449 = vst [vmem:[#allocation35_spill] sm:$0xff] %v8459_v17  ;;  %v5929_v35 = vpop.eup %5928  ;;  %5952 = vrcp.f32 %v3663_v57 }
 0x4f3   : > { %4555 = vrot.lane.b32.xlu0 %v9447_v12, %s6081_s25  ;;  %v8453_v29 = vpop.permute.xlu1 %4121  ;;  %v8469_v39 = vpop.eup %5930  ;;  %v5390_v12 = vmul.f32 -1.442695, %v9454_v49  ;;  %v3664_v53 = vadd.f32 1.0, %v5929_v35  ;;  %v4381_v49 = vmul.f32 %v9456_v7, %v4157_v6  ;;  %v9458_v35 = vld [vmem:[#allocation7_spill] sm:$0xff]  ;;  %v4191_v7 = vsub.f32 1.0, %v4159_v1 }
 0x4f4   : > { %v4382_v6 = vmul.f32 %v9458_v35, %v4158_v40  ;;  %v9460_v40 = vld [vmem:[#allocation9_spill] sm:$0xff]  ;;  %v4192_v35 = vsub.f32 1.0, %v4160_v36 }
 0x4f5   : > { %v8461_v50 = vpop.permute.xlu0 %4251  ;;  %4557 = vrot.lane.b32.xlu1 %v9451_v20, %s6081_s25  ;;  %v5933_v20 = vpop.eup %5932 }
 0x4f6   : > { %9450 = vst [vmem:[#allocation38_spill] sm:$0xff] %v8461_v50  ;;  %v4347_v8 = vmul.f32 %v8461_v50, %v4187_v31  ;;  %v8480_v50 = vpop.eup %5934  ;;  %v3665_v57 = vadd.f32 1.0, %v5933_v20  ;;  %v9461_v20 = vld [vmem:[#allocation28_spill] sm:$0xff] }
 0x4f7   : > { %4559 = vrot.lane.b32.xlu0 %v8193_v43, %s6081_s25  ;;  %v8477_v59 = vpop.permute.xlu1 %4253  ;;  %v8489_v43 = vpop.eup %5936 }
 0x4f8   : > { %9455 = vst [vmem:[#allocation42_spill] sm:$0xff] %v8477_v59  ;;  %v4411_v15 = vadd.f32 %v4379_v34, %v4347_v8  ;;  %v4348_v31 = vmul.f32 %v8477_v59, %v4188_v60  ;;  %v8492_v8 = vpop.eup %5938 }
 0x4f9   : > { %v8485_v58 = vpop.permute.xlu0 %4255  ;;  %4561 = vrot.lane.b32.xlu1 %v8200_v27, %s6081_s25  ;;  %v8499_v27 = vpop.eup %5940 }
 0x4fa   : > { %9457 = vst [vmem:[#allocation44_spill] sm:$0xff] %v8485_v58  ;;  %5954 = vtanh.f32 %v4411_v15  ;;  %v4349_v34 = vmul.f32 %v8485_v58, %v4189_v0  ;;  %v4412_v60 = vadd.f32 %v4380_v37, %v4348_v31  ;;  %v4161_v15 = vmul.f32 %v8435_v14, %v8312_v26  ;;  %v8504_v0 = vpop.eup %5942 }
 0x4fb   : > { %5956 = vpow2.f32 %v5390_v12  ;;  %4563 = vrot.lane.b32.xlu0 %v8212_v63, %s6081_s25  ;;  %v8497_v13 = vpop.permute.xlu1 %4257  ;;  %v4383_v12 = vmul.f32 %v9460_v40, %v4159_v1  ;;  %v5391_v31 = vmul.f32 -1.442695, %v9461_v20  ;;  %v8512_v58 = vpop.eup %5944  ;;  %v4162_v26 = vmul.f32 %v8449_v62, %v8316_v56  ;;  %v9463_v1 = vld [vmem:[#allocation8_spill] sm:$0xff] }
 0x4fc   : > { %9459 = vst [vmem:[#allocation26_spill] sm:$0xff] %v8497_v13  ;;  %v4413_v59 = vadd.f32 %v4381_v49, %v4349_v34  ;;  %5958 = vtanh.f32 %v4412_v60  ;;  %v4350_v37 = vmul.f32 %v8497_v13, %v4190_v55  ;;  %v4384_v34 = vmul.f32 %v9463_v1, %v4160_v36  ;;  %v9464_v60 = vld [vmem:[#allocation30_spill] sm:$0xff] }
 0x4fd   : > { %5960 = vrcp.f32 %v3664_v53  ;;  %v8508_v63 = vpop.permute.xlu0 %4259  ;;  %4565 = vrot.lane.b32.xlu1 %v8216_v45, %s6081_s25  ;;  %v8517_v53 = vpop.eup %5946  ;;  %v5392_v20 = vmul.f32 -1.442695, %v9464_v60  ;;  %v4163_v40 = vmul.f32 %v8455_v21, %v8320_v5  ;;  %v4193_v56 = vsub.f32 1.0, %v4161_v15 }
 0x4fe   : > { %9462 = vst [vmem:[#allocation28_spill] sm:$0xff] %v8508_v63  ;;  %5962 = vtanh.f32 %v4413_v59  ;;  %v4351_v49 = vmul.f32 %v8508_v63, %v4191_v7  ;;  %v4414_v55 = vadd.f32 %v4382_v6, %v4350_v37  ;;  %v8528_v6 = vpop.eup %5948  ;;  %v9467_v37 = vld [vmem:[#allocation32_spill] sm:$0xff]  ;;  %v4164_v5 = vmul.f32 %v8459_v17, %v8325_v54 }
 0x4ff   : > { %5964 = vrcp.f32 %v3665_v57  ;;  %4567 = vrot.lane.b32.xlu0 %v8226_v9, %s6081_s25  ;;  %v8525_v45 = vpop.permute.xlu1 %4261  ;;  %v9466_v57 = vld [vmem:[#allocation11_spill] sm:$0xff]  ;;  %v5393_v60 = vmul.f32 -1.442695, %v9467_v37  ;;  %v9469_v9 = vld [vmem:[#allocation50_spill] sm:$0xff]  ;;  %v8538_v63 = vpop.eup %5950  ;;  %v9471_v37 = vld [vmem:[#allocation36_spill] sm:$0xff]  ;;  %v4195_v54 = vsub.f32 1.0, %v4163_v40  ;;  %v4166_v21 = vmul.f32 %v8480_v50, %v8334_v30 }
 0x500   : > { %9465 = vst [vmem:[#allocation30_spill] sm:$0xff] %v8525_v45  ;;  %v4415_v59 = vadd.f32 %v4383_v12, %v4351_v49  ;;  %5966 = vtanh.f32 %v4414_v55  ;;  %v4352_v7 = vmul.f32 %v8525_v45, %v4192_v35  ;;  %v4385_v36 = vmul.f32 %v9466_v57, %v4161_v15  ;;  %v9470_v15 = vld [vmem:[#allocation10_spill] sm:$0xff] }
 0x501   : > { %5968 = vpow2.f32 %v5391_v31  ;;  %v8534_v1 = vpop.permute.xlu0 %4263  ;;  %4569 = vrot.lane.b32.xlu1 %v9469_v9, %s6081_s25  ;;  %v4194_v12 = vsub.f32 1.0, %v4162_v26  ;;  %v8541_v31 = vpop.eup %5952  ;;  %v4386_v55 = vmul.f32 %v9470_v15, %v4162_v26  ;;  %v5394_v57 = vmul.f32 -1.442695, %v9471_v37 }
 0x502   : > { %9468 = vst [vmem:[#allocation32_spill] sm:$0xff] %v8534_v1  ;;  %5970 = vtanh.f32 %v4415_v59  ;;  %v4353_v35 = vmul.f32 %v8534_v1, %v4193_v56  ;;  %v4416_v49 = vadd.f32 %v4384_v34, %v4352_v7  ;;  %v4165_v9 = vmul.f32 %v8469_v39, %v8330_v23  ;;  %v9472_v34 = vld [vmem:[#allocation13_spill] sm:$0xff] }
 0x503   : > { %5972 = vpow2.f32 %v5392_v20  ;;  %v8545_v45 = vpop.permute.xlu1 %4265  ;;  %v4387_v7 = vmul.f32 %v9472_v34, %v4163_v40  ;;  %v9473_v20 = vld [vmem:[#allocation39_spill] sm:$0xff]  ;;  %v4196_v26 = vsub.f32 1.0, %v4164_v5 }
 0x504   : > { %v5955_v13 = vpop.eup %5954  ;;  %v4417_v17 = vadd.f32 %v4385_v36, %v4353_v35  ;;  %5974 = vtanh.f32 %v4416_v49  ;;  %v4354_v59 = vmul.f32 %v8545_v45, %v4194_v12  ;;  %v5395_v1 = vmul.f32 -1.442695, %v9473_v20  ;;  %v9476_v35 = vld [vmem:[#allocation41_spill] sm:$0xff] }
 0x505   : > { %v5957_v56 = vpop.eup %5956  ;;  %5976 = vpow2.f32 %v5393_v60  ;;  %4763 = vrot.lane.b32.xlu0 %v5955_v13, %s6081_s25  ;;  %v8553_v37 = vpop.permute.xlu0 %4267  ;;  %v9475_v60 = vld [vmem:[#allocation12_spill] sm:$0xff]  ;;  %v5396_v49 = vmul.f32 -1.442695, %v9476_v35  ;;  %v4167_v13 = vmul.f32 %v8489_v43, %v8338_v38  ;;  %v4197_v30 = vsub.f32 1.0, %v4165_v9 }
 0x506   : > { %9474 = vst [vmem:[#allocation50_spill] sm:$0xff] %v8553_v37  ;;  %v5959_v15 = vpop.eup %5958  ;;  %5978 = vtanh.f32 %v4417_v17  ;;  %v4355_v23 = vmul.f32 %v8553_v37, %v4195_v54  ;;  %v4418_v36 = vadd.f32 %v4386_v55, %v4354_v59  ;;  %v4388_v40 = vmul.f32 %v9475_v60, %v4164_v5  ;;  %v9478_v5 = vld [vmem:[#allocation14_spill] sm:$0xff] }
 0x507   : > { %v8558_v12 = vpop.eup %5960  ;;  %5980 = vpow2.f32 %v5394_v57  ;;  %4765 = vrot.lane.b32.xlu1 %v5959_v15, %s6081_s25  ;;  %v8565_v20 = vpop.permute.xlu1 %4269  ;;  %v3666_v57 = vadd.f32 1.0, %v5957_v56  ;;  %v4389_v59 = vmul.f32 %v9478_v5, %v4165_v9  ;;  %v4168_v35 = vmul.f32 %v8492_v8, %v8342_v47 }
 0x508   : > { %9477 = vst [vmem:[#allocation36_spill] sm:$0xff] %v8565_v20  ;;  %v5963_v34 = vpop.eup %5962  ;;  %v4419_v17 = vadd.f32 %v4387_v7, %v4355_v23  ;;  %5982 = vtanh.f32 %v4418_v36  ;;  %v4356_v55 = vmul.f32 %v8565_v20, %v4196_v26  ;;  %v4198_v60 = vsub.f32 1.0, %v4166_v21  ;;  %v9480_v36 = vld [vmem:[#allocation45_spill] sm:$0xff] }
 0x509   : > { %v8568_v54 = vpop.eup %5964  ;;  %5984 = vpow2.f32 %v5395_v1  ;;  %v8573_v38 = vpop.permute.xlu0 %4271  ;;  %4767 = vrot.lane.b32.xlu0 %v5963_v34, %s6081_s25  ;;  %v5397_v56 = vmul.f32 -1.442695, %v9480_v36  ;;  %v9481_v1 = vld [vmem:[#allocation15_spill] sm:$0xff]  ;;  %v4199_v9 = vsub.f32 1.0, %v4167_v13  ;;  %v4169_v34 = vmul.f32 %v8499_v27, %v8347_v51 }
 0x50a   : > { %9479 = vst [vmem:[#allocation39_spill] sm:$0xff] %v8573_v38  ;;  %v5967_v15 = vpop.eup %5966  ;;  %5986 = vtanh.f32 %v4419_v17  ;;  %v4357_v7 = vmul.f32 %v8573_v38, %v4197_v30  ;;  %v4420_v23 = vadd.f32 %v4388_v40, %v4356_v55  ;;  %v4390_v20 = vmul.f32 %v9481_v1, %v4166_v21  ;;  %v9484_v55 = vld [vmem:[#allocation16_spill] sm:$0xff] }
 0x50b   : > { %v5969_v26 = vpop.eup %5968  ;;  %5988 = vpow2.f32 %v5396_v49  ;;  %v8579_v5 = vpop.permute.xlu1 %4273  ;;  %4769 = vrot.lane.b32.xlu1 %v5967_v15, %s6081_s25  ;;  %v9483_v49 = vld [vmem:[#allocation47_spill] sm:$0xff]  ;;  %v4391_v36 = vmul.f32 %v9484_v55, %v4167_v13  ;;  %v4200_v21 = vsub.f32 1.0, %v4168_v35  ;;  %v4170_v38 = vmul.f32 %v8504_v0, %v8351_v24 }
 0x50c   : > { %9482 = vst [vmem:[#allocation41_spill] sm:$0xff] %v8579_v5  ;;  %v5971_v47 = vpop.eup %5970  ;;  %v4421_v37 = vadd.f32 %v4389_v59, %v4357_v7  ;;  %5990 = vtanh.f32 %v4420_v23  ;;  %v4358_v30 = vmul.f32 %v8579_v5, %v4198_v60  ;;  %v5398_v17 = vmul.f32 -1.442695, %v9483_v49 }
 0x50d   : > { %v5973_v40 = vpop.eup %5972  ;;  %5992 = vrcp.f32 %v3666_v57  ;;  %v8587_v1 = vpop.permute.xlu0 %4275  ;;  %4771 = vrot.lane.b32.xlu0 %v5971_v47, %s6081_s25  ;;  %v3667_v7 = vadd.f32 1.0, %v5969_v26  ;;  %v9485_v57 = vld [vmem:[#allocation17_spill] sm:$0xff]  ;;  %v4171_v13 = vmul.f32 %v8512_v58, %v8357_v61  ;;  %v4201_v55 = vsub.f32 1.0, %v4169_v34  ;;  %v9486_v26 = vld [vmem:[#allocation18_spill] sm:$0xff] }
 0x50e   : > { %v5975_v15 = vpop.eup %5974  ;;  %5994 = vtanh.f32 %v4421_v37  ;;  %v4359_v51 = vmul.f32 %v8587_v1, %v4199_v9  ;;  %v4422_v59 = vadd.f32 %v4390_v20, %v4358_v30  ;;  %v4392_v23 = vmul.f32 %v9485_v57, %v4168_v35 }
 0x50f   : > { %v5977_v60 = vpop.eup %5976  ;;  %5996 = vpow2.f32 %v5397_v56  ;;  %v8596_v49 = vpop.permute.xlu1 %4277  ;;  %4773 = vrot.lane.b32.xlu1 %v5975_v15, %s6081_s25  ;;  %v3668_v20 = vadd.f32 1.0, %v5973_v40  ;;  %v4393_v56 = vmul.f32 %v9486_v26, %v4169_v34  ;;  %v4172_v35 = vmul.f32 %v8517_v53, %v8362_v25  ;;  %v9487_v40 = vld [vmem:[#allocation19_spill] sm:$0xff] }
 0x510   : > { %v5979_v47 = vpop.eup %5978  ;;  %v4423_v5 = vadd.f32 %v4391_v36, %v4359_v51  ;;  %5998 = vtanh.f32 %v4422_v59  ;;  %v4360_v24 = vmul.f32 %v8596_v49, %v4200_v21  ;;  %v4202_v30 = vsub.f32 1.0, %v4170_v38 }
 0x511   : > { %v5981_v37 = vpop.eup %5980  ;;  %6000 = vpow2.f32 %v5398_v17  ;;  %v8603_v9 = vpop.permute.xlu0 %4279  ;;  %4775 = vrot.lane.b32.xlu0 %v5979_v47, %s6081_s25  ;;  %v3669_v21 = vadd.f32 1.0, %v5977_v60  ;;  %v4394_v17 = vmul.f32 %v9487_v40, %v4170_v38  ;;  %v4203_v59 = vsub.f32 1.0, %v4171_v13 }
 0x512   : > { %v5983_v61 = vpop.eup %5982  ;;  %6002 = vtanh.f32 %v4423_v5  ;;  %v4361_v36 = vmul.f32 %v8603_v9, %v4201_v55  ;;  %v4424_v15 = vadd.f32 %v4392_v23, %v4360_v24  ;;  %v4173_v47 = vmul.f32 %v8528_v6, %v8367_v52 }
 0x513   : > { %v5985_v51 = vpop.eup %5984  ;;  %6004 = vrcp.f32 %v3667_v7  ;;  %v8608_v34 = vpop.permute.xlu1 %4281  ;;  %4777 = vrot.lane.b32.xlu1 %v5983_v61, %s6081_s25  ;;  %v3670_v23 = vadd.f32 1.0, %v5981_v37  ;;  %v9489_v7 = vld [vmem:[#allocation20_spill] sm:$0xff]  ;;  %v4204_v24 = vsub.f32 1.0, %v4172_v35  ;;  %v4174_v61 = vmul.f32 %v8538_v63, %v8373_v11  ;;  %v9491_v37 = vld [vmem:[#allocation21_spill] sm:$0xff] }
 0x514   : > { %9488 = vst [vmem:[#allocation45_spill] sm:$0xff] %v8608_v34  ;;  %v5987_v25 = vpop.eup %5986  ;;  %v4425_v26 = vadd.f32 %v4393_v56, %v4361_v36  ;;  %6006 = vtanh.f32 %v4424_v15  ;;  %v4362_v5 = vmul.f32 %v8608_v34, %v4202_v30  ;;  %v4395_v60 = vmul.f32 %v9489_v7, %v4171_v13 }
 0x515   : > { %v5989_v55 = vpop.eup %5988  ;;  %6008 = vrcp.f32 %v3668_v20  ;;  %v8615_v38 = vpop.permute.xlu0 %4283  ;;  %4779 = vrot.lane.b32.xlu0 %v5987_v25, %s6081_s25  ;;  %v3671_v20 = vadd.f32 1.0, %v5985_v51  ;;  %v4396_v30 = vmul.f32 %v9491_v37, %v4172_v35  ;;  %v4175_v13 = vmul.f32 %v8541_v31, %v8381_v10 }
 0x516   : > { %9490 = vst [vmem:[#allocation47_spill] sm:$0xff] %v8615_v38  ;;  %v5991_v40 = vpop.eup %5990  ;;  %6010 = vtanh.f32 %v4425_v26  ;;  %v4363_v52 = vmul.f32 %v8615_v38, %v4203_v59  ;;  %v4426_v56 = vadd.f32 %v4394_v17, %v4362_v5  ;;  %v4205_v7 = vsub.f32 1.0, %v4173_v47 }
 0x517   : > { %v8621_v36 = vpop.eup %5992  ;;  %6012 = vrcp.f32 %v3669_v21  ;;  %v8626_v15 = vpop.permute.xlu1 %4285  ;;  %4781 = vrot.lane.b32.xlu1 %v5991_v40, %s6081_s25  ;;  %v3672_v59 = vadd.f32 1.0, %v5989_v55  ;;  %v9493_v21 = vld [vmem:[#allocation22_spill] sm:$0xff]  ;;  %v4176_v35 = vmul.f32 %v8558_v12, %v8389_v33  ;;  %v4206_v40 = vsub.f32 1.0, %v4174_v61 }
 0x518   : > { %9492 = vst [vmem:[#allocation17_spill] sm:$0xff] %v8626_v15  ;;  %v5995_v25 = vpop.eup %5994  ;;  %v4427_v11 = vadd.f32 %v4395_v60, %v4363_v52  ;;  %6014 = vtanh.f32 %v4426_v56  ;;  %v4364_v26 = vmul.f32 %v8626_v15, %v4204_v24  ;;  %v4397_v51 = vmul.f32 %v9493_v21, %v4173_v47  ;;  %v9495_v24 = vld [vmem:[#allocation23_spill] sm:$0xff] }
 0x519   : > { %v5997_v17 = vpop.eup %5996  ;;  %6016 = vrcp.f32 %v3670_v23  ;;  %v8633_v5 = vpop.permute.xlu0 %4287  ;;  %4783 = vrot.lane.b32.xlu0 %v5995_v25, %s6081_s25  ;;  %v4398_v23 = vmul.f32 %v9495_v24, %v4174_v61  ;;  %v4207_v55 = vsub.f32 1.0, %v4175_v13  ;;  %v4177_v47 = vmul.f32 %v8568_v54, %v8398_v32 }
 0x51a   : > { %9494 = vst [vmem:[#allocation52_spill] sm:$0xff] %v8633_v5  ;;  %v5999_v10 = vpop.eup %5998  ;;  %6018 = vtanh.f32 %v4427_v11  ;;  %v4365_v60 = vmul.f32 %v8633_v5, %v4205_v7  ;;  %v4428_v52 = vadd.f32 %v4396_v30, %v4364_v26  ;;  %v3673_v7 = vadd.f32 1.0, %v5997_v17 }
 0x51b   : > { %v6001_v56 = vpop.eup %6000  ;;  %6020 = vrcp.f32 %v3671_v20  ;;  %v8638_v15 = vpop.permute.xlu1 %4289  ;;  %4785 = vrot.lane.b32.xlu1 %v5999_v10, %s6081_s25  ;;  %v9497_v20 = vld [vmem:[#allocation24_spill] sm:$0xff]  ;;  %v4208_v61 = vsub.f32 1.0, %v4176_v35  ;;  %v4178_v24 = vmul.f32 %v8621_v36, %v8404_v2 }
 0x51c   : > { %9496 = vst [vmem:[#allocation53_spill] sm:$0xff] %v8638_v15  ;;  %v6003_v33 = vpop.eup %6002  ;;  %v4429_v25 = vadd.f32 %v4397_v51, %v4365_v60  ;;  %6022 = vtanh.f32 %v4428_v52  ;;  %v4366_v11 = vmul.f32 %v8638_v15, %v4206_v40  ;;  %v4399_v30 = vmul.f32 %v9497_v20, %v4175_v13 }
 0x51d   : > { %v8644_v21 = vpop.eup %6004  ;;  %6024 = vrcp.f32 %v3672_v59  ;;  %v8647_v26 = vpop.permute.xlu0 %4291  ;;  %4787 = vrot.lane.b32.xlu0 %v6003_v33, %s6081_s25  ;;  %v3674_v60 = vadd.f32 1.0, %v6001_v56  ;;  %v9500_v59 = vld [vmem:[#allocation25_spill] sm:$0xff]  ;;  %v4209_v20 = vsub.f32 1.0, %v4177_v47 }
 0x51e   : > { %9498 = vst [vmem:[#allocation54_spill] sm:$0xff] %v8647_v26  ;;  %v6007_v10 = vpop.eup %6006  ;;  %6026 = vtanh.f32 %v4429_v25  ;;  %v4367_v32 = vmul.f32 %v8647_v26, %v4207_v55  ;;  %v4430_v51 = vadd.f32 %v4398_v23, %v4366_v11  ;;  %v4400_v17 = vmul.f32 %v9500_v59, %v4176_v35  ;;  %v9503_v23 = vld [vmem:[#allocation27_spill] sm:$0xff] }
 0x51f   : > { %v8653_v40 = vpop.eup %6008  ;;  %v4179_v13 = vmul.f32 %v8644_v21, %v8411_v48  ;;  %v8658_v52 = vpop.permute.xlu1 %4293  ;;  %4789 = vrot.lane.b32.xlu1 %v6007_v10, %s6081_s25  ;;  %v4401_v56 = vmul.f32 %v9503_v23, %v4177_v47  ;;  %v4210_v11 = vsub.f32 1.0, %v4178_v24 }
 0x520   : > { %9499 = vst [vmem:[#allocation55_spill] sm:$0xff] %v8653_v40  ;;  %9501 = vst [vmem:[#allocation56_spill] sm:$0xff] %v8658_v52  ;;  %v6011_v33 = vpop.eup %6010  ;;  %v4431_v15 = vadd.f32 %v4399_v30, %v4367_v32  ;;  %6028 = vtanh.f32 %v4430_v51  ;;  %v4368_v2 = vmul.f32 %v8658_v52, %v4208_v61  ;;  %v4180_v35 = vmul.f32 %v8653_v40, %v8417_v18  ;;  %v9506_v61 = vld [vmem:[#allocation29_spill] sm:$0xff] }
 0x521   : > { %v8662_v55 = vpop.eup %6012  ;;  %6030 = vrcp.f32 %v3673_v7  ;;  %v8667_v25 = vpop.permute.xlu0 %4295  ;;  %4791 = vrot.lane.b32.xlu0 %v6011_v33, %s6081_s25  ;;  %v4402_v7 = vmul.f32 %v9506_v61, %v4178_v24  ;;  %v4211_v51 = vsub.f32 1.0, %v4179_v13 }
 0x522   : > { %9502 = vst [vmem:[#allocation57_spill] sm:$0xff] %v8662_v55  ;;  %9504 = vst [vmem:[#allocation58_spill] sm:$0xff] %v8667_v25  ;;  %v6015_v48 = vpop.eup %6014  ;;  %6032 = vtanh.f32 %v4431_v15  ;;  %v4369_v30 = vmul.f32 %v8667_v25, %v4209_v20  ;;  %v4432_v10 = vadd.f32 %v4400_v17, %v4368_v2  ;;  %v4181_v33 = vmul.f32 %v8662_v55, %v8422_v42  ;;  %v9509_v17 = vld [vmem:[#allocation31_spill] sm:$0xff] }
 0x523   : > { %v8671_v32 = vpop.eup %6016  ;;  %6034 = vrcp.f32 %v3674_v60  ;;  %v8674_v47 = vpop.permute.xlu1 %4297  ;;  %4793 = vrot.lane.b32.xlu1 %v6015_v48, %s6081_s25  ;;  %v4403_v2 = vmul.f32 %v9509_v17, %v4179_v13  ;;  %v4212_v60 = vsub.f32 1.0, %v4180_v35 }
 0x524   : > { %9505 = vst [vmem:[#allocation59_spill] sm:$0xff] %v8671_v32  ;;  %9507 = vst [vmem:[#allocation60_spill] sm:$0xff] %v8674_v47  ;;  %v6019_v18 = vpop.eup %6018  ;;  %v4433_v23 = vadd.f32 %v4401_v56, %v4369_v30  ;;  %6036 = vtanh.f32 %v4432_v10  ;;  %v4370_v15 = vmul.f32 %v8674_v47, %v4210_v11  ;;  %v4182_v48 = vmul.f32 %v8671_v32, %v8427_v19  ;;  %v9511_v11 = vld [vmem:[#allocation34_spill] sm:$0xff] }
 0x525   : > { %v8680_v20 = vpop.eup %6020  ;;  %v8683_v25 = vpop.permute.xlu0 %4299  ;;  %4795 = vrot.lane.b32.xlu0 %v6019_v18, %s6081_s25  ;;  %v4404_v10 = vmul.f32 %v9511_v11, %v4180_v35  ;;  %v4213_v47 = vsub.f32 1.0, %v4181_v33 }
 0x526   : > { %9508 = vst [vmem:[#allocation61_spill] sm:$0xff] %v8680_v20  ;;  %9510 = vst [vmem:[#allocation62_spill] sm:$0xff] %v8683_v25  ;;  %v6023_v24 = vpop.eup %6022  ;;  %6038 = vtanh.f32 %v4433_v23  ;;  %v4371_v42 = vmul.f32 %v8683_v25, %v4211_v51  ;;  %v4434_v56 = vadd.f32 %v4402_v7, %v4370_v15  ;;  %v4183_v13 = vmul.f32 %v8680_v20, %v8431_v22  ;;  %v9513_v23 = vld [vmem:[#allocation37_spill] sm:$0xff] }
 0x527   : > { %v8689_v30 = vpop.eup %6024  ;;  %v8694_v17 = vpop.permute.xlu1 %4301  ;;  %4797 = vrot.lane.b32.xlu1 %v6023_v24, %s6081_s25  ;;  %v4405_v51 = vmul.f32 %v9513_v23, %v4181_v33  ;;  %v4214_v35 = vsub.f32 1.0, %v4182_v48 }
 0x528   : > { %9512 = vst [vmem:[#allocation63_spill] sm:$0xff] %v8694_v17  ;;  %v6027_v18 = vpop.eup %6026  ;;  %v4435_v61 = vadd.f32 %v4403_v2, %v4371_v42  ;;  %6040 = vtanh.f32 %v4434_v56  ;;  %v4372_v19 = vmul.f32 %v8694_v17, %v4212_v60  ;;  %v4184_v7 = vmul.f32 %v8689_v30, %v8437_v44  ;;  %v9516_v2 = vld [vmem:[#allocation40_spill] sm:$0xff] }
 0x529   : > { %v8701_v15 = vpop.permute.xlu0 %4303  ;;  %4799 = vrot.lane.b32.xlu0 %v6027_v18, %s6081_s25  ;;  %v4406_v42 = vmul.f32 %v9516_v2, %v4182_v48  ;;  %v4215_v60 = vsub.f32 1.0, %v4183_v13  ;;  %v9522_v2 = vld [vmem:[#allocation48_spill] sm:$0xff] }
 0x52a   : > { %9514 = vst [vmem:[#allocation64_spill] sm:$0xff] %v8701_v15  ;;  %v6029_v22 = vpop.eup %6028  ;;  %6042 = vtanh.f32 %v4435_v61  ;;  %v4373_v24 = vmul.f32 %v8701_v15, %v4213_v47  ;;  %v4436_v11 = vadd.f32 %v4404_v10, %v4372_v19  ;;  %v9518_v47 = vld [vmem:[#allocation43_spill] sm:$0xff]  ;;  %v4216_v19 = vsub.f32 1.0, %v4184_v7 }
 0x52b   : > { %v8705_v25 = vpop.eup %6030  ;;  %v8708_v56 = vpop.permute.xlu1 %4305  ;;  %4801 = vrot.lane.b32.xlu1 %v6029_v22, %s6081_s25  ;;  %v4407_v10 = vmul.f32 %v9518_v47, %v4183_v13 }
 0x52c   : > { %9515 = vst [vmem:[#allocation65_spill] sm:$0xff] %v8705_v25  ;;  %9517 = vst [vmem:[#allocation66_spill] sm:$0xff] %v8708_v56  ;;  %v6033_v44 = vpop.eup %6032  ;;  %v4185_v33 = vmul.f32 %v8705_v25, %v8443_v3  ;;  %v4437_v18 = vadd.f32 %v4405_v51, %v4373_v24  ;;  %6044 = vtanh.f32 %v4436_v11  ;;  %v4374_v61 = vmul.f32 %v8708_v56, %v4214_v35  ;;  %v9520_v11 = vld [vmem:[#allocation46_spill] sm:$0xff] }
 0x52d   : > { %v8714_v23 = vpop.eup %6034  ;;  %v8717_v15 = vpop.permute.xlu0 %4307  ;;  %4803 = vrot.lane.b32.xlu0 %v6033_v44, %s6081_s25  ;;  %v4408_v24 = vmul.f32 %v9520_v11, %v4184_v7 }
 0x52e   : > { %9519 = vst [vmem:[#allocation67_spill] sm:$0xff] %v8717_v15  ;;  %v6037_v48 = vpop.eup %6036  ;;  %v4186_v22 = vmul.f32 %v8714_v23, %v8453_v29  ;;  %6046 = vtanh.f32 %v4437_v18  ;;  %v4375_v3 = vmul.f32 %v8717_v15, %v4215_v60  ;;  %v4438_v51 = vadd.f32 %v4406_v42, %v4374_v61 }
 0x52f   : > { %v8724_v35 = vpop.permute.xlu1 %4309  ;;  %4805 = vrot.lane.b32.xlu1 %v6037_v48, %s6081_s25  ;;  %v4217_v47 = vsub.f32 1.0, %v4185_v33  ;;  %v4409_v17 = vmul.f32 %v9522_v2, %v4185_v33 }
 0x530   : > { %9521 = vst [vmem:[#allocation68_spill] sm:$0xff] %v8724_v35  ;;  %v6039_v13 = vpop.eup %6038  ;;  %v4439_v56 = vadd.f32 %v4407_v10, %v4375_v3  ;;  %6048 = vtanh.f32 %v4438_v51  ;;  %v4376_v44 = vmul.f32 %v8724_v35, %v4216_v19  ;;  %v4218_v42 = vsub.f32 1.0, %v4186_v22  ;;  %v9525_v10 = vld [vmem:[#allocation49_spill] sm:$0xff] }
 0x531   : > { %v8729_v52 = vpop.permute.xlu0 %4311  ;;  %4807 = vrot.lane.b32.xlu0 %v6039_v13, %s6081_s25  ;;  %v4410_v48 = vmul.f32 %v9525_v10, %v4186_v22 }
 0x532   : > { %9523 = vst [vmem:[#allocation69_spill] sm:$0xff] %v8729_v52  ;;  %v6041_v29 = vpop.eup %6040  ;;  %6050 = vtanh.f32 %v4439_v56  ;;  %v4377_v7 = vmul.f32 %v8729_v52, %v4217_v47  ;;  %v4440_v60 = vadd.f32 %v4408_v24, %v4376_v44 }
 0x533   : > { %v8733_v18 = vpop.permute.xlu1 %4313  ;;  %4809 = vrot.lane.b32.xlu1 %v6041_v29, %s6081_s25 }
 0x534   : > { %9524 = vst [vmem:[#allocation70_spill] sm:$0xff] %v8733_v18  ;;  %v6043_v61 = vpop.eup %6042  ;;  %v4441_v19 = vadd.f32 %v4409_v17, %v4377_v7  ;;  %6052 = vtanh.f32 %v4440_v60  ;;  %v4378_v33 = vmul.f32 %v8733_v18, %v4218_v42 }
 0x535   : > { %v8738_v3 = vpop.permute.xlu0 %4507  ;;  %4811 = vrot.lane.b32.xlu0 %v6043_v61, %s6081_s25 }
 0x536   : > { %v6045_v51 = vpop.eup %6044  ;;  %6054 = vtanh.f32 %v4441_v19  ;;  %v4442_v56 = vadd.f32 %v4410_v48, %v4378_v33 }
 0x537   : > { %v8741_v47 = vpop.permute.xlu1 %4509  ;;  %4813 = vrot.lane.b32.xlu1 %v6045_v51, %s6081_s25 }
 0x538   : > { %v6047_v24 = vpop.eup %6046  ;;  %6056 = vtanh.f32 %v4442_v56 }
 0x539   : > { %v8744_v13 = vpop.permute.xlu0 %4511  ;;  %4815 = vrot.lane.b32.xlu0 %v6047_v24, %s6081_s25 }
 0x53a   : > { %v6049_v17 = vpop.eup %6048 }
 0x53b   : > { %v8747_v22 = vpop.permute.xlu1 %4513  ;;  %4817 = vrot.lane.b32.xlu1 %v6049_v17, %s6081_s25 }
 0x53c   : > { %v6051_v44 = vpop.eup %6050 }
 0x53d   : > { %v8750_v29 = vpop.permute.xlu0 %4515  ;;  %4819 = vrot.lane.b32.xlu0 %v6051_v44, %s6081_s25 }
 0x53e   : > { %v6053_v42 = vpop.eup %6052 }
 0x53f   : > { %v8753_v7 = vpop.permute.xlu1 %4517  ;;  %4821 = vrot.lane.b32.xlu1 %v6053_v42, %s6081_s25 }
 0x540   : > { %v6055_v60 = vpop.eup %6054 }
 0x541   : > { %v8756_v61 = vpop.permute.xlu0 %4519  ;;  %4823 = vrot.lane.b32.xlu0 %v6055_v60, %s6081_s25 }
 0x542   : > { %v6057_v48 = vpop.eup %6056 }
 0x543   : > { %v8759_v19 = vpop.permute.xlu1 %4521  ;;  %4825 = vrot.lane.b32.xlu1 %v6057_v48, %s6081_s25 }
 0x545   : > { %v8762_v33 = vpop.permute.xlu0 %4523 }
 0x547   : > { %v8764_v51 = vpop.permute.xlu1 %4525 }
 0x549   : > { %v8766_v56 = vpop.permute.xlu0 %4527 }
 0x54b   : > { %v8768_v24 = vpop.permute.xlu1 %4529 }
 0x54d   : > { %v8770_v17 = vpop.permute.xlu0 %4531 }
 0x54f   : > { %v8772_v44 = vpop.permute.xlu1 %4533 }
 0x551   : > { %v8774_v42 = vpop.permute.xlu0 %4535 }
 0x553   : > { %v8776_v60 = vpop.permute.xlu1 %4537 }
 0x555   : > { %v8778_v18 = vpop.permute.xlu0 %4539 }
 0x557   : > { %v8780_v10 = vpop.permute.xlu1 %4541 }
 0x558   : > { %9526 = vst [vmem:[#allocation71_spill] sm:$0xff] %v8780_v10 }
 0x559   : > { %v8782_v48 = vpop.permute.xlu0 %4543 }
 0x55a   : > { %9527 = vst [vmem:[#allocation72_spill] sm:$0xff] %v8782_v48 }
 0x55b   : > { %v8784_v52 = vpop.permute.xlu1 %4545 }
 0x55c   : > { %9528 = vst [vmem:[#allocation73_spill] sm:$0xff] %v8784_v52 }
 0x55d   : > { %v8786_v2 = vpop.permute.xlu0 %4547 }
 0x55e   : > { %9529 = vst [vmem:[#allocation74_spill] sm:$0xff] %v8786_v2 }
 0x55f   : > { %v8788_v35 = vpop.permute.xlu1 %4549 }
 0x560   : > { %9530 = vst [vmem:[#allocation75_spill] sm:$0xff] %v8788_v35 }
 0x561   : > { %v8790_v11 = vpop.permute.xlu0 %4551 }
 0x562   : > { %9531 = vst [vmem:[#allocation76_spill] sm:$0xff] %v8790_v11 }
 0x563   : > { %v8792_v15 = vpop.permute.xlu1 %4553 }
 0x564   : > { %9532 = vst [vmem:[#allocation77_spill] sm:$0xff] %v8792_v15 }
 0x565   : > { %v8794_v59 = vpop.permute.xlu0 %4555 }
 0x566   : > { %9533 = vst [vmem:[#allocation78_spill] sm:$0xff] %v8794_v59 }
 0x567   : > { %v8796_v26 = vpop.permute.xlu1 %4557 }
 0x568   : > { %9534 = vst [vmem:[#allocation79_spill] sm:$0xff] %v8796_v26 }
 0x569   : > { %v8798_v5 = vpop.permute.xlu0 %4559 }
 0x56a   : > { %9535 = vst [vmem:[#allocation80_spill] sm:$0xff] %v8798_v5  ;;  %v9541_v5 = vld [vmem:[#allocation51_spill] sm:$0xff] }
 0x56b   : > { %v8800_v37 = vpop.permute.xlu1 %4561 }
 0x56c   : > { %9536 = vst [vmem:[#allocation81_spill] sm:$0xff] %v8800_v37  ;;  %v9542_v37 = vld [vmem:[#allocation33_spill] sm:$0xff] }
 0x56d   : > { %v8802_v38 = vpop.permute.xlu0 %4563 }
 0x56e   : > { %9537 = vst [vmem:[#allocation82_spill] sm:$0xff] %v8802_v38 }
 0x56f   : > { %v8804_v48 = vpop.permute.xlu1 %4565 }
 0x570   : > { %9538 = vst [vmem:[#allocation83_spill] sm:$0xff] %v8804_v48 }
 0x571   : > { %v8806_v52 = vpop.permute.xlu0 %4567 }
 0x572   : > { %9539 = vst [vmem:[#allocation84_spill] sm:$0xff] %v8806_v52 }
 0x573   : > { %v8808_v2 = vpop.permute.xlu1 %4569 }
 0x574   : > { %9540 = vst [vmem:[#allocation85_spill] sm:$0xff] %v8808_v2 }
 0x577   : > { %v4764_v35 = vpop.permute.xlu0 %4763 }
 0x578   : > { %v4859_v11 = vmul.f32 %v8378_v41, %v4764_v35 }
 0x579   : > { %v4766_v15 = vpop.permute.xlu1 %4765 }
 0x57a   : > { %4923 = vrot.lane.b32.xlu0 %v4859_v11, %s6081_s25  ;;  %v4860_v26 = vmul.f32 %v8386_v28, %v4766_v15 }
 0x57b   : > { %v4768_v59 = vpop.permute.xlu0 %4767 }
 0x57c   : > { %v4861_v34 = vmul.f32 %v9541_v5, %v4768_v59  ;;  %4925 = vrot.lane.b32.xlu1 %v4860_v26, %s6081_s25 }
 0x57d   : > { %v4770_v38 = vpop.permute.xlu1 %4769 }
 0x57e   : > { %4927 = vrot.lane.b32.xlu0 %v4861_v34, %s6081_s25  ;;  %v4862_v52 = vmul.f32 %v8396_v46, %v4770_v38 }
 0x57f   : > { %v4772_v48 = vpop.permute.xlu0 %4771 }
 0x580   : > { %v4863_v2 = vmul.f32 %v8409_v4, %v4772_v48  ;;  %4929 = vrot.lane.b32.xlu1 %v4862_v52, %s6081_s25 }
 0x581   : > { %v4774_v35 = vpop.permute.xlu1 %4773 }
 0x582   : > { %4931 = vrot.lane.b32.xlu0 %v4863_v2, %s6081_s25  ;;  %v4864_v15 = vmul.f32 %v8415_v16, %v4774_v35  ;;  %v9543_v2 = vld [vmem:[#allocation35_spill] sm:$0xff] }
 0x583   : > { %v4776_v11 = vpop.permute.xlu0 %4775 }
 0x584   : > { %v4865_v59 = vmul.f32 %v8435_v14, %v4776_v11  ;;  %4933 = vrot.lane.b32.xlu1 %v4864_v15, %s6081_s25 }
 0x585   : > { %v4778_v26 = vpop.permute.xlu1 %4777 }
 0x586   : > { %4935 = vrot.lane.b32.xlu0 %v4865_v59, %s6081_s25  ;;  %v4866_v34 = vmul.f32 %v8449_v62, %v4778_v26 }
 0x587   : > { %v4780_v38 = vpop.permute.xlu0 %4779 }
 0x588   : > { %v4867_v48 = vmul.f32 %v9542_v37, %v4780_v38  ;;  %4937 = vrot.lane.b32.xlu1 %v4866_v34, %s6081_s25 }
 0x589   : > { %v4782_v52 = vpop.permute.xlu1 %4781 }
 0x58a   : > { %4939 = vrot.lane.b32.xlu0 %v4867_v48, %s6081_s25  ;;  %v4868_v35 = vmul.f32 %v9543_v2, %v4782_v52 }
 0x58b   : > { %v4784_v10 = vpop.permute.xlu0 %4783 }
 0x58c   : > { %v4869_v11 = vmul.f32 %v8469_v39, %v4784_v10  ;;  %4941 = vrot.lane.b32.xlu1 %v4868_v35, %s6081_s25 }
 0x58d   : > { %v4786_v15 = vpop.permute.xlu1 %4785 }
 0x58e   : > { %4943 = vrot.lane.b32.xlu0 %v4869_v11, %s6081_s25  ;;  %v4870_v59 = vmul.f32 %v8480_v50, %v4786_v15 }
 0x58f   : > { %v4788_v26 = vpop.permute.xlu0 %4787 }
 0x590   : > { %v4871_v38 = vmul.f32 %v8489_v43, %v4788_v26  ;;  %4945 = vrot.lane.b32.xlu1 %v4870_v59, %s6081_s25 }
 0x591   : > { %v4790_v34 = vpop.permute.xlu1 %4789 }
 0x592   : > { %4947 = vrot.lane.b32.xlu0 %v4871_v38, %s6081_s25  ;;  %v4872_v48 = vmul.f32 %v8492_v8, %v4790_v34 }
 0x593   : > { %v4792_v52 = vpop.permute.xlu0 %4791 }
 0x594   : > { %v4873_v10 = vmul.f32 %v8499_v27, %v4792_v52  ;;  %4949 = vrot.lane.b32.xlu1 %v4872_v48, %s6081_s25 }
 0x595   : > { %v4794_v35 = vpop.permute.xlu1 %4793 }
 0x596   : > { %4951 = vrot.lane.b32.xlu0 %v4873_v10, %s6081_s25  ;;  %v4874_v11 = vmul.f32 %v8504_v0, %v4794_v35 }
 0x597   : > { %v4796_v15 = vpop.permute.xlu0 %4795 }
 0x598   : > { %v4875_v26 = vmul.f32 %v8512_v58, %v4796_v15  ;;  %4953 = vrot.lane.b32.xlu1 %v4874_v11, %s6081_s25 }
 0x599   : > { %v4798_v59 = vpop.permute.xlu1 %4797 }
 0x59a   : > { %4955 = vrot.lane.b32.xlu0 %v4875_v26, %s6081_s25  ;;  %v4876_v38 = vmul.f32 %v8517_v53, %v4798_v59 }
 0x59b   : > { %v4800_v34 = vpop.permute.xlu0 %4799 }
 0x59c   : > { %v4877_v52 = vmul.f32 %v8528_v6, %v4800_v34  ;;  %4957 = vrot.lane.b32.xlu1 %v4876_v38, %s6081_s25 }
 0x59d   : > { %v4802_v48 = vpop.permute.xlu1 %4801 }
 0x59e   : > { %4959 = vrot.lane.b32.xlu0 %v4877_v52, %s6081_s25  ;;  %v4878_v10 = vmul.f32 %v8538_v63, %v4802_v48 }
 0x59f   : > { %v4804_v35 = vpop.permute.xlu0 %4803 }
 0x5a0   : > { %v4879_v15 = vmul.f32 %v8541_v31, %v4804_v35  ;;  %4961 = vrot.lane.b32.xlu1 %v4878_v10, %s6081_s25 }
 0x5a1   : > { %v4806_v11 = vpop.permute.xlu1 %4805 }
 0x5a2   : > { %4963 = vrot.lane.b32.xlu0 %v4879_v15, %s6081_s25  ;;  %v4880_v26 = vmul.f32 %v8558_v12, %v4806_v11 }
 0x5a3   : > { %v4808_v59 = vpop.permute.xlu0 %4807 }
 0x5a4   : > { %v4881_v34 = vmul.f32 %v8568_v54, %v4808_v59  ;;  %4965 = vrot.lane.b32.xlu1 %v4880_v26, %s6081_s25 }
 0x5a5   : > { %v4810_v38 = vpop.permute.xlu1 %4809 }
 0x5a6   : > { %4967 = vrot.lane.b32.xlu0 %v4881_v34, %s6081_s25  ;;  %v4882_v52 = vmul.f32 %v8621_v36, %v4810_v38 }
 0x5a7   : > { %v4812_v48 = vpop.permute.xlu0 %4811 }
 0x5a8   : > { %v4883_v35 = vmul.f32 %v8644_v21, %v4812_v48  ;;  %4969 = vrot.lane.b32.xlu1 %v4882_v52, %s6081_s25  ;;  %v4603_v48 = vmul.f32 %v8378_v41, %v8738_v3  ;;  %v4605_v3 = vmul.f32 %v9541_v5, %v8744_v13  ;;  %v4445_v13 = vsub.f32 1.0, %v9541_v5 }
 0x5a9   : > { %v4814_v10 = vpop.permute.xlu1 %4813  ;;  %v4608_v5 = vmul.f32 %v8415_v16, %v8753_v7 }
 0x5aa   : > { %4971 = vrot.lane.b32.xlu0 %v4883_v35, %s6081_s25  ;;  %v4884_v15 = vmul.f32 %v8653_v40, %v4814_v10  ;;  %v4604_v10 = vmul.f32 %v8386_v28, %v8741_v47  ;;  %v9545_v47 = vld [vmem:[#allocation38_spill] sm:$0xff] }
 0x5ab   : > { %v4816_v11 = vpop.permute.xlu0 %4815 }
 0x5ac   : > { %v4885_v59 = vmul.f32 %v8662_v55, %v4816_v11  ;;  %4973 = vrot.lane.b32.xlu1 %v4884_v15, %s6081_s25 }
 0x5ad   : > { %v4818_v26 = vpop.permute.xlu1 %4817 }
 0x5ae   : > { %4975 = vrot.lane.b32.xlu0 %v4885_v59, %s6081_s25  ;;  %v4886_v34 = vmul.f32 %v8671_v32, %v4818_v26  ;;  %v4443_v59 = vsub.f32 1.0, %v8378_v41  ;;  %v9544_v26 = vld [vmem:[#allocation4_spill] sm:$0xff] }
 0x5af   : > { %v4820_v38 = vpop.permute.xlu0 %4819  ;;  %v4635_v32 = vmul.f32 %v9544_v26, %v4603_v48  ;;  %v9547_v48 = vld [vmem:[#allocation42_spill] sm:$0xff] }
 0x5b0   : > { %v4887_v52 = vmul.f32 %v8680_v20, %v4820_v38  ;;  %4977 = vrot.lane.b32.xlu1 %v4886_v34, %s6081_s25  ;;  %v4444_v34 = vsub.f32 1.0, %v8386_v28  ;;  %v4475_v55 = vmul.f32 %v4443_v59, %v9545_v47  ;;  %v4607_v28 = vmul.f32 %v8409_v4, %v8750_v29  ;;  %v9549_v59 = vld [vmem:[#allocation44_spill] sm:$0xff] }
 0x5b1   : > { %v4822_v35 = vpop.permute.xlu1 %4821 }
 0x5b2   : > { %4979 = vrot.lane.b32.xlu0 %v4887_v52, %s6081_s25  ;;  %v4888_v15 = vmul.f32 %v8689_v30, %v4822_v35  ;;  %v9546_v52 = vld [vmem:[#allocation5_spill] sm:$0xff]  ;;  %v4606_v35 = vmul.f32 %v8396_v46, %v8747_v22  ;;  %v4667_v26 = vadd.f32 %v4635_v32, %v4475_v55  ;;  %v4477_v22 = vmul.f32 %v4445_v13, %v9549_v59  ;;  %v9551_v32 = vld [vmem:[#allocation26_spill] sm:$0xff]  ;;  %v9554_v13 = vld [vmem:[#allocation8_spill] sm:$0xff] }
 0x5b3   : > { %v4824_v11 = vpop.permute.xlu0 %4823  ;;  %v4636_v40 = vmul.f32 %v9546_v52, %v4604_v10  ;;  %v4446_v10 = vsub.f32 1.0, %v8396_v46  ;;  %v4447_v55 = vsub.f32 1.0, %v8409_v4  ;;  %v4609_v46 = vmul.f32 %v8435_v14, %v8756_v61  ;;  %v9556_v61 = vld [vmem:[#allocation11_spill] sm:$0xff]  ;;  %v9557_v59 = vld [vmem:[#allocation32_spill] sm:$0xff] }
 0x5b4   : > { %v4889_v38 = vmul.f32 %v8705_v25, %v4824_v11  ;;  %4981 = vrot.lane.b32.xlu1 %v4888_v15, %s6081_s25  ;;  %v4476_v11 = vmul.f32 %v4444_v34, %v9547_v48  ;;  %v9548_v15 = vld [vmem:[#allocation6_spill] sm:$0xff]  ;;  %v4640_v48 = vmul.f32 %v9554_v13, %v4608_v5  ;;  %v4610_v4 = vmul.f32 %v8449_v62, %v8759_v19 }
 0x5b5   : > { %v4826_v20 = vpop.permute.xlu1 %4825  ;;  %v4637_v25 = vmul.f32 %v9548_v15, %v4605_v3  ;;  %v9552_v3 = vld [vmem:[#allocation9_spill] sm:$0xff]  ;;  %v9558_v19 = vld [vmem:[#allocation10_spill] sm:$0xff]  ;;  %v4454_v13 = vsub.f32 1.0, %v8480_v50 }
 0x5b6   : > { %4983 = vrot.lane.b32.xlu0 %v4889_v38, %s6081_s25  ;;  %v4890_v41 = vmul.f32 %v8714_v23, %v4826_v20  ;;  %v4668_v47 = vadd.f32 %v4636_v40, %v4476_v11  ;;  %v9550_v38 = vld [vmem:[#allocation7_spill] sm:$0xff]  ;;  %v4478_v20 = vmul.f32 %v4446_v10, %v9551_v32  ;;  %v4639_v34 = vmul.f32 %v9552_v3, %v4607_v28  ;;  %v9555_v11 = vld [vmem:[#allocation30_spill] sm:$0xff] }
 0x5b7   : > { %v4638_v52 = vmul.f32 %v9550_v38, %v4606_v35  ;;  %v4669_v29 = vadd.f32 %v4637_v25, %v4477_v22  ;;  %v4448_v40 = vsub.f32 1.0, %v8415_v16  ;;  %v9553_v35 = vld [vmem:[#allocation28_spill] sm:$0xff]  ;;  %v4449_v25 = vsub.f32 1.0, %v8435_v14 }
 0x5b8   : > { %4985 = vrot.lane.b32.xlu1 %v4890_v41, %s6081_s25  ;;  %v4479_v41 = vmul.f32 %v4447_v55, %v9553_v35  ;;  %v4641_v28 = vmul.f32 %v9556_v61, %v4609_v46  ;;  %v4611_v16 = vmul.f32 %v9542_v37, %v8762_v33  ;;  %v4450_v10 = vsub.f32 1.0, %v8449_v62  ;;  %v9559_v33 = vld [vmem:[#allocation13_spill] sm:$0xff] }
 0x5b9   : > { %v4670_v7 = vadd.f32 %v4638_v52, %v4478_v20  ;;  %v4481_v22 = vmul.f32 %v4449_v25, %v9557_v59  ;;  %v4642_v38 = vmul.f32 %v9558_v19, %v4610_v4  ;;  %v4612_v14 = vmul.f32 %v9543_v2, %v8764_v51  ;;  %v9561_v51 = vld [vmem:[#allocation12_spill] sm:$0xff] }
 0x5ba   : > { %5051 = vrot.lane.b32.xlu0 %v4667_v26, %s6082_s26  ;;  %v4480_v26 = vmul.f32 %v4448_v40, %v9555_v11  ;;  %v4671_v15 = vadd.f32 %v4639_v34, %v4479_v41  ;;  %v4451_v52 = vsub.f32 1.0, %v9542_v37  ;;  %v4482_v5 = vmul.f32 %v4450_v10, %v8545_v45  ;;  %v9562_v40 = vld [vmem:[#allocation36_spill] sm:$0xff] }
 0x5bb   : > { %v4673_v55 = vadd.f32 %v4641_v28, %v4481_v22  ;;  %v4643_v32 = vmul.f32 %v9559_v33, %v4611_v16  ;;  %v4613_v62 = vmul.f32 %v8469_v39, %v8766_v56  ;;  %v4452_v20 = vsub.f32 1.0, %v9543_v2  ;;  %v9563_v56 = vld [vmem:[#allocation14_spill] sm:$0xff]  ;;  %v9571_v33 = vld [vmem:[#allocation45_spill] sm:$0xff] }
 0x5bc   : > { %5053 = vrot.lane.b32.xlu1 %v4668_v47, %s6082_s26  ;;  %v4672_v47 = vadd.f32 %v4640_v48, %v4480_v26  ;;  %v4674_v34 = vadd.f32 %v4642_v38, %v4482_v5  ;;  %v4644_v46 = vmul.f32 %v9561_v51, %v4612_v14  ;;  %v4614_v37 = vmul.f32 %v8480_v50, %v8768_v24  ;;  %v9564_v48 = vld [vmem:[#allocation39_spill] sm:$0xff] }
 0x5bd   : > { %v4453_v45 = vsub.f32 1.0, %v8469_v39  ;;  %v4484_v35 = vmul.f32 %v4452_v20, %v9562_v40  ;;  %v4615_v2 = vmul.f32 %v8489_v43, %v8770_v17  ;;  %v9565_v24 = vld [vmem:[#allocation15_spill] sm:$0xff]  ;;  %v4616_v39 = vmul.f32 %v8492_v8, %v8772_v44  ;;  %v9567_v17 = vld [vmem:[#allocation16_spill] sm:$0xff] }
 0x5be   : > { %5055 = vrot.lane.b32.xlu0 %v4669_v29, %s6082_s26  ;;  %v9560_v29 = vld [vmem:[#allocation50_spill] sm:$0xff]  ;;  %v4646_v11 = vmul.f32 %v9565_v24, %v4614_v37  ;;  %v4455_v26 = vsub.f32 1.0, %v8489_v43  ;;  %v4617_v50 = vmul.f32 %v8499_v27, %v8774_v42  ;;  %v4456_v10 = vsub.f32 1.0, %v8492_v8 }
 0x5bf   : > { %v4483_v3 = vmul.f32 %v4451_v52, %v9560_v29  ;;  %v4485_v4 = vmul.f32 %v4453_v45, %v9564_v48  ;;  %v4676_v25 = vadd.f32 %v4644_v46, %v4484_v35  ;;  %v4647_v16 = vmul.f32 %v9567_v17, %v4615_v2  ;;  %v9568_v42 = vld [vmem:[#allocation18_spill] sm:$0xff]  ;;  %v9573_v29 = vld [vmem:[#allocation72_spill] sm:$0xff]  ;;  %v9575_v46 = vld [vmem:[#allocation21_spill] sm:$0xff] }
 0x5c0   : > { %5057 = vrot.lane.b32.xlu1 %v4670_v7, %s6082_s26  ;;  %v4645_v7 = vmul.f32 %v9563_v56, %v4613_v62  ;;  %v4487_v59 = vmul.f32 %v4455_v26, %v8587_v1  ;;  %v4648_v44 = vmul.f32 %v9485_v57, %v4616_v39  ;;  %v4618_v43 = vmul.f32 %v8504_v0, %v8776_v60  ;;  %v9569_v60 = vld [vmem:[#allocation19_spill] sm:$0xff]  ;;  %v9576_v45 = vld [vmem:[#allocation73_spill] sm:$0xff] }
 0x5c1   : > { %v4675_v41 = vadd.f32 %v4643_v32, %v4483_v3  ;;  %v4488_v19 = vmul.f32 %v4456_v10, %v8596_v49  ;;  %v4649_v14 = vmul.f32 %v9568_v42, %v4617_v50  ;;  %v4619_v8 = vmul.f32 %v8512_v58, %v8778_v18  ;;  %v9572_v18 = vld [vmem:[#allocation20_spill] sm:$0xff]  ;;  %v9574_v3 = vld [vmem:[#allocation47_spill] sm:$0xff]  ;;  %v9577_v35 = vld [vmem:[#allocation17_spill] sm:$0xff] }
 0x5c2   : > { %5059 = vrot.lane.b32.xlu0 %v4671_v15, %s6082_s26  ;;  %v9566_v15 = vld [vmem:[#allocation41_spill] sm:$0xff]  ;;  %v4677_v28 = vadd.f32 %v4645_v7, %v4485_v4  ;;  %v4679_v38 = vadd.f32 %v4647_v16, %v4487_v59  ;;  %v4458_v1 = vsub.f32 1.0, %v8504_v0  ;;  %v4650_v5 = vmul.f32 %v9569_v60, %v4618_v43  ;;  %v9578_v7 = vld [vmem:[#allocation22_spill] sm:$0xff]  ;;  %v9580_v4 = vld [vmem:[#allocation52_spill] sm:$0xff] }
 0x5c3   : > { %v4486_v61 = vmul.f32 %v4454_v13, %v9566_v15  ;;  %v4680_v52 = vadd.f32 %v4648_v44, %v4488_v19  ;;  %v4459_v49 = vsub.f32 1.0, %v8512_v58  ;;  %v4651_v20 = vmul.f32 %v9572_v18, %v4619_v8  ;;  %v9579_v13 = vld [vmem:[#allocation74_spill] sm:$0xff]  ;;  %v9582_v26 = vld [vmem:[#allocation75_spill] sm:$0xff]  ;;  %v9584_v16 = vld [vmem:[#allocation24_spill] sm:$0xff] }
 0x5c4   : > { %5061 = vrot.lane.b32.xlu1 %v4672_v47, %s6082_s26  ;;  %v4457_v47 = vsub.f32 1.0, %v8499_v27  ;;  %v4490_v32 = vmul.f32 %v4458_v1, %v9571_v33  ;;  %v4621_v0 = vmul.f32 %v8528_v6, %v9573_v29  ;;  %v4622_v58 = vmul.f32 %v8538_v63, %v9576_v45  ;;  %v9585_v10 = vld [vmem:[#allocation76_spill] sm:$0xff]  ;;  %v9591_v60 = vld [vmem:[#allocation78_spill] sm:$0xff]  ;;  %v9593_v33 = vld [vmem:[#allocation29_spill] sm:$0xff] }
 0x5c5   : > { %v4678_v22 = vadd.f32 %v4646_v11, %v4486_v61  ;;  %v4461_v40 = vsub.f32 1.0, %v8528_v6  ;;  %v4462_v48 = vsub.f32 1.0, %v8538_v63  ;;  %v9581_v11 = vld [vmem:[#allocation23_spill] sm:$0xff]  ;;  %v4624_v6 = vmul.f32 %v8558_v12, %v9582_v26  ;;  %v9583_v61 = vld [vmem:[#allocation53_spill] sm:$0xff]  ;;  %v9596_v29 = vld [vmem:[#allocation60_spill] sm:$0xff] }
 0x5c6   : > { %5063 = vrot.lane.b32.xlu0 %v4673_v55, %s6082_s26  ;;  %v4489_v57 = vmul.f32 %v4457_v47, %v8603_v9  ;;  %v9570_v55 = vld [vmem:[#allocation71_spill] sm:$0xff]  ;;  %v4460_v9 = vsub.f32 1.0, %v8517_v53  ;;  %v4682_v51 = vadd.f32 %v4650_v5, %v4490_v32  ;;  %v4653_v2 = vmul.f32 %v9578_v7, %v4621_v0  ;;  %v9587_v47 = vld [vmem:[#allocation25_spill] sm:$0xff]  ;;  %v9600_v45 = vld [vmem:[#allocation62_spill] sm:$0xff] }
 0x5c7   : > { %v4620_v27 = vmul.f32 %v8517_v53, %v9570_v55  ;;  %v4623_v53 = vmul.f32 %v8541_v31, %v9579_v13  ;;  %v4654_v39 = vmul.f32 %v9581_v11, %v4622_v58  ;;  %v4463_v15 = vsub.f32 1.0, %v8541_v31  ;;  %v9592_v55 = vld [vmem:[#allocation58_spill] sm:$0xff]  ;;  %v9595_v18 = vld [vmem:[#allocation55_spill] sm:$0xff]  ;;  %v9607_v11 = vld [vmem:[#allocation61_spill] sm:$0xff] }
 0x5c8   : > { %5065 = vrot.lane.b32.xlu1 %v4674_v34, %s6082_s26  ;;  %v4681_v62 = vadd.f32 %v4649_v14, %v4489_v57  ;;  %v4491_v34 = vmul.f32 %v4459_v49, %v9574_v3  ;;  %v4625_v63 = vmul.f32 %v8568_v54, %v9585_v10  ;;  %v4464_v59 = vsub.f32 1.0, %v8558_v12  ;;  %v9589_v14 = vld [vmem:[#allocation56_spill] sm:$0xff]  ;;  %v9590_v57 = vld [vmem:[#allocation27_spill] sm:$0xff] }
 0x5c9   : > { %v4652_v37 = vmul.f32 %v9575_v46, %v4620_v27  ;;  %v4655_v50 = vmul.f32 %v9584_v16, %v4623_v53  ;;  %v4656_v19 = vmul.f32 %v9587_v47, %v4624_v6  ;;  %v4465_v42 = vsub.f32 1.0, %v8568_v54  ;;  %v9597_v3 = vld [vmem:[#allocation31_spill] sm:$0xff]  ;;  %v9599_v46 = vld [vmem:[#allocation57_spill] sm:$0xff]  ;;  %v9608_v6 = vld [vmem:[#allocation64_spill] sm:$0xff] }
 0x5ca   : > { %5067 = vrot.lane.b32.xlu0 %v4675_v41, %s6082_s26  ;;  %v4492_v41 = vmul.f32 %v4460_v9, %v9577_v35  ;;  %v4683_v56 = vadd.f32 %v4651_v20, %v4491_v34  ;;  %v4496_v8 = vmul.f32 %v4464_v59, %v9589_v14  ;;  %v4627_v12 = vmul.f32 %v8644_v21, %v9591_v60  ;;  %v9601_v35 = vld [vmem:[#allocation34_spill] sm:$0xff]  ;;  %v9603_v7 = vld [vmem:[#allocation59_spill] sm:$0xff]  ;;  %v9613_v47 = vld [vmem:[#allocation84_spill] sm:$0xff] }
 0x5cb   : > { %v4466_v5 = vsub.f32 1.0, %v8621_v36  ;;  %v4497_v27 = vmul.f32 %v4465_v42, %v9592_v55  ;;  %v4467_v20 = vsub.f32 1.0, %v8644_v21  ;;  %v9604_v13 = vld [vmem:[#allocation63_spill] sm:$0xff]  ;;  %v4470_v26 = vsub.f32 1.0, %v9603_v7  ;;  %v9617_v60 = vld [vmem:[#allocation85_spill] sm:$0xff] }
 0x5cc   : > { %5069 = vrot.lane.b32.xlu1 %v4676_v25, %s6082_s26  ;;  %v4493_v25 = vmul.f32 %v4461_v40, %v9580_v4  ;;  %v4684_v24 = vadd.f32 %v4652_v37, %v4492_v41  ;;  %v4688_v49 = vadd.f32 %v4656_v19, %v4496_v8  ;;  %v4659_v34 = vmul.f32 %v9597_v3, %v4627_v12  ;;  %v9605_v4 = vld [vmem:[#allocation37_spill] sm:$0xff]  ;;  %v9610_v16 = vld [vmem:[#allocation83_spill] sm:$0xff] }
 0x5cd   : > { %v4498_v0 = vmul.f32 %v4466_v5, %v9596_v29  ;;  %v4468_v37 = vsub.f32 1.0, %v9595_v18  ;;  %v4499_v58 = vmul.f32 %v4467_v20, %v9600_v45  ;;  %v4471_v10 = vsub.f32 1.0, %v9607_v11  ;;  %v9614_v19 = vld [vmem:[#allocation65_spill] sm:$0xff]  ;;  %v9615_v14 = vld [vmem:[#allocation67_spill] sm:$0xff] }
 0x5ce   : > { %5071 = vrot.lane.b32.xlu0 %v4677_v28, %s6082_s26  ;;  %v4494_v28 = vmul.f32 %v4462_v48, %v9583_v61  ;;  %v4685_v17 = vadd.f32 %v4653_v2, %v4493_v25  ;;  %v4469_v2 = vsub.f32 1.0, %v9599_v46  ;;  %v4472_v42 = vsub.f32 1.0, %v8689_v30 }
 0x5cf   : > { %v4500_v53 = vmul.f32 %v4468_v37, %v9604_v13  ;;  %v4691_v48 = vadd.f32 %v4659_v34, %v4499_v58  ;;  %v4503_v8 = vmul.f32 %v4471_v10, %v9615_v14  ;;  %v4634_v12 = vmul.f32 %v8714_v23, %v9617_v60  ;;  %v9622_v34 = vld [vmem:[#allocation70_spill] sm:$0xff] }
 0x5d0   : > { %5073 = vrot.lane.b32.xlu1 %v4678_v22, %s6082_s26  ;;  %v9586_v22 = vld [vmem:[#allocation54_spill] sm:$0xff]  ;;  %v4686_v43 = vadd.f32 %v4654_v39, %v4494_v28  ;;  %v9609_v28 = vld [vmem:[#allocation40_spill] sm:$0xff]  ;;  %v4473_v55 = vsub.f32 1.0, %v9614_v19  ;;  %v4474_v20 = vsub.f32 1.0, %v8714_v23 }
 0x5d1   : > { %v4495_v44 = vmul.f32 %v4463_v15, %v9586_v22  ;;  %v4501_v15 = vmul.f32 %v4469_v2, %v9608_v6 }
 0x5d2   : > { %5075 = vrot.lane.b32.xlu0 %v4679_v38, %s6082_s26  ;;  %v9588_v38 = vld [vmem:[#allocation77_spill] sm:$0xff] }
 0x5d3   : > { %v4626_v31 = vmul.f32 %v8621_v36, %v9588_v38  ;;  %v4687_v1 = vadd.f32 %v4655_v50, %v4495_v44  ;;  %v4632_v50 = vmul.f32 %v8689_v30, %v9610_v16  ;;  %v9612_v44 = vld [vmem:[#allocation43_spill] sm:$0xff]  ;;  %v4633_v38 = vmul.f32 %v9614_v19, %v9613_v47  ;;  %v9620_v30 = vld [vmem:[#allocation69_spill] sm:$0xff] }
 0x5d4   : > { %5077 = vrot.lane.b32.xlu1 %v4680_v52, %s6082_s26  ;;  %v4657_v52 = vmul.f32 %v9590_v57, %v4625_v63  ;;  %v9611_v63 = vld [vmem:[#allocation66_spill] sm:$0xff] }
 0x5d5   : > { %v4658_v32 = vmul.f32 %v9593_v33, %v4626_v31  ;;  %v4502_v59 = vmul.f32 %v4470_v26, %v9611_v63  ;;  %v9616_v57 = vld [vmem:[#allocation46_spill] sm:$0xff] }
 0x5d6   : > { %5079 = vrot.lane.b32.xlu0 %v4681_v62, %s6082_s26  ;;  %v9594_v62 = vld [vmem:[#allocation79_spill] sm:$0xff]  ;;  %v4689_v9 = vadd.f32 %v4657_v52, %v4497_v27  ;;  %v4664_v52 = vmul.f32 %v9616_v57, %v4632_v50  ;;  %v9618_v27 = vld [vmem:[#allocation68_spill] sm:$0xff] }
 0x5d7   : > { %v4628_v54 = vmul.f32 %v9595_v18, %v9594_v62  ;;  %v4690_v40 = vadd.f32 %v4658_v32, %v4498_v0  ;;  %v9619_v32 = vld [vmem:[#allocation48_spill] sm:$0xff]  ;;  %v9621_v0 = vld [vmem:[#allocation49_spill] sm:$0xff] }
 0x5d8   : > { %5081 = vrot.lane.b32.xlu1 %v4682_v51, %s6082_s26  ;;  %v9598_v51 = vld [vmem:[#allocation80_spill] sm:$0xff]  ;;  %v4665_v62 = vmul.f32 %v9619_v32, %v4633_v38 }
 0x5d9   : > { %v4629_v36 = vmul.f32 %v9599_v46, %v9598_v51  ;;  %v4660_v41 = vmul.f32 %v9601_v35, %v4628_v54  ;;  %v4505_v54 = vmul.f32 %v4473_v55, %v9620_v30  ;;  %v4506_v51 = vmul.f32 %v4474_v20, %v9622_v34 }
 0x5da   : > { %5083 = vrot.lane.b32.xlu0 %v4683_v56, %s6082_s26  ;;  %v9602_v56 = vld [vmem:[#allocation81_spill] sm:$0xff] }
 0x5db   : > { %v4630_v21 = vmul.f32 %v9603_v7, %v9602_v56  ;;  %v4661_v25 = vmul.f32 %v9605_v4, %v4629_v36  ;;  %v4692_v61 = vadd.f32 %v4660_v41, %v4500_v53  ;;  %v4697_v46 = vadd.f32 %v4665_v62, %v4505_v54 }
 0x5dc   : > { %5085 = vrot.lane.b32.xlu1 %v4684_v24, %s6082_s26  ;;  %v9606_v24 = vld [vmem:[#allocation82_spill] sm:$0xff] }
 0x5dd   : > { %v4631_v39 = vmul.f32 %v9607_v11, %v9606_v24  ;;  %v4693_v22 = vadd.f32 %v4661_v25, %v4501_v15 }
 0x5de   : > { %5087 = vrot.lane.b32.xlu0 %v4685_v17, %s6082_s26  ;;  %v4662_v17 = vmul.f32 %v9609_v28, %v4630_v21 }
 0x5e0   : > { %5089 = vrot.lane.b32.xlu1 %v4686_v43, %s6082_s26  ;;  %v4663_v43 = vmul.f32 %v9612_v44, %v4631_v39 }
 0x5e2   : > { %5091 = vrot.lane.b32.xlu0 %v4687_v1, %s6082_s26  ;;  %v4694_v1 = vadd.f32 %v4662_v17, %v4502_v59  ;;  %v4695_v33 = vadd.f32 %v4663_v43, %v4503_v8 }
 0x5e4   : > { %5093 = vrot.lane.b32.xlu1 %v4688_v49, %s6082_s26  ;;  %v4504_v49 = vmul.f32 %v4472_v42, %v9618_v27 }
 0x5e6   : > { %5095 = vrot.lane.b32.xlu0 %v4689_v9, %s6082_s26  ;;  %v4696_v29 = vadd.f32 %v4664_v52, %v4504_v49  ;;  %v4666_v9 = vmul.f32 %v9621_v0, %v4634_v12 }
 0x5e8   : > { %5097 = vrot.lane.b32.xlu1 %v4690_v40, %s6082_s26  ;;  %v4698_v37 = vadd.f32 %v4666_v9, %v4506_v51 }
 0x5ea   : > { %5099 = vrot.lane.b32.xlu0 %v4691_v48, %s6082_s26 }
 0x5ec   : > { %v4924_v31 = vpop.permute.xlu0 %4923  ;;  %5101 = vrot.lane.b32.xlu1 %v4692_v61, %s6082_s26 }
 0x5ee   : > { %5103 = vrot.lane.b32.xlu0 %v4693_v22, %s6082_s26  ;;  %v4926_v5 = vpop.permute.xlu1 %4925 }
 0x5f0   : > { %v4928_v18 = vpop.permute.xlu0 %4927  ;;  %5105 = vrot.lane.b32.xlu1 %v4694_v1, %s6082_s26 }
 0x5f2   : > { %5107 = vrot.lane.b32.xlu0 %v4695_v33, %s6082_s26  ;;  %v4930_v3 = vpop.permute.xlu1 %4929 }
 0x5f4   : > { %v4932_v36 = vpop.permute.xlu0 %4931  ;;  %5109 = vrot.lane.b32.xlu1 %v4696_v29, %s6082_s26 }
 0x5f6   : > { %5111 = vrot.lane.b32.xlu0 %v4697_v46, %s6082_s26  ;;  %v4934_v45 = vpop.permute.xlu1 %4933 }
 0x5f8   : > { %v4936_v58 = vpop.permute.xlu0 %4935  ;;  %5113 = vrot.lane.b32.xlu1 %v4698_v37, %s6082_s26 }
 0x5fa   : > { %v4938_v23 = vpop.permute.xlu1 %4937 }
 0x5fc   : > { %v4940_v40 = vpop.permute.xlu0 %4939 }
 0x5fe   : > { %v4942_v35 = vpop.permute.xlu1 %4941 }
 0x600   : > { %v4944_v41 = vpop.permute.xlu0 %4943 }
 0x602   : > { %v4946_v56 = vpop.permute.xlu1 %4945 }
 0x604   : > { %v4948_v7 = vpop.permute.xlu0 %4947 }
 0x606   : > { %v9066_v21 = vpop.permute.xlu1 %4949 }
 0x608   : > { %v9068_v2 = vpop.permute.xlu0 %4951 }
 0x60a   : > { %v9070_v13 = vpop.permute.xlu1 %4953 }
 0x60c   : > { %v9072_v53 = vpop.permute.xlu0 %4955 }
 0x60e   : > { %v9074_v48 = vpop.permute.xlu1 %4957 }
 0x610   : > { %v9076_v4 = vpop.permute.xlu0 %4959 }
 0x612   : > { %v9078_v25 = vpop.permute.xlu1 %4961 }
 0x614   : > { %v9080_v24 = vpop.permute.xlu0 %4963 }
 0x616   : > { %v9082_v11 = vpop.permute.xlu1 %4965 }
 0x618   : > { %v9084_v39 = vpop.permute.xlu0 %4967 }
 0x61a   : > { %v9086_v26 = vpop.permute.xlu1 %4969 }
 0x61c   : > { %v9088_v6 = vpop.permute.xlu0 %4971 }
 0x61e   : > { %v9090_v15 = vpop.permute.xlu1 %4973 }
 0x620   : > { %v9092_v61 = vpop.permute.xlu0 %4975 }
 0x622   : > { %v9094_v28 = vpop.permute.xlu1 %4977 }
 0x624   : > { %v9096_v17 = vpop.permute.xlu0 %4979 }
 0x626   : > { %v9098_v16 = vpop.permute.xlu1 %4981 }
 0x628   : > { %v9100_v50 = vpop.permute.xlu0 %4983 }
 0x62a   : > { %v9102_v10 = vpop.permute.xlu1 %4985 }
 0x62c   : > { %v5052_v63 = vpop.permute.xlu0 %5051 }
 0x62d   : > { %v5148_v59 = vsel %vm5147_vm2, %v4924_v31, %v5052_v63 }
 0x62e   : > { %5181 = vst.msk [vmem:[%s9108_s30] sm:$0xff] %vm5180_vm3, %v5148_v59  ;;  %v5054_v22 = vpop.permute.xlu1 %5053 }
 0x62f   : > { %v5149_v44 = vsel %vm5147_vm2, %v4926_v5, %v5054_v22 }
 0x630   : > { %v5056_v43 = vpop.permute.xlu0 %5055  ;;  %5182 = vst.msk [vmem:[%s9108_s30 + $0x8] sm:$0xff] %vm5180_vm3, %v5149_v44 }
 0x631   : > { %v5150_v47 = vsel %vm5147_vm2, %v4928_v18, %v5056_v43 }
 0x632   : > { %5183 = vst.msk [vmem:[%s9108_s30 + $0x10] sm:$0xff] %vm5180_vm3, %v5150_v47  ;;  %v5058_v19 = vpop.permute.xlu1 %5057 }
 0x633   : > { %v5151_v38 = vsel %vm5147_vm2, %v4930_v3, %v5058_v19 }
 0x634   : > { %v5060_v31 = vpop.permute.xlu0 %5059  ;;  %5184 = vst.msk [vmem:[%s9108_s30 + $0x18] sm:$0xff] %vm5180_vm3, %v5151_v38 }
 0x635   : > { %v5152_v42 = vsel %vm5147_vm2, %v4932_v36, %v5060_v31 }
 0x636   : > { %5185 = vst.msk [vmem:[%s9108_s30 + $0x20] sm:$0xff] %vm5180_vm3, %v5152_v42  ;;  %v5062_v14 = vpop.permute.xlu1 %5061 }
 0x637   : > { %v5153_v8 = vsel %vm5147_vm2, %v4934_v45, %v5062_v14 }
 0x638   : > { %v5064_v1 = vpop.permute.xlu0 %5063  ;;  %5186 = vst.msk [vmem:[%s9108_s30 + $0x28] sm:$0xff] %vm5180_vm3, %v5153_v8 }
 0x639   : > { %v5154_v57 = vsel %vm5147_vm2, %v4936_v58, %v5064_v1 }
 0x63a   : > { %5187 = vst.msk [vmem:[%s9108_s30 + $0x30] sm:$0xff] %vm5180_vm3, %v5154_v57  ;;  %v5066_v52 = vpop.permute.xlu1 %5065 }
 0x63b   : > { %v5155_v60 = vsel %vm5147_vm2, %v4938_v23, %v5066_v52 }
 0x63c   : > { %v5068_v12 = vpop.permute.xlu0 %5067  ;;  %5188 = vst.msk [vmem:[%s9108_s30 + $0x38] sm:$0xff] %vm5180_vm3, %v5155_v60 }
 0x63d   : > { %v5156_v5 = vsel %vm5147_vm2, %v4940_v40, %v5068_v12 }
 0x63e   : > { %5189 = vst.msk [vmem:[%s9108_s30 + $0x40] sm:$0xff] %vm5180_vm3, %v5156_v5  ;;  %v5070_v55 = vpop.permute.xlu1 %5069 }
 0x63f   : > { %v5157_v27 = vsel %vm5147_vm2, %v4942_v35, %v5070_v55 }
 0x640   : > { %v5072_v49 = vpop.permute.xlu0 %5071  ;;  %5190 = vst.msk [vmem:[%s9108_s30 + $0x48] sm:$0xff] %vm5180_vm3, %v5157_v27 }
 0x641   : > { %v5158_v33 = vsel %vm5147_vm2, %v4944_v41, %v5072_v49 }
 0x642   : > { %5191 = vst.msk [vmem:[%s9108_s30 + $0x50] sm:$0xff] %vm5180_vm3, %v5158_v33  ;;  %v5074_v32 = vpop.permute.xlu1 %5073 }
 0x643   : > { %v5159_v62 = vsel %vm5147_vm2, %v4946_v56, %v5074_v32 }
 0x644   : > { %v5076_v18 = vpop.permute.xlu0 %5075  ;;  %5192 = vst.msk [vmem:[%s9108_s30 + $0x58] sm:$0xff] %vm5180_vm3, %v5159_v62 }
 0x645   : > { %v5160_v30 = vsel %vm5147_vm2, %v4948_v7, %v5076_v18 }
 0x646   : > { %5193 = vst.msk [vmem:[%s9108_s30 + $0x60] sm:$0xff] %vm5180_vm3, %v5160_v30  ;;  %v5078_v54 = vpop.permute.xlu1 %5077 }
 0x647   : > { %v5161_v20 = vsel %vm5147_vm2, %v9066_v21, %v5078_v54 }
 0x648   : > { %v5080_v29 = vpop.permute.xlu0 %5079  ;;  %5194 = vst.msk [vmem:[%s9108_s30 + $0x68] sm:$0xff] %vm5180_vm3, %v5161_v20 }
 0x649   : > { %v5162_v0 = vsel %vm5147_vm2, %v9068_v2, %v5080_v29 }
 0x64a   : > { %5195 = vst.msk [vmem:[%s9108_s30 + $0x70] sm:$0xff] %vm5180_vm3, %v5162_v0  ;;  %v5082_v9 = vpop.permute.xlu1 %5081 }
 0x64b   : > { %v5163_v3 = vsel %vm5147_vm2, %v9070_v13, %v5082_v9 }
 0x64c   : > { %v5084_v34 = vpop.permute.xlu0 %5083  ;;  %5196 = vst.msk [vmem:[%s9108_s30 + $0x78] sm:$0xff] %vm5180_vm3, %v5163_v3 }
 0x64d   : > { %v5164_v51 = vsel %vm5147_vm2, %v9072_v53, %v5084_v34 }
 0x64e   : > { %5197 = vst.msk [vmem:[%s9108_s30 + $0x80] sm:$0xff] %vm5180_vm3, %v5164_v51  ;;  %v5086_v46 = vpop.permute.xlu1 %5085 }
 0x64f   : > { %v5165_v36 = vsel %vm5147_vm2, %v9074_v48, %v5086_v46 }
 0x650   : > { %v5088_v37 = vpop.permute.xlu0 %5087  ;;  %5198 = vst.msk [vmem:[%s9108_s30 + $0x88] sm:$0xff] %vm5180_vm3, %v5165_v36 }
 0x651   : > { %v5166_v45 = vsel %vm5147_vm2, %v9076_v4, %v5088_v37 }
 0x652   : > { %5199 = vst.msk [vmem:[%s9108_s30 + $0x90] sm:$0xff] %vm5180_vm3, %v5166_v45  ;;  %v5090_v58 = vpop.permute.xlu1 %5089 }
 0x653   : > { %v5167_v23 = vsel %vm5147_vm2, %v9078_v25, %v5090_v58 }
 0x654   : > { %v5092_v40 = vpop.permute.xlu0 %5091  ;;  %5200 = vst.msk [vmem:[%s9108_s30 + $0x98] sm:$0xff] %vm5180_vm3, %v5167_v23 }
 0x655   : > { %v5168_v35 = vsel %vm5147_vm2, %v9080_v24, %v5092_v40 }
 0x656   : > { %5201 = vst.msk [vmem:[%s9108_s30 + $0xa0] sm:$0xff] %vm5180_vm3, %v5168_v35  ;;  %v5094_v41 = vpop.permute.xlu1 %5093 }
 0x657   : > { %v5169_v56 = vsel %vm5147_vm2, %v9082_v11, %v5094_v41 }
 0x658   : > { %v5096_v7 = vpop.permute.xlu0 %5095  ;;  %5202 = vst.msk [vmem:[%s9108_s30 + $0xa8] sm:$0xff] %vm5180_vm3, %v5169_v56 }
 0x659   : > { %v5170_v21 = vsel %vm5147_vm2, %v9084_v39, %v5096_v7 }
 0x65a   : > { %5203 = vst.msk [vmem:[%s9108_s30 + $0xb0] sm:$0xff] %vm5180_vm3, %v5170_v21  ;;  %v5098_v2 = vpop.permute.xlu1 %5097 }
 0x65b   : > { %v5171_v13 = vsel %vm5147_vm2, %v9086_v26, %v5098_v2 }
 0x65c   : > { %v5100_v53 = vpop.permute.xlu0 %5099  ;;  %5204 = vst.msk [vmem:[%s9108_s30 + $0xb8] sm:$0xff] %vm5180_vm3, %v5171_v13 }
 0x65d   : > { %v5172_v48 = vsel %vm5147_vm2, %v9088_v6, %v5100_v53 }
 0x65e   : > { %5205 = vst.msk [vmem:[%s9108_s30 + $0xc0] sm:$0xff] %vm5180_vm3, %v5172_v48  ;;  %v5102_v4 = vpop.permute.xlu1 %5101 }
 0x65f   : > { %v5173_v25 = vsel %vm5147_vm2, %v9090_v15, %v5102_v4 }
 0x660   : > { %v5104_v24 = vpop.permute.xlu0 %5103  ;;  %5206 = vst.msk [vmem:[%s9108_s30 + $0xc8] sm:$0xff] %vm5180_vm3, %v5173_v25 }
 0x661   : > { %v5174_v11 = vsel %vm5147_vm2, %v9092_v61, %v5104_v24 }
 0x662   : > { %5207 = vst.msk [vmem:[%s9108_s30 + $0xd0] sm:$0xff] %vm5180_vm3, %v5174_v11  ;;  %v5106_v39 = vpop.permute.xlu1 %5105 }
 0x663   : > { %v5175_v26 = vsel %vm5147_vm2, %v9094_v28, %v5106_v39 }
 0x664   : > { %v5108_v6 = vpop.permute.xlu0 %5107  ;;  %5208 = vst.msk [vmem:[%s9108_s30 + $0xd8] sm:$0xff] %vm5180_vm3, %v5175_v26 }
 0x665   : > { %v5176_v15 = vsel %vm5147_vm2, %v9096_v17, %v5108_v6 }
 0x666   : > { %5209 = vst.msk [vmem:[%s9108_s30 + $0xe0] sm:$0xff] %vm5180_vm3, %v5176_v15  ;;  %v5110_v63 = vpop.permute.xlu1 %5109 }
 0x667   : > { %v5177_v59 = vsel %vm5147_vm2, %v9098_v16, %v5110_v63 }
 0x668   : > { %v5112_v61 = vpop.permute.xlu0 %5111  ;;  %5210 = vst.msk [vmem:[%s9108_s30 + $0xe8] sm:$0xff] %vm5180_vm3, %v5177_v59 }
 0x669   : > { %v5178_v22 = vsel %vm5147_vm2, %v9100_v50, %v5112_v61 }
 0x66a   : > { %5211 = vst.msk [vmem:[%s9108_s30 + $0xf0] sm:$0xff] %vm5180_vm3, %v5178_v22  ;;  %v5114_v28 = vpop.permute.xlu1 %5113 }
 0x66b   : > { %v5179_v44 = vsel %vm5147_vm2, %v9102_v10, %v5114_v28 }
 0x66c   : > { %5212 = vst.msk [vmem:[%s9108_s30 + $0xf8] sm:$0xff] %vm5180_vm3, %v5179_v44 }
 0x66d PF: > { %s17_s24 = sadd.s32 1, %s6066_s24  }
 0x66e   : > { %p14_p4 = scmp.ge.s32.totalorder %s17_s24, 4  }
 0x670   :  { %16 = sbr.rel (!%p14_p4) target bundleno = 1 (0x1), region = 92 }

</bundles_post_ra>
